<compile_context>
chip_gen: v5e
topology: v5e:2x2
jax: 0.10.0
libtpu: 0.0.40
codegen_flags: <defaults>
</compile_context>

<pallas_src>
import jax
import jax.numpy as jnp
from jax.experimental import pallas as pl
from jax.experimental.pallas import tpu as pltpu

# ----------------------------- static geometry ----------------------------- #
LANES = 128          # lane-dense padding for every channel/feature dim
C1_OUT = 28          # conv1 output spatial size (32 - 5 + 1)
P1G = 14             # pooled conv1 grid (28 / 2)
P1_ROWS = P1G * P1G  # 196 compact pooled rows
BANK = 200           # per-pool-offset bank stride (196 rounded up to 8)
X_ROWS = 4 * BANK    # 800 im2col rows per sample (4 pooling banks)
A2_ROWS = 136        # conv2 accumulator rows on the 14-grid (covers 10x10)
K1 = 25 * 3          # conv1 im2col K = 75 (padded to 128 lanes)


# ------------------------------ fused kernel ------------------------------- #
def _net_kernel(x_ref, w1_ref, b1_ref, w2_ref, b2_ref,
                wf1_ref, bf1_ref, wf2_ref, bf2_ref, wf3_ref, bf3_ref,
                out_ref, a1_ref, p1_ref, a2_ref):
    # ---- conv1: single bf16 matmul over the wrapper-built im2col ------------
    a1_ref[...] = jnp.dot(x_ref[...], w1_ref[...],
                          preferred_element_type=jnp.float32)

    # ---- 2x2/2 max-pool over the 4 pooling banks + bias + ReLU --------------
    # (banks are contiguous row ranges -> pure elementwise max, no strides)
    m1 = jnp.maximum(
        jnp.maximum(a1_ref[pl.ds(0 * BANK, P1_ROWS), :],
                    a1_ref[pl.ds(1 * BANK, P1_ROWS), :]),
        jnp.maximum(a1_ref[pl.ds(2 * BANK, P1_ROWS), :],
                    a1_ref[pl.ds(3 * BANK, P1_ROWS), :]))
    p1_ref[...] = jnp.maximum(m1 + b1_ref[...], 0.0)       # compact 14x14 grid

    # ---- conv2: 25 taps on the compact 14-grid (only 136 rows) --------------
    for t in range(25):
        ki, kj = divmod(t, 5)
        lhs = p1_ref[pl.ds(ki * P1G + kj, A2_ROWS), :].astype(jnp.bfloat16)
        v = jnp.dot(lhs, w2_ref[t], preferred_element_type=jnp.float32)
        if t == 0:
            a2_ref[...] = v
        else:
            a2_ref[...] += v

    # ---- 2x2/2 max-pool + bias + ReLU fused with fc1 ------------------------
    # (25 accumulated M=1 dots; avoids the (1,3200) lane-relayout concat)
    h1 = None
    for pos in range(25):
        ph, pw = divmod(pos, 5)
        base = 2 * ph * P1G + 2 * pw
        m2 = jnp.maximum(
            jnp.maximum(a2_ref[pl.ds(base, 1), :],
                        a2_ref[pl.ds(base + 1, 1), :]),
            jnp.maximum(a2_ref[pl.ds(base + P1G, 1), :],
                        a2_ref[pl.ds(base + P1G + 1, 1), :]))
        row = jnp.maximum(m2 + b2_ref[...], 0.0).astype(jnp.bfloat16)
        d = jnp.dot(row, wf1_ref[pos], preferred_element_type=jnp.float32)
        h1 = d if h1 is None else h1 + d

    # ---- fc1 ReLU, fc2 + ReLU, fc3 (lane-dense 128-wide bf16 matmuls) -------
    h1 = jnp.maximum(h1 + bf1_ref[...], 0.0).astype(jnp.bfloat16)
    h2 = jnp.dot(h1, wf2_ref[...], preferred_element_type=jnp.float32)
    h2 = jnp.maximum(h2 + bf2_ref[...], 0.0).astype(jnp.bfloat16)
    h3 = jnp.dot(h2, wf3_ref[...], preferred_element_type=jnp.float32) + bf3_ref[...]
    out_ref[...] = h3


# ------------------------------ forward wrapper ----------------------------- #
def net_forward(x_nchw, packed):
    n = x_nchw.shape[0]

    # One-time layout prep (XLA): im2col for conv1, grouped into 4 pooling
    # banks so the in-kernel pool is contiguous; lanes = (ki*5+kj)*3 + cin.
    xh = jnp.transpose(x_nchw, (0, 2, 3, 1))                       # (n,32,32,3)
    cols = [xh[:, ki:ki + C1_OUT, kj:kj + C1_OUT, :]
            for ki in range(5) for kj in range(5)]
    patches = jnp.concatenate(cols, axis=-1)                       # (n,28,28,75)
    patches = patches.reshape(n, P1G, 2, P1G, 2, K1)               # (n,ph,di,pw,dj,75)
    patches = jnp.transpose(patches, (0, 2, 4, 1, 3, 5))           # (n,di,dj,ph,pw,75)
    patches = patches.reshape(n, 4, P1_ROWS, K1)
    patches = jnp.pad(patches, ((0, 0), (0, 0),
                                (0, BANK - P1_ROWS), (0, LANES - K1)))
    patches = patches.reshape(n, X_ROWS, LANES).astype(jnp.bfloat16)

    c2 = lambda i: (0, 0)
    c3 = lambda i: (0, 0, 0)
    in_specs = [
        pl.BlockSpec((None, X_ROWS, LANES), lambda i: (i, 0, 0)),  # im2col (per sample)
        pl.BlockSpec((LANES, LANES), c2),                          # w1 (75->128 x 6->128)
        pl.BlockSpec((1, LANES), c2),                              # b1
        pl.BlockSpec((25, LANES, LANES), c3),                      # conv2 taps
        pl.BlockSpec((1, LANES), c2),                              # b2
        pl.BlockSpec((25, LANES, LANES), c3),                      # fc1 per pooled position
        pl.BlockSpec((1, LANES), c2),                              # bf1
        pl.BlockSpec((LANES, LANES), c2),                          # fc2
        pl.BlockSpec((1, LANES), c2),                              # bf2
        pl.BlockSpec((LANES, LANES), c2),                          # fc3
        pl.BlockSpec((1, LANES), c2),                              # bf3
    ]
    out = pl.pallas_call(
        _net_kernel,
        out_shape=jax.ShapeDtypeStruct((n, 1, LANES), jnp.float32),
        grid=(n,),
        in_specs=in_specs,
        out_specs=pl.BlockSpec((None, 1, LANES), lambda i: (i, 0, 0)),
        scratch_shapes=[
            pltpu.VMEM((X_ROWS, LANES), jnp.float32),   # conv1 output (banked)
            pltpu.VMEM((P1_ROWS, LANES), jnp.float32),  # compact pooled conv1
            pltpu.VMEM((A2_ROWS, LANES), jnp.float32),  # conv2 accumulator
        ],
        compiler_params=pltpu.CompilerParams(
            dimension_semantics=("parallel",),
            vmem_limit_bytes=32 * 1024 * 1024),
    )(patches, packed["w1"], packed["b1"], packed["w2"], packed["b2"],
      packed["wf1"], packed["bf1"], packed["wf2"], packed["bf2"],
      packed["wf3"], packed["bf3"])
    return out.reshape(n, LANES)[:, :10]


# --------------------------------- params ----------------------------------- #
def init_params(key):
    """Deterministic synthetic parameters in the torch layouts of Net."""
    ks = jax.random.split(key, 10)

    def u(k, shape, fan_in):
        bound = 1.0 / jnp.sqrt(jnp.float32(fan_in))
        return jax.random.uniform(k, shape, jnp.float32, -bound, bound)

    return dict(
        conv1_w=u(ks[0], (6, 3, 5, 5), 3 * 25), conv1_b=u(ks[1], (6,), 3 * 25),
        conv2_w=u(ks[2], (16, 6, 5, 5), 6 * 25), conv2_b=u(ks[3], (16,), 6 * 25),
        fc1_w=u(ks[4], (120, 400), 400), fc1_b=u(ks[5], (120,), 400),
        fc2_w=u(ks[6], (84, 120), 120), fc2_b=u(ks[7], (84,), 120),
        fc3_w=u(ks[8], (10, 84), 84), fc3_b=u(ks[9], (10,), 84),
    )


def pack_params(p):
    """One-time repack: fold layouts, lane-pad to 128, cast matmul weights to bf16."""
    def bias_row(b):
        return jnp.pad(b, (0, LANES - b.shape[0])).reshape(1, LANES).astype(jnp.float32)

    def fc_pad(w):                       # torch (out,in) -> (128,128) [in,out] bf16
        o, i = w.shape
        return jnp.pad(jnp.transpose(w), ((0, LANES - i), (0, LANES - o))).astype(jnp.bfloat16)

    # conv1: (cout,cin,5,5) -> single (128,128), row = (ki*5+kj)*3 + cin, col = cout
    w1 = jnp.transpose(p["conv1_w"], (2, 3, 1, 0)).reshape(K1, 6)
    w1 = jnp.pad(w1, ((0, LANES - K1), (0, LANES - 6))).astype(jnp.bfloat16)

    # conv2: (cout,cin,5,5) -> (25,128,128) per-tap [cin, cout]
    w2 = jnp.transpose(p["conv2_w"], (2, 3, 1, 0)).reshape(25, 6, 16)
    w2 = jnp.pad(w2, ((0, 0), (0, LANES - 6), (0, LANES - 16))).astype(jnp.bfloat16)

    # fc1: torch flatten index = c*25 + pos  ->  wf1[pos, c, out]
    wf1 = jnp.transpose(p["fc1_w"].reshape(120, 16, 25), (2, 1, 0))
    wf1 = jnp.pad(wf1, ((0, 0), (0, LANES - 16), (0, LANES - 120))).astype(jnp.bfloat16)

    return dict(
        w1=w1, b1=bias_row(p["conv1_b"]),
        w2=w2, b2=bias_row(p["conv2_b"]),
        wf1=wf1, bf1=bias_row(p["fc1_b"]),
        wf2=fc_pad(p["fc2_w"]), bf2=bias_row(p["fc2_b"]),
        wf3=fc_pad(p["fc3_w"]), bf3=bias_row(p["fc3_b"]),
    )


# ----------------------- plain-JAX reference (for check) -------------------- #
def reference_forward(x, p):
    def conv(x, w, b):
        y = jax.lax.conv_general_dilated(
            x, w, (1, 1), "VALID", dimension_numbers=("NCHW", "OIHW", "NCHW"))
        return jax.nn.relu(y + b[None, :, None, None])

    def pool(y):
        n, c, h, w = y.shape
        return y.reshape(n, c, h // 2, 2, w // 2, 2).max(axis=(3, 5))

    y = pool(conv(x, p["conv1_w"], p["conv1_b"]))
    y = pool(conv(y, p["conv2_w"], p["conv2_b"]))
    y = y.reshape(y.shape[0], -1)                          # torch.flatten order
    y = jax.nn.relu(y @ p["fc1_w"].T + p["fc1_b"])
    y = jax.nn.relu(y @ p["fc2_w"].T + p["fc2_b"])
    return y @ p["fc3_w"].T + p["fc3_b"]


if __name__ == "__main__":
    key = jax.random.PRNGKey(0)
    pkey, xkey = jax.random.split(key)
    raw_params = init_params(pkey)
    packed_params = pack_params(raw_params)
    # Spatial size 32x32 is forced by fc1 = Linear(16*5*5, 120); small batch=2.
    x = jax.random.normal(xkey, (2, 3, 32, 32), jnp.float32)

    out = jax.jit(net_forward)(x, packed_params)
    out = jax.block_until_ready(out)
    assert out.shape == (2, 10) and out.dtype == jnp.float32

    ref = reference_forward(x, raw_params)
    assert jnp.allclose(out, ref, rtol=2e-2, atol=2e-2), \
        float(jnp.max(jnp.abs(out - ref)))
    print("KERNEL_OK")
</pallas_src>

<mosaic_0001>
module attributes {stable_mosaic.version = 11 : i64} {
  func.func @_net_kernel(%arg0: i32, %arg1: memref<1x800x128xbf16, #tpu.memory_space<vmem>>, %arg2: memref<128x128xbf16, #tpu.memory_space<vmem>>, %arg3: memref<1x128xf32, #tpu.memory_space<vmem>>, %arg4: memref<25x128x128xbf16, #tpu.memory_space<vmem>>, %arg5: memref<1x128xf32, #tpu.memory_space<vmem>>, %arg6: memref<25x128x128xbf16, #tpu.memory_space<vmem>>, %arg7: memref<1x128xf32, #tpu.memory_space<vmem>>, %arg8: memref<128x128xbf16, #tpu.memory_space<vmem>>, %arg9: memref<1x128xf32, #tpu.memory_space<vmem>>, %arg10: memref<128x128xbf16, #tpu.memory_space<vmem>>, %arg11: memref<1x128xf32, #tpu.memory_space<vmem>>, %arg12: memref<1x1x128xf32, #tpu.memory_space<vmem>>, %arg13: memref<800x128xf32, #tpu.memory_space<vmem>>, %arg14: memref<196x128xf32, #tpu.memory_space<vmem>>, %arg15: memref<136x128xf32, #tpu.memory_space<vmem>>) attributes {dimension_semantics = [#tpu.dimension_semantics<parallel>], iteration_bounds = array<i64: 2>, scalar_prefetch = 0 : i64, scratch_operands = 3 : i64, tpu.core_type = #tpu.core_type<tc>, window_params = [{transform_indices = @transform_0, window_bounds = array<i64: 1, 800, 128>}, {pipeline_mode = #tpu.pipeline_mode<synchronous>, transform_indices = @transform_1, window_bounds = array<i64: 128, 128>}, {pipeline_mode = #tpu.pipeline_mode<synchronous>, transform_indices = @transform_2, window_bounds = array<i64: 1, 128>}, {pipeline_mode = #tpu.pipeline_mode<synchronous>, transform_indices = @transform_3, window_bounds = array<i64: 25, 128, 128>}, {pipeline_mode = #tpu.pipeline_mode<synchronous>, transform_indices = @transform_4, window_bounds = array<i64: 1, 128>}, {pipeline_mode = #tpu.pipeline_mode<synchronous>, transform_indices = @transform_5, window_bounds = array<i64: 25, 128, 128>}, {pipeline_mode = #tpu.pipeline_mode<synchronous>, transform_indices = @transform_6, window_bounds = array<i64: 1, 128>}, {pipeline_mode = #tpu.pipeline_mode<synchronous>, transform_indices = @transform_7, window_bounds = array<i64: 128, 128>}, {pipeline_mode = #tpu.pipeline_mode<synchronous>, transform_indices = @transform_8, window_bounds = array<i64: 1, 128>}, {pipeline_mode = #tpu.pipeline_mode<synchronous>, transform_indices = @transform_9, window_bounds = array<i64: 128, 128>}, {pipeline_mode = #tpu.pipeline_mode<synchronous>, transform_indices = @transform_10, window_bounds = array<i64: 1, 128>}, {transform_indices = @transform_11, window_bounds = array<i64: 1, 1, 128>}]} {
    %c0 = arith.constant 0 : index
    %c0_0 = arith.constant 0 : index
    %c0_1 = arith.constant 0 : index
    %0 = vector.load %arg1[%c0, %c0_0, %c0_1] : memref<1x800x128xbf16, #tpu.memory_space<vmem>>, vector<1x800x128xbf16>
    %1 = vector.shape_cast %0 : vector<1x800x128xbf16> to vector<800x128xbf16>
    %c0_2 = arith.constant 0 : index
    %c0_3 = arith.constant 0 : index
    %2 = vector.load %arg2[%c0_2, %c0_3] : memref<128x128xbf16, #tpu.memory_space<vmem>>, vector<128x128xbf16>
    %cst = arith.constant dense<0.000000e+00> : vector<800x128xf32>
    %3 = tpu.matmul %1, %2, %cst {dimension_numbers = #tpu.dot_dimension_numbers<[1], [0], [0], [1], [0, 0, 1, 1], [], []>} : vector<800x128xbf16>, vector<128x128xbf16>, vector<800x128xf32> -> vector<800x128xf32>
    %c0_4 = arith.constant 0 : index
    %c0_5 = arith.constant 0 : index
    %4 = vector.load %arg13[%c0_4, %c0_5] : memref<800x128xf32, #tpu.memory_space<vmem>>, vector<800x128xf32>
    tpu.vector_store %arg13[%c0_4, %c0_5], %3 {strides = array<i32>} : memref<800x128xf32, #tpu.memory_space<vmem>>, vector<800x128xf32>,
    %c0_6 = arith.constant 0 : index
    %c0_7 = arith.constant 0 : index
    %5 = vector.load %arg13[%c0_6, %c0_7] : memref<800x128xf32, #tpu.memory_space<vmem>>, vector<196x128xf32>
    %c200 = arith.constant 200 : index
    %c0_8 = arith.constant 0 : index
    %6 = vector.load %arg13[%c200, %c0_8] : memref<800x128xf32, #tpu.memory_space<vmem>>, vector<196x128xf32>
    %7 = arith.maximumf %5, %6 : vector<196x128xf32>
    %c400 = arith.constant 400 : index
    %c0_9 = arith.constant 0 : index
    %8 = vector.load %arg13[%c400, %c0_9] : memref<800x128xf32, #tpu.memory_space<vmem>>, vector<196x128xf32>
    %c600 = arith.constant 600 : index
    %c0_10 = arith.constant 0 : index
    %9 = vector.load %arg13[%c600, %c0_10] : memref<800x128xf32, #tpu.memory_space<vmem>>, vector<196x128xf32>
    %10 = arith.maximumf %8, %9 : vector<196x128xf32>
    %11 = arith.maximumf %7, %10 : vector<196x128xf32>
    %c0_11 = arith.constant 0 : index
    %c0_12 = arith.constant 0 : index
    %12 = vector.load %arg3[%c0_11, %c0_12] : memref<1x128xf32, #tpu.memory_space<vmem>>, vector<1x128xf32>
    %13 = vector.broadcast %12 : vector<1x128xf32> to vector<196x128xf32>
    %14 = arith.addf %11, %13 : vector<196x128xf32>
    %cst_13 = arith.constant 0.000000e+00 : f32
    %15 = vector.broadcast %cst_13 : f32 to vector<196x128xf32>
    %16 = arith.maximumf %14, %15 : vector<196x128xf32>
    %c0_14 = arith.constant 0 : index
    %c0_15 = arith.constant 0 : index
    %17 = vector.load %arg14[%c0_14, %c0_15] : memref<196x128xf32, #tpu.memory_space<vmem>>, vector<196x128xf32>
    tpu.vector_store %arg14[%c0_14, %c0_15], %16 {strides = array<i32>} : memref<196x128xf32, #tpu.memory_space<vmem>>, vector<196x128xf32>,
    %c0_16 = arith.constant 0 : index
    %c0_17 = arith.constant 0 : index
    %18 = vector.load %arg14[%c0_16, %c0_17] : memref<196x128xf32, #tpu.memory_space<vmem>>, vector<136x128xf32>
    %19 = arith.truncf %18 : vector<136x128xf32> to vector<136x128xbf16>
    %c0_18 = arith.constant 0 : index
    %c0_19 = arith.constant 0 : index
    %c0_20 = arith.constant 0 : index
    %20 = vector.load %arg4[%c0_18, %c0_19, %c0_20] : memref<25x128x128xbf16, #tpu.memory_space<vmem>>, vector<1x128x128xbf16>
    %21 = vector.shape_cast %20 : vector<1x128x128xbf16> to vector<128x128xbf16>
    %cst_21 = arith.constant dense<0.000000e+00> : vector<136x128xf32>
    %22 = tpu.matmul %19, %21, %cst_21 {dimension_numbers = #tpu.dot_dimension_numbers<[1], [0], [0], [1], [0, 0, 1, 1], [], []>} : vector<136x128xbf16>, vector<128x128xbf16>, vector<136x128xf32> -> vector<136x128xf32>
    %c0_22 = arith.constant 0 : index
    %c0_23 = arith.constant 0 : index
    %23 = vector.load %arg15[%c0_22, %c0_23] : memref<136x128xf32, #tpu.memory_space<vmem>>, vector<136x128xf32>
    tpu.vector_store %arg15[%c0_22, %c0_23], %22 {strides = array<i32>} : memref<136x128xf32, #tpu.memory_space<vmem>>, vector<136x128xf32>,
    %c1 = arith.constant 1 : index
    %c0_24 = arith.constant 0 : index
    %24 = vector.load %arg14[%c1, %c0_24] : memref<196x128xf32, #tpu.memory_space<vmem>>, vector<136x128xf32>
    %25 = arith.truncf %24 : vector<136x128xf32> to vector<136x128xbf16>
    %c1_25 = arith.constant 1 : index
    %c0_26 = arith.constant 0 : index
    %c0_27 = arith.constant 0 : index
    %26 = vector.load %arg4[%c1_25, %c0_26, %c0_27] : memref<25x128x128xbf16, #tpu.memory_space<vmem>>, vector<1x128x128xbf16>
    %27 = vector.shape_cast %26 : vector<1x128x128xbf16> to vector<128x128xbf16>
    %cst_28 = arith.constant dense<0.000000e+00> : vector<136x128xf32>
    %28 = tpu.matmul %25, %27, %cst_28 {dimension_numbers = #tpu.dot_dimension_numbers<[1], [0], [0], [1], [0, 0, 1, 1], [], []>} : vector<136x128xbf16>, vector<128x128xbf16>, vector<136x128xf32> -> vector<136x128xf32>
    %c0_29 = arith.constant 0 : index
    %c0_30 = arith.constant 0 : index
    %29 = vector.load %arg15[%c0_29, %c0_30] : memref<136x128xf32, #tpu.memory_space<vmem>>, vector<136x128xf32>
    %30 = arith.addf %29, %28 : vector<136x128xf32>
    %c0_31 = arith.constant 0 : index
    %c0_32 = arith.constant 0 : index
    %31 = vector.load %arg15[%c0_31, %c0_32] : memref<136x128xf32, #tpu.memory_space<vmem>>, vector<136x128xf32>
    tpu.vector_store %arg15[%c0_31, %c0_32], %30 {strides = array<i32>} : memref<136x128xf32, #tpu.memory_space<vmem>>, vector<136x128xf32>,
    %c2 = arith.constant 2 : index
    %c0_33 = arith.constant 0 : index
    %32 = vector.load %arg14[%c2, %c0_33] : memref<196x128xf32, #tpu.memory_space<vmem>>, vector<136x128xf32>
    %33 = arith.truncf %32 : vector<136x128xf32> to vector<136x128xbf16>
    %c2_34 = arith.constant 2 : index
    %c0_35 = arith.constant 0 : index
    %c0_36 = arith.constant 0 : index
    %34 = vector.load %arg4[%c2_34, %c0_35, %c0_36] : memref<25x128x128xbf16, #tpu.memory_space<vmem>>, vector<1x128x128xbf16>
    %35 = vector.shape_cast %34 : vector<1x128x128xbf16> to vector<128x128xbf16>
    %cst_37 = arith.constant dense<0.000000e+00> : vector<136x128xf32>
    %36 = tpu.matmul %33, %35, %cst_37 {dimension_numbers = #tpu.dot_dimension_numbers<[1], [0], [0], [1], [0, 0, 1, 1], [], []>} : vector<136x128xbf16>, vector<128x128xbf16>, vector<136x128xf32> -> vector<136x128xf32>
    %c0_38 = arith.constant 0 : index
    %c0_39 = arith.constant 0 : index
    %37 = vector.load %arg15[%c0_38, %c0_39] : memref<136x128xf32, #tpu.memory_space<vmem>>, vector<136x128xf32>
    %38 = arith.addf %37, %36 : vector<136x128xf32>
    %c0_40 = arith.constant 0 : index
    %c0_41 = arith.constant 0 : index
    %39 = vector.load %arg15[%c0_40, %c0_41] : memref<136x128xf32, #tpu.memory_space<vmem>>, vector<136x128xf32>
    tpu.vector_store %arg15[%c0_40, %c0_41], %38 {strides = array<i32>} : memref<136x128xf32, #tpu.memory_space<vmem>>, vector<136x128xf32>,
    %c3 = arith.constant 3 : index
    %c0_42 = arith.constant 0 : index
    %40 = vector.load %arg14[%c3, %c0_42] : memref<196x128xf32, #tpu.memory_space<vmem>>, vector<136x128xf32>
    %41 = arith.truncf %40 : vector<136x128xf32> to vector<136x128xbf16>
    %c3_43 = arith.constant 3 : index
    %c0_44 = arith.constant 0 : index
    %c0_45 = arith.constant 0 : index
    %42 = vector.load %arg4[%c3_43, %c0_44, %c0_45] : memref<25x128x128xbf16, #tpu.memory_space<vmem>>, vector<1x128x128xbf16>
    %43 = vector.shape_cast %42 : vector<1x128x128xbf16> to vector<128x128xbf16>
    %cst_46 = arith.constant dense<0.000000e+00> : vector<136x128xf32>
    %44 = tpu.matmul %41, %43, %cst_46 {dimension_numbers = #tpu.dot_dimension_numbers<[1], [0], [0], [1], [0, 0, 1, 1], [], []>} : vector<136x128xbf16>, vector<128x128xbf16>, vector<136x128xf32> -> vector<136x128xf32>
    %c0_47 = arith.constant 0 : index
    %c0_48 = arith.constant 0 : index
    %45 = vector.load %arg15[%c0_47, %c0_48] : memref<136x128xf32, #tpu.memory_space<vmem>>, vector<136x128xf32>
    %46 = arith.addf %45, %44 : vector<136x128xf32>
    %c0_49 = arith.constant 0 : index
    %c0_50 = arith.constant 0 : index
    %47 = vector.load %arg15[%c0_49, %c0_50] : memref<136x128xf32, #tpu.memory_space<vmem>>, vector<136x128xf32>
    tpu.vector_store %arg15[%c0_49, %c0_50], %46 {strides = array<i32>} : memref<136x128xf32, #tpu.memory_space<vmem>>, vector<136x128xf32>,
    %c4 = arith.constant 4 : index
    %c0_51 = arith.constant 0 : index
    %48 = vector.load %arg14[%c4, %c0_51] : memref<196x128xf32, #tpu.memory_space<vmem>>, vector<136x128xf32>
    %49 = arith.truncf %48 : vector<136x128xf32> to vector<136x128xbf16>
    %c4_52 = arith.constant 4 : index
    %c0_53 = arith.constant 0 : index
    %c0_54 = arith.constant 0 : index
    %50 = vector.load %arg4[%c4_52, %c0_53, %c0_54] : memref<25x128x128xbf16, #tpu.memory_space<vmem>>, vector<1x128x128xbf16>
    %51 = vector.shape_cast %50 : vector<1x128x128xbf16> to vector<128x128xbf16>
    %cst_55 = arith.constant dense<0.000000e+00> : vector<136x128xf32>
    %52 = tpu.matmul %49, %51, %cst_55 {dimension_numbers = #tpu.dot_dimension_numbers<[1], [0], [0], [1], [0, 0, 1, 1], [], []>} : vector<136x128xbf16>, vector<128x128xbf16>, vector<136x128xf32> -> vector<136x128xf32>
    %c0_56 = arith.constant 0 : index
    %c0_57 = arith.constant 0 : index
    %53 = vector.load %arg15[%c0_56, %c0_57] : memref<136x128xf32, #tpu.memory_space<vmem>>, vector<136x128xf32>
    %54 = arith.addf %53, %52 : vector<136x128xf32>
    %c0_58 = arith.constant 0 : index
    %c0_59 = arith.constant 0 : index
    %55 = vector.load %arg15[%c0_58, %c0_59] : memref<136x128xf32, #tpu.memory_space<vmem>>, vector<136x128xf32>
    tpu.vector_store %arg15[%c0_58, %c0_59], %54 {strides = array<i32>} : memref<136x128xf32, #tpu.memory_space<vmem>>, vector<136x128xf32>,
    %c14 = arith.constant 14 : index
    %c0_60 = arith.constant 0 : index
    %56 = vector.load %arg14[%c14, %c0_60] : memref<196x128xf32, #tpu.memory_space<vmem>>, vector<136x128xf32>
    %57 = arith.truncf %56 : vector<136x128xf32> to vector<136x128xbf16>
    %c5 = arith.constant 5 : index
    %c0_61 = arith.constant 0 : index
    %c0_62 = arith.constant 0 : index
    %58 = vector.load %arg4[%c5, %c0_61, %c0_62] : memref<25x128x128xbf16, #tpu.memory_space<vmem>>, vector<1x128x128xbf16>
    %59 = vector.shape_cast %58 : vector<1x128x128xbf16> to vector<128x128xbf16>
    %cst_63 = arith.constant dense<0.000000e+00> : vector<136x128xf32>
    %60 = tpu.matmul %57, %59, %cst_63 {dimension_numbers = #tpu.dot_dimension_numbers<[1], [0], [0], [1], [0, 0, 1, 1], [], []>} : vector<136x128xbf16>, vector<128x128xbf16>, vector<136x128xf32> -> vector<136x128xf32>
    %c0_64 = arith.constant 0 : index
    %c0_65 = arith.constant 0 : index
    %61 = vector.load %arg15[%c0_64, %c0_65] : memref<136x128xf32, #tpu.memory_space<vmem>>, vector<136x128xf32>
    %62 = arith.addf %61, %60 : vector<136x128xf32>
    %c0_66 = arith.constant 0 : index
    %c0_67 = arith.constant 0 : index
    %63 = vector.load %arg15[%c0_66, %c0_67] : memref<136x128xf32, #tpu.memory_space<vmem>>, vector<136x128xf32>
    tpu.vector_store %arg15[%c0_66, %c0_67], %62 {strides = array<i32>} : memref<136x128xf32, #tpu.memory_space<vmem>>, vector<136x128xf32>,
    %c15 = arith.constant 15 : index
    %c0_68 = arith.constant 0 : index
    %64 = vector.load %arg14[%c15, %c0_68] : memref<196x128xf32, #tpu.memory_space<vmem>>, vector<136x128xf32>
    %65 = arith.truncf %64 : vector<136x128xf32> to vector<136x128xbf16>
    %c6 = arith.constant 6 : index
    %c0_69 = arith.constant 0 : index
    %c0_70 = arith.constant 0 : index
    %66 = vector.load %arg4[%c6, %c0_69, %c0_70] : memref<25x128x128xbf16, #tpu.memory_space<vmem>>, vector<1x128x128xbf16>
    %67 = vector.shape_cast %66 : vector<1x128x128xbf16> to vector<128x128xbf16>
    %cst_71 = arith.constant dense<0.000000e+00> : vector<136x128xf32>
    %68 = tpu.matmul %65, %67, %cst_71 {dimension_numbers = #tpu.dot_dimension_numbers<[1], [0], [0], [1], [0, 0, 1, 1], [], []>} : vector<136x128xbf16>, vector<128x128xbf16>, vector<136x128xf32> -> vector<136x128xf32>
    %c0_72 = arith.constant 0 : index
    %c0_73 = arith.constant 0 : index
    %69 = vector.load %arg15[%c0_72, %c0_73] : memref<136x128xf32, #tpu.memory_space<vmem>>, vector<136x128xf32>
    %70 = arith.addf %69, %68 : vector<136x128xf32>
    %c0_74 = arith.constant 0 : index
    %c0_75 = arith.constant 0 : index
    %71 = vector.load %arg15[%c0_74, %c0_75] : memref<136x128xf32, #tpu.memory_space<vmem>>, vector<136x128xf32>
    tpu.vector_store %arg15[%c0_74, %c0_75], %70 {strides = array<i32>} : memref<136x128xf32, #tpu.memory_space<vmem>>, vector<136x128xf32>,
    %c16 = arith.constant 16 : index
    %c0_76 = arith.constant 0 : index
    %72 = vector.load %arg14[%c16, %c0_76] : memref<196x128xf32, #tpu.memory_space<vmem>>, vector<136x128xf32>
    %73 = arith.truncf %72 : vector<136x128xf32> to vector<136x128xbf16>
    %c7 = arith.constant 7 : index
    %c0_77 = arith.constant 0 : index
    %c0_78 = arith.constant 0 : index
    %74 = vector.load %arg4[%c7, %c0_77, %c0_78] : memref<25x128x128xbf16, #tpu.memory_space<vmem>>, vector<1x128x128xbf16>
    %75 = vector.shape_cast %74 : vector<1x128x128xbf16> to vector<128x128xbf16>
    %cst_79 = arith.constant dense<0.000000e+00> : vector<136x128xf32>
    %76 = tpu.matmul %73, %75, %cst_79 {dimension_numbers = #tpu.dot_dimension_numbers<[1], [0], [0], [1], [0, 0, 1, 1], [], []>} : vector<136x128xbf16>, vector<128x128xbf16>, vector<136x128xf32> -> vector<136x128xf32>
    %c0_80 = arith.constant 0 : index
    %c0_81 = arith.constant 0 : index
    %77 = vector.load %arg15[%c0_80, %c0_81] : memref<136x128xf32, #tpu.memory_space<vmem>>, vector<136x128xf32>
    %78 = arith.addf %77, %76 : vector<136x128xf32>
    %c0_82 = arith.constant 0 : index
    %c0_83 = arith.constant 0 : index
    %79 = vector.load %arg15[%c0_82, %c0_83] : memref<136x128xf32, #tpu.memory_space<vmem>>, vector<136x128xf32>
    tpu.vector_store %arg15[%c0_82, %c0_83], %78 {strides = array<i32>} : memref<136x128xf32, #tpu.memory_space<vmem>>, vector<136x128xf32>,
    %c17 = arith.constant 17 : index
    %c0_84 = arith.constant 0 : index
    %80 = vector.load %arg14[%c17, %c0_84] : memref<196x128xf32, #tpu.memory_space<vmem>>, vector<136x128xf32>
    %81 = arith.truncf %80 : vector<136x128xf32> to vector<136x128xbf16>
    %c8 = arith.constant 8 : index
    %c0_85 = arith.constant 0 : index
    %c0_86 = arith.constant 0 : index
    %82 = vector.load %arg4[%c8, %c0_85, %c0_86] : memref<25x128x128xbf16, #tpu.memory_space<vmem>>, vector<1x128x128xbf16>
    %83 = vector.shape_cast %82 : vector<1x128x128xbf16> to vector<128x128xbf16>
    %cst_87 = arith.constant dense<0.000000e+00> : vector<136x128xf32>
    %84 = tpu.matmul %81, %83, %cst_87 {dimension_numbers = #tpu.dot_dimension_numbers<[1], [0], [0], [1], [0, 0, 1, 1], [], []>} : vector<136x128xbf16>, vector<128x128xbf16>, vector<136x128xf32> -> vector<136x128xf32>
    %c0_88 = arith.constant 0 : index
    %c0_89 = arith.constant 0 : index
    %85 = vector.load %arg15[%c0_88, %c0_89] : memref<136x128xf32, #tpu.memory_space<vmem>>, vector<136x128xf32>
    %86 = arith.addf %85, %84 : vector<136x128xf32>
    %c0_90 = arith.constant 0 : index
    %c0_91 = arith.constant 0 : index
    %87 = vector.load %arg15[%c0_90, %c0_91] : memref<136x128xf32, #tpu.memory_space<vmem>>, vector<136x128xf32>
    tpu.vector_store %arg15[%c0_90, %c0_91], %86 {strides = array<i32>} : memref<136x128xf32, #tpu.memory_space<vmem>>, vector<136x128xf32>,
    %c18 = arith.constant 18 : index
    %c0_92 = arith.constant 0 : index
    %88 = vector.load %arg14[%c18, %c0_92] : memref<196x128xf32, #tpu.memory_space<vmem>>, vector<136x128xf32>
    %89 = arith.truncf %88 : vector<136x128xf32> to vector<136x128xbf16>
    %c9 = arith.constant 9 : index
    %c0_93 = arith.constant 0 : index
    %c0_94 = arith.constant 0 : index
    %90 = vector.load %arg4[%c9, %c0_93, %c0_94] : memref<25x128x128xbf16, #tpu.memory_space<vmem>>, vector<1x128x128xbf16>
    %91 = vector.shape_cast %90 : vector<1x128x128xbf16> to vector<128x128xbf16>
    %cst_95 = arith.constant dense<0.000000e+00> : vector<136x128xf32>
    %92 = tpu.matmul %89, %91, %cst_95 {dimension_numbers = #tpu.dot_dimension_numbers<[1], [0], [0], [1], [0, 0, 1, 1], [], []>} : vector<136x128xbf16>, vector<128x128xbf16>, vector<136x128xf32> -> vector<136x128xf32>
    %c0_96 = arith.constant 0 : index
    %c0_97 = arith.constant 0 : index
    %93 = vector.load %arg15[%c0_96, %c0_97] : memref<136x128xf32, #tpu.memory_space<vmem>>, vector<136x128xf32>
    %94 = arith.addf %93, %92 : vector<136x128xf32>
    %c0_98 = arith.constant 0 : index
    %c0_99 = arith.constant 0 : index
    %95 = vector.load %arg15[%c0_98, %c0_99] : memref<136x128xf32, #tpu.memory_space<vmem>>, vector<136x128xf32>
    tpu.vector_store %arg15[%c0_98, %c0_99], %94 {strides = array<i32>} : memref<136x128xf32, #tpu.memory_space<vmem>>, vector<136x128xf32>,
    %c28 = arith.constant 28 : index
    %c0_100 = arith.constant 0 : index
    %96 = vector.load %arg14[%c28, %c0_100] : memref<196x128xf32, #tpu.memory_space<vmem>>, vector<136x128xf32>
    %97 = arith.truncf %96 : vector<136x128xf32> to vector<136x128xbf16>
    %c10 = arith.constant 10 : index
    %c0_101 = arith.constant 0 : index
    %c0_102 = arith.constant 0 : index
    %98 = vector.load %arg4[%c10, %c0_101, %c0_102] : memref<25x128x128xbf16, #tpu.memory_space<vmem>>, vector<1x128x128xbf16>
    %99 = vector.shape_cast %98 : vector<1x128x128xbf16> to vector<128x128xbf16>
    %cst_103 = arith.constant dense<0.000000e+00> : vector<136x128xf32>
    %100 = tpu.matmul %97, %99, %cst_103 {dimension_numbers = #tpu.dot_dimension_numbers<[1], [0], [0], [1], [0, 0, 1, 1], [], []>} : vector<136x128xbf16>, vector<128x128xbf16>, vector<136x128xf32> -> vector<136x128xf32>
    %c0_104 = arith.constant 0 : index
    %c0_105 = arith.constant 0 : index
    %101 = vector.load %arg15[%c0_104, %c0_105] : memref<136x128xf32, #tpu.memory_space<vmem>>, vector<136x128xf32>
    %102 = arith.addf %101, %100 : vector<136x128xf32>
    %c0_106 = arith.constant 0 : index
    %c0_107 = arith.constant 0 : index
    %103 = vector.load %arg15[%c0_106, %c0_107] : memref<136x128xf32, #tpu.memory_space<vmem>>, vector<136x128xf32>
    tpu.vector_store %arg15[%c0_106, %c0_107], %102 {strides = array<i32>} : memref<136x128xf32, #tpu.memory_space<vmem>>, vector<136x128xf32>,
    %c29 = arith.constant 29 : index
    %c0_108 = arith.constant 0 : index
    %104 = vector.load %arg14[%c29, %c0_108] : memref<196x128xf32, #tpu.memory_space<vmem>>, vector<136x128xf32>
    %105 = arith.truncf %104 : vector<136x128xf32> to vector<136x128xbf16>
    %c11 = arith.constant 11 : index
    %c0_109 = arith.constant 0 : index
    %c0_110 = arith.constant 0 : index
    %106 = vector.load %arg4[%c11, %c0_109, %c0_110] : memref<25x128x128xbf16, #tpu.memory_space<vmem>>, vector<1x128x128xbf16>
    %107 = vector.shape_cast %106 : vector<1x128x128xbf16> to vector<128x128xbf16>
    %cst_111 = arith.constant dense<0.000000e+00> : vector<136x128xf32>
    %108 = tpu.matmul %105, %107, %cst_111 {dimension_numbers = #tpu.dot_dimension_numbers<[1], [0], [0], [1], [0, 0, 1, 1], [], []>} : vector<136x128xbf16>, vector<128x128xbf16>, vector<136x128xf32> -> vector<136x128xf32>
    %c0_112 = arith.constant 0 : index
    %c0_113 = arith.constant 0 : index
    %109 = vector.load %arg15[%c0_112, %c0_113] : memref<136x128xf32, #tpu.memory_space<vmem>>, vector<136x128xf32>
    %110 = arith.addf %109, %108 : vector<136x128xf32>
    %c0_114 = arith.constant 0 : index
    %c0_115 = arith.constant 0 : index
    %111 = vector.load %arg15[%c0_114, %c0_115] : memref<136x128xf32, #tpu.memory_space<vmem>>, vector<136x128xf32>
    tpu.vector_store %arg15[%c0_114, %c0_115], %110 {strides = array<i32>} : memref<136x128xf32, #tpu.memory_space<vmem>>, vector<136x128xf32>,
    %c30 = arith.constant 30 : index
    %c0_116 = arith.constant 0 : index
    %112 = vector.load %arg14[%c30, %c0_116] : memref<196x128xf32, #tpu.memory_space<vmem>>, vector<136x128xf32>
    %113 = arith.truncf %112 : vector<136x128xf32> to vector<136x128xbf16>
    %c12 = arith.constant 12 : index
    %c0_117 = arith.constant 0 : index
    %c0_118 = arith.constant 0 : index
    %114 = vector.load %arg4[%c12, %c0_117, %c0_118] : memref<25x128x128xbf16, #tpu.memory_space<vmem>>, vector<1x128x128xbf16>
    %115 = vector.shape_cast %114 : vector<1x128x128xbf16> to vector<128x128xbf16>
    %cst_119 = arith.constant dense<0.000000e+00> : vector<136x128xf32>
    %116 = tpu.matmul %113, %115, %cst_119 {dimension_numbers = #tpu.dot_dimension_numbers<[1], [0], [0], [1], [0, 0, 1, 1], [], []>} : vector<136x128xbf16>, vector<128x128xbf16>, vector<136x128xf32> -> vector<136x128xf32>
    %c0_120 = arith.constant 0 : index
    %c0_121 = arith.constant 0 : index
    %117 = vector.load %arg15[%c0_120, %c0_121] : memref<136x128xf32, #tpu.memory_space<vmem>>, vector<136x128xf32>
    %118 = arith.addf %117, %116 : vector<136x128xf32>
    %c0_122 = arith.constant 0 : index
    %c0_123 = arith.constant 0 : index
    %119 = vector.load %arg15[%c0_122, %c0_123] : memref<136x128xf32, #tpu.memory_space<vmem>>, vector<136x128xf32>
    tpu.vector_store %arg15[%c0_122, %c0_123], %118 {strides = array<i32>} : memref<136x128xf32, #tpu.memory_space<vmem>>, vector<136x128xf32>,
    %c31 = arith.constant 31 : index
    %c0_124 = arith.constant 0 : index
    %120 = vector.load %arg14[%c31, %c0_124] : memref<196x128xf32, #tpu.memory_space<vmem>>, vector<136x128xf32>
    %121 = arith.truncf %120 : vector<136x128xf32> to vector<136x128xbf16>
    %c13 = arith.constant 13 : index
    %c0_125 = arith.constant 0 : index
    %c0_126 = arith.constant 0 : index
    %122 = vector.load %arg4[%c13, %c0_125, %c0_126] : memref<25x128x128xbf16, #tpu.memory_space<vmem>>, vector<1x128x128xbf16>
    %123 = vector.shape_cast %122 : vector<1x128x128xbf16> to vector<128x128xbf16>
    %cst_127 = arith.constant dense<0.000000e+00> : vector<136x128xf32>
    %124 = tpu.matmul %121, %123, %cst_127 {dimension_numbers = #tpu.dot_dimension_numbers<[1], [0], [0], [1], [0, 0, 1, 1], [], []>} : vector<136x128xbf16>, vector<128x128xbf16>, vector<136x128xf32> -> vector<136x128xf32>
    %c0_128 = arith.constant 0 : index
    %c0_129 = arith.constant 0 : index
    %125 = vector.load %arg15[%c0_128, %c0_129] : memref<136x128xf32, #tpu.memory_space<vmem>>, vector<136x128xf32>
    %126 = arith.addf %125, %124 : vector<136x128xf32>
    %c0_130 = arith.constant 0 : index
    %c0_131 = arith.constant 0 : index
    %127 = vector.load %arg15[%c0_130, %c0_131] : memref<136x128xf32, #tpu.memory_space<vmem>>, vector<136x128xf32>
    tpu.vector_store %arg15[%c0_130, %c0_131], %126 {strides = array<i32>} : memref<136x128xf32, #tpu.memory_space<vmem>>, vector<136x128xf32>,
    %c32 = arith.constant 32 : index
    %c0_132 = arith.constant 0 : index
    %128 = vector.load %arg14[%c32, %c0_132] : memref<196x128xf32, #tpu.memory_space<vmem>>, vector<136x128xf32>
    %129 = arith.truncf %128 : vector<136x128xf32> to vector<136x128xbf16>
    %c14_133 = arith.constant 14 : index
    %c0_134 = arith.constant 0 : index
    %c0_135 = arith.constant 0 : index
    %130 = vector.load %arg4[%c14_133, %c0_134, %c0_135] : memref<25x128x128xbf16, #tpu.memory_space<vmem>>, vector<1x128x128xbf16>
    %131 = vector.shape_cast %130 : vector<1x128x128xbf16> to vector<128x128xbf16>
    %cst_136 = arith.constant dense<0.000000e+00> : vector<136x128xf32>
    %132 = tpu.matmul %129, %131, %cst_136 {dimension_numbers = #tpu.dot_dimension_numbers<[1], [0], [0], [1], [0, 0, 1, 1], [], []>} : vector<136x128xbf16>, vector<128x128xbf16>, vector<136x128xf32> -> vector<136x128xf32>
    %c0_137 = arith.constant 0 : index
    %c0_138 = arith.constant 0 : index
    %133 = vector.load %arg15[%c0_137, %c0_138] : memref<136x128xf32, #tpu.memory_space<vmem>>, vector<136x128xf32>
    %134 = arith.addf %133, %132 : vector<136x128xf32>
    %c0_139 = arith.constant 0 : index
    %c0_140 = arith.constant 0 : index
    %135 = vector.load %arg15[%c0_139, %c0_140] : memref<136x128xf32, #tpu.memory_space<vmem>>, vector<136x128xf32>
    tpu.vector_store %arg15[%c0_139, %c0_140], %134 {strides = array<i32>} : memref<136x128xf32, #tpu.memory_space<vmem>>, vector<136x128xf32>,
    %c42 = arith.constant 42 : index
    %c0_141 = arith.constant 0 : index
    %136 = vector.load %arg14[%c42, %c0_141] : memref<196x128xf32, #tpu.memory_space<vmem>>, vector<136x128xf32>
    %137 = arith.truncf %136 : vector<136x128xf32> to vector<136x128xbf16>
    %c15_142 = arith.constant 15 : index
    %c0_143 = arith.constant 0 : index
    %c0_144 = arith.constant 0 : index
    %138 = vector.load %arg4[%c15_142, %c0_143, %c0_144] : memref<25x128x128xbf16, #tpu.memory_space<vmem>>, vector<1x128x128xbf16>
    %139 = vector.shape_cast %138 : vector<1x128x128xbf16> to vector<128x128xbf16>
    %cst_145 = arith.constant dense<0.000000e+00> : vector<136x128xf32>
    %140 = tpu.matmul %137, %139, %cst_145 {dimension_numbers = #tpu.dot_dimension_numbers<[1], [0], [0], [1], [0, 0, 1, 1], [], []>} : vector<136x128xbf16>, vector<128x128xbf16>, vector<136x128xf32> -> vector<136x128xf32>
    %c0_146 = arith.constant 0 : index
    %c0_147 = arith.constant 0 : index
    %141 = vector.load %arg15[%c0_146, %c0_147] : memref<136x128xf32, #tpu.memory_space<vmem>>, vector<136x128xf32>
    %142 = arith.addf %141, %140 : vector<136x128xf32>
    %c0_148 = arith.constant 0 : index
    %c0_149 = arith.constant 0 : index
    %143 = vector.load %arg15[%c0_148, %c0_149] : memref<136x128xf32, #tpu.memory_space<vmem>>, vector<136x128xf32>
    tpu.vector_store %arg15[%c0_148, %c0_149], %142 {strides = array<i32>} : memref<136x128xf32, #tpu.memory_space<vmem>>, vector<136x128xf32>,
    %c43 = arith.constant 43 : index
    %c0_150 = arith.constant 0 : index
    %144 = vector.load %arg14[%c43, %c0_150] : memref<196x128xf32, #tpu.memory_space<vmem>>, vector<136x128xf32>
    %145 = arith.truncf %144 : vector<136x128xf32> to vector<136x128xbf16>
    %c16_151 = arith.constant 16 : index
    %c0_152 = arith.constant 0 : index
    %c0_153 = arith.constant 0 : index
    %146 = vector.load %arg4[%c16_151, %c0_152, %c0_153] : memref<25x128x128xbf16, #tpu.memory_space<vmem>>, vector<1x128x128xbf16>
    %147 = vector.shape_cast %146 : vector<1x128x128xbf16> to vector<128x128xbf16>
    %cst_154 = arith.constant dense<0.000000e+00> : vector<136x128xf32>
    %148 = tpu.matmul %145, %147, %cst_154 {dimension_numbers = #tpu.dot_dimension_numbers<[1], [0], [0], [1], [0, 0, 1, 1], [], []>} : vector<136x128xbf16>, vector<128x128xbf16>, vector<136x128xf32> -> vector<136x128xf32>
    %c0_155 = arith.constant 0 : index
    %c0_156 = arith.constant 0 : index
    %149 = vector.load %arg15[%c0_155, %c0_156] : memref<136x128xf32, #tpu.memory_space<vmem>>, vector<136x128xf32>
    %150 = arith.addf %149, %148 : vector<136x128xf32>
    %c0_157 = arith.constant 0 : index
    %c0_158 = arith.constant 0 : index
    %151 = vector.load %arg15[%c0_157, %c0_158] : memref<136x128xf32, #tpu.memory_space<vmem>>, vector<136x128xf32>
    tpu.vector_store %arg15[%c0_157, %c0_158], %150 {strides = array<i32>} : memref<136x128xf32, #tpu.memory_space<vmem>>, vector<136x128xf32>,
    %c44 = arith.constant 44 : index
    %c0_159 = arith.constant 0 : index
    %152 = vector.load %arg14[%c44, %c0_159] : memref<196x128xf32, #tpu.memory_space<vmem>>, vector<136x128xf32>
    %153 = arith.truncf %152 : vector<136x128xf32> to vector<136x128xbf16>
    %c17_160 = arith.constant 17 : index
    %c0_161 = arith.constant 0 : index
    %c0_162 = arith.constant 0 : index
    %154 = vector.load %arg4[%c17_160, %c0_161, %c0_162] : memref<25x128x128xbf16, #tpu.memory_space<vmem>>, vector<1x128x128xbf16>
    %155 = vector.shape_cast %154 : vector<1x128x128xbf16> to vector<128x128xbf16>
    %cst_163 = arith.constant dense<0.000000e+00> : vector<136x128xf32>
    %156 = tpu.matmul %153, %155, %cst_163 {dimension_numbers = #tpu.dot_dimension_numbers<[1], [0], [0], [1], [0, 0, 1, 1], [], []>} : vector<136x128xbf16>, vector<128x128xbf16>, vector<136x128xf32> -> vector<136x128xf32>
    %c0_164 = arith.constant 0 : index
    %c0_165 = arith.constant 0 : index
    %157 = vector.load %arg15[%c0_164, %c0_165] : memref<136x128xf32, #tpu.memory_space<vmem>>, vector<136x128xf32>
    %158 = arith.addf %157, %156 : vector<136x128xf32>
    %c0_166 = arith.constant 0 : index
    %c0_167 = arith.constant 0 : index
    %159 = vector.load %arg15[%c0_166, %c0_167] : memref<136x128xf32, #tpu.memory_space<vmem>>, vector<136x128xf32>
    tpu.vector_store %arg15[%c0_166, %c0_167], %158 {strides = array<i32>} : memref<136x128xf32, #tpu.memory_space<vmem>>, vector<136x128xf32>,
    %c45 = arith.constant 45 : index
    %c0_168 = arith.constant 0 : index
    %160 = vector.load %arg14[%c45, %c0_168] : memref<196x128xf32, #tpu.memory_space<vmem>>, vector<136x128xf32>
    %161 = arith.truncf %160 : vector<136x128xf32> to vector<136x128xbf16>
    %c18_169 = arith.constant 18 : index
    %c0_170 = arith.constant 0 : index
    %c0_171 = arith.constant 0 : index
    %162 = vector.load %arg4[%c18_169, %c0_170, %c0_171] : memref<25x128x128xbf16, #tpu.memory_space<vmem>>, vector<1x128x128xbf16>
    %163 = vector.shape_cast %162 : vector<1x128x128xbf16> to vector<128x128xbf16>
    %cst_172 = arith.constant dense<0.000000e+00> : vector<136x128xf32>
    %164 = tpu.matmul %161, %163, %cst_172 {dimension_numbers = #tpu.dot_dimension_numbers<[1], [0], [0], [1], [0, 0, 1, 1], [], []>} : vector<136x128xbf16>, vector<128x128xbf16>, vector<136x128xf32> -> vector<136x128xf32>
    %c0_173 = arith.constant 0 : index
    %c0_174 = arith.constant 0 : index
    %165 = vector.load %arg15[%c0_173, %c0_174] : memref<136x128xf32, #tpu.memory_space<vmem>>, vector<136x128xf32>
    %166 = arith.addf %165, %164 : vector<136x128xf32>
    %c0_175 = arith.constant 0 : index
    %c0_176 = arith.constant 0 : index
    %167 = vector.load %arg15[%c0_175, %c0_176] : memref<136x128xf32, #tpu.memory_space<vmem>>, vector<136x128xf32>
    tpu.vector_store %arg15[%c0_175, %c0_176], %166 {strides = array<i32>} : memref<136x128xf32, #tpu.memory_space<vmem>>, vector<136x128xf32>,
    %c46 = arith.constant 46 : index
    %c0_177 = arith.constant 0 : index
    %168 = vector.load %arg14[%c46, %c0_177] : memref<196x128xf32, #tpu.memory_space<vmem>>, vector<136x128xf32>
    %169 = arith.truncf %168 : vector<136x128xf32> to vector<136x128xbf16>
    %c19 = arith.constant 19 : index
    %c0_178 = arith.constant 0 : index
    %c0_179 = arith.constant 0 : index
    %170 = vector.load %arg4[%c19, %c0_178, %c0_179] : memref<25x128x128xbf16, #tpu.memory_space<vmem>>, vector<1x128x128xbf16>
    %171 = vector.shape_cast %170 : vector<1x128x128xbf16> to vector<128x128xbf16>
    %cst_180 = arith.constant dense<0.000000e+00> : vector<136x128xf32>
    %172 = tpu.matmul %169, %171, %cst_180 {dimension_numbers = #tpu.dot_dimension_numbers<[1], [0], [0], [1], [0, 0, 1, 1], [], []>} : vector<136x128xbf16>, vector<128x128xbf16>, vector<136x128xf32> -> vector<136x128xf32>
    %c0_181 = arith.constant 0 : index
    %c0_182 = arith.constant 0 : index
    %173 = vector.load %arg15[%c0_181, %c0_182] : memref<136x128xf32, #tpu.memory_space<vmem>>, vector<136x128xf32>
    %174 = arith.addf %173, %172 : vector<136x128xf32>
    %c0_183 = arith.constant 0 : index
    %c0_184 = arith.constant 0 : index
    %175 = vector.load %arg15[%c0_183, %c0_184] : memref<136x128xf32, #tpu.memory_space<vmem>>, vector<136x128xf32>
    tpu.vector_store %arg15[%c0_183, %c0_184], %174 {strides = array<i32>} : memref<136x128xf32, #tpu.memory_space<vmem>>, vector<136x128xf32>,
    %c56 = arith.constant 56 : index
    %c0_185 = arith.constant 0 : index
    %176 = vector.load %arg14[%c56, %c0_185] : memref<196x128xf32, #tpu.memory_space<vmem>>, vector<136x128xf32>
    %177 = arith.truncf %176 : vector<136x128xf32> to vector<136x128xbf16>
    %c20 = arith.constant 20 : index
    %c0_186 = arith.constant 0 : index
    %c0_187 = arith.constant 0 : index
    %178 = vector.load %arg4[%c20, %c0_186, %c0_187] : memref<25x128x128xbf16, #tpu.memory_space<vmem>>, vector<1x128x128xbf16>
    %179 = vector.shape_cast %178 : vector<1x128x128xbf16> to vector<128x128xbf16>
    %cst_188 = arith.constant dense<0.000000e+00> : vector<136x128xf32>
    %180 = tpu.matmul %177, %179, %cst_188 {dimension_numbers = #tpu.dot_dimension_numbers<[1], [0], [0], [1], [0, 0, 1, 1], [], []>} : vector<136x128xbf16>, vector<128x128xbf16>, vector<136x128xf32> -> vector<136x128xf32>
    %c0_189 = arith.constant 0 : index
    %c0_190 = arith.constant 0 : index
    %181 = vector.load %arg15[%c0_189, %c0_190] : memref<136x128xf32, #tpu.memory_space<vmem>>, vector<136x128xf32>
    %182 = arith.addf %181, %180 : vector<136x128xf32>
    %c0_191 = arith.constant 0 : index
    %c0_192 = arith.constant 0 : index
    %183 = vector.load %arg15[%c0_191, %c0_192] : memref<136x128xf32, #tpu.memory_space<vmem>>, vector<136x128xf32>
    tpu.vector_store %arg15[%c0_191, %c0_192], %182 {strides = array<i32>} : memref<136x128xf32, #tpu.memory_space<vmem>>, vector<136x128xf32>,
    %c57 = arith.constant 57 : index
    %c0_193 = arith.constant 0 : index
    %184 = vector.load %arg14[%c57, %c0_193] : memref<196x128xf32, #tpu.memory_space<vmem>>, vector<136x128xf32>
    %185 = arith.truncf %184 : vector<136x128xf32> to vector<136x128xbf16>
    %c21 = arith.constant 21 : index
    %c0_194 = arith.constant 0 : index
    %c0_195 = arith.constant 0 : index
    %186 = vector.load %arg4[%c21, %c0_194, %c0_195] : memref<25x128x128xbf16, #tpu.memory_space<vmem>>, vector<1x128x128xbf16>
    %187 = vector.shape_cast %186 : vector<1x128x128xbf16> to vector<128x128xbf16>
    %cst_196 = arith.constant dense<0.000000e+00> : vector<136x128xf32>
    %188 = tpu.matmul %185, %187, %cst_196 {dimension_numbers = #tpu.dot_dimension_numbers<[1], [0], [0], [1], [0, 0, 1, 1], [], []>} : vector<136x128xbf16>, vector<128x128xbf16>, vector<136x128xf32> -> vector<136x128xf32>
    %c0_197 = arith.constant 0 : index
    %c0_198 = arith.constant 0 : index
    %189 = vector.load %arg15[%c0_197, %c0_198] : memref<136x128xf32, #tpu.memory_space<vmem>>, vector<136x128xf32>
    %190 = arith.addf %189, %188 : vector<136x128xf32>
    %c0_199 = arith.constant 0 : index
    %c0_200 = arith.constant 0 : index
    %191 = vector.load %arg15[%c0_199, %c0_200] : memref<136x128xf32, #tpu.memory_space<vmem>>, vector<136x128xf32>
    tpu.vector_store %arg15[%c0_199, %c0_200], %190 {strides = array<i32>} : memref<136x128xf32, #tpu.memory_space<vmem>>, vector<136x128xf32>,
    %c58 = arith.constant 58 : index
    %c0_201 = arith.constant 0 : index
    %192 = vector.load %arg14[%c58, %c0_201] : memref<196x128xf32, #tpu.memory_space<vmem>>, vector<136x128xf32>
    %193 = arith.truncf %192 : vector<136x128xf32> to vector<136x128xbf16>
    %c22 = arith.constant 22 : index
    %c0_202 = arith.constant 0 : index
    %c0_203 = arith.constant 0 : index
    %194 = vector.load %arg4[%c22, %c0_202, %c0_203] : memref<25x128x128xbf16, #tpu.memory_space<vmem>>, vector<1x128x128xbf16>
    %195 = vector.shape_cast %194 : vector<1x128x128xbf16> to vector<128x128xbf16>
    %cst_204 = arith.constant dense<0.000000e+00> : vector<136x128xf32>
    %196 = tpu.matmul %193, %195, %cst_204 {dimension_numbers = #tpu.dot_dimension_numbers<[1], [0], [0], [1], [0, 0, 1, 1], [], []>} : vector<136x128xbf16>, vector<128x128xbf16>, vector<136x128xf32> -> vector<136x128xf32>
    %c0_205 = arith.constant 0 : index
    %c0_206 = arith.constant 0 : index
    %197 = vector.load %arg15[%c0_205, %c0_206] : memref<136x128xf32, #tpu.memory_space<vmem>>, vector<136x128xf32>
    %198 = arith.addf %197, %196 : vector<136x128xf32>
    %c0_207 = arith.constant 0 : index
    %c0_208 = arith.constant 0 : index
    %199 = vector.load %arg15[%c0_207, %c0_208] : memref<136x128xf32, #tpu.memory_space<vmem>>, vector<136x128xf32>
    tpu.vector_store %arg15[%c0_207, %c0_208], %198 {strides = array<i32>} : memref<136x128xf32, #tpu.memory_space<vmem>>, vector<136x128xf32>,
    %c59 = arith.constant 59 : index
    %c0_209 = arith.constant 0 : index
    %200 = vector.load %arg14[%c59, %c0_209] : memref<196x128xf32, #tpu.memory_space<vmem>>, vector<136x128xf32>
    %201 = arith.truncf %200 : vector<136x128xf32> to vector<136x128xbf16>
    %c23 = arith.constant 23 : index
    %c0_210 = arith.constant 0 : index
    %c0_211 = arith.constant 0 : index
    %202 = vector.load %arg4[%c23, %c0_210, %c0_211] : memref<25x128x128xbf16, #tpu.memory_space<vmem>>, vector<1x128x128xbf16>
    %203 = vector.shape_cast %202 : vector<1x128x128xbf16> to vector<128x128xbf16>
    %cst_212 = arith.constant dense<0.000000e+00> : vector<136x128xf32>
    %204 = tpu.matmul %201, %203, %cst_212 {dimension_numbers = #tpu.dot_dimension_numbers<[1], [0], [0], [1], [0, 0, 1, 1], [], []>} : vector<136x128xbf16>, vector<128x128xbf16>, vector<136x128xf32> -> vector<136x128xf32>
    %c0_213 = arith.constant 0 : index
    %c0_214 = arith.constant 0 : index
    %205 = vector.load %arg15[%c0_213, %c0_214] : memref<136x128xf32, #tpu.memory_space<vmem>>, vector<136x128xf32>
    %206 = arith.addf %205, %204 : vector<136x128xf32>
    %c0_215 = arith.constant 0 : index
    %c0_216 = arith.constant 0 : index
    %207 = vector.load %arg15[%c0_215, %c0_216] : memref<136x128xf32, #tpu.memory_space<vmem>>, vector<136x128xf32>
    tpu.vector_store %arg15[%c0_215, %c0_216], %206 {strides = array<i32>} : memref<136x128xf32, #tpu.memory_space<vmem>>, vector<136x128xf32>,
    %c60 = arith.constant 60 : index
    %c0_217 = arith.constant 0 : index
    %208 = vector.load %arg14[%c60, %c0_217] : memref<196x128xf32, #tpu.memory_space<vmem>>, vector<136x128xf32>
    %209 = arith.truncf %208 : vector<136x128xf32> to vector<136x128xbf16>
    %c24 = arith.constant 24 : index
    %c0_218 = arith.constant 0 : index
    %c0_219 = arith.constant 0 : index
    %210 = vector.load %arg4[%c24, %c0_218, %c0_219] : memref<25x128x128xbf16, #tpu.memory_space<vmem>>, vector<1x128x128xbf16>
    %211 = vector.shape_cast %210 : vector<1x128x128xbf16> to vector<128x128xbf16>
    %cst_220 = arith.constant dense<0.000000e+00> : vector<136x128xf32>
    %212 = tpu.matmul %209, %211, %cst_220 {dimension_numbers = #tpu.dot_dimension_numbers<[1], [0], [0], [1], [0, 0, 1, 1], [], []>} : vector<136x128xbf16>, vector<128x128xbf16>, vector<136x128xf32> -> vector<136x128xf32>
    %c0_221 = arith.constant 0 : index
    %c0_222 = arith.constant 0 : index
    %213 = vector.load %arg15[%c0_221, %c0_222] : memref<136x128xf32, #tpu.memory_space<vmem>>, vector<136x128xf32>
    %214 = arith.addf %213, %212 : vector<136x128xf32>
    %c0_223 = arith.constant 0 : index
    %c0_224 = arith.constant 0 : index
    %215 = vector.load %arg15[%c0_223, %c0_224] : memref<136x128xf32, #tpu.memory_space<vmem>>, vector<136x128xf32>
    tpu.vector_store %arg15[%c0_223, %c0_224], %214 {strides = array<i32>} : memref<136x128xf32, #tpu.memory_space<vmem>>, vector<136x128xf32>,
    %c0_225 = arith.constant 0 : index
    %c0_226 = arith.constant 0 : index
    %216 = vector.load %arg15[%c0_225, %c0_226] : memref<136x128xf32, #tpu.memory_space<vmem>>, vector<1x128xf32>
    %c1_227 = arith.constant 1 : index
    %c0_228 = arith.constant 0 : index
    %217 = vector.load %arg15[%c1_227, %c0_228] : memref<136x128xf32, #tpu.memory_space<vmem>>, vector<1x128xf32>
    %218 = arith.maximumf %216, %217 : vector<1x128xf32>
    %c14_229 = arith.constant 14 : index
    %c0_230 = arith.constant 0 : index
    %219 = vector.load %arg15[%c14_229, %c0_230] : memref<136x128xf32, #tpu.memory_space<vmem>>, vector<1x128xf32>
    %c15_231 = arith.constant 15 : index
    %c0_232 = arith.constant 0 : index
    %220 = vector.load %arg15[%c15_231, %c0_232] : memref<136x128xf32, #tpu.memory_space<vmem>>, vector<1x128xf32>
    %221 = arith.maximumf %219, %220 : vector<1x128xf32>
    %222 = arith.maximumf %218, %221 : vector<1x128xf32>
    %c0_233 = arith.constant 0 : index
    %c0_234 = arith.constant 0 : index
    %223 = vector.load %arg5[%c0_233, %c0_234] : memref<1x128xf32, #tpu.memory_space<vmem>>, vector<1x128xf32>
    %224 = arith.addf %222, %223 : vector<1x128xf32>
    %cst_235 = arith.constant 0.000000e+00 : f32
    %225 = vector.broadcast %cst_235 : f32 to vector<1x128xf32>
    %226 = arith.maximumf %224, %225 : vector<1x128xf32>
    %227 = arith.truncf %226 : vector<1x128xf32> to vector<1x128xbf16>
    %c0_236 = arith.constant 0 : index
    %c0_237 = arith.constant 0 : index
    %c0_238 = arith.constant 0 : index
    %228 = vector.load %arg6[%c0_236, %c0_237, %c0_238] : memref<25x128x128xbf16, #tpu.memory_space<vmem>>, vector<1x128x128xbf16>
    %229 = vector.shape_cast %228 : vector<1x128x128xbf16> to vector<128x128xbf16>
    %cst_239 = arith.constant dense<0.000000e+00> : vector<1x128xf32>
    %230 = tpu.matmul %227, %229, %cst_239 {dimension_numbers = #tpu.dot_dimension_numbers<[1], [0], [0], [1], [0, 0, 1, 1], [], []>} : vector<1x128xbf16>, vector<128x128xbf16>, vector<1x128xf32> -> vector<1x128xf32>
    %c2_240 = arith.constant 2 : index
    %c0_241 = arith.constant 0 : index
    %231 = vector.load %arg15[%c2_240, %c0_241] : memref<136x128xf32, #tpu.memory_space<vmem>>, vector<1x128xf32>
    %c3_242 = arith.constant 3 : index
    %c0_243 = arith.constant 0 : index
    %232 = vector.load %arg15[%c3_242, %c0_243] : memref<136x128xf32, #tpu.memory_space<vmem>>, vector<1x128xf32>
    %233 = arith.maximumf %231, %232 : vector<1x128xf32>
    %c16_244 = arith.constant 16 : index
    %c0_245 = arith.constant 0 : index
    %234 = vector.load %arg15[%c16_244, %c0_245] : memref<136x128xf32, #tpu.memory_space<vmem>>, vector<1x128xf32>
    %c17_246 = arith.constant 17 : index
    %c0_247 = arith.constant 0 : index
    %235 = vector.load %arg15[%c17_246, %c0_247] : memref<136x128xf32, #tpu.memory_space<vmem>>, vector<1x128xf32>
    %236 = arith.maximumf %234, %235 : vector<1x128xf32>
    %237 = arith.maximumf %233, %236 : vector<1x128xf32>
    %c0_248 = arith.constant 0 : index
    %c0_249 = arith.constant 0 : index
    %238 = vector.load %arg5[%c0_248, %c0_249] : memref<1x128xf32, #tpu.memory_space<vmem>>, vector<1x128xf32>
    %239 = arith.addf %237, %238 : vector<1x128xf32>
    %cst_250 = arith.constant 0.000000e+00 : f32
    %240 = vector.broadcast %cst_250 : f32 to vector<1x128xf32>
    %241 = arith.maximumf %239, %240 : vector<1x128xf32>
    %242 = arith.truncf %241 : vector<1x128xf32> to vector<1x128xbf16>
    %c1_251 = arith.constant 1 : index
    %c0_252 = arith.constant 0 : index
    %c0_253 = arith.constant 0 : index
    %243 = vector.load %arg6[%c1_251, %c0_252, %c0_253] : memref<25x128x128xbf16, #tpu.memory_space<vmem>>, vector<1x128x128xbf16>
    %244 = vector.shape_cast %243 : vector<1x128x128xbf16> to vector<128x128xbf16>
    %cst_254 = arith.constant dense<0.000000e+00> : vector<1x128xf32>
    %245 = tpu.matmul %242, %244, %cst_254 {dimension_numbers = #tpu.dot_dimension_numbers<[1], [0], [0], [1], [0, 0, 1, 1], [], []>} : vector<1x128xbf16>, vector<128x128xbf16>, vector<1x128xf32> -> vector<1x128xf32>
    %246 = arith.addf %230, %245 : vector<1x128xf32>
    %c4_255 = arith.constant 4 : index
    %c0_256 = arith.constant 0 : index
    %247 = vector.load %arg15[%c4_255, %c0_256] : memref<136x128xf32, #tpu.memory_space<vmem>>, vector<1x128xf32>
    %c5_257 = arith.constant 5 : index
    %c0_258 = arith.constant 0 : index
    %248 = vector.load %arg15[%c5_257, %c0_258] : memref<136x128xf32, #tpu.memory_space<vmem>>, vector<1x128xf32>
    %249 = arith.maximumf %247, %248 : vector<1x128xf32>
    %c18_259 = arith.constant 18 : index
    %c0_260 = arith.constant 0 : index
    %250 = vector.load %arg15[%c18_259, %c0_260] : memref<136x128xf32, #tpu.memory_space<vmem>>, vector<1x128xf32>
    %c19_261 = arith.constant 19 : index
    %c0_262 = arith.constant 0 : index
    %251 = vector.load %arg15[%c19_261, %c0_262] : memref<136x128xf32, #tpu.memory_space<vmem>>, vector<1x128xf32>
    %252 = arith.maximumf %250, %251 : vector<1x128xf32>
    %253 = arith.maximumf %249, %252 : vector<1x128xf32>
    %c0_263 = arith.constant 0 : index
    %c0_264 = arith.constant 0 : index
    %254 = vector.load %arg5[%c0_263, %c0_264] : memref<1x128xf32, #tpu.memory_space<vmem>>, vector<1x128xf32>
    %255 = arith.addf %253, %254 : vector<1x128xf32>
    %cst_265 = arith.constant 0.000000e+00 : f32
    %256 = vector.broadcast %cst_265 : f32 to vector<1x128xf32>
    %257 = arith.maximumf %255, %256 : vector<1x128xf32>
    %258 = arith.truncf %257 : vector<1x128xf32> to vector<1x128xbf16>
    %c2_266 = arith.constant 2 : index
    %c0_267 = arith.constant 0 : index
    %c0_268 = arith.constant 0 : index
    %259 = vector.load %arg6[%c2_266, %c0_267, %c0_268] : memref<25x128x128xbf16, #tpu.memory_space<vmem>>, vector<1x128x128xbf16>
    %260 = vector.shape_cast %259 : vector<1x128x128xbf16> to vector<128x128xbf16>
    %cst_269 = arith.constant dense<0.000000e+00> : vector<1x128xf32>
    %261 = tpu.matmul %258, %260, %cst_269 {dimension_numbers = #tpu.dot_dimension_numbers<[1], [0], [0], [1], [0, 0, 1, 1], [], []>} : vector<1x128xbf16>, vector<128x128xbf16>, vector<1x128xf32> -> vector<1x128xf32>
    %262 = arith.addf %246, %261 : vector<1x128xf32>
    %c6_270 = arith.constant 6 : index
    %c0_271 = arith.constant 0 : index
    %263 = vector.load %arg15[%c6_270, %c0_271] : memref<136x128xf32, #tpu.memory_space<vmem>>, vector<1x128xf32>
    %c7_272 = arith.constant 7 : index
    %c0_273 = arith.constant 0 : index
    %264 = vector.load %arg15[%c7_272, %c0_273] : memref<136x128xf32, #tpu.memory_space<vmem>>, vector<1x128xf32>
    %265 = arith.maximumf %263, %264 : vector<1x128xf32>
    %c20_274 = arith.constant 20 : index
    %c0_275 = arith.constant 0 : index
    %266 = vector.load %arg15[%c20_274, %c0_275] : memref<136x128xf32, #tpu.memory_space<vmem>>, vector<1x128xf32>
    %c21_276 = arith.constant 21 : index
    %c0_277 = arith.constant 0 : index
    %267 = vector.load %arg15[%c21_276, %c0_277] : memref<136x128xf32, #tpu.memory_space<vmem>>, vector<1x128xf32>
    %268 = arith.maximumf %266, %267 : vector<1x128xf32>
    %269 = arith.maximumf %265, %268 : vector<1x128xf32>
    %c0_278 = arith.constant 0 : index
    %c0_279 = arith.constant 0 : index
    %270 = vector.load %arg5[%c0_278, %c0_279] : memref<1x128xf32, #tpu.memory_space<vmem>>, vector<1x128xf32>
    %271 = arith.addf %269, %270 : vector<1x128xf32>
    %cst_280 = arith.constant 0.000000e+00 : f32
    %272 = vector.broadcast %cst_280 : f32 to vector<1x128xf32>
    %273 = arith.maximumf %271, %272 : vector<1x128xf32>
    %274 = arith.truncf %273 : vector<1x128xf32> to vector<1x128xbf16>
    %c3_281 = arith.constant 3 : index
    %c0_282 = arith.constant 0 : index
    %c0_283 = arith.constant 0 : index
    %275 = vector.load %arg6[%c3_281, %c0_282, %c0_283] : memref<25x128x128xbf16, #tpu.memory_space<vmem>>, vector<1x128x128xbf16>
    %276 = vector.shape_cast %275 : vector<1x128x128xbf16> to vector<128x128xbf16>
    %cst_284 = arith.constant dense<0.000000e+00> : vector<1x128xf32>
    %277 = tpu.matmul %274, %276, %cst_284 {dimension_numbers = #tpu.dot_dimension_numbers<[1], [0], [0], [1], [0, 0, 1, 1], [], []>} : vector<1x128xbf16>, vector<128x128xbf16>, vector<1x128xf32> -> vector<1x128xf32>
    %278 = arith.addf %262, %277 : vector<1x128xf32>
    %c8_285 = arith.constant 8 : index
    %c0_286 = arith.constant 0 : index
    %279 = vector.load %arg15[%c8_285, %c0_286] : memref<136x128xf32, #tpu.memory_space<vmem>>, vector<1x128xf32>
    %c9_287 = arith.constant 9 : index
    %c0_288 = arith.constant 0 : index
    %280 = vector.load %arg15[%c9_287, %c0_288] : memref<136x128xf32, #tpu.memory_space<vmem>>, vector<1x128xf32>
    %281 = arith.maximumf %279, %280 : vector<1x128xf32>
    %c22_289 = arith.constant 22 : index
    %c0_290 = arith.constant 0 : index
    %282 = vector.load %arg15[%c22_289, %c0_290] : memref<136x128xf32, #tpu.memory_space<vmem>>, vector<1x128xf32>
    %c23_291 = arith.constant 23 : index
    %c0_292 = arith.constant 0 : index
    %283 = vector.load %arg15[%c23_291, %c0_292] : memref<136x128xf32, #tpu.memory_space<vmem>>, vector<1x128xf32>
    %284 = arith.maximumf %282, %283 : vector<1x128xf32>
    %285 = arith.maximumf %281, %284 : vector<1x128xf32>
    %c0_293 = arith.constant 0 : index
    %c0_294 = arith.constant 0 : index
    %286 = vector.load %arg5[%c0_293, %c0_294] : memref<1x128xf32, #tpu.memory_space<vmem>>, vector<1x128xf32>
    %287 = arith.addf %285, %286 : vector<1x128xf32>
    %cst_295 = arith.constant 0.000000e+00 : f32
    %288 = vector.broadcast %cst_295 : f32 to vector<1x128xf32>
    %289 = arith.maximumf %287, %288 : vector<1x128xf32>
    %290 = arith.truncf %289 : vector<1x128xf32> to vector<1x128xbf16>
    %c4_296 = arith.constant 4 : index
    %c0_297 = arith.constant 0 : index
    %c0_298 = arith.constant 0 : index
    %291 = vector.load %arg6[%c4_296, %c0_297, %c0_298] : memref<25x128x128xbf16, #tpu.memory_space<vmem>>, vector<1x128x128xbf16>
    %292 = vector.shape_cast %291 : vector<1x128x128xbf16> to vector<128x128xbf16>
    %cst_299 = arith.constant dense<0.000000e+00> : vector<1x128xf32>
    %293 = tpu.matmul %290, %292, %cst_299 {dimension_numbers = #tpu.dot_dimension_numbers<[1], [0], [0], [1], [0, 0, 1, 1], [], []>} : vector<1x128xbf16>, vector<128x128xbf16>, vector<1x128xf32> -> vector<1x128xf32>
    %294 = arith.addf %278, %293 : vector<1x128xf32>
    %c28_300 = arith.constant 28 : index
    %c0_301 = arith.constant 0 : index
    %295 = vector.load %arg15[%c28_300, %c0_301] : memref<136x128xf32, #tpu.memory_space<vmem>>, vector<1x128xf32>
    %c29_302 = arith.constant 29 : index
    %c0_303 = arith.constant 0 : index
    %296 = vector.load %arg15[%c29_302, %c0_303] : memref<136x128xf32, #tpu.memory_space<vmem>>, vector<1x128xf32>
    %297 = arith.maximumf %295, %296 : vector<1x128xf32>
    %c42_304 = arith.constant 42 : index
    %c0_305 = arith.constant 0 : index
    %298 = vector.load %arg15[%c42_304, %c0_305] : memref<136x128xf32, #tpu.memory_space<vmem>>, vector<1x128xf32>
    %c43_306 = arith.constant 43 : index
    %c0_307 = arith.constant 0 : index
    %299 = vector.load %arg15[%c43_306, %c0_307] : memref<136x128xf32, #tpu.memory_space<vmem>>, vector<1x128xf32>
    %300 = arith.maximumf %298, %299 : vector<1x128xf32>
    %301 = arith.maximumf %297, %300 : vector<1x128xf32>
    %c0_308 = arith.constant 0 : index
    %c0_309 = arith.constant 0 : index
    %302 = vector.load %arg5[%c0_308, %c0_309] : memref<1x128xf32, #tpu.memory_space<vmem>>, vector<1x128xf32>
    %303 = arith.addf %301, %302 : vector<1x128xf32>
    %cst_310 = arith.constant 0.000000e+00 : f32
    %304 = vector.broadcast %cst_310 : f32 to vector<1x128xf32>
    %305 = arith.maximumf %303, %304 : vector<1x128xf32>
    %306 = arith.truncf %305 : vector<1x128xf32> to vector<1x128xbf16>
    %c5_311 = arith.constant 5 : index
    %c0_312 = arith.constant 0 : index
    %c0_313 = arith.constant 0 : index
    %307 = vector.load %arg6[%c5_311, %c0_312, %c0_313] : memref<25x128x128xbf16, #tpu.memory_space<vmem>>, vector<1x128x128xbf16>
    %308 = vector.shape_cast %307 : vector<1x128x128xbf16> to vector<128x128xbf16>
    %cst_314 = arith.constant dense<0.000000e+00> : vector<1x128xf32>
    %309 = tpu.matmul %306, %308, %cst_314 {dimension_numbers = #tpu.dot_dimension_numbers<[1], [0], [0], [1], [0, 0, 1, 1], [], []>} : vector<1x128xbf16>, vector<128x128xbf16>, vector<1x128xf32> -> vector<1x128xf32>
    %310 = arith.addf %294, %309 : vector<1x128xf32>
    %c30_315 = arith.constant 30 : index
    %c0_316 = arith.constant 0 : index
    %311 = vector.load %arg15[%c30_315, %c0_316] : memref<136x128xf32, #tpu.memory_space<vmem>>, vector<1x128xf32>
    %c31_317 = arith.constant 31 : index
    %c0_318 = arith.constant 0 : index
    %312 = vector.load %arg15[%c31_317, %c0_318] : memref<136x128xf32, #tpu.memory_space<vmem>>, vector<1x128xf32>
    %313 = arith.maximumf %311, %312 : vector<1x128xf32>
    %c44_319 = arith.constant 44 : index
    %c0_320 = arith.constant 0 : index
    %314 = vector.load %arg15[%c44_319, %c0_320] : memref<136x128xf32, #tpu.memory_space<vmem>>, vector<1x128xf32>
    %c45_321 = arith.constant 45 : index
    %c0_322 = arith.constant 0 : index
    %315 = vector.load %arg15[%c45_321, %c0_322] : memref<136x128xf32, #tpu.memory_space<vmem>>, vector<1x128xf32>
    %316 = arith.maximumf %314, %315 : vector<1x128xf32>
    %317 = arith.maximumf %313, %316 : vector<1x128xf32>
    %c0_323 = arith.constant 0 : index
    %c0_324 = arith.constant 0 : index
    %318 = vector.load %arg5[%c0_323, %c0_324] : memref<1x128xf32, #tpu.memory_space<vmem>>, vector<1x128xf32>
    %319 = arith.addf %317, %318 : vector<1x128xf32>
    %cst_325 = arith.constant 0.000000e+00 : f32
    %320 = vector.broadcast %cst_325 : f32 to vector<1x128xf32>
    %321 = arith.maximumf %319, %320 : vector<1x128xf32>
    %322 = arith.truncf %321 : vector<1x128xf32> to vector<1x128xbf16>
    %c6_326 = arith.constant 6 : index
    %c0_327 = arith.constant 0 : index
    %c0_328 = arith.constant 0 : index
    %323 = vector.load %arg6[%c6_326, %c0_327, %c0_328] : memref<25x128x128xbf16, #tpu.memory_space<vmem>>, vector<1x128x128xbf16>
    %324 = vector.shape_cast %323 : vector<1x128x128xbf16> to vector<128x128xbf16>
    %cst_329 = arith.constant dense<0.000000e+00> : vector<1x128xf32>
    %325 = tpu.matmul %322, %324, %cst_329 {dimension_numbers = #tpu.dot_dimension_numbers<[1], [0], [0], [1], [0, 0, 1, 1], [], []>} : vector<1x128xbf16>, vector<128x128xbf16>, vector<1x128xf32> -> vector<1x128xf32>
    %326 = arith.addf %310, %325 : vector<1x128xf32>
    %c32_330 = arith.constant 32 : index
    %c0_331 = arith.constant 0 : index
    %327 = vector.load %arg15[%c32_330, %c0_331] : memref<136x128xf32, #tpu.memory_space<vmem>>, vector<1x128xf32>
    %c33 = arith.constant 33 : index
    %c0_332 = arith.constant 0 : index
    %328 = vector.load %arg15[%c33, %c0_332] : memref<136x128xf32, #tpu.memory_space<vmem>>, vector<1x128xf32>
    %329 = arith.maximumf %327, %328 : vector<1x128xf32>
    %c46_333 = arith.constant 46 : index
    %c0_334 = arith.constant 0 : index
    %330 = vector.load %arg15[%c46_333, %c0_334] : memref<136x128xf32, #tpu.memory_space<vmem>>, vector<1x128xf32>
    %c47 = arith.constant 47 : index
    %c0_335 = arith.constant 0 : index
    %331 = vector.load %arg15[%c47, %c0_335] : memref<136x128xf32, #tpu.memory_space<vmem>>, vector<1x128xf32>
    %332 = arith.maximumf %330, %331 : vector<1x128xf32>
    %333 = arith.maximumf %329, %332 : vector<1x128xf32>
    %c0_336 = arith.constant 0 : index
    %c0_337 = arith.constant 0 : index
    %334 = vector.load %arg5[%c0_336, %c0_337] : memref<1x128xf32, #tpu.memory_space<vmem>>, vector<1x128xf32>
    %335 = arith.addf %333, %334 : vector<1x128xf32>
    %cst_338 = arith.constant 0.000000e+00 : f32
    %336 = vector.broadcast %cst_338 : f32 to vector<1x128xf32>
    %337 = arith.maximumf %335, %336 : vector<1x128xf32>
    %338 = arith.truncf %337 : vector<1x128xf32> to vector<1x128xbf16>
    %c7_339 = arith.constant 7 : index
    %c0_340 = arith.constant 0 : index
    %c0_341 = arith.constant 0 : index
    %339 = vector.load %arg6[%c7_339, %c0_340, %c0_341] : memref<25x128x128xbf16, #tpu.memory_space<vmem>>, vector<1x128x128xbf16>
    %340 = vector.shape_cast %339 : vector<1x128x128xbf16> to vector<128x128xbf16>
    %cst_342 = arith.constant dense<0.000000e+00> : vector<1x128xf32>
    %341 = tpu.matmul %338, %340, %cst_342 {dimension_numbers = #tpu.dot_dimension_numbers<[1], [0], [0], [1], [0, 0, 1, 1], [], []>} : vector<1x128xbf16>, vector<128x128xbf16>, vector<1x128xf32> -> vector<1x128xf32>
    %342 = arith.addf %326, %341 : vector<1x128xf32>
    %c34 = arith.constant 34 : index
    %c0_343 = arith.constant 0 : index
    %343 = vector.load %arg15[%c34, %c0_343] : memref<136x128xf32, #tpu.memory_space<vmem>>, vector<1x128xf32>
    %c35 = arith.constant 35 : index
    %c0_344 = arith.constant 0 : index
    %344 = vector.load %arg15[%c35, %c0_344] : memref<136x128xf32, #tpu.memory_space<vmem>>, vector<1x128xf32>
    %345 = arith.maximumf %343, %344 : vector<1x128xf32>
    %c48 = arith.constant 48 : index
    %c0_345 = arith.constant 0 : index
    %346 = vector.load %arg15[%c48, %c0_345] : memref<136x128xf32, #tpu.memory_space<vmem>>, vector<1x128xf32>
    %c49 = arith.constant 49 : index
    %c0_346 = arith.constant 0 : index
    %347 = vector.load %arg15[%c49, %c0_346] : memref<136x128xf32, #tpu.memory_space<vmem>>, vector<1x128xf32>
    %348 = arith.maximumf %346, %347 : vector<1x128xf32>
    %349 = arith.maximumf %345, %348 : vector<1x128xf32>
    %c0_347 = arith.constant 0 : index
    %c0_348 = arith.constant 0 : index
    %350 = vector.load %arg5[%c0_347, %c0_348] : memref<1x128xf32, #tpu.memory_space<vmem>>, vector<1x128xf32>
    %351 = arith.addf %349, %350 : vector<1x128xf32>
    %cst_349 = arith.constant 0.000000e+00 : f32
    %352 = vector.broadcast %cst_349 : f32 to vector<1x128xf32>
    %353 = arith.maximumf %351, %352 : vector<1x128xf32>
    %354 = arith.truncf %353 : vector<1x128xf32> to vector<1x128xbf16>
    %c8_350 = arith.constant 8 : index
    %c0_351 = arith.constant 0 : index
    %c0_352 = arith.constant 0 : index
    %355 = vector.load %arg6[%c8_350, %c0_351, %c0_352] : memref<25x128x128xbf16, #tpu.memory_space<vmem>>, vector<1x128x128xbf16>
    %356 = vector.shape_cast %355 : vector<1x128x128xbf16> to vector<128x128xbf16>
    %cst_353 = arith.constant dense<0.000000e+00> : vector<1x128xf32>
    %357 = tpu.matmul %354, %356, %cst_353 {dimension_numbers = #tpu.dot_dimension_numbers<[1], [0], [0], [1], [0, 0, 1, 1], [], []>} : vector<1x128xbf16>, vector<128x128xbf16>, vector<1x128xf32> -> vector<1x128xf32>
    %358 = arith.addf %342, %357 : vector<1x128xf32>
    %c36 = arith.constant 36 : index
    %c0_354 = arith.constant 0 : index
    %359 = vector.load %arg15[%c36, %c0_354] : memref<136x128xf32, #tpu.memory_space<vmem>>, vector<1x128xf32>
    %c37 = arith.constant 37 : index
    %c0_355 = arith.constant 0 : index
    %360 = vector.load %arg15[%c37, %c0_355] : memref<136x128xf32, #tpu.memory_space<vmem>>, vector<1x128xf32>
    %361 = arith.maximumf %359, %360 : vector<1x128xf32>
    %c50 = arith.constant 50 : index
    %c0_356 = arith.constant 0 : index
    %362 = vector.load %arg15[%c50, %c0_356] : memref<136x128xf32, #tpu.memory_space<vmem>>, vector<1x128xf32>
    %c51 = arith.constant 51 : index
    %c0_357 = arith.constant 0 : index
    %363 = vector.load %arg15[%c51, %c0_357] : memref<136x128xf32, #tpu.memory_space<vmem>>, vector<1x128xf32>
    %364 = arith.maximumf %362, %363 : vector<1x128xf32>
    %365 = arith.maximumf %361, %364 : vector<1x128xf32>
    %c0_358 = arith.constant 0 : index
    %c0_359 = arith.constant 0 : index
    %366 = vector.load %arg5[%c0_358, %c0_359] : memref<1x128xf32, #tpu.memory_space<vmem>>, vector<1x128xf32>
    %367 = arith.addf %365, %366 : vector<1x128xf32>
    %cst_360 = arith.constant 0.000000e+00 : f32
    %368 = vector.broadcast %cst_360 : f32 to vector<1x128xf32>
    %369 = arith.maximumf %367, %368 : vector<1x128xf32>
    %370 = arith.truncf %369 : vector<1x128xf32> to vector<1x128xbf16>
    %c9_361 = arith.constant 9 : index
    %c0_362 = arith.constant 0 : index
    %c0_363 = arith.constant 0 : index
    %371 = vector.load %arg6[%c9_361, %c0_362, %c0_363] : memref<25x128x128xbf16, #tpu.memory_space<vmem>>, vector<1x128x128xbf16>
    %372 = vector.shape_cast %371 : vector<1x128x128xbf16> to vector<128x128xbf16>
    %cst_364 = arith.constant dense<0.000000e+00> : vector<1x128xf32>
    %373 = tpu.matmul %370, %372, %cst_364 {dimension_numbers = #tpu.dot_dimension_numbers<[1], [0], [0], [1], [0, 0, 1, 1], [], []>} : vector<1x128xbf16>, vector<128x128xbf16>, vector<1x128xf32> -> vector<1x128xf32>
    %374 = arith.addf %358, %373 : vector<1x128xf32>
    %c56_365 = arith.constant 56 : index
    %c0_366 = arith.constant 0 : index
    %375 = vector.load %arg15[%c56_365, %c0_366] : memref<136x128xf32, #tpu.memory_space<vmem>>, vector<1x128xf32>
    %c57_367 = arith.constant 57 : index
    %c0_368 = arith.constant 0 : index
    %376 = vector.load %arg15[%c57_367, %c0_368] : memref<136x128xf32, #tpu.memory_space<vmem>>, vector<1x128xf32>
    %377 = arith.maximumf %375, %376 : vector<1x128xf32>
    %c70 = arith.constant 70 : index
    %c0_369 = arith.constant 0 : index
    %378 = vector.load %arg15[%c70, %c0_369] : memref<136x128xf32, #tpu.memory_space<vmem>>, vector<1x128xf32>
    %c71 = arith.constant 71 : index
    %c0_370 = arith.constant 0 : index
    %379 = vector.load %arg15[%c71, %c0_370] : memref<136x128xf32, #tpu.memory_space<vmem>>, vector<1x128xf32>
    %380 = arith.maximumf %378, %379 : vector<1x128xf32>
    %381 = arith.maximumf %377, %380 : vector<1x128xf32>
    %c0_371 = arith.constant 0 : index
    %c0_372 = arith.constant 0 : index
    %382 = vector.load %arg5[%c0_371, %c0_372] : memref<1x128xf32, #tpu.memory_space<vmem>>, vector<1x128xf32>
    %383 = arith.addf %381, %382 : vector<1x128xf32>
    %cst_373 = arith.constant 0.000000e+00 : f32
    %384 = vector.broadcast %cst_373 : f32 to vector<1x128xf32>
    %385 = arith.maximumf %383, %384 : vector<1x128xf32>
    %386 = arith.truncf %385 : vector<1x128xf32> to vector<1x128xbf16>
    %c10_374 = arith.constant 10 : index
    %c0_375 = arith.constant 0 : index
    %c0_376 = arith.constant 0 : index
    %387 = vector.load %arg6[%c10_374, %c0_375, %c0_376] : memref<25x128x128xbf16, #tpu.memory_space<vmem>>, vector<1x128x128xbf16>
    %388 = vector.shape_cast %387 : vector<1x128x128xbf16> to vector<128x128xbf16>
    %cst_377 = arith.constant dense<0.000000e+00> : vector<1x128xf32>
    %389 = tpu.matmul %386, %388, %cst_377 {dimension_numbers = #tpu.dot_dimension_numbers<[1], [0], [0], [1], [0, 0, 1, 1], [], []>} : vector<1x128xbf16>, vector<128x128xbf16>, vector<1x128xf32> -> vector<1x128xf32>
    %390 = arith.addf %374, %389 : vector<1x128xf32>
    %c58_378 = arith.constant 58 : index
    %c0_379 = arith.constant 0 : index
    %391 = vector.load %arg15[%c58_378, %c0_379] : memref<136x128xf32, #tpu.memory_space<vmem>>, vector<1x128xf32>
    %c59_380 = arith.constant 59 : index
    %c0_381 = arith.constant 0 : index
    %392 = vector.load %arg15[%c59_380, %c0_381] : memref<136x128xf32, #tpu.memory_space<vmem>>, vector<1x128xf32>
    %393 = arith.maximumf %391, %392 : vector<1x128xf32>
    %c72 = arith.constant 72 : index
    %c0_382 = arith.constant 0 : index
    %394 = vector.load %arg15[%c72, %c0_382] : memref<136x128xf32, #tpu.memory_space<vmem>>, vector<1x128xf32>
    %c73 = arith.constant 73 : index
    %c0_383 = arith.constant 0 : index
    %395 = vector.load %arg15[%c73, %c0_383] : memref<136x128xf32, #tpu.memory_space<vmem>>, vector<1x128xf32>
    %396 = arith.maximumf %394, %395 : vector<1x128xf32>
    %397 = arith.maximumf %393, %396 : vector<1x128xf32>
    %c0_384 = arith.constant 0 : index
    %c0_385 = arith.constant 0 : index
    %398 = vector.load %arg5[%c0_384, %c0_385] : memref<1x128xf32, #tpu.memory_space<vmem>>, vector<1x128xf32>
    %399 = arith.addf %397, %398 : vector<1x128xf32>
    %cst_386 = arith.constant 0.000000e+00 : f32
    %400 = vector.broadcast %cst_386 : f32 to vector<1x128xf32>
    %401 = arith.maximumf %399, %400 : vector<1x128xf32>
    %402 = arith.truncf %401 : vector<1x128xf32> to vector<1x128xbf16>
    %c11_387 = arith.constant 11 : index
    %c0_388 = arith.constant 0 : index
    %c0_389 = arith.constant 0 : index
    %403 = vector.load %arg6[%c11_387, %c0_388, %c0_389] : memref<25x128x128xbf16, #tpu.memory_space<vmem>>, vector<1x128x128xbf16>
    %404 = vector.shape_cast %403 : vector<1x128x128xbf16> to vector<128x128xbf16>
    %cst_390 = arith.constant dense<0.000000e+00> : vector<1x128xf32>
    %405 = tpu.matmul %402, %404, %cst_390 {dimension_numbers = #tpu.dot_dimension_numbers<[1], [0], [0], [1], [0, 0, 1, 1], [], []>} : vector<1x128xbf16>, vector<128x128xbf16>, vector<1x128xf32> -> vector<1x128xf32>
    %406 = arith.addf %390, %405 : vector<1x128xf32>
    %c60_391 = arith.constant 60 : index
    %c0_392 = arith.constant 0 : index
    %407 = vector.load %arg15[%c60_391, %c0_392] : memref<136x128xf32, #tpu.memory_space<vmem>>, vector<1x128xf32>
    %c61 = arith.constant 61 : index
    %c0_393 = arith.constant 0 : index
    %408 = vector.load %arg15[%c61, %c0_393] : memref<136x128xf32, #tpu.memory_space<vmem>>, vector<1x128xf32>
    %409 = arith.maximumf %407, %408 : vector<1x128xf32>
    %c74 = arith.constant 74 : index
    %c0_394 = arith.constant 0 : index
    %410 = vector.load %arg15[%c74, %c0_394] : memref<136x128xf32, #tpu.memory_space<vmem>>, vector<1x128xf32>
    %c75 = arith.constant 75 : index
    %c0_395 = arith.constant 0 : index
    %411 = vector.load %arg15[%c75, %c0_395] : memref<136x128xf32, #tpu.memory_space<vmem>>, vector<1x128xf32>
    %412 = arith.maximumf %410, %411 : vector<1x128xf32>
    %413 = arith.maximumf %409, %412 : vector<1x128xf32>
    %c0_396 = arith.constant 0 : index
    %c0_397 = arith.constant 0 : index
    %414 = vector.load %arg5[%c0_396, %c0_397] : memref<1x128xf32, #tpu.memory_space<vmem>>, vector<1x128xf32>
    %415 = arith.addf %413, %414 : vector<1x128xf32>
    %cst_398 = arith.constant 0.000000e+00 : f32
    %416 = vector.broadcast %cst_398 : f32 to vector<1x128xf32>
    %417 = arith.maximumf %415, %416 : vector<1x128xf32>
    %418 = arith.truncf %417 : vector<1x128xf32> to vector<1x128xbf16>
    %c12_399 = arith.constant 12 : index
    %c0_400 = arith.constant 0 : index
    %c0_401 = arith.constant 0 : index
    %419 = vector.load %arg6[%c12_399, %c0_400, %c0_401] : memref<25x128x128xbf16, #tpu.memory_space<vmem>>, vector<1x128x128xbf16>
    %420 = vector.shape_cast %419 : vector<1x128x128xbf16> to vector<128x128xbf16>
    %cst_402 = arith.constant dense<0.000000e+00> : vector<1x128xf32>
    %421 = tpu.matmul %418, %420, %cst_402 {dimension_numbers = #tpu.dot_dimension_numbers<[1], [0], [0], [1], [0, 0, 1, 1], [], []>} : vector<1x128xbf16>, vector<128x128xbf16>, vector<1x128xf32> -> vector<1x128xf32>
    %422 = arith.addf %406, %421 : vector<1x128xf32>
    %c62 = arith.constant 62 : index
    %c0_403 = arith.constant 0 : index
    %423 = vector.load %arg15[%c62, %c0_403] : memref<136x128xf32, #tpu.memory_space<vmem>>, vector<1x128xf32>
    %c63 = arith.constant 63 : index
    %c0_404 = arith.constant 0 : index
    %424 = vector.load %arg15[%c63, %c0_404] : memref<136x128xf32, #tpu.memory_space<vmem>>, vector<1x128xf32>
    %425 = arith.maximumf %423, %424 : vector<1x128xf32>
    %c76 = arith.constant 76 : index
    %c0_405 = arith.constant 0 : index
    %426 = vector.load %arg15[%c76, %c0_405] : memref<136x128xf32, #tpu.memory_space<vmem>>, vector<1x128xf32>
    %c77 = arith.constant 77 : index
    %c0_406 = arith.constant 0 : index
    %427 = vector.load %arg15[%c77, %c0_406] : memref<136x128xf32, #tpu.memory_space<vmem>>, vector<1x128xf32>
    %428 = arith.maximumf %426, %427 : vector<1x128xf32>
    %429 = arith.maximumf %425, %428 : vector<1x128xf32>
    %c0_407 = arith.constant 0 : index
    %c0_408 = arith.constant 0 : index
    %430 = vector.load %arg5[%c0_407, %c0_408] : memref<1x128xf32, #tpu.memory_space<vmem>>, vector<1x128xf32>
    %431 = arith.addf %429, %430 : vector<1x128xf32>
    %cst_409 = arith.constant 0.000000e+00 : f32
    %432 = vector.broadcast %cst_409 : f32 to vector<1x128xf32>
    %433 = arith.maximumf %431, %432 : vector<1x128xf32>
    %434 = arith.truncf %433 : vector<1x128xf32> to vector<1x128xbf16>
    %c13_410 = arith.constant 13 : index
    %c0_411 = arith.constant 0 : index
    %c0_412 = arith.constant 0 : index
    %435 = vector.load %arg6[%c13_410, %c0_411, %c0_412] : memref<25x128x128xbf16, #tpu.memory_space<vmem>>, vector<1x128x128xbf16>
    %436 = vector.shape_cast %435 : vector<1x128x128xbf16> to vector<128x128xbf16>
    %cst_413 = arith.constant dense<0.000000e+00> : vector<1x128xf32>
    %437 = tpu.matmul %434, %436, %cst_413 {dimension_numbers = #tpu.dot_dimension_numbers<[1], [0], [0], [1], [0, 0, 1, 1], [], []>} : vector<1x128xbf16>, vector<128x128xbf16>, vector<1x128xf32> -> vector<1x128xf32>
    %438 = arith.addf %422, %437 : vector<1x128xf32>
    %c64 = arith.constant 64 : index
    %c0_414 = arith.constant 0 : index
    %439 = vector.load %arg15[%c64, %c0_414] : memref<136x128xf32, #tpu.memory_space<vmem>>, vector<1x128xf32>
    %c65 = arith.constant 65 : index
    %c0_415 = arith.constant 0 : index
    %440 = vector.load %arg15[%c65, %c0_415] : memref<136x128xf32, #tpu.memory_space<vmem>>, vector<1x128xf32>
    %441 = arith.maximumf %439, %440 : vector<1x128xf32>
    %c78 = arith.constant 78 : index
    %c0_416 = arith.constant 0 : index
    %442 = vector.load %arg15[%c78, %c0_416] : memref<136x128xf32, #tpu.memory_space<vmem>>, vector<1x128xf32>
    %c79 = arith.constant 79 : index
    %c0_417 = arith.constant 0 : index
    %443 = vector.load %arg15[%c79, %c0_417] : memref<136x128xf32, #tpu.memory_space<vmem>>, vector<1x128xf32>
    %444 = arith.maximumf %442, %443 : vector<1x128xf32>
    %445 = arith.maximumf %441, %444 : vector<1x128xf32>
    %c0_418 = arith.constant 0 : index
    %c0_419 = arith.constant 0 : index
    %446 = vector.load %arg5[%c0_418, %c0_419] : memref<1x128xf32, #tpu.memory_space<vmem>>, vector<1x128xf32>
    %447 = arith.addf %445, %446 : vector<1x128xf32>
    %cst_420 = arith.constant 0.000000e+00 : f32
    %448 = vector.broadcast %cst_420 : f32 to vector<1x128xf32>
    %449 = arith.maximumf %447, %448 : vector<1x128xf32>
    %450 = arith.truncf %449 : vector<1x128xf32> to vector<1x128xbf16>
    %c14_421 = arith.constant 14 : index
    %c0_422 = arith.constant 0 : index
    %c0_423 = arith.constant 0 : index
    %451 = vector.load %arg6[%c14_421, %c0_422, %c0_423] : memref<25x128x128xbf16, #tpu.memory_space<vmem>>, vector<1x128x128xbf16>
    %452 = vector.shape_cast %451 : vector<1x128x128xbf16> to vector<128x128xbf16>
    %cst_424 = arith.constant dense<0.000000e+00> : vector<1x128xf32>
    %453 = tpu.matmul %450, %452, %cst_424 {dimension_numbers = #tpu.dot_dimension_numbers<[1], [0], [0], [1], [0, 0, 1, 1], [], []>} : vector<1x128xbf16>, vector<128x128xbf16>, vector<1x128xf32> -> vector<1x128xf32>
    %454 = arith.addf %438, %453 : vector<1x128xf32>
    %c84 = arith.constant 84 : index
    %c0_425 = arith.constant 0 : index
    %455 = vector.load %arg15[%c84, %c0_425] : memref<136x128xf32, #tpu.memory_space<vmem>>, vector<1x128xf32>
    %c85 = arith.constant 85 : index
    %c0_426 = arith.constant 0 : index
    %456 = vector.load %arg15[%c85, %c0_426] : memref<136x128xf32, #tpu.memory_space<vmem>>, vector<1x128xf32>
    %457 = arith.maximumf %455, %456 : vector<1x128xf32>
    %c98 = arith.constant 98 : index
    %c0_427 = arith.constant 0 : index
    %458 = vector.load %arg15[%c98, %c0_427] : memref<136x128xf32, #tpu.memory_space<vmem>>, vector<1x128xf32>
    %c99 = arith.constant 99 : index
    %c0_428 = arith.constant 0 : index
    %459 = vector.load %arg15[%c99, %c0_428] : memref<136x128xf32, #tpu.memory_space<vmem>>, vector<1x128xf32>
    %460 = arith.maximumf %458, %459 : vector<1x128xf32>
    %461 = arith.maximumf %457, %460 : vector<1x128xf32>
    %c0_429 = arith.constant 0 : index
    %c0_430 = arith.constant 0 : index
    %462 = vector.load %arg5[%c0_429, %c0_430] : memref<1x128xf32, #tpu.memory_space<vmem>>, vector<1x128xf32>
    %463 = arith.addf %461, %462 : vector<1x128xf32>
    %cst_431 = arith.constant 0.000000e+00 : f32
    %464 = vector.broadcast %cst_431 : f32 to vector<1x128xf32>
    %465 = arith.maximumf %463, %464 : vector<1x128xf32>
    %466 = arith.truncf %465 : vector<1x128xf32> to vector<1x128xbf16>
    %c15_432 = arith.constant 15 : index
    %c0_433 = arith.constant 0 : index
    %c0_434 = arith.constant 0 : index
    %467 = vector.load %arg6[%c15_432, %c0_433, %c0_434] : memref<25x128x128xbf16, #tpu.memory_space<vmem>>, vector<1x128x128xbf16>
    %468 = vector.shape_cast %467 : vector<1x128x128xbf16> to vector<128x128xbf16>
    %cst_435 = arith.constant dense<0.000000e+00> : vector<1x128xf32>
    %469 = tpu.matmul %466, %468, %cst_435 {dimension_numbers = #tpu.dot_dimension_numbers<[1], [0], [0], [1], [0, 0, 1, 1], [], []>} : vector<1x128xbf16>, vector<128x128xbf16>, vector<1x128xf32> -> vector<1x128xf32>
    %470 = arith.addf %454, %469 : vector<1x128xf32>
    %c86 = arith.constant 86 : index
    %c0_436 = arith.constant 0 : index
    %471 = vector.load %arg15[%c86, %c0_436] : memref<136x128xf32, #tpu.memory_space<vmem>>, vector<1x128xf32>
    %c87 = arith.constant 87 : index
    %c0_437 = arith.constant 0 : index
    %472 = vector.load %arg15[%c87, %c0_437] : memref<136x128xf32, #tpu.memory_space<vmem>>, vector<1x128xf32>
    %473 = arith.maximumf %471, %472 : vector<1x128xf32>
    %c100 = arith.constant 100 : index
    %c0_438 = arith.constant 0 : index
    %474 = vector.load %arg15[%c100, %c0_438] : memref<136x128xf32, #tpu.memory_space<vmem>>, vector<1x128xf32>
    %c101 = arith.constant 101 : index
    %c0_439 = arith.constant 0 : index
    %475 = vector.load %arg15[%c101, %c0_439] : memref<136x128xf32, #tpu.memory_space<vmem>>, vector<1x128xf32>
    %476 = arith.maximumf %474, %475 : vector<1x128xf32>
    %477 = arith.maximumf %473, %476 : vector<1x128xf32>
    %c0_440 = arith.constant 0 : index
    %c0_441 = arith.constant 0 : index
    %478 = vector.load %arg5[%c0_440, %c0_441] : memref<1x128xf32, #tpu.memory_space<vmem>>, vector<1x128xf32>
    %479 = arith.addf %477, %478 : vector<1x128xf32>
    %cst_442 = arith.constant 0.000000e+00 : f32
    %480 = vector.broadcast %cst_442 : f32 to vector<1x128xf32>
    %481 = arith.maximumf %479, %480 : vector<1x128xf32>
    %482 = arith.truncf %481 : vector<1x128xf32> to vector<1x128xbf16>
    %c16_443 = arith.constant 16 : index
    %c0_444 = arith.constant 0 : index
    %c0_445 = arith.constant 0 : index
    %483 = vector.load %arg6[%c16_443, %c0_444, %c0_445] : memref<25x128x128xbf16, #tpu.memory_space<vmem>>, vector<1x128x128xbf16>
    %484 = vector.shape_cast %483 : vector<1x128x128xbf16> to vector<128x128xbf16>
    %cst_446 = arith.constant dense<0.000000e+00> : vector<1x128xf32>
    %485 = tpu.matmul %482, %484, %cst_446 {dimension_numbers = #tpu.dot_dimension_numbers<[1], [0], [0], [1], [0, 0, 1, 1], [], []>} : vector<1x128xbf16>, vector<128x128xbf16>, vector<1x128xf32> -> vector<1x128xf32>
    %486 = arith.addf %470, %485 : vector<1x128xf32>
    %c88 = arith.constant 88 : index
    %c0_447 = arith.constant 0 : index
    %487 = vector.load %arg15[%c88, %c0_447] : memref<136x128xf32, #tpu.memory_space<vmem>>, vector<1x128xf32>
    %c89 = arith.constant 89 : index
    %c0_448 = arith.constant 0 : index
    %488 = vector.load %arg15[%c89, %c0_448] : memref<136x128xf32, #tpu.memory_space<vmem>>, vector<1x128xf32>
    %489 = arith.maximumf %487, %488 : vector<1x128xf32>
    %c102 = arith.constant 102 : index
    %c0_449 = arith.constant 0 : index
    %490 = vector.load %arg15[%c102, %c0_449] : memref<136x128xf32, #tpu.memory_space<vmem>>, vector<1x128xf32>
    %c103 = arith.constant 103 : index
    %c0_450 = arith.constant 0 : index
    %491 = vector.load %arg15[%c103, %c0_450] : memref<136x128xf32, #tpu.memory_space<vmem>>, vector<1x128xf32>
    %492 = arith.maximumf %490, %491 : vector<1x128xf32>
    %493 = arith.maximumf %489, %492 : vector<1x128xf32>
    %c0_451 = arith.constant 0 : index
    %c0_452 = arith.constant 0 : index
    %494 = vector.load %arg5[%c0_451, %c0_452] : memref<1x128xf32, #tpu.memory_space<vmem>>, vector<1x128xf32>
    %495 = arith.addf %493, %494 : vector<1x128xf32>
    %cst_453 = arith.constant 0.000000e+00 : f32
    %496 = vector.broadcast %cst_453 : f32 to vector<1x128xf32>
    %497 = arith.maximumf %495, %496 : vector<1x128xf32>
    %498 = arith.truncf %497 : vector<1x128xf32> to vector<1x128xbf16>
    %c17_454 = arith.constant 17 : index
    %c0_455 = arith.constant 0 : index
    %c0_456 = arith.constant 0 : index
    %499 = vector.load %arg6[%c17_454, %c0_455, %c0_456] : memref<25x128x128xbf16, #tpu.memory_space<vmem>>, vector<1x128x128xbf16>
    %500 = vector.shape_cast %499 : vector<1x128x128xbf16> to vector<128x128xbf16>
    %cst_457 = arith.constant dense<0.000000e+00> : vector<1x128xf32>
    %501 = tpu.matmul %498, %500, %cst_457 {dimension_numbers = #tpu.dot_dimension_numbers<[1], [0], [0], [1], [0, 0, 1, 1], [], []>} : vector<1x128xbf16>, vector<128x128xbf16>, vector<1x128xf32> -> vector<1x128xf32>
    %502 = arith.addf %486, %501 : vector<1x128xf32>
    %c90 = arith.constant 90 : index
    %c0_458 = arith.constant 0 : index
    %503 = vector.load %arg15[%c90, %c0_458] : memref<136x128xf32, #tpu.memory_space<vmem>>, vector<1x128xf32>
    %c91 = arith.constant 91 : index
    %c0_459 = arith.constant 0 : index
    %504 = vector.load %arg15[%c91, %c0_459] : memref<136x128xf32, #tpu.memory_space<vmem>>, vector<1x128xf32>
    %505 = arith.maximumf %503, %504 : vector<1x128xf32>
    %c104 = arith.constant 104 : index
    %c0_460 = arith.constant 0 : index
    %506 = vector.load %arg15[%c104, %c0_460] : memref<136x128xf32, #tpu.memory_space<vmem>>, vector<1x128xf32>
    %c105 = arith.constant 105 : index
    %c0_461 = arith.constant 0 : index
    %507 = vector.load %arg15[%c105, %c0_461] : memref<136x128xf32, #tpu.memory_space<vmem>>, vector<1x128xf32>
    %508 = arith.maximumf %506, %507 : vector<1x128xf32>
    %509 = arith.maximumf %505, %508 : vector<1x128xf32>
    %c0_462 = arith.constant 0 : index
    %c0_463 = arith.constant 0 : index
    %510 = vector.load %arg5[%c0_462, %c0_463] : memref<1x128xf32, #tpu.memory_space<vmem>>, vector<1x128xf32>
    %511 = arith.addf %509, %510 : vector<1x128xf32>
    %cst_464 = arith.constant 0.000000e+00 : f32
    %512 = vector.broadcast %cst_464 : f32 to vector<1x128xf32>
    %513 = arith.maximumf %511, %512 : vector<1x128xf32>
    %514 = arith.truncf %513 : vector<1x128xf32> to vector<1x128xbf16>
    %c18_465 = arith.constant 18 : index
    %c0_466 = arith.constant 0 : index
    %c0_467 = arith.constant 0 : index
    %515 = vector.load %arg6[%c18_465, %c0_466, %c0_467] : memref<25x128x128xbf16, #tpu.memory_space<vmem>>, vector<1x128x128xbf16>
    %516 = vector.shape_cast %515 : vector<1x128x128xbf16> to vector<128x128xbf16>
    %cst_468 = arith.constant dense<0.000000e+00> : vector<1x128xf32>
    %517 = tpu.matmul %514, %516, %cst_468 {dimension_numbers = #tpu.dot_dimension_numbers<[1], [0], [0], [1], [0, 0, 1, 1], [], []>} : vector<1x128xbf16>, vector<128x128xbf16>, vector<1x128xf32> -> vector<1x128xf32>
    %518 = arith.addf %502, %517 : vector<1x128xf32>
    %c92 = arith.constant 92 : index
    %c0_469 = arith.constant 0 : index
    %519 = vector.load %arg15[%c92, %c0_469] : memref<136x128xf32, #tpu.memory_space<vmem>>, vector<1x128xf32>
    %c93 = arith.constant 93 : index
    %c0_470 = arith.constant 0 : index
    %520 = vector.load %arg15[%c93, %c0_470] : memref<136x128xf32, #tpu.memory_space<vmem>>, vector<1x128xf32>
    %521 = arith.maximumf %519, %520 : vector<1x128xf32>
    %c106 = arith.constant 106 : index
    %c0_471 = arith.constant 0 : index
    %522 = vector.load %arg15[%c106, %c0_471] : memref<136x128xf32, #tpu.memory_space<vmem>>, vector<1x128xf32>
    %c107 = arith.constant 107 : index
    %c0_472 = arith.constant 0 : index
    %523 = vector.load %arg15[%c107, %c0_472] : memref<136x128xf32, #tpu.memory_space<vmem>>, vector<1x128xf32>
    %524 = arith.maximumf %522, %523 : vector<1x128xf32>
    %525 = arith.maximumf %521, %524 : vector<1x128xf32>
    %c0_473 = arith.constant 0 : index
    %c0_474 = arith.constant 0 : index
    %526 = vector.load %arg5[%c0_473, %c0_474] : memref<1x128xf32, #tpu.memory_space<vmem>>, vector<1x128xf32>
    %527 = arith.addf %525, %526 : vector<1x128xf32>
    %cst_475 = arith.constant 0.000000e+00 : f32
    %528 = vector.broadcast %cst_475 : f32 to vector<1x128xf32>
    %529 = arith.maximumf %527, %528 : vector<1x128xf32>
    %530 = arith.truncf %529 : vector<1x128xf32> to vector<1x128xbf16>
    %c19_476 = arith.constant 19 : index
    %c0_477 = arith.constant 0 : index
    %c0_478 = arith.constant 0 : index
    %531 = vector.load %arg6[%c19_476, %c0_477, %c0_478] : memref<25x128x128xbf16, #tpu.memory_space<vmem>>, vector<1x128x128xbf16>
    %532 = vector.shape_cast %531 : vector<1x128x128xbf16> to vector<128x128xbf16>
    %cst_479 = arith.constant dense<0.000000e+00> : vector<1x128xf32>
    %533 = tpu.matmul %530, %532, %cst_479 {dimension_numbers = #tpu.dot_dimension_numbers<[1], [0], [0], [1], [0, 0, 1, 1], [], []>} : vector<1x128xbf16>, vector<128x128xbf16>, vector<1x128xf32> -> vector<1x128xf32>
    %534 = arith.addf %518, %533 : vector<1x128xf32>
    %c112 = arith.constant 112 : index
    %c0_480 = arith.constant 0 : index
    %535 = vector.load %arg15[%c112, %c0_480] : memref<136x128xf32, #tpu.memory_space<vmem>>, vector<1x128xf32>
    %c113 = arith.constant 113 : index
    %c0_481 = arith.constant 0 : index
    %536 = vector.load %arg15[%c113, %c0_481] : memref<136x128xf32, #tpu.memory_space<vmem>>, vector<1x128xf32>
    %537 = arith.maximumf %535, %536 : vector<1x128xf32>
    %c126 = arith.constant 126 : index
    %c0_482 = arith.constant 0 : index
    %538 = vector.load %arg15[%c126, %c0_482] : memref<136x128xf32, #tpu.memory_space<vmem>>, vector<1x128xf32>
    %c127 = arith.constant 127 : index
    %c0_483 = arith.constant 0 : index
    %539 = vector.load %arg15[%c127, %c0_483] : memref<136x128xf32, #tpu.memory_space<vmem>>, vector<1x128xf32>
    %540 = arith.maximumf %538, %539 : vector<1x128xf32>
    %541 = arith.maximumf %537, %540 : vector<1x128xf32>
    %c0_484 = arith.constant 0 : index
    %c0_485 = arith.constant 0 : index
    %542 = vector.load %arg5[%c0_484, %c0_485] : memref<1x128xf32, #tpu.memory_space<vmem>>, vector<1x128xf32>
    %543 = arith.addf %541, %542 : vector<1x128xf32>
    %cst_486 = arith.constant 0.000000e+00 : f32
    %544 = vector.broadcast %cst_486 : f32 to vector<1x128xf32>
    %545 = arith.maximumf %543, %544 : vector<1x128xf32>
    %546 = arith.truncf %545 : vector<1x128xf32> to vector<1x128xbf16>
    %c20_487 = arith.constant 20 : index
    %c0_488 = arith.constant 0 : index
    %c0_489 = arith.constant 0 : index
    %547 = vector.load %arg6[%c20_487, %c0_488, %c0_489] : memref<25x128x128xbf16, #tpu.memory_space<vmem>>, vector<1x128x128xbf16>
    %548 = vector.shape_cast %547 : vector<1x128x128xbf16> to vector<128x128xbf16>
    %cst_490 = arith.constant dense<0.000000e+00> : vector<1x128xf32>
    %549 = tpu.matmul %546, %548, %cst_490 {dimension_numbers = #tpu.dot_dimension_numbers<[1], [0], [0], [1], [0, 0, 1, 1], [], []>} : vector<1x128xbf16>, vector<128x128xbf16>, vector<1x128xf32> -> vector<1x128xf32>
    %550 = arith.addf %534, %549 : vector<1x128xf32>
    %c114 = arith.constant 114 : index
    %c0_491 = arith.constant 0 : index
    %551 = vector.load %arg15[%c114, %c0_491] : memref<136x128xf32, #tpu.memory_space<vmem>>, vector<1x128xf32>
    %c115 = arith.constant 115 : index
    %c0_492 = arith.constant 0 : index
    %552 = vector.load %arg15[%c115, %c0_492] : memref<136x128xf32, #tpu.memory_space<vmem>>, vector<1x128xf32>
    %553 = arith.maximumf %551, %552 : vector<1x128xf32>
    %c128 = arith.constant 128 : index
    %c0_493 = arith.constant 0 : index
    %554 = vector.load %arg15[%c128, %c0_493] : memref<136x128xf32, #tpu.memory_space<vmem>>, vector<1x128xf32>
    %c129 = arith.constant 129 : index
    %c0_494 = arith.constant 0 : index
    %555 = vector.load %arg15[%c129, %c0_494] : memref<136x128xf32, #tpu.memory_space<vmem>>, vector<1x128xf32>
    %556 = arith.maximumf %554, %555 : vector<1x128xf32>
    %557 = arith.maximumf %553, %556 : vector<1x128xf32>
    %c0_495 = arith.constant 0 : index
    %c0_496 = arith.constant 0 : index
    %558 = vector.load %arg5[%c0_495, %c0_496] : memref<1x128xf32, #tpu.memory_space<vmem>>, vector<1x128xf32>
    %559 = arith.addf %557, %558 : vector<1x128xf32>
    %cst_497 = arith.constant 0.000000e+00 : f32
    %560 = vector.broadcast %cst_497 : f32 to vector<1x128xf32>
    %561 = arith.maximumf %559, %560 : vector<1x128xf32>
    %562 = arith.truncf %561 : vector<1x128xf32> to vector<1x128xbf16>
    %c21_498 = arith.constant 21 : index
    %c0_499 = arith.constant 0 : index
    %c0_500 = arith.constant 0 : index
    %563 = vector.load %arg6[%c21_498, %c0_499, %c0_500] : memref<25x128x128xbf16, #tpu.memory_space<vmem>>, vector<1x128x128xbf16>
    %564 = vector.shape_cast %563 : vector<1x128x128xbf16> to vector<128x128xbf16>
    %cst_501 = arith.constant dense<0.000000e+00> : vector<1x128xf32>
    %565 = tpu.matmul %562, %564, %cst_501 {dimension_numbers = #tpu.dot_dimension_numbers<[1], [0], [0], [1], [0, 0, 1, 1], [], []>} : vector<1x128xbf16>, vector<128x128xbf16>, vector<1x128xf32> -> vector<1x128xf32>
    %566 = arith.addf %550, %565 : vector<1x128xf32>
    %c116 = arith.constant 116 : index
    %c0_502 = arith.constant 0 : index
    %567 = vector.load %arg15[%c116, %c0_502] : memref<136x128xf32, #tpu.memory_space<vmem>>, vector<1x128xf32>
    %c117 = arith.constant 117 : index
    %c0_503 = arith.constant 0 : index
    %568 = vector.load %arg15[%c117, %c0_503] : memref<136x128xf32, #tpu.memory_space<vmem>>, vector<1x128xf32>
    %569 = arith.maximumf %567, %568 : vector<1x128xf32>
    %c130 = arith.constant 130 : index
    %c0_504 = arith.constant 0 : index
    %570 = vector.load %arg15[%c130, %c0_504] : memref<136x128xf32, #tpu.memory_space<vmem>>, vector<1x128xf32>
    %c131 = arith.constant 131 : index
    %c0_505 = arith.constant 0 : index
    %571 = vector.load %arg15[%c131, %c0_505] : memref<136x128xf32, #tpu.memory_space<vmem>>, vector<1x128xf32>
    %572 = arith.maximumf %570, %571 : vector<1x128xf32>
    %573 = arith.maximumf %569, %572 : vector<1x128xf32>
    %c0_506 = arith.constant 0 : index
    %c0_507 = arith.constant 0 : index
    %574 = vector.load %arg5[%c0_506, %c0_507] : memref<1x128xf32, #tpu.memory_space<vmem>>, vector<1x128xf32>
    %575 = arith.addf %573, %574 : vector<1x128xf32>
    %cst_508 = arith.constant 0.000000e+00 : f32
    %576 = vector.broadcast %cst_508 : f32 to vector<1x128xf32>
    %577 = arith.maximumf %575, %576 : vector<1x128xf32>
    %578 = arith.truncf %577 : vector<1x128xf32> to vector<1x128xbf16>
    %c22_509 = arith.constant 22 : index
    %c0_510 = arith.constant 0 : index
    %c0_511 = arith.constant 0 : index
    %579 = vector.load %arg6[%c22_509, %c0_510, %c0_511] : memref<25x128x128xbf16, #tpu.memory_space<vmem>>, vector<1x128x128xbf16>
    %580 = vector.shape_cast %579 : vector<1x128x128xbf16> to vector<128x128xbf16>
    %cst_512 = arith.constant dense<0.000000e+00> : vector<1x128xf32>
    %581 = tpu.matmul %578, %580, %cst_512 {dimension_numbers = #tpu.dot_dimension_numbers<[1], [0], [0], [1], [0, 0, 1, 1], [], []>} : vector<1x128xbf16>, vector<128x128xbf16>, vector<1x128xf32> -> vector<1x128xf32>
    %582 = arith.addf %566, %581 : vector<1x128xf32>
    %c118 = arith.constant 118 : index
    %c0_513 = arith.constant 0 : index
    %583 = vector.load %arg15[%c118, %c0_513] : memref<136x128xf32, #tpu.memory_space<vmem>>, vector<1x128xf32>
    %c119 = arith.constant 119 : index
    %c0_514 = arith.constant 0 : index
    %584 = vector.load %arg15[%c119, %c0_514] : memref<136x128xf32, #tpu.memory_space<vmem>>, vector<1x128xf32>
    %585 = arith.maximumf %583, %584 : vector<1x128xf32>
    %c132 = arith.constant 132 : index
    %c0_515 = arith.constant 0 : index
    %586 = vector.load %arg15[%c132, %c0_515] : memref<136x128xf32, #tpu.memory_space<vmem>>, vector<1x128xf32>
    %c133 = arith.constant 133 : index
    %c0_516 = arith.constant 0 : index
    %587 = vector.load %arg15[%c133, %c0_516] : memref<136x128xf32, #tpu.memory_space<vmem>>, vector<1x128xf32>
    %588 = arith.maximumf %586, %587 : vector<1x128xf32>
    %589 = arith.maximumf %585, %588 : vector<1x128xf32>
    %c0_517 = arith.constant 0 : index
    %c0_518 = arith.constant 0 : index
    %590 = vector.load %arg5[%c0_517, %c0_518] : memref<1x128xf32, #tpu.memory_space<vmem>>, vector<1x128xf32>
    %591 = arith.addf %589, %590 : vector<1x128xf32>
    %cst_519 = arith.constant 0.000000e+00 : f32
    %592 = vector.broadcast %cst_519 : f32 to vector<1x128xf32>
    %593 = arith.maximumf %591, %592 : vector<1x128xf32>
    %594 = arith.truncf %593 : vector<1x128xf32> to vector<1x128xbf16>
    %c23_520 = arith.constant 23 : index
    %c0_521 = arith.constant 0 : index
    %c0_522 = arith.constant 0 : index
    %595 = vector.load %arg6[%c23_520, %c0_521, %c0_522] : memref<25x128x128xbf16, #tpu.memory_space<vmem>>, vector<1x128x128xbf16>
    %596 = vector.shape_cast %595 : vector<1x128x128xbf16> to vector<128x128xbf16>
    %cst_523 = arith.constant dense<0.000000e+00> : vector<1x128xf32>
    %597 = tpu.matmul %594, %596, %cst_523 {dimension_numbers = #tpu.dot_dimension_numbers<[1], [0], [0], [1], [0, 0, 1, 1], [], []>} : vector<1x128xbf16>, vector<128x128xbf16>, vector<1x128xf32> -> vector<1x128xf32>
    %598 = arith.addf %582, %597 : vector<1x128xf32>
    %c120 = arith.constant 120 : index
    %c0_524 = arith.constant 0 : index
    %599 = vector.load %arg15[%c120, %c0_524] : memref<136x128xf32, #tpu.memory_space<vmem>>, vector<1x128xf32>
    %c121 = arith.constant 121 : index
    %c0_525 = arith.constant 0 : index
    %600 = vector.load %arg15[%c121, %c0_525] : memref<136x128xf32, #tpu.memory_space<vmem>>, vector<1x128xf32>
    %601 = arith.maximumf %599, %600 : vector<1x128xf32>
    %c134 = arith.constant 134 : index
    %c0_526 = arith.constant 0 : index
    %602 = vector.load %arg15[%c134, %c0_526] : memref<136x128xf32, #tpu.memory_space<vmem>>, vector<1x128xf32>
    %c135 = arith.constant 135 : index
    %c0_527 = arith.constant 0 : index
    %603 = vector.load %arg15[%c135, %c0_527] : memref<136x128xf32, #tpu.memory_space<vmem>>, vector<1x128xf32>
    %604 = arith.maximumf %602, %603 : vector<1x128xf32>
    %605 = arith.maximumf %601, %604 : vector<1x128xf32>
    %c0_528 = arith.constant 0 : index
    %c0_529 = arith.constant 0 : index
    %606 = vector.load %arg5[%c0_528, %c0_529] : memref<1x128xf32, #tpu.memory_space<vmem>>, vector<1x128xf32>
    %607 = arith.addf %605, %606 : vector<1x128xf32>
    %cst_530 = arith.constant 0.000000e+00 : f32
    %608 = vector.broadcast %cst_530 : f32 to vector<1x128xf32>
    %609 = arith.maximumf %607, %608 : vector<1x128xf32>
    %610 = arith.truncf %609 : vector<1x128xf32> to vector<1x128xbf16>
    %c24_531 = arith.constant 24 : index
    %c0_532 = arith.constant 0 : index
    %c0_533 = arith.constant 0 : index
    %611 = vector.load %arg6[%c24_531, %c0_532, %c0_533] : memref<25x128x128xbf16, #tpu.memory_space<vmem>>, vector<1x128x128xbf16>
    %612 = vector.shape_cast %611 : vector<1x128x128xbf16> to vector<128x128xbf16>
    %cst_534 = arith.constant dense<0.000000e+00> : vector<1x128xf32>
    %613 = tpu.matmul %610, %612, %cst_534 {dimension_numbers = #tpu.dot_dimension_numbers<[1], [0], [0], [1], [0, 0, 1, 1], [], []>} : vector<1x128xbf16>, vector<128x128xbf16>, vector<1x128xf32> -> vector<1x128xf32>
    %614 = arith.addf %598, %613 : vector<1x128xf32>
    %c0_535 = arith.constant 0 : index
    %c0_536 = arith.constant 0 : index
    %615 = vector.load %arg7[%c0_535, %c0_536] : memref<1x128xf32, #tpu.memory_space<vmem>>, vector<1x128xf32>
    %616 = arith.addf %614, %615 : vector<1x128xf32>
    %cst_537 = arith.constant 0.000000e+00 : f32
    %617 = vector.broadcast %cst_537 : f32 to vector<1x128xf32>
    %618 = arith.maximumf %616, %617 : vector<1x128xf32>
    %619 = arith.truncf %618 : vector<1x128xf32> to vector<1x128xbf16>
    %c0_538 = arith.constant 0 : index
    %c0_539 = arith.constant 0 : index
    %620 = vector.load %arg8[%c0_538, %c0_539] : memref<128x128xbf16, #tpu.memory_space<vmem>>, vector<128x128xbf16>
    %cst_540 = arith.constant dense<0.000000e+00> : vector<1x128xf32>
    %621 = tpu.matmul %619, %620, %cst_540 {dimension_numbers = #tpu.dot_dimension_numbers<[1], [0], [0], [1], [0, 0, 1, 1], [], []>} : vector<1x128xbf16>, vector<128x128xbf16>, vector<1x128xf32> -> vector<1x128xf32>
    %c0_541 = arith.constant 0 : index
    %c0_542 = arith.constant 0 : index
    %622 = vector.load %arg9[%c0_541, %c0_542] : memref<1x128xf32, #tpu.memory_space<vmem>>, vector<1x128xf32>
    %623 = arith.addf %621, %622 : vector<1x128xf32>
    %cst_543 = arith.constant 0.000000e+00 : f32
    %624 = vector.broadcast %cst_543 : f32 to vector<1x128xf32>
    %625 = arith.maximumf %623, %624 : vector<1x128xf32>
    %626 = arith.truncf %625 : vector<1x128xf32> to vector<1x128xbf16>
    %c0_544 = arith.constant 0 : index
    %c0_545 = arith.constant 0 : index
    %627 = vector.load %arg10[%c0_544, %c0_545] : memref<128x128xbf16, #tpu.memory_space<vmem>>, vector<128x128xbf16>
    %cst_546 = arith.constant dense<0.000000e+00> : vector<1x128xf32>
    %628 = tpu.matmul %626, %627, %cst_546 {dimension_numbers = #tpu.dot_dimension_numbers<[1], [0], [0], [1], [0, 0, 1, 1], [], []>} : vector<1x128xbf16>, vector<128x128xbf16>, vector<1x128xf32> -> vector<1x128xf32>
    %c0_547 = arith.constant 0 : index
    %c0_548 = arith.constant 0 : index
    %629 = vector.load %arg11[%c0_547, %c0_548] : memref<1x128xf32, #tpu.memory_space<vmem>>, vector<1x128xf32>
    %630 = arith.addf %628, %629 : vector<1x128xf32>
    %c0_549 = arith.constant 0 : index
    %c0_550 = arith.constant 0 : index
    %c0_551 = arith.constant 0 : index
    %631 = vector.load %arg12[%c0_549, %c0_550, %c0_551] : memref<1x1x128xf32, #tpu.memory_space<vmem>>, vector<1x1x128xf32>
    %632 = vector.shape_cast %631 : vector<1x1x128xf32> to vector<1x128xf32>
    %633 = vector.shape_cast %630 : vector<1x128xf32> to vector<1x1x128xf32>
    tpu.vector_store %arg12[%c0_549, %c0_550, %c0_551], %633 {strides = array<i32>} : memref<1x1x128xf32, #tpu.memory_space<vmem>>, vector<1x1x128xf32>,
    return
  }
  func.func @transform_0(%arg0: i32) -> (i32, i32, i32) {
    %c0_i32 = arith.constant 0 : i32
    %c0_i32_0 = arith.constant 0 : i32
    %c0_i32_1 = arith.constant 0 : i32
    return %arg0, %c0_i32, %c0_i32_0 : i32, i32, i32
  }
  func.func @transform_1(%arg0: i32) -> (i32, i32) {
    %c0_i32 = arith.constant 0 : i32
    %c0_i32_0 = arith.constant 0 : i32
    %c0_i32_1 = arith.constant 0 : i32
    return %c0_i32, %c0_i32_0 : i32, i32
  }
  func.func @transform_2(%arg0: i32) -> (i32, i32) {
    %c0_i32 = arith.constant 0 : i32
    %c0_i32_0 = arith.constant 0 : i32
    %c0_i32_1 = arith.constant 0 : i32
    return %c0_i32, %c0_i32_0 : i32, i32
  }
  func.func @transform_3(%arg0: i32) -> (i32, i32, i32) {
    %c0_i32 = arith.constant 0 : i32
    %c0_i32_0 = arith.constant 0 : i32
    %c0_i32_1 = arith.constant 0 : i32
    %c0_i32_2 = arith.constant 0 : i32
    return %c0_i32, %c0_i32_0, %c0_i32_1 : i32, i32, i32
  }
  func.func @transform_4(%arg0: i32) -> (i32, i32) {
    %c0_i32 = arith.constant 0 : i32
    %c0_i32_0 = arith.constant 0 : i32
    %c0_i32_1 = arith.constant 0 : i32
    return %c0_i32, %c0_i32_0 : i32, i32
  }
  func.func @transform_5(%arg0: i32) -> (i32, i32, i32) {
    %c0_i32 = arith.constant 0 : i32
    %c0_i32_0 = arith.constant 0 : i32
    %c0_i32_1 = arith.constant 0 : i32
    %c0_i32_2 = arith.constant 0 : i32
    return %c0_i32, %c0_i32_0, %c0_i32_1 : i32, i32, i32
  }
  func.func @transform_6(%arg0: i32) -> (i32, i32) {
    %c0_i32 = arith.constant 0 : i32
    %c0_i32_0 = arith.constant 0 : i32
    %c0_i32_1 = arith.constant 0 : i32
    return %c0_i32, %c0_i32_0 : i32, i32
  }
  func.func @transform_7(%arg0: i32) -> (i32, i32) {
    %c0_i32 = arith.constant 0 : i32
    %c0_i32_0 = arith.constant 0 : i32
    %c0_i32_1 = arith.constant 0 : i32
    return %c0_i32, %c0_i32_0 : i32, i32
  }
  func.func @transform_8(%arg0: i32) -> (i32, i32) {
    %c0_i32 = arith.constant 0 : i32
    %c0_i32_0 = arith.constant 0 : i32
    %c0_i32_1 = arith.constant 0 : i32
    return %c0_i32, %c0_i32_0 : i32, i32
  }
  func.func @transform_9(%arg0: i32) -> (i32, i32) {
    %c0_i32 = arith.constant 0 : i32
    %c0_i32_0 = arith.constant 0 : i32
    %c0_i32_1 = arith.constant 0 : i32
    return %c0_i32, %c0_i32_0 : i32, i32
  }
  func.func @transform_10(%arg0: i32) -> (i32, i32) {
    %c0_i32 = arith.constant 0 : i32
    %c0_i32_0 = arith.constant 0 : i32
    %c0_i32_1 = arith.constant 0 : i32
    return %c0_i32, %c0_i32_0 : i32, i32
  }
  func.func @transform_11(%arg0: i32) -> (i32, i32, i32) {
    %c0_i32 = arith.constant 0 : i32
    %c0_i32_0 = arith.constant 0 : i32
    %c0_i32_1 = arith.constant 0 : i32
    return %arg0, %c0_i32, %c0_i32_0 : i32, i32, i32
  }
}

</mosaic_0001>

<bundles_post_ra>
// kernel: net_forward.1
= control target key start
LH: loop header
LB: loop body
LE: loop exit
PB: predicated region body
PF: predicated region fallthrough
CT: control target
= control target key end

     0   :  { %s14321_s0 = inlined_call_operand.vmem [shape: bf16[2,800,128], index: 0, kind: input, shape index: {}]   ;;  %s14322_s1 = inlined_call_operand.vmem [shape: bf16[128,128], index: 1, kind: input, shape index: {}]   ;;  %s14323_s2 = inlined_call_operand.vmem [shape: f32[1,128], index: 2, kind: input, shape index: {}]   ;;  %s14324_s3 = inlined_call_operand.vmem [shape: bf16[25,128,128], index: 3, kind: input, shape index: {}]   ;;  %s14325_s4 = inlined_call_operand.vmem [shape: f32[1,128], index: 4, kind: input, shape index: {}]   ;;  %s14326_s5 = inlined_call_operand.vmem [shape: bf16[25,128,128], index: 5, kind: input, shape index: {}]   ;;  %s14327_s6 = inlined_call_operand.vmem [shape: f32[1,128], index: 6, kind: input, shape index: {}]   ;;  %s14328_s7 = inlined_call_operand.vmem [shape: bf16[128,128], index: 7, kind: input, shape index: {}]   ;;  %s14329_s8 = inlined_call_operand.vmem [shape: f32[1,128], index: 8, kind: input, shape index: {}]   ;;  %s14330_s9 = inlined_call_operand.vmem [shape: bf16[128,128], index: 9, kind: input, shape index: {}]   ;;  %s14331_s10 = inlined_call_operand.vmem [shape: f32[1,128], index: 10, kind: input, shape index: {}]   ;;  %s14332_s11 = inlined_call_operand.hbm [shape: f32[2,1,128], index: 11, kind: output, shape index: {}]  }
   0x1   :  { %14333 = sst [smem:[#allocation21_spill]] %s14321_s0 }
   0x2   :  { %16 = vsyncpa [#allocation6], 0 }
   0x3   :  { %18 = vsyncpa [#allocation6 + $0x1], 0  ;;  %s12074_s17 = smov 0   ;;  %s12076_s18 = smov 0  }
   0x4   :  { %s12078_s19 = smov 0   ;;  %s12080_s20 = smov 0  }
   0x5 LB: > { %s12095_s21 = sadd.s32 4294967295, %s12012_s20   ;;  %s8755_s22 = sadd.s32 4294967294, %s12012_s20   ;;  %s12012_s20 = sphi %s12080_s20, %s14384_s20   ;;  %s12008_s19 = sphi %s12078_s19, %s14383_s19   ;;  %s12004_s18 = sphi %s12076_s18, %s14382_s18   ;;  %s12000_s17 = sphi %s12074_s17, %s14381_s17  }
   0x6   : > { %s12099_s23 = sadd.s32 1, %s12012_s20   ;;  %s267_s24 = sadd.s32 1, %s12008_s19 }
   0x7   : > { %s264_s25 = ssub.s32 %s12012_s20, %s12099_s23  ;;  %p277_p0 = scmp.ne.s32.totalorder %s12008_s19, %s12004_s18 }
   0x8   : > { %p265_p1 = scmp.eq.s32.totalorder %s264_s25, 0  ;;  %p278_p2 = scmp.eq.s32.totalorder %s12095_s21, 1 }
   0x9   : > { %p283_p3 = scmp.ne.s32.totalorder %s12004_s18, %s12000_s17  ;;  %p284_p4 = scmp.eq.s32.totalorder %s8755_s22, 1 }
   0xa   : > { %s12110_s26 = scalar_select %p265_p1, %s12008_s19, %s267_s24  }
   0xb   : > { %p12112_p5 = por %p278_p2, %p277_p0  ;;  %p12116_p6 = por %p284_p4, %p283_p3 }
   0xc   : > { %14334 = sst [smem:[#allocation8_spill]] %s12110_s26  ;;  %p8758_p7 = scmp.ge.s32.totalorder %s12012_s20, 1 }
   0xd   : > { %p340_p8 = scmp.lt.s32.totalorder %s12012_s20, 3 }
   0xf   : > { %p341_p9 = pnand %p8758_p7, %p340_p8 }
  0x11   : > { %344 = sbr.rel (%p341_p9) target bundleno = 2636 (0xa4c), region = 64 }
  0x16   : > { %v11483_v0 = vld [vmem:[%s14322_s1 + $0x38] sm:$0xff]  ;;  %v11482_v1 = vld [vmem:[%s14322_s1 + $0x30] sm:$0xff]  ;;  %v11481_v2 = vld [vmem:[%s14322_s1 + $0x28] sm:$0xff]  ;;  %p379_p10 = scmp.lt.s32.totalorder %s12095_s21, 1  ;;  %s14337_s0 = sld [smem:[#allocation21_spill]] }
  0x17   : > { %848 = vmatpush.bf16.msra.mxu0 %v11483_v0  ;;  %v11480_v3 = vld [vmem:[%s14322_s1 + $0x20] sm:$0xff]  ;;  %v11479_v4 = vld [vmem:[%s14322_s1 + $0x18] sm:$0xff]  ;;  %v11478_v5 = vld [vmem:[%s14322_s1 + $0x10] sm:$0xff]  ;;  %s377_s30 = sand.u32 1, %s12004_s18   ;;  %s8696_s14 = scalar_lea.hbm %s14332_s11, %s12095_s21 }
  0x18   : > { %s380_s12 = scalar_select %p379_p10, %s12095_s21, 1  ;;  %v11477_v6 = vld [vmem:[%s14322_s1 + $0x8] sm:$0xff]  ;;  %v11476_v7 = vld [vmem:[%s14322_s1] sm:$0xff] }
  0x19   : > { %s378_s16 = scalar_lea.vmem [#allocation5], %s377_s30  ;;  %s8700_s24 = sshll.u32 %s8696_s14, 4  ;;  %s8701_s24 = int_to_ptr.hbm [resolvable:$true] %s8700_s24 }
  0x1a   : > { %s11900_s15 = smul.u32 400, %s380_s12  ;;  %s8698_s22 = sshll.u32 %s378_s16, 4  ;;  %s8699_s22 = int_to_ptr.vmem [resolvable:$true] %s8698_s22 }
  0x1b   : > { %849 = vmatpush.bf16.msra.mxu0 %v11482_v1  ;;  %s8688_s25 = scalar_lea.sflag [#allocation6], %s377_s30  ;;  %s11964_s29 = sshra.s32 %s8701_s24, 4  ;;  %s11965_s29 = int_to_ptr.hbm [resolvable:$true] %s11964_s29 }
  0x1c   : > { %s12151_s26 = scalar_lea.vmem %s14337_s0, %s11900_s15  ;;  %s11966_s0 = scalar_lea.hbm %s11965_s29, 1 }
  0x1d   : > { %v11426_v8 = vld [vmem:[%s12151_s26] sm:$0xff]  ;;  %v11427_v9 = vld [vmem:[%s12151_s26 + $0x8] sm:$0xff]  ;;  %v11428_v10 = vld [vmem:[%s12151_s26 + $0x10] sm:$0xff]  ;;  %p11967_p11 = scmp.ne.s32.totalorder %s11965_s29, %s11966_s0  ;;  %s11970_s13 = scalar_lea.hbm %s14332_s11, 2 }
  0x1e   : > { %v11429_v11 = vld [vmem:[%s12151_s26 + $0x18] sm:$0xff]  ;;  %v11430_v12 = vld [vmem:[%s12151_s26 + $0x20] sm:$0xff]  ;;  %v11431_v13 = vld [vmem:[%s12151_s26 + $0x28] sm:$0xff]  ;;  %p11971_p0 = scmp.lt.s32.totalorder %s11965_s29, %s14332_s11  ;;  %p11972_p1 = scmp.lt.s32.totalorder %s11970_s13, %s11966_s0 }
  0x1f   : > { %850 = vmatpush.bf16.msra.mxu0 %v11481_v2  ;;  %v11432_v14 = vld [vmem:[%s12151_s26 + $0x30] sm:$0xff]  ;;  %v11433_v15 = vld [vmem:[%s12151_s26 + $0x38] sm:$0xff]  ;;  %v11434_v16 = vld [vmem:[%s12151_s26 + $0x40] sm:$0xff]  ;;  %p11968_p12 = pnand %p11967_p11, %p12112_p5 }
  0x20   : > { %v11435_v19 = vld [vmem:[%s12151_s26 + $0x48] sm:$0xff]  ;;  %v11436_v22 = vld [vmem:[%s12151_s26 + $0x50] sm:$0xff]  ;;  %v11437_v25 = vld [vmem:[%s12151_s26 + $0x58] sm:$0xff]  ;;  %p11973_p2 = por %p11972_p1, %p11971_p0 }
  0x21   : > { %v11438_v28 = vld [vmem:[%s12151_s26 + $0x60] sm:$0xff]  ;;  %v11439_v31 = vld [vmem:[%s12151_s26 + $0x68] sm:$0xff]  ;;  %v11440_v34 = vld [vmem:[%s12151_s26 + $0x70] sm:$0xff]  ;;  %p11969_p13 = pneg %p11968_p12 }
  0x22   : > { %v11441_v37 = vld [vmem:[%s12151_s26 + $0x78] sm:$0xff]  ;;  %v11442_v40 = vld [vmem:[%s12151_s26 + $0x80] sm:$0xff]  ;;  %v11443_v43 = vld [vmem:[%s12151_s26 + $0x88] sm:$0xff] }
  0x23   : > { %851 = vmatpush.bf16.msra.mxu0 %v11480_v3  ;;  %v11444_v46 = vld [vmem:[%s12151_s26 + $0x90] sm:$0xff]  ;;  %v11445_v49 = vld [vmem:[%s12151_s26 + $0x98] sm:$0xff]  ;;  %v11446_v52 = vld [vmem:[%s12151_s26 + $0xa0] sm:$0xff]  ;;  %p11974_p3 = pnand %p11973_p2, %p11969_p13 }
  0x24   : > { %v11447_v55 = vld [vmem:[%s12151_s26 + $0xa8] sm:$0xff]  ;;  %v11448_v58 = vld [vmem:[%s12151_s26 + $0xb0] sm:$0xff]  ;;  %v11449_v61 = vld [vmem:[%s12151_s26 + $0xb8] sm:$0xff] }
  0x25   : > { %v11450_v0 = vld [vmem:[%s12151_s26 + $0xc0] sm:$0xff]  ;;  %v11451_v3 = vld [vmem:[%s12151_s26 + $0xc8] sm:$0xff] }
  0x27   : > { %852 = vmatpush.bf16.msra.mxu0 %v11479_v4 }
  0x2b   : > { %853 = vmatpush.bf16.msra.mxu0 %v11478_v5 }
  0x2f   : > { %854 = vmatpush.bf16.msra.mxu0 %v11477_v6  ;;  %v11452_v6 = vld [vmem:[%s12151_s26 + $0xd0] sm:$0xff] }
  0x33   : > { %855 = vmatpush.bf16.msra.mxu0 %v11476_v7 }
  0x36   : > { %856 = vmatmul.bf16.vlgmr.msra.gmra.mxu0 %v11426_v8 }
  0x46   : > { %861 = vmatmul.bf16.gmra.mxu0 %v11427_v9  ;;  %v11453_v9 = vld [vmem:[%s12151_s26 + $0xd8] sm:$0xff] }
  0x56   : > { %866 = vmatmul.bf16.gmra.mxu0 %v11428_v10 }
  0x66   : > { %871 = vmatmul.bf16.gmra.mxu0 %v11429_v11 }
  0x76   : > { %876 = vmatmul.bf16.gmra.mxu0 %v11430_v12  ;;  %v11454_v12 = vld [vmem:[%s12151_s26 + $0xe0] sm:$0xff] }
  0x86   : > { %881 = vmatmul.bf16.gmra.mxu0 %v11431_v13 }
  0x96   : > { %886 = vmatmul.bf16.gmra.mxu0 %v11432_v14 }
  0xa6   : > { %891 = vmatmul.bf16.gmra.mxu0 %v11433_v15  ;;  %v11455_v15 = vld [vmem:[%s12151_s26 + $0xe8] sm:$0xff] }
  0xb3   : > { %v12162_v17 = vpop.f32.mrf.mxu0 }
  0xb6   : > { %896 = vmatmul.bf16.gmra.mxu0 %v11434_v16 }
  0xbb   : > { %v12164_v18 = vpop.f32.mrf.mxu0 }
  0xc3   : > { %v12167_v20 = vpop.f32.mrf.mxu0 }
  0xc6   : > { %901 = vmatmul.bf16.gmra.mxu0 %v11435_v19 }
  0xcb   : > { %v12169_v21 = vpop.f32.mrf.mxu0 }
  0xd3   : > { %v12172_v23 = vpop.f32.mrf.mxu0 }
  0xd6   : > { %906 = vmatmul.bf16.gmra.mxu0 %v11436_v22  ;;  %v11456_v22 = vld [vmem:[%s12151_s26 + $0xf0] sm:$0xff] }
  0xdb   : > { %v12174_v24 = vpop.f32.mrf.mxu0 }
  0xe3   : > { %v12177_v26 = vpop.f32.mrf.mxu0 }
  0xe6   : > { %911 = vmatmul.bf16.gmra.mxu0 %v11437_v25 }
  0xeb   : > { %v12179_v27 = vpop.f32.mrf.mxu0 }
  0xf3   : > { %v12182_v29 = vpop.f32.mrf.mxu0 }
  0xf6   : > { %916 = vmatmul.bf16.gmra.mxu0 %v11438_v28 }
  0xfb   : > { %v12184_v30 = vpop.f32.mrf.mxu0 }
 0x103   : > { %v12187_v32 = vpop.f32.mrf.mxu0 }
 0x106   : > { %921 = vmatmul.bf16.gmra.mxu0 %v11439_v31  ;;  %v11457_v31 = vld [vmem:[%s12151_s26 + $0xf8] sm:$0xff] }
 0x10b   : > { %v12189_v33 = vpop.f32.mrf.mxu0 }
 0x113   : > { %v12192_v35 = vpop.f32.mrf.mxu0 }
 0x116   : > { %926 = vmatmul.bf16.gmra.mxu0 %v11440_v34 }
 0x11b   : > { %v12194_v36 = vpop.f32.mrf.mxu0 }
 0x123   : > { %v12197_v38 = vpop.f32.mrf.mxu0 }
 0x126   : > { %931 = vmatmul.bf16.gmra.mxu0 %v11441_v37 }
 0x12b   : > { %v12199_v39 = vpop.f32.mrf.mxu0 }
 0x133   : > { %v12202_v41 = vpop.f32.mrf.mxu0 }
 0x136   : > { %936 = vmatmul.bf16.gmra.mxu0 %v11442_v40  ;;  %v11458_v40 = vld [vmem:[%s12151_s26 + $0x100] sm:$0xff] }
 0x13b   : > { %v12204_v42 = vpop.f32.mrf.mxu0 }
 0x13c   : > { %14338 = vst [vmem:[#allocation9_spill] sm:$0xff] %v12204_v42 }
 0x143   : > { %v902_v44 = vpop.f32.mrf.mxu0 }
 0x144   : > { %1125 = vst [vmem:[#allocation2 + $0x140] sm:$0xff] %v902_v44 }
 0x146   : > { %941 = vmatmul.bf16.gmra.mxu0 %v11443_v43 }
 0x14b   : > { %v904_v45 = vpop.f32.mrf.mxu0 }
 0x14c   : > { %1126 = vst [vmem:[#allocation2 + $0x2c8] sm:$0xff] %v904_v45  ;;  %v11459_v45 = vld [vmem:[%s12151_s26 + $0x108] sm:$0xff] }
 0x153   : > { %v907_v47 = vpop.f32.mrf.mxu0 }
 0x154   : > { %1127 = vst [vmem:[#allocation2 + $0x260] sm:$0xff] %v907_v47 }
 0x156   : > { %946 = vmatmul.bf16.gmra.mxu0 %v11444_v46 }
 0x15b   : > { %v909_v48 = vpop.f32.mrf.mxu0 }
 0x15c   : > { %1128 = vst [vmem:[#allocation2 + $0x100] sm:$0xff] %v909_v48  ;;  %v11460_v48 = vld [vmem:[%s12151_s26 + $0x110] sm:$0xff] }
 0x163   : > { %v912_v50 = vpop.f32.mrf.mxu0 }
 0x164   : > { %1129 = vst [vmem:[#allocation2 + $0x80] sm:$0xff] %v912_v50 }
 0x166   : > { %951 = vmatmul.bf16.gmra.mxu0 %v11445_v49 }
 0x16b   : > { %v914_v51 = vpop.f32.mrf.mxu0 }
 0x16c   : > { %1130 = vst [vmem:[#allocation2 + $0x240] sm:$0xff] %v914_v51  ;;  %v11461_v51 = vld [vmem:[%s12151_s26 + $0x118] sm:$0xff] }
 0x173   : > { %v917_v53 = vpop.f32.mrf.mxu0 }
 0x174   : > { %1131 = vst [vmem:[#allocation2 + $0xc0] sm:$0xff] %v917_v53 }
 0x176   : > { %956 = vmatmul.bf16.gmra.mxu0 %v11446_v52 }
 0x17b   : > { %v12210_v54 = vpop.f32.mrf.mxu0 }
 0x183   : > { %v12213_v56 = vpop.f32.mrf.mxu0 }
 0x184   : > { %v1258_v42 = vmax.f32 %v12164_v18, %v12213_v56 }
 0x186   : > { %961 = vmatmul.bf16.gmra.mxu0 %v11447_v55  ;;  %v11462_v55 = vld [vmem:[%s12151_s26 + $0x120] sm:$0xff] }
 0x18b   : > { %v12215_v57 = vpop.f32.mrf.mxu0 }
 0x18c   : > { %v1259_v18 = vmax.f32 %v12167_v20, %v12215_v57  ;;  %v11632_v20 = vld [vmem:[%s14324_s3 + $0x4a0] sm:$0xff] }
 0x193   : > { %v12218_v59 = vpop.f32.mrf.mxu0 }
 0x196   : > { %966 = vmatmul.bf16.gmra.mxu0 %v11448_v58 }
 0x19b   : > { %v12220_v60 = vpop.f32.mrf.mxu0 }
 0x1a3   : > { %v12223_v62 = vpop.f32.mrf.mxu0 }
 0x1a6   : > { %971 = vmatmul.bf16.gmra.mxu0 %v11449_v61 }
 0x1ab   : > { %v12225_v63 = vpop.f32.mrf.mxu0 }
 0x1b3   : > { %v12228_v1 = vpop.f32.mrf.mxu0 }
 0x1b6   : > { %976 = vmatmul.bf16.gmra.mxu0 %v11450_v0  ;;  %v11463_v0 = vld [vmem:[%s12151_s26 + $0x128] sm:$0xff] }
 0x1bb   : > { %v12230_v2 = vpop.f32.mrf.mxu0 }
 0x1c3   : > { %v12233_v4 = vpop.f32.mrf.mxu0 }
 0x1c6   : > { %981 = vmatmul.bf16.gmra.mxu0 %v11451_v3 }
 0x1cb   : > { %v12235_v5 = vpop.f32.mrf.mxu0 }
 0x1d3   : > { %v12238_v7 = vpop.f32.mrf.mxu0 }
 0x1d6   : > { %986 = vmatmul.bf16.gmra.mxu0 %v11452_v6 }
 0x1db   : > { %v12240_v8 = vpop.f32.mrf.mxu0 }
 0x1e3   : > { %v12243_v10 = vpop.f32.mrf.mxu0 }
 0x1e6   : > { %991 = vmatmul.bf16.gmra.mxu0 %v11453_v9  ;;  %v11464_v9 = vld [vmem:[%s12151_s26 + $0x130] sm:$0xff] }
 0x1eb   : > { %v12245_v11 = vpop.f32.mrf.mxu0 }
 0x1f3   : > { %v12248_v13 = vpop.f32.mrf.mxu0 }
 0x1f6   : > { %996 = vmatmul.bf16.gmra.mxu0 %v11454_v12 }
 0x1fb   : > { %v12250_v14 = vpop.f32.mrf.mxu0 }
 0x203   : > { %v12253_v16 = vpop.f32.mrf.mxu0 }
 0x206   : > { %1001 = vmatmul.bf16.gmra.mxu0 %v11455_v15 }
 0x20b   : > { %v12255_v19 = vpop.f32.mrf.mxu0 }
 0x20c   : > { %14339 = vst [vmem:[#allocation10_spill] sm:$0xff] %v12255_v19 }
 0x213   : > { %v12258_v25 = vpop.f32.mrf.mxu0 }
 0x214   : > { %14340 = vst [vmem:[#allocation11_spill] sm:$0xff] %v12258_v25 }
 0x216   : > { %1006 = vmatmul.bf16.gmra.mxu0 %v11456_v22  ;;  %v11465_v22 = vld [vmem:[%s12151_s26 + $0x138] sm:$0xff] }
 0x21b   : > { %v12260_v28 = vpop.f32.mrf.mxu0 }
 0x21c   : > { %14341 = vst [vmem:[#allocation12_spill] sm:$0xff] %v12260_v28 }
 0x223   : > { %v12263_v34 = vpop.f32.mrf.mxu0 }
 0x224   : > { %14342 = vst [vmem:[#allocation13_spill] sm:$0xff] %v12263_v34  ;;  %v11469_v34 = vld [vmem:[%s12151_s26 + $0x158] sm:$0xff] }
 0x226   : > { %1011 = vmatmul.bf16.gmra.mxu0 %v11457_v31 }
 0x22b   : > { %v974_v37 = vpop.f32.mrf.mxu0 }
 0x22c   : > { %1154 = vst [vmem:[#allocation2 + $0x2a0] sm:$0xff] %v974_v37 }
 0x233   : > { %v977_v43 = vpop.f32.mrf.mxu0 }
 0x234   : > { %1155 = vst [vmem:[#allocation2 + $0x70] sm:$0xff] %v977_v43 }
 0x236   : > { %1016 = vmatmul.bf16.gmra.mxu0 %v11458_v40  ;;  %v11466_v40 = vld [vmem:[%s12151_s26 + $0x140] sm:$0xff] }
 0x23b   : > { %v979_v44 = vpop.f32.mrf.mxu0 }
 0x23c   : > { %1156 = vst [vmem:[#allocation2 + $0x60] sm:$0xff] %v979_v44 }
 0x243   : > { %v12267_v46 = vpop.f32.mrf.mxu0 }
 0x246   : > { %1021 = vmatmul.bf16.gmra.mxu0 %v11459_v45  ;;  %v11467_v45 = vld [vmem:[%s12151_s26 + $0x148] sm:$0xff] }
 0x24b   : > { %v12269_v47 = vpop.f32.mrf.mxu0 }
 0x253   : > { %v12272_v49 = vpop.f32.mrf.mxu0 }
 0x256   : > { %1026 = vmatmul.bf16.gmra.mxu0 %v11460_v48 }
 0x25b   : > { %v12274_v50 = vpop.f32.mrf.mxu0 }
 0x263   : > { %v12277_v52 = vpop.f32.mrf.mxu0 }
 0x266   : > { %1031 = vmatmul.bf16.gmra.mxu0 %v11461_v51 }
 0x26b   : > { %v12279_v53 = vpop.f32.mrf.mxu0 }
 0x273   : > { %v12282_v58 = vpop.f32.mrf.mxu0 }
 0x276   : > { %1036 = vmatmul.bf16.gmra.mxu0 %v11462_v55  ;;  %v11468_v55 = vld [vmem:[%s12151_s26 + $0x150] sm:$0xff] }
 0x27b   : > { %v12284_v61 = vpop.f32.mrf.mxu0 }
 0x283   : > { %v12287_v3 = vpop.f32.mrf.mxu0 }
 0x286   : > { %1041 = vmatmul.bf16.gmra.mxu0 %v11463_v0 }
 0x28b   : > { %v12289_v6 = vpop.f32.mrf.mxu0 }
 0x293   : > { %v12292_v12 = vpop.f32.mrf.mxu0 }
 0x296   : > { %1046 = vmatmul.bf16.gmra.mxu0 %v11464_v9 }
 0x29b   : > { %v12294_v15 = vpop.f32.mrf.mxu0 }
 0x2a3   : > { %v12297_v31 = vpop.f32.mrf.mxu0 }
 0x2a6   : > { %1051 = vmatmul.bf16.gmra.mxu0 %v11465_v22  ;;  %v11491_v22 = vld [vmem:[%s14324_s3 + $0x38] sm:$0xff] }
 0x2a7   : > { %1551 = vmatpush.bf16.msra.mxu1 %v11491_v22 }
 0x2ab   : > { %v12299_v37 = vpop.f32.mrf.mxu0 }
 0x2b3   : > { %v12302_v43 = vpop.f32.mrf.mxu0 }
 0x2b6   : > { %1056 = vmatmul.bf16.gmra.mxu0 %v11466_v40  ;;  %v11490_v40 = vld [vmem:[%s14324_s3 + $0x30] sm:$0xff] }
 0x2b7   : > { %1552 = vmatpush.bf16.msra.mxu1 %v11490_v40  ;;  %v11507_v40 = vld [vmem:[%s14324_s3 + $0xb8] sm:$0xff] }
 0x2b8   : > { %1907 = vmatpush.bf16.msra.mxu3 %v11507_v40  ;;  %v11505_v40 = vld [vmem:[%s14324_s3 + $0xa8] sm:$0xff] }
 0x2bb   : > { %v12304_v44 = vpop.f32.mrf.mxu0 }
 0x2c3   : > { %v12307_v48 = vpop.f32.mrf.mxu0 }
 0x2c6   : > { %1061 = vmatmul.bf16.gmra.mxu0 %v11467_v45  ;;  %v11489_v45 = vld [vmem:[%s14324_s3 + $0x28] sm:$0xff] }
 0x2c7   : > { %1553 = vmatpush.bf16.msra.mxu1 %v11489_v45  ;;  %v11498_v45 = vld [vmem:[%s14324_s3 + $0x70] sm:$0xff] }
 0x2cb   : > { %v12309_v51 = vpop.f32.mrf.mxu0 }
 0x2cc   : > { %14343 = vst [vmem:[#allocation14_spill] sm:$0xff] %v12309_v51 }
 0x2d3   : > { %v12312_v0 = vpop.f32.mrf.mxu0 }
 0x2d4   : > { %14344 = vst [vmem:[#allocation15_spill] sm:$0xff] %v12312_v0  ;;  %v11472_v0 = vld [vmem:[%s12151_s26 + $0x170] sm:$0xff] }
 0x2d6   : > { %1066 = vmatmul.bf16.gmra.mxu0 %v11468_v55  ;;  %v11488_v55 = vld [vmem:[%s14324_s3 + $0x20] sm:$0xff] }
 0x2d7   : > { %1554 = vmatpush.bf16.msra.mxu1 %v11488_v55  ;;  %v11506_v55 = vld [vmem:[%s14324_s3 + $0xb0] sm:$0xff] }
 0x2d8   : > { %1908 = vmatpush.bf16.msra.mxu3 %v11506_v55  ;;  %v11484_v55 = vld [vmem:[%s14324_s3] sm:$0xff] }
 0x2db   : > { %v12314_v9 = vpop.f32.mrf.mxu0 }
 0x2dc   : > { %14345 = vst [vmem:[#allocation16_spill] sm:$0xff] %v12314_v9  ;;  %v11499_v9 = vld [vmem:[%s14324_s3 + $0x78] sm:$0xff]  ;;  %1909 = vmatpush.bf16.msra.mxu3 %v11505_v40  ;;  %v11494_v40 = vld [vmem:[%s14324_s3 + $0x50] sm:$0xff] }
 0x2dd   : > { %1712 = vmatpush.bf16.msra.mxu2 %v11499_v9  ;;  %v11497_v9 = vld [vmem:[%s14324_s3 + $0x68] sm:$0xff] }
 0x2e1   : > { %1713 = vmatpush.bf16.msra.mxu2 %v11498_v45  ;;  %v11504_v45 = vld [vmem:[%s14324_s3 + $0xa0] sm:$0xff] }
 0x2e2   : > { %1910 = vmatpush.bf16.msra.mxu3 %v11504_v45 }
 0x2e3   : > { %v12323_v28 = vpop.f32.mrf.mxu0 }
 0x2e4   : > { %14346 = vst [vmem:[#allocation17_spill] sm:$0xff] %v12323_v28  ;;  %v11470_v28 = vld [vmem:[%s12151_s26 + $0x160] sm:$0xff] }
 0x2e5   : > { %1714 = vmatpush.bf16.msra.mxu2 %v11497_v9  ;;  %v11503_v9 = vld [vmem:[%s14324_s3 + $0x98] sm:$0xff] }
 0x2e6   : > { %1071 = vmatmul.bf16.gmra.mxu0 %v11469_v34  ;;  %v11487_v34 = vld [vmem:[%s14324_s3 + $0x18] sm:$0xff]  ;;  %1911 = vmatpush.bf16.msra.mxu3 %v11503_v9  ;;  %v11492_v9 = vld [vmem:[%s14324_s3 + $0x40] sm:$0xff] }
 0x2e7   : > { %1555 = vmatpush.bf16.msra.mxu1 %v11487_v34  ;;  %v11485_v34 = vld [vmem:[%s14324_s3 + $0x8] sm:$0xff] }
 0x2eb   : > { %v12331_v22 = vpop.f32.mrf.mxu0 }
 0x2ec   : > { %14347 = vst [vmem:[#allocation18_spill] sm:$0xff] %v12331_v22  ;;  %v11486_v22 = vld [vmem:[%s14324_s3 + $0x10] sm:$0xff] }
 0x2ed   : > { %1556 = vmatpush.bf16.msra.mxu1 %v11486_v22  ;;  %v11496_v22 = vld [vmem:[%s14324_s3 + $0x60] sm:$0xff] }
 0x2ee   : > { %1715 = vmatpush.bf16.msra.mxu2 %v11496_v22  ;;  %v11471_v22 = vld [vmem:[%s12151_s26 + $0x168] sm:$0xff] }
 0x2f1   : > { %1557 = vmatpush.bf16.msra.mxu1 %v11485_v34  ;;  %v11502_v34 = vld [vmem:[%s14324_s3 + $0x90] sm:$0xff] }
 0x2f2   : > { %1912 = vmatpush.bf16.msra.mxu3 %v11502_v34 }
 0x2f3   : > { %v12352_v25 = vpop.f32.mrf.mxu0 }
 0x2f4   : > { %14348 = vst [vmem:[#allocation19_spill] sm:$0xff] %v12352_v25 }
 0x2f5   : > { %1558 = vmatpush.bf16.msra.mxu1 %v11484_v55  ;;  %v11493_v55 = vld [vmem:[%s14324_s3 + $0x48] sm:$0xff] }
 0x2f6   : > { %1076 = vmatmul.bf16.gmra.mxu0 %v11470_v28  ;;  %v11495_v28 = vld [vmem:[%s14324_s3 + $0x58] sm:$0xff] }
 0x2f7   : > { %1716 = vmatpush.bf16.msra.mxu2 %v11495_v28  ;;  %v11501_v28 = vld [vmem:[%s14324_s3 + $0x88] sm:$0xff] }
 0x2f8   : > { %1913 = vmatpush.bf16.msra.mxu3 %v11501_v28 }
 0x2fb   : > { %v12372_v25 = vpop.f32.mrf.mxu0  ;;  %1717 = vmatpush.bf16.msra.mxu2 %v11494_v40  ;;  %v11500_v40 = vld [vmem:[%s14324_s3 + $0x80] sm:$0xff] }
 0x2fc   : > { %14349 = vst [vmem:[#allocation20_spill] sm:$0xff] %v12372_v25  ;;  %v12405_v25 = vld [vmem:[%s14323_s2] ss:$0 sm:$0xff]  ;;  %1914 = vmatpush.bf16.msra.mxu3 %v11500_v40 }
 0x2ff   : > { %1718 = vmatpush.bf16.msra.mxu2 %v11493_v55 }
 0x303   : > { %v1042_v45 = vpop.f32.mrf.mxu0  ;;  %1719 = vmatpush.bf16.msra.mxu2 %v11492_v9 }
 0x304   : > { %1181 = vst [vmem:[#allocation2 + $0x120] sm:$0xff] %v1042_v45 }
 0x306   : > { %1081 = vmatmul.bf16.gmra.mxu0 %v11471_v22  ;;  %v1257_v22 = vmax.f32 %v12162_v17, %v12210_v54 }
 0x30b   : > { %v1044_v34 = vpop.f32.mrf.mxu0 }
 0x30c   : > { %v1332_v45 = vmax.f32 %v12267_v46, %v1044_v34  ;;  %v11635_v46 = vld [vmem:[%s14324_s3 + $0x4b8] sm:$0xff]  ;;  %v11634_v34 = vld [vmem:[%s14324_s3 + $0x4b0] sm:$0xff] }
 0x30d   : > { %5027 = vmatpush.bf16.msrb.mxu0 %v11635_v46 }
 0x30e   : > { %v1357_v55 = vmax.f32 %v1257_v22, %v1332_v45  ;;  %v11473_v45 = vld [vmem:[%s12151_s26 + $0x178] sm:$0xff] }
 0x310   : > { %v1386_v28 = vadd.f32 %v12405_v25, %v1357_v55 }
 0x311   : > { %5028 = vmatpush.bf16.msrb.mxu0 %v11634_v34 }
 0x312   : > { %v1411_v19 = vmax.f32 %v1386_v28, 0.0 }
 0x313   : > { %v1047_v51 = vpop.f32.mrf.mxu0 }
 0x314   : > { %v1333_v17 = vmax.f32 %v12269_v47, %v1047_v51  ;;  %1436 = vst [vmem:[#allocation3] sm:$0xff] %v1411_v19  ;;  %v11633_v51 = vld [vmem:[%s14324_s3 + $0x4a8] sm:$0xff] }
 0x315   : > { %5029 = vmatpush.bf16.msrb.mxu0 %v11633_v51 }
 0x316   : > { %v1358_v54 = vmax.f32 %v1258_v42, %v1333_v17  ;;  %1086 = vmatmul.bf16.gmra.mxu0 %v11472_v0  ;;  %v11631_v17 = vld [vmem:[%s14324_s3 + $0x498] sm:$0xff] }
 0x318   : > { %v1387_v9 = vadd.f32 %v12405_v25, %v1358_v54 }
 0x319   : > { %5030 = vmatpush.bf16.msrb.mxu0 %v11632_v20  ;;  %v1262_v20 = vmax.f32 %v12174_v24, %v12223_v62 }
 0x31a   : > { %v1412_v40 = vmax.f32 %v1387_v9, 0.0  ;;  %v11630_v9 = vld [vmem:[%s14324_s3 + $0x490] sm:$0xff] }
 0x31b   : > { %v1049_v22 = vpop.f32.mrf.mxu0 }
 0x31c   : > { %v1334_v42 = vmax.f32 %v12272_v49, %v1049_v22  ;;  %v1478_v56 = vpack.c.bf16 %v1412_v40, %v1411_v19  ;;  %1437 = vst [vmem:[#allocation3 + $0x8] sm:$0xff] %v1412_v40  ;;  %v1260_v19 = vmax.f32 %v12169_v21, %v12218_v59  ;;  %v1261_v59 = vmax.f32 %v12172_v23, %v12220_v60  ;;  %v11474_v60 = vld [vmem:[%s12151_s26 + $0x180] sm:$0xff] }
 0x31d   : > { %5031 = vmatpush.bf16.msrb.mxu0 %v11631_v17 }
 0x31e   : > { %v1359_v47 = vmax.f32 %v1259_v18, %v1334_v42  ;;  %1559 = vmatmul.bf16.vlgmr.msra.gmra.mxu1 %v1478_v56 }
 0x320   : > { %v1388_v0 = vadd.f32 %v12405_v25, %v1359_v47 }
 0x321   : > { %5032 = vmatpush.bf16.msrb.mxu0 %v11630_v9 }
 0x322   : > { %v1413_v55 = vmax.f32 %v1388_v0, 0.0  ;;  %v11629_v0 = vld [vmem:[%s14324_s3 + $0x488] sm:$0xff] }
 0x323   : > { %v1052_v57 = vpop.f32.mrf.mxu0  ;;  %v1621_v21 = vld [vmem:[#allocation3 + $0x1] sm:$0xff] }
 0x324   : > { %v1335_v49 = vmax.f32 %v12274_v50, %v1052_v57  ;;  %1438 = vst [vmem:[#allocation3 + $0x10] sm:$0xff] %v1413_v55  ;;  %v1816_v22 = vld [vmem:[#allocation3 + $0x2] sm:$0xff] }
 0x325   : > { %5033 = vmatpush.bf16.msrb.mxu0 %v11629_v0 }
 0x326   : > { %v1360_v28 = vmax.f32 %v1260_v19, %v1335_v49  ;;  %1091 = vmatmul.bf16.gmra.mxu0 %v11473_v45  ;;  %v11628_v45 = vld [vmem:[%s14324_s3 + $0x480] sm:$0xff] }
 0x328   : > { %v1389_v54 = vadd.f32 %v12405_v25, %v1360_v28 }
 0x329   : > { %5034 = vmatpush.bf16.msrb.mxu0 %v11628_v45 }
 0x32a   : > { %v1414_v46 = vmax.f32 %v1389_v54, 0.0 }
 0x32b   : > { %v1054_v40 = vpop.f32.mrf.mxu0  ;;  %v1622_v34 = vld [vmem:[#allocation3 + $0x9] sm:$0xff] }
 0x32c   : > { %v1336_v50 = vmax.f32 %v12277_v52, %v1054_v40  ;;  %v1817_v18 = vld [vmem:[#allocation3 + $0xa] sm:$0xff]  ;;  %v1479_v42 = vpack.c.bf16 %v1414_v46, %v1413_v55  ;;  %v1638_v56 = vpack.c.bf16 %v1622_v34, %v1621_v21  ;;  %1439 = vst [vmem:[#allocation3 + $0x18] sm:$0xff] %v1414_v46  ;;  %v1263_v46 = vmax.f32 %v12177_v26, %v12225_v63 }
 0x32d   : > { %v1833_v47 = vpack.c.bf16 %v1817_v18, %v1816_v22  ;;  %v11475_v22 = vld [vmem:[%s12151_s26 + $0x188] sm:$0xff]  ;;  %v1264_v26 = vmax.f32 %v12179_v27, %v12228_v1 }
 0x32e   : > { %v1361_v51 = vmax.f32 %v1261_v59, %v1336_v50  ;;  %1564 = vmatmul.bf16.gmra.mxu1 %v1479_v42  ;;  %1720 = vmatmul.bf16.vlgmr.msra.gmra.mxu2 %v1638_v56 }
 0x32f   : > { %1915 = vmatmul.bf16.vlgmr.msra.gmra.mxu3 %v1833_v47 }
 0x330   : > { %v1390_v23 = vadd.f32 %v12405_v25, %v1361_v51 }
 0x332   : > { %v1415_v52 = vmax.f32 %v1390_v23, 0.0  ;;  %v1265_v23 = vmax.f32 %v12182_v29, %v12230_v2  ;;  %v1266_v29 = vmax.f32 %v12184_v30, %v12233_v4 }
 0x333   : > { %v1057_v55 = vpop.f32.mrf.mxu0  ;;  %v1623_v54 = vld [vmem:[#allocation3 + $0x11] sm:$0xff] }
 0x334   : > { %v1337_v57 = vmax.f32 %v12279_v53, %v1057_v55  ;;  %1440 = vst [vmem:[#allocation3 + $0x20] sm:$0xff] %v1415_v52  ;;  %v1818_v21 = vld [vmem:[#allocation3 + $0x12] sm:$0xff] }
 0x336   : > { %v1362_v19 = vmax.f32 %v1262_v20, %v1337_v57  ;;  %1096 = vmatmul.bf16.gmra.mxu0 %v11474_v60 }
 0x338   : > { %v1391_v49 = vadd.f32 %v12405_v25, %v1362_v19 }
 0x33a   : > { %v1416_v28 = vmax.f32 %v1391_v49, 0.0 }
 0x33b   : > { %v1059_v17 = vpop.f32.mrf.mxu0  ;;  %v1624_v40 = vld [vmem:[#allocation3 + $0x19] sm:$0xff] }
 0x33c   : > { %v1338_v9 = vmax.f32 %v12282_v58, %v1059_v17  ;;  %v1819_v24 = vld [vmem:[#allocation3 + $0x1a] sm:$0xff]  ;;  %v1480_v62 = vpack.c.bf16 %v1416_v28, %v1415_v52  ;;  %v1639_v53 = vpack.c.bf16 %v1624_v40, %v1623_v54  ;;  %1441 = vst [vmem:[#allocation3 + $0x28] sm:$0xff] %v1416_v28 }
 0x33d   : > { %v1834_v59 = vpack.c.bf16 %v1819_v24, %v1818_v21  ;;  %v1267_v24 = vmax.f32 %v12187_v32, %v12235_v5 }
 0x33e   : > { %v1363_v50 = vmax.f32 %v1263_v46, %v1338_v9  ;;  %1569 = vmatmul.bf16.gmra.mxu1 %v1480_v62  ;;  %1725 = vmatmul.bf16.gmra.mxu2 %v1639_v53 }
 0x33f   : > { %1920 = vmatmul.bf16.gmra.mxu3 %v1834_v59 }
 0x340   : > { %v1392_v34 = vadd.f32 %v12405_v25, %v1363_v50 }
 0x342   : > { %v1417_v18 = vmax.f32 %v1392_v34, 0.0 }
 0x343   : > { %v1062_v42 = vpop.f32.mrf.mxu0  ;;  %v1625_v0 = vld [vmem:[#allocation3 + $0x21] sm:$0xff] }
 0x344   : > { %v1339_v63 = vmax.f32 %v12284_v61, %v1062_v42  ;;  %1442 = vst [vmem:[#allocation3 + $0x30] sm:$0xff] %v1417_v18  ;;  %v1820_v45 = vld [vmem:[#allocation3 + $0x22] sm:$0xff] }
 0x346   : > { %v1364_v58 = vmax.f32 %v1264_v26, %v1339_v63  ;;  %1101 = vmatmul.bf16.gmra.mxu0 %v11475_v22  ;;  %v11515_v22 = vld [vmem:[%s14324_s3 + $0xf8] sm:$0xff] }
 0x347   : > { %2102 = vmatpush.bf16.msrb.mxu1 %v11515_v22  ;;  %v11531_v22 = vld [vmem:[%s14324_s3 + $0x178] sm:$0xff] }
 0x348   : > { %v1393_v56 = vadd.f32 %v12405_v25, %v1364_v58  ;;  %2492 = vmatpush.bf16.msrb.mxu3 %v11531_v22 }
 0x34a   : > { %v1418_v47 = vmax.f32 %v1393_v56, 0.0 }
 0x34b   : > { %v1064_v51 = vpop.f32.mrf.mxu0  ;;  %v1626_v52 = vld [vmem:[#allocation3 + $0x29] sm:$0xff] }
 0x34c   : > { %v1340_v60 = vmax.f32 %v12287_v3, %v1064_v51  ;;  %v1821_v55 = vld [vmem:[#allocation3 + $0x2a] sm:$0xff]  ;;  %v1481_v20 = vpack.c.bf16 %v1418_v47, %v1417_v18  ;;  %v1640_v27 = vpack.c.bf16 %v1626_v52, %v1625_v0  ;;  %1443 = vst [vmem:[#allocation3 + $0x38] sm:$0xff] %v1418_v47  ;;  %v1268_v18 = vmax.f32 %v12189_v33, %v12238_v7  ;;  %v11523_v0 = vld [vmem:[%s14324_s3 + $0x138] sm:$0xff] }
 0x34d   : > { %v1835_v1 = vpack.c.bf16 %v1821_v55, %v1820_v45  ;;  %v4936_v3 = vld [vmem:[#allocation3 + $0x2d] sm:$0xff]  ;;  %2297 = vmatpush.bf16.msrb.mxu2 %v11523_v0 }
 0x34e   : > { %v1365_v61 = vmax.f32 %v1265_v23, %v1340_v60  ;;  %1574 = vmatmul.bf16.gmra.mxu1 %v1481_v20  ;;  %1730 = vmatmul.bf16.gmra.mxu2 %v1640_v27 }
 0x34f   : > { %1925 = vmatmul.bf16.gmra.mxu3 %v1835_v1 }
 0x350   : > { %v1394_v57 = vadd.f32 %v12405_v25, %v1365_v61 }
 0x352   : > { %v1419_v19 = vmax.f32 %v1394_v57, 0.0  ;;  %v11514_v57 = vld [vmem:[%s14324_s3 + $0xf0] sm:$0xff] }
 0x353   : > { %v1067_v49 = vpop.f32.mrf.mxu0  ;;  %v4937_v28 = vld [vmem:[#allocation3 + $0x35] sm:$0xff]  ;;  %2103 = vmatpush.bf16.msrb.mxu1 %v11514_v57 }
 0x354   : > { %v1341_v2 = vmax.f32 %v12289_v6, %v1067_v49  ;;  %v4953_v17 = vpack.c.bf16 %v4937_v28, %v4936_v3  ;;  %1444 = vst [vmem:[#allocation3 + $0x40] sm:$0xff] %v1419_v19  ;;  %v1627_v21 = vld [vmem:[#allocation3 + $0x31] sm:$0xff] }
 0x355   : > { %v1822_v30 = vld [vmem:[#allocation3 + $0x32] sm:$0xff] }
 0x356   : > { %v1366_v54 = vmax.f32 %v1266_v29, %v1341_v2  ;;  %5035 = vmatmul.bf16.vlgmr.msrb.gmra.mxu0 %v4953_v17 }
 0x358   : > { %v1395_v46 = vadd.f32 %v12405_v25, %v1366_v54 }
 0x35a   : > { %v1420_v9 = vmax.f32 %v1395_v46, 0.0  ;;  %v11513_v46 = vld [vmem:[%s14324_s3 + $0xe8] sm:$0xff] }
 0x35b   : > { %v1069_v40 = vpop.f32.mrf.mxu0  ;;  %v1628_v53 = vld [vmem:[#allocation3 + $0x39] sm:$0xff]  ;;  %2104 = vmatpush.bf16.msrb.mxu1 %v11513_v46 }
 0x35c   : > { %v1342_v62 = vmax.f32 %v12292_v12, %v1069_v40  ;;  %v12475_v4 = vld [vmem:[#allocation3 + $0x3a] sm:$0xff]  ;;  %v1482_v6 = vpack.c.bf16 %v1420_v9, %v1419_v19  ;;  %v1641_v59 = vpack.c.bf16 %v1628_v53, %v1627_v21  ;;  %1445 = vst [vmem:[#allocation3 + $0x48] sm:$0xff] %v1420_v9  ;;  %v1270_v19 = vmax.f32 %v12194_v36, %v12243_v10  ;;  %v11522_v36 = vld [vmem:[%s14324_s3 + $0x130] sm:$0xff] }
 0x35d   : > { %v1836_v50 = vpack.c.bf16 %v12475_v4, %v1822_v30  ;;  %v4938_v26 = vld [vmem:[#allocation3 + $0x3d] sm:$0xff]  ;;  %2298 = vmatpush.bf16.msrb.mxu2 %v11522_v36  ;;  %v1271_v21 = vmax.f32 %v12197_v38, %v12245_v11 }
 0x35e   : > { %v1367_v34 = vmax.f32 %v1267_v24, %v1342_v62  ;;  %1579 = vmatmul.bf16.gmra.mxu1 %v1482_v6  ;;  %1735 = vmatmul.bf16.gmra.mxu2 %v1641_v59  ;;  %v11511_v38 = vld [vmem:[%s14324_s3 + $0xd8] sm:$0xff] }
 0x35f   : > { %1930 = vmatmul.bf16.gmra.mxu3 %v1836_v50 }
 0x360   : > { %v1396_v32 = vadd.f32 %v12405_v25, %v1367_v34 }
 0x362   : > { %v1421_v5 = vmax.f32 %v1396_v32, 0.0  ;;  %v11530_v32 = vld [vmem:[%s14324_s3 + $0x170] sm:$0xff] }
 0x363   : > { %v1072_v12 = vpop.f32.mrf.mxu0  ;;  %v4939_v63 = vld [vmem:[#allocation3 + $0x45] sm:$0xff]  ;;  %2493 = vmatpush.bf16.msrb.mxu3 %v11530_v32 }
 0x364   : > { %v1343_v42 = vmax.f32 %v12294_v15, %v1072_v12  ;;  %v12485_v58 = vld [vmem:[#allocation3 + $0x42] sm:$0xff]  ;;  %v4954_v56 = vpack.c.bf16 %v4939_v63, %v4938_v26  ;;  %1446 = vst [vmem:[#allocation3 + $0x50] sm:$0xff] %v1421_v5  ;;  %v1269_v15 = vmax.f32 %v12192_v35, %v12240_v8 }
 0x365   : > { %v5733_v47 = vpack.c.bf16 %v12485_v58, %v12475_v4  ;;  %v1629_v52 = vld [vmem:[#allocation3 + $0x41] sm:$0xff] }
 0x366   : > { %v1368_v51 = vmax.f32 %v1268_v18, %v1343_v42  ;;  %5040 = vmatmul.bf16.gmra.mxu0 %v4954_v56  ;;  %v1272_v18 = vmax.f32 %v12199_v39, %v12248_v13  ;;  %v11529_v39 = vld [vmem:[%s14324_s3 + $0x168] sm:$0xff] }
 0x367   : > { %v11509_v13 = vld [vmem:[%s14324_s3 + $0xc8] sm:$0xff]  ;;  %2494 = vmatpush.bf16.msrb.mxu3 %v11529_v39 }
 0x368   : > { %v1397_v23 = vadd.f32 %v12405_v25, %v1368_v51 }
 0x36a   : > { %v1422_v33 = vmax.f32 %v1397_v23, 0.0 }
 0x36b   : > { %v1074_v7 = vpop.f32.mrf.mxu0  ;;  %v1630_v45 = vld [vmem:[#allocation3 + $0x49] sm:$0xff] }
 0x36c   : > { %v1344_v60 = vmax.f32 %v12297_v31, %v1074_v7  ;;  %v12496_v55 = vld [vmem:[#allocation3 + $0x4a] sm:$0xff]  ;;  %v1483_v20 = vpack.c.bf16 %v1422_v33, %v1421_v5  ;;  %v1642_v27 = vpack.c.bf16 %v1630_v45, %v1629_v52  ;;  %1447 = vst [vmem:[#allocation3 + $0x58] sm:$0xff] %v1422_v33  ;;  %v11508_v52 = vld [vmem:[%s14324_s3 + $0xc0] sm:$0xff] }
 0x36d   : > { %v1837_v1 = vpack.c.bf16 %v12496_v55, %v12485_v58  ;;  %v4940_v29 = vld [vmem:[#allocation3 + $0x4d] sm:$0xff] }
 0x36e   : > { %v1369_v61 = vmax.f32 %v1269_v15, %v1344_v60  ;;  %1584 = vmatmul.bf16.gmra.mxu1 %v1483_v20  ;;  %1740 = vmatmul.bf16.gmra.mxu2 %v1642_v27  ;;  %v11510_v5 = vld [vmem:[%s14324_s3 + $0xd0] sm:$0xff]  ;;  %v11521_v33 = vld [vmem:[%s14324_s3 + $0x128] sm:$0xff]  ;;  %v11520_v15 = vld [vmem:[%s14324_s3 + $0x120] sm:$0xff]  ;;  %v1273_v20 = vmax.f32 %v12202_v41, %v12250_v14 }
 0x36f   : > { %1935 = vmatmul.bf16.gmra.mxu3 %v1837_v1  ;;  %2299 = vmatpush.bf16.msrb.mxu2 %v11521_v33  ;;  %v11528_v60 = vld [vmem:[%s14324_s3 + $0x160] sm:$0xff]  ;;  %v11519_v41 = vld [vmem:[%s14324_s3 + $0x118] sm:$0xff] }
 0x370   : > { %v1398_v35 = vadd.f32 %v12405_v25, %v1369_v61  ;;  %2495 = vmatpush.bf16.msrb.mxu3 %v11528_v60  ;;  %v11527_v14 = vld [vmem:[%s14324_s3 + $0x158] sm:$0xff]  ;;  %v14354_v60 = vld [vmem:[#allocation11_spill] sm:$0xff] }
 0x372   : > { %v1423_v8 = vmax.f32 %v1398_v35, 0.0 }
 0x373   : > { %v1077_v31 = vpop.f32.mrf.mxu0  ;;  %v4941_v2 = vld [vmem:[#allocation3 + $0x55] sm:$0xff]  ;;  %2300 = vmatpush.bf16.msrb.mxu2 %v11520_v15  ;;  %v11942_v15 = vld [vmem:[#allocation2 + $0x2c8] sm:$0xff] }
 0x374   : > { %v1345_v49 = vmax.f32 %v12299_v37, %v1077_v31  ;;  %v12507_v3 = vld [vmem:[#allocation3 + $0x52] sm:$0xff]  ;;  %v4955_v28 = vpack.c.bf16 %v4941_v2, %v4940_v29  ;;  %1448 = vst [vmem:[#allocation3 + $0x60] sm:$0xff] %v1423_v8  ;;  %v11512_v37 = vld [vmem:[%s14324_s3 + $0xe0] sm:$0xff]  ;;  %2496 = vmatpush.bf16.msrb.mxu3 %v11527_v14 }
 0x375   : > { %v5734_v17 = vpack.c.bf16 %v12507_v3, %v12496_v55  ;;  %v1631_v62 = vld [vmem:[#allocation3 + $0x51] sm:$0xff]  ;;  %2105 = vmatpush.bf16.msrb.mxu1 %v11512_v37 }
 0x376   : > { %v1370_v54 = vmax.f32 %v1270_v19, %v1345_v49  ;;  %5045 = vmatmul.bf16.gmra.mxu0 %v4955_v28  ;;  %v11518_v29 = vld [vmem:[%s14324_s3 + $0x110] sm:$0xff] }
 0x377   : > { %2301 = vmatpush.bf16.msrb.mxu2 %v11519_v41  ;;  %v11526_v2 = vld [vmem:[%s14324_s3 + $0x150] sm:$0xff] }
 0x378   : > { %v1399_v9 = vadd.f32 %v12405_v25, %v1370_v54  ;;  %v14350_v54 = vld [vmem:[#allocation9_spill] sm:$0xff]  ;;  %2497 = vmatpush.bf16.msrb.mxu3 %v11526_v2 }
 0x379   : > { %2106 = vmatpush.bf16.msrb.mxu1 %v11511_v38  ;;  %v1274_v46 = vmax.f32 %v14350_v54, %v12253_v16  ;;  %v11525_v16 = vld [vmem:[%s14324_s3 + $0x148] sm:$0xff]  ;;  %v11666_v54 = vld [vmem:[%s14324_s3 + $0x5b0] sm:$0xff] }
 0x37a   : > { %v1424_v10 = vmax.f32 %v1399_v9, 0.0  ;;  %v14351_v9 = vld [vmem:[#allocation14_spill] sm:$0xff]  ;;  %v2012_v14 = vld [vmem:[#allocation3 + $0xb] sm:$0xff] }
 0x37b   : > { %v1079_v40 = vpop.f32.mrf.mxu0  ;;  %v1632_v53 = vld [vmem:[#allocation3 + $0x59] sm:$0xff]  ;;  %2302 = vmatpush.bf16.msrb.mxu2 %v11518_v29  ;;  %v11538_v55 = vld [vmem:[%s14324_s3 + $0x1b0] sm:$0xff] }
 0x37c   : > { %v1346_v24 = vmax.f32 %v12302_v43, %v1079_v40  ;;  %v12524_v30 = vld [vmem:[#allocation3 + $0x5a] sm:$0xff]  ;;  %v1484_v6 = vpack.c.bf16 %v1424_v10, %v1423_v8  ;;  %v1643_v59 = vpack.c.bf16 %v1632_v53, %v1631_v62  ;;  %1449 = vst [vmem:[#allocation3 + $0x68] sm:$0xff] %v1424_v10  ;;  %v11517_v53 = vld [vmem:[%s14324_s3 + $0x108] sm:$0xff]  ;;  %2498 = vmatpush.bf16.msrb.mxu3 %v11525_v16 }
 0x37d   : > { %v1838_v50 = vpack.c.bf16 %v12524_v30, %v12507_v3  ;;  %v4942_v26 = vld [vmem:[#allocation3 + $0x5d] sm:$0xff]  ;;  %2107 = vmatpush.bf16.msrb.mxu1 %v11510_v5  ;;  %v11546_v3 = vld [vmem:[%s14324_s3 + $0x1f0] sm:$0xff] }
 0x37e   : > { %v1371_v34 = vmax.f32 %v1271_v21, %v1346_v24  ;;  %1589 = vmatmul.bf16.gmra.mxu1 %v1484_v6  ;;  %1745 = vmatmul.bf16.gmra.mxu2 %v1643_v59  ;;  %v14353_v5 = vld [vmem:[#allocation15_spill] sm:$0xff] }
 0x37f   : > { %1940 = vmatmul.bf16.gmra.mxu3 %v1838_v50  ;;  %2303 = vmatpush.bf16.msrb.mxu2 %v11517_v53  ;;  %v11516_v50 = vld [vmem:[%s14324_s3 + $0x100] sm:$0xff] }
 0x380   : > { %v1400_v11 = vadd.f32 %v12405_v25, %v1371_v34  ;;  %v11524_v34 = vld [vmem:[%s14324_s3 + $0x140] sm:$0xff] }
 0x381   : > { %2108 = vmatpush.bf16.msrb.mxu1 %v11509_v13  ;;  %2499 = vmatpush.bf16.msrb.mxu3 %v11524_v34 }
 0x382   : > { %v1425_v43 = vmax.f32 %v1400_v11, 0.0  ;;  %v11941_v11 = vld [vmem:[#allocation2 + $0x140] sm:$0xff] }
 0x383   : > { %v1082_v12 = vpop.f32.mrf.mxu0  ;;  %v4943_v63 = vld [vmem:[#allocation3 + $0x65] sm:$0xff]  ;;  %2304 = vmatpush.bf16.msrb.mxu2 %v11516_v50 }
 0x384   : > { %v1347_v42 = vmax.f32 %v12304_v44, %v1082_v12  ;;  %v12544_v56 = vld [vmem:[#allocation3 + $0x62] sm:$0xff]  ;;  %v4956_v51 = vpack.c.bf16 %v4943_v63, %v4942_v26  ;;  %1450 = vst [vmem:[#allocation3 + $0x70] sm:$0xff] %v1425_v43 }
 0x385   : > { %v5735_v0 = vpack.c.bf16 %v12544_v56, %v12524_v30  ;;  %v1633_v1 = vld [vmem:[#allocation3 + $0x61] sm:$0xff]  ;;  %2109 = vmatpush.bf16.msrb.mxu1 %v11508_v52  ;;  %v1276_v52 = vmax.f32 %v11942_v15, %v14354_v60 }
 0x386   : > { %v1372_v23 = vmax.f32 %v1272_v18, %v1347_v42  ;;  %5050 = vmatmul.bf16.gmra.mxu0 %v4956_v51  ;;  %v2014_v60 = vld [vmem:[#allocation3 + $0x1b] sm:$0xff] }
 0x388   : > { %v1401_v44 = vadd.f32 %v12405_v25, %v1372_v23 }
 0x38a   : > { %v1426_v7 = vmax.f32 %v1401_v44, 0.0 }
 0x38b   : > { %v1084_v45 = vpop.f32.mrf.mxu0  ;;  %v1634_v61 = vld [vmem:[#allocation3 + $0x69] sm:$0xff] }
 0x38c   : > { %v1348_v27 = vmax.f32 %v12307_v48, %v1084_v45  ;;  %v12570_v57 = vld [vmem:[#allocation3 + $0x6a] sm:$0xff]  ;;  %v1485_v35 = vpack.c.bf16 %v1426_v7, %v1425_v43  ;;  %v1644_v8 = vpack.c.bf16 %v1634_v61, %v1633_v1  ;;  %1451 = vst [vmem:[#allocation3 + $0x78] sm:$0xff] %v1426_v7  ;;  %v14352_v43 = vld [vmem:[#allocation10_spill] sm:$0xff] }
 0x38d   : > { %v1839_v31 = vpack.c.bf16 %v12570_v57, %v12544_v56  ;;  %v4944_v10 = vld [vmem:[#allocation3 + $0x6d] sm:$0xff]  ;;  %v1275_v32 = vmax.f32 %v11941_v11, %v14352_v43 }
 0x38e   : > { %v1373_v19 = vmax.f32 %v1273_v20, %v1348_v27  ;;  %1594 = vmatmul.bf16.gmra.mxu1 %v1485_v35  ;;  %1750 = vmatmul.bf16.gmra.mxu2 %v1644_v8  ;;  %v14355_v45 = vld [vmem:[#allocation16_spill] sm:$0xff]  ;;  %v2216_v56 = vld [vmem:[#allocation3 + $0x54] sm:$0xff] }
 0x38f   : > { %1945 = vmatmul.bf16.gmra.mxu3 %v1839_v31 }
 0x390   : > { %v1402_v48 = vadd.f32 %v12405_v25, %v1373_v19  ;;  %v11667_v19 = vld [vmem:[%s14324_s3 + $0x5b8] sm:$0xff] }
 0x391   : > { %5807 = vmatpush.bf16.msra.mxu0 %v11667_v19 }
 0x392   : > { %v1427_v49 = vmax.f32 %v1402_v48, 0.0 }
 0x393   : > { %v1087_v28 = vpop.f32.mrf.mxu0  ;;  %v4945_v37 = vld [vmem:[#allocation3 + $0x75] sm:$0xff] }
 0x394   : > { %v1349_v36 = vmax.f32 %v14351_v9, %v1087_v28  ;;  %v12590_v40 = vld [vmem:[#allocation3 + $0x72] sm:$0xff]  ;;  %v4957_v21 = vpack.c.bf16 %v4945_v37, %v4944_v10  ;;  %1452 = vst [vmem:[#allocation3 + $0x80] sm:$0xff] %v1427_v49  ;;  %v1486_v63 = vpack.c.bf16 %v1427_v49, %v1427_v49  ;;  %v2011_v28 = vld [vmem:[#allocation3 + $0x3] sm:$0xff] }
 0x395   : > { %v5736_v24 = vpack.c.bf16 %v12590_v40, %v12570_v57  ;;  %v1635_v18 = vld [vmem:[#allocation3 + $0x71] sm:$0xff]  ;;  %5808 = vmatpush.bf16.msra.mxu0 %v11666_v54  ;;  %v11552_v57 = vld [vmem:[%s14324_s3 + $0x220] sm:$0xff] }
 0x396   : > { %v1374_v62 = vmax.f32 %v1274_v46, %v1349_v36  ;;  %5055 = vmatmul.bf16.gmra.mxu0 %v4957_v21  ;;  %v11943_v46 = vld [vmem:[#allocation2 + $0x260] sm:$0xff]  ;;  %v14356_v9 = vld [vmem:[#allocation12_spill] sm:$0xff]  ;;  %v14357_v10 = vld [vmem:[#allocation17_spill] sm:$0xff]  ;;  %v2028_v21 = vpack.c.bf16 %v2012_v14, %v2011_v28 }
 0x397   : > { %v1277_v36 = vmax.f32 %v11943_v46, %v14356_v9  ;;  %v11662_v14 = vld [vmem:[%s14324_s3 + $0x590] sm:$0xff]  ;;  %v14360_v28 = vld [vmem:[#allocation19_spill] sm:$0xff] }
 0x398   : > { %v1403_v6 = vadd.f32 %v12405_v25, %v1374_v62  ;;  %v2206_v46 = vld [vmem:[#allocation3 + $0x4] sm:$0xff]  ;;  %v2401_v9 = vld [vmem:[#allocation3 + $0xe] sm:$0xff] }
 0x39a   : > { %v1428_v59 = vmax.f32 %v1403_v6, 0.0  ;;  %v11665_v6 = vld [vmem:[%s14324_s3 + $0x5a8] sm:$0xff] }
 0x39b   : > { %v1089_v22 = vpop.f32.mrf.mxu0  ;;  %v1560_v38 = vpop.f32.mrf.mxu1  ;;  %v1636_v42 = vld [vmem:[#allocation3 + $0x79] sm:$0xff]  ;;  %5809 = vmatpush.bf16.msra.mxu0 %v11665_v6 }
 0x39c   : > { %v1350_v12 = vmax.f32 %v14353_v5, %v1089_v22  ;;  %v12609_v26 = vld [vmem:[#allocation3 + $0x7a] sm:$0xff]  ;;  %v1645_v51 = vpack.c.bf16 %v1636_v42, %v1635_v18  ;;  %1453 = vst [vmem:[#allocation3 + $0x88] sm:$0xff] %v1428_v59  ;;  %v14358_v18 = vld [vmem:[#allocation13_spill] sm:$0xff] }
 0x39d   : > { %v1840_v23 = vpack.c.bf16 %v12609_v26, %v12590_v40  ;;  %v4946_v27 = vld [vmem:[#allocation3 + $0x7d] sm:$0xff] }
 0x39e   : > { %v1375_v33 = vmax.f32 %v1275_v32, %v1350_v12  ;;  %1599 = vmatmul.bf16.gmra.mxu1 %v1486_v63  ;;  %1755 = vmatmul.bf16.gmra.mxu2 %v1645_v51  ;;  %v11664_v5 = vld [vmem:[%s14324_s3 + $0x5a0] sm:$0xff] }
 0x39f   : > { %1950 = vmatmul.bf16.gmra.mxu3 %v1840_v23  ;;  %v11944_v12 = vld [vmem:[#allocation2 + $0x100] sm:$0xff]  ;;  %5810 = vmatpush.bf16.msra.mxu0 %v11664_v5  ;;  %v11948_v5 = vld [vmem:[#allocation2 + $0x70] sm:$0xff] }
 0x3a0   : > { %v1404_v39 = vadd.f32 %v12405_v25, %v1375_v33  ;;  %v1278_v42 = vmax.f32 %v11944_v12, %v14358_v18  ;;  %v14359_v63 = vld [vmem:[#allocation18_spill] sm:$0xff]  ;;  %v14361_v18 = vld [vmem:[#allocation20_spill] sm:$0xff] }
 0x3a2   : > { %v1429_v13 = vmax.f32 %v1404_v39, 0.0 }
 0x3a3   : > { %v1092_v44 = vpop.f32.mrf.mxu0  ;;  %v12614_v7 = vpop.f32.mrf.mxu1  ;;  %v4947_v1 = vld [vmem:[#allocation3 + $0x85] sm:$0xff] }
 0x3a4   : > { %v1351_v20 = vmax.f32 %v14355_v45, %v1092_v44  ;;  %v12618_v61 = vld [vmem:[#allocation3 + $0x82] sm:$0xff]  ;;  %v4958_v35 = vpack.c.bf16 %v4947_v1, %v4946_v27  ;;  %1454 = vst [vmem:[#allocation3 + $0x90] sm:$0xff] %v1429_v13  ;;  %v2402_v27 = vld [vmem:[#allocation3 + $0x16] sm:$0xff] }
 0x3a5   : > { %v5737_v8 = vpack.c.bf16 %v12618_v61, %v12609_v26  ;;  %v1637_v48 = vld [vmem:[#allocation3 + $0x81] sm:$0xff]  ;;  %v1841_v53 = vpack.c.bf16 %v12618_v61, %v12618_v61 }
 0x3a6   : > { %v1376_v31 = vmax.f32 %v1276_v52, %v1351_v20  ;;  %5060 = vmatmul.bf16.gmra.mxu0 %v4958_v35  ;;  %v1646_v62 = vpack.c.bf16 %v1637_v48, %v1637_v48  ;;  %v2207_v20 = vld [vmem:[#allocation3 + $0xc] sm:$0xff]  ;;  %v11945_v48 = vld [vmem:[#allocation2 + $0x80] sm:$0xff] }
 0x3a7   : > { %v11540_v26 = vld [vmem:[%s14324_s3 + $0x1c0] sm:$0xff] }
 0x3a8   : > { %v1405_v41 = vadd.f32 %v12405_v25, %v1376_v31  ;;  %v11548_v61 = vld [vmem:[%s14324_s3 + $0x200] sm:$0xff] }
 0x3aa   : > { %v1430_v49 = vmax.f32 %v1405_v41, 0.0  ;;  %v2013_v41 = vld [vmem:[#allocation3 + $0x13] sm:$0xff] }
 0x3ab   : > { %v1094_v29 = vpop.f32.mrf.mxu0  ;;  %v12626_v2 = vpop.f32.mrf.mxu1  ;;  %v4948_v23 = vld [vmem:[#allocation3 + $0x8d] sm:$0xff] }
 0x3ac   : > { %v1352_v37 = vmax.f32 %v14357_v10, %v1094_v29  ;;  %1455 = vst [vmem:[#allocation3 + $0x98] sm:$0xff] %v1430_v49  ;;  %v11946_v49 = vld [vmem:[#allocation2 + $0x2a0] sm:$0xff] }
 0x3ad   : > { %v1279_v29 = vmax.f32 %v11945_v48, %v11946_v49 }
 0x3ae   : > { %v1377_v16 = vmax.f32 %v1277_v36, %v1352_v37  ;;  %2110 = vmatmul.bf16.vlgmr.msrb.gmra.mxu1 %v2028_v21  ;;  %1760 = vmatmul.bf16.gmra.mxu2 %v1646_v62  ;;  %v2029_v36 = vpack.c.bf16 %v2014_v60, %v2013_v41  ;;  %v2223_v37 = vpack.c.bf16 %v2207_v20, %v2206_v46  ;;  %v11661_v62 = vld [vmem:[%s14324_s3 + $0x588] sm:$0xff]  ;;  %v2209_v60 = vld [vmem:[#allocation3 + $0x1c] sm:$0xff] }
 0x3af   : > { %1955 = vmatmul.bf16.gmra.mxu3 %v1841_v53  ;;  %v2418_v21 = vpack.c.bf16 %v2402_v27, %v2401_v9  ;;  %v2403_v41 = vld [vmem:[#allocation3 + $0x1e] sm:$0xff] }
 0x3b0   : > { %v1406_v59 = vadd.f32 %v12405_v25, %v1377_v16 }
 0x3b1   : > { %v1721_v50 = vpop.f32.mrf.mxu2 }
 0x3b2   : > { %v1916_v34 = vpop.f32.mrf.mxu3  ;;  %v1431_v22 = vmax.f32 %v1406_v59, 0.0  ;;  %v1782_v43 = vadd.f32 %v1721_v50, %v1560_v38  ;;  %v11663_v38 = vld [vmem:[%s14324_s3 + $0x598] sm:$0xff] }
 0x3b3   : > { %v1097_v11 = vpop.f32.mrf.mxu0  ;;  %v12639_v32 = vpop.f32.mrf.mxu1  ;;  %v4949_v33 = vld [vmem:[#allocation3 + $0x95] sm:$0xff]  ;;  %5811 = vmatpush.bf16.msra.mxu0 %v11663_v38 }
 0x3b4   : > { %v1353_v51 = vmax.f32 %v14359_v63, %v1097_v11  ;;  %v12646_v39 = vadd.f32 %v1916_v34, %v1782_v43  ;;  %v4959_v13 = vpack.c.bf16 %v4949_v33, %v4948_v23  ;;  %1456 = vst [vmem:[#allocation3 + $0xa0] sm:$0xff] %v1431_v22  ;;  %v11660_v11 = vld [vmem:[%s14324_s3 + $0x580] sm:$0xff] }
 0x3b5   : > { %v11947_v43 = vld [vmem:[#allocation2 + $0x240] sm:$0xff] }
 0x3b6   : > { %v1378_v44 = vmax.f32 %v1278_v42, %v1353_v51  ;;  %5065 = vmatmul.bf16.gmra.mxu0 %v4959_v13  ;;  %v1280_v12 = vmax.f32 %v11947_v43, %v11948_v5 }
 0x3b7   : > { %5812 = vmatpush.bf16.msra.mxu0 %v11662_v14 }
 0x3b8   : > { %v1407_v15 = vadd.f32 %v12405_v25, %v1378_v44  ;;  %v2016_v44 = vld [vmem:[#allocation3 + $0x2b] sm:$0xff] }
 0x3b9   : > { %v1723_v52 = vpop.f32.mrf.mxu2 }
 0x3ba   : > { %v1918_v45 = vpop.f32.mrf.mxu3  ;;  %v1432_v1 = vmax.f32 %v1407_v15, 0.0  ;;  %v1783_v31 = vadd.f32 %v1723_v52, %v12614_v7  ;;  %v2404_v52 = vld [vmem:[#allocation3 + $0x26] sm:$0xff] }
 0x3bb   : > { %v1099_v35 = vpop.f32.mrf.mxu0  ;;  %v12653_v19 = vpop.f32.mrf.mxu1  ;;  %5813 = vmatpush.bf16.msra.mxu0 %v11661_v62  ;;  %v4950_v63 = vld [vmem:[#allocation3 + $0x9d] sm:$0xff] }
 0x3bc   : > { %v1354_v54 = vmax.f32 %v14360_v28, %v1099_v35  ;;  %v12659_v10 = vadd.f32 %v1918_v45, %v1783_v31  ;;  %1457 = vst [vmem:[#allocation3 + $0xa8] sm:$0xff] %v1432_v1  ;;  %v2015_v35 = vld [vmem:[#allocation3 + $0x23] sm:$0xff]  ;;  %v2208_v31 = vld [vmem:[#allocation3 + $0x14] sm:$0xff] }
 0x3bd   : > { %v2030_v14 = vpack.c.bf16 %v2016_v44, %v2015_v35  ;;  %v2224_v49 = vpack.c.bf16 %v2209_v60, %v2208_v31  ;;  %v1256_v28 = vld [vmem:[#allocation2 + $0x60] sm:$0xf]  ;;  %v11539_v35 = vld [vmem:[%s14324_s3 + $0x1b8] sm:$0xff]  ;;  %v2020_v31 = vld [vmem:[#allocation3 + $0x4b] sm:$0xff] }
 0x3be   : > { %v1379_v7 = vmax.f32 %v1279_v29, %v1354_v54  ;;  %2115 = vmatmul.bf16.gmra.mxu1 %v2029_v36  ;;  %2305 = vmatmul.bf16.vlgmr.msrb.gmra.mxu2 %v2223_v37  ;;  %v2419_v29 = vpack.c.bf16 %v2404_v52, %v2403_v41  ;;  %v1231_v36 = vld [vmem:[#allocation2 + $0xc0] sm:$0xf] }
 0x3bf   : > { %2500 = vmatmul.bf16.vlgmr.msrb.gmra.mxu3 %v2418_v21  ;;  %5814 = vmatpush.bf16.msra.mxu0 %v11660_v11  ;;  %v1281_v62 = vmax.f32 %v1231_v36, %v1256_v28  ;;  %v2018_v11 = vld [vmem:[#allocation3 + $0x3b] sm:$0xff] }
 0x3c0   : > { %v1408_v53 = vadd.f32 %v12405_v25, %v1379_v7  ;;  %2687 = vmatpush.bf16.msra.mxu1 %v11539_v35  ;;  %v2407_v36 = vld [vmem:[#allocation3 + $0x3e] sm:$0xff] }
 0x3c1   : > { %v1726_v16 = vpop.f32.mrf.mxu2 }
 0x3c2   : > { %v1921_v6 = vpop.f32.mrf.mxu3  ;;  %v1433_v59 = vmax.f32 %v1408_v53, 0.0  ;;  %v1784_v34 = vadd.f32 %v1726_v16, %v12626_v2 }
 0x3c3   : > { %v1102_v50 = vpop.f32.mrf.mxu0  ;;  %v1572_v22 = vpop.f32.mrf.mxu1  ;;  %v4951_v51 = vld [vmem:[#allocation3 + $0xa5] sm:$0xff] }
 0x3c4   : > { %v1355_v42 = vmax.f32 %v14361_v18, %v1102_v50  ;;  %v12670_v23 = vadd.f32 %v1921_v6, %v1784_v34  ;;  %v4960_v33 = vpack.c.bf16 %v4951_v51, %v4950_v63  ;;  %1458 = vst [vmem:[#allocation3 + $0xb0] sm:$0xff] %v1433_v59  ;;  %v2406_v18 = vld [vmem:[#allocation3 + $0x36] sm:$0xff]  ;;  %2688 = vmatpush.bf16.msra.mxu1 %v11538_v55 }
 0x3c5   : > { %v2017_v51 = vld [vmem:[#allocation3 + $0x33] sm:$0xff] }
 0x3c6   : > { %v1380_v13 = vmax.f32 %v1280_v12, %v1355_v42  ;;  %5070 = vmatmul.bf16.gmra.mxu0 %v4960_v33  ;;  %v2211_v12 = vld [vmem:[#allocation3 + $0x2c] sm:$0xff]  ;;  %v2031_v44 = vpack.c.bf16 %v2018_v11, %v2017_v51  ;;  %v2414_v55 = vld [vmem:[#allocation3 + $0x76] sm:$0xff] }
 0x3c8   : > { %v1409_v2 = vadd.f32 %v12405_v25, %v1380_v13  ;;  %v2210_v13 = vld [vmem:[#allocation3 + $0x24] sm:$0xff] }
 0x3c9   : > { %v1728_v38 = vpop.f32.mrf.mxu2 }
 0x3ca   : > { %v1923_v15 = vpop.f32.mrf.mxu3  ;;  %v1434_v45 = vmax.f32 %v1409_v2, 0.0  ;;  %v1785_v27 = vadd.f32 %v1728_v38, %v12639_v32  ;;  %v1306_v32 = vld [vmem:[#allocation2 + $0x120] sm:$0xf]  ;;  %v2405_v2 = vld [vmem:[#allocation3 + $0x2e] sm:$0xff] }
 0x3cb   : > { %v1104_v20 = vpop.f32.mrf.mxu0  ;;  %v1575_v1 = vpop.f32.mrf.mxu1  ;;  %v4952_v9 = vld [vmem:[#allocation3 + $0xad] sm:$0xff]  ;;  %v2420_v60 = vpack.c.bf16 %v2406_v18, %v2405_v2 }
 0x3cc   : > { %1206 = vst [vmem:[#allocation2 + $0x228] sm:$0xff] %v1104_v20  ;;  %v12674_v48 = vadd.f32 %v1923_v15, %v1785_v27  ;;  %v4961_v59 = vpack.c.bf16 %v4952_v9, %v4952_v9  ;;  %v2225_v15 = vpack.c.bf16 %v2211_v12, %v2210_v13  ;;  %v2212_v9 = vld [vmem:[#allocation3 + $0x34] sm:$0xff] }
 0x3cd   : > { %1459 = vst [vmem:[#allocation3 + $0xb8] sm:$0xff] %v1434_v45  ;;  %v2410_v12 = vld [vmem:[#allocation3 + $0x56] sm:$0xff]  ;;  %v2409_v13 = vld [vmem:[#allocation3 + $0x4e] sm:$0xff] }
 0x3ce   : > { %2120 = vmatmul.bf16.gmra.mxu1 %v2030_v14  ;;  %2310 = vmatmul.bf16.gmra.mxu2 %v2224_v49  ;;  %v2213_v49 = vld [vmem:[#allocation3 + $0x3c] sm:$0xff] }
 0x3cf   : > { %2505 = vmatmul.bf16.gmra.mxu3 %v2419_v29  ;;  %v2408_v29 = vld [vmem:[#allocation3 + $0x46] sm:$0xff]  ;;  %v2226_v58 = vpack.c.bf16 %v2213_v49, %v2212_v9 }
 0x3d0   : > { %v2023_v9 = vld [vmem:[#allocation3 + $0x63] sm:$0xff] }
 0x3d1   : > { %v1731_v54 = vpop.f32.mrf.mxu2 }
 0x3d2   : > { %v1926_v46 = vpop.f32.mrf.mxu3  ;;  %v1786_v21 = vadd.f32 %v1731_v54, %v12653_v19  ;;  %v2019_v54 = vld [vmem:[#allocation3 + $0x43] sm:$0xff] }
 0x3d3   : > { %v1331_v37 = vld [vmem:[#allocation2 + $0x228] sm:$0xf]  ;;  %v1577_v7 = vpop.f32.mrf.mxu1  ;;  %v12677_v16 = vpop.f32.mrf.mxu0 }
 0x3d4   : > { %v1356_v53 = vmax.f32 %v1306_v32, %v1331_v37  ;;  %v12679_v6 = vadd.f32 %v1926_v46, %v1786_v21  ;;  %v2032_v32 = vpack.c.bf16 %v2020_v31, %v2019_v54  ;;  %v11547_v37 = vld [vmem:[%s14324_s3 + $0x1f8] sm:$0xff]  ;;  %v11537_v31 = vld [vmem:[%s14324_s3 + $0x1a8] sm:$0xff] }
 0x3d5   : > { %2882 = vmatpush.bf16.msra.mxu2 %v11547_v37  ;;  %2689 = vmatpush.bf16.msra.mxu1 %v11537_v31  ;;  %v2413_v31 = vld [vmem:[#allocation3 + $0x6e] sm:$0xff] }
 0x3d6   : > { %v1381_v50 = vmax.f32 %v1281_v62, %v1356_v53  ;;  %5075 = vmatmul.bf16.gmra.mxu0 %v4961_v59 }
 0x3d8   : > { %v1410_v34 = vadd.f32 %v12405_v25, %v1381_v50 }
 0x3d9   : > { %v1733_v43 = vpop.f32.mrf.mxu2  ;;  %2883 = vmatpush.bf16.msra.mxu2 %v11546_v3  ;;  %v11544_v3 = vld [vmem:[%s14324_s3 + $0x1e0] sm:$0xff] }
 0x3da   : > { %v1928_v5 = vpop.f32.mrf.mxu3  ;;  %v1435_v42 = vmax.f32 %v1410_v34, 0.0  ;;  %v1787_v63 = vadd.f32 %v1733_v43, %v1572_v22  ;;  %v2022_v34 = vld [vmem:[#allocation3 + $0x5b] sm:$0xff] }
 0x3db   : > { %v1580_v19 = vpop.f32.mrf.mxu1  ;;  %v12682_v33 = vpop.f32.mrf.mxu0 }
 0x3dc   : > { %1460 = vst [vmem:[#allocation3 + $0xc0] sm:$0xf] %v1435_v42  ;;  %v12684_v38 = vadd.f32 %v1928_v5, %v1787_v63  ;;  %v2215_v5 = vld [vmem:[#allocation3 + $0x4c] sm:$0xff] }
 0x3dd   : > { %v2021_v63 = vld [vmem:[#allocation3 + $0x53] sm:$0xff] }
 0x3de   : > { %2125 = vmatmul.bf16.gmra.mxu1 %v2031_v44  ;;  %2315 = vmatmul.bf16.gmra.mxu2 %v2225_v15  ;;  %v2033_v2 = vpack.c.bf16 %v2022_v34, %v2021_v63 }
 0x3df   : > { %2510 = vmatmul.bf16.gmra.mxu3 %v2420_v60  ;;  %v2422_v60 = vpack.c.bf16 %v2410_v12, %v2409_v13  ;;  %v11534_v12 = vld [vmem:[%s14324_s3 + $0x190] sm:$0xff] }
 0x3e0   : > { %v2219_v13 = vld [vmem:[#allocation3 + $0x6c] sm:$0xff] }
 0x3e1   : > { %v1736_v25 = vpop.f32.mrf.mxu2 }
 0x3e2   : > { %v1931_v52 = vpop.f32.mrf.mxu3  ;;  %v1788_v45 = vadd.f32 %v1736_v25, %v1575_v1 }
 0x3e3   : > { %v1582_v20 = vpop.f32.mrf.mxu1  ;;  %v12686_v22 = vpop.f32.mrf.mxu0 }
 0x3e4   : > { %v12688_v27 = vadd.f32 %v1931_v52, %v1788_v45 }
 0x3e6   : > { %5815 = vmatmul.bf16.vlgmr.msra.gmra.mxu0 %v5733_v47  ;;  %v2421_v47 = vpack.c.bf16 %v2408_v29, %v2407_v36  ;;  %v2217_v29 = vld [vmem:[#allocation3 + $0x5c] sm:$0xff] }
 0x3e7   : > { %v11536_v36 = vld [vmem:[%s14324_s3 + $0x1a0] sm:$0xff] }
 0x3e8   : > { %2690 = vmatpush.bf16.msra.mxu1 %v11536_v36 }
 0x3e9   : > { %v1738_v41 = vpop.f32.mrf.mxu2 }
 0x3ea   : > { %v1933_v14 = vpop.f32.mrf.mxu3  ;;  %v1789_v1 = vadd.f32 %v1738_v41, %v1577_v7  ;;  %v2024_v41 = vld [vmem:[#allocation3 + $0x6b] sm:$0xff] }
 0x3eb   : > { %v1585_v28 = vpop.f32.mrf.mxu1  ;;  %v12696_v46 = vpop.f32.mrf.mxu0 }
 0x3ec   : > { %v12698_v4 = vadd.f32 %v1933_v14, %v1789_v1  ;;  %v2412_v1 = vld [vmem:[#allocation3 + $0x66] sm:$0xff] }
 0x3ee   : > { %2130 = vmatmul.bf16.gmra.mxu1 %v2032_v32  ;;  %2320 = vmatmul.bf16.gmra.mxu2 %v2226_v58  ;;  %v2034_v32 = vpack.c.bf16 %v2024_v41, %v2023_v9 }
 0x3ef   : > { %2515 = vmatmul.bf16.gmra.mxu3 %v2421_v47  ;;  %v2228_v47 = vpack.c.bf16 %v2217_v29, %v2216_v56 }
 0x3f1   : > { %v1741_v21 = vpop.f32.mrf.mxu2 }
 0x3f2   : > { %v1936_v7 = vpop.f32.mrf.mxu3  ;;  %v1790_v62 = vadd.f32 %v1741_v21, %v1580_v19  ;;  %v2214_v19 = vld [vmem:[#allocation3 + $0x44] sm:$0xff] }
 0x3f3   : > { %v1587_v53 = vpop.f32.mrf.mxu1  ;;  %v12703_v59 = vpop.f32.mrf.mxu0  ;;  %v2227_v15 = vpack.c.bf16 %v2215_v5, %v2214_v19  ;;  %v11545_v21 = vld [vmem:[%s14324_s3 + $0x1e8] sm:$0xff]  ;;  %v11554_v5 = vld [vmem:[%s14324_s3 + $0x230] sm:$0xff] }
 0x3f4   : > { %v12705_v50 = vadd.f32 %v1936_v7, %v1790_v62  ;;  %v11555_v7 = vld [vmem:[%s14324_s3 + $0x238] sm:$0xff]  ;;  %2884 = vmatpush.bf16.msra.mxu2 %v11545_v21  ;;  %v11533_v19 = vld [vmem:[%s14324_s3 + $0x188] sm:$0xff] }
 0x3f5   : > { %v11535_v62 = vld [vmem:[%s14324_s3 + $0x198] sm:$0xff]  ;;  %3077 = vmatpush.bf16.msra.mxu3 %v11555_v7  ;;  %v11549_v7 = vld [vmem:[%s14324_s3 + $0x208] sm:$0xff] }
 0x3f6   : > { %5820 = vmatmul.bf16.gmra.mxu0 %v5734_v17  ;;  %2691 = vmatpush.bf16.msra.mxu1 %v11535_v62  ;;  %v2027_v62 = vld [vmem:[#allocation3 + $0x83] sm:$0xff] }
 0x3f8   : > { %2885 = vmatpush.bf16.msra.mxu2 %v11544_v3 }
 0x3f9   : > { %v1743_v11 = vpop.f32.mrf.mxu2  ;;  %3078 = vmatpush.bf16.msra.mxu3 %v11554_v5  ;;  %v2416_v5 = vld [vmem:[#allocation3 + $0x86] sm:$0xff] }
 0x3fa   : > { %v1938_v43 = vpop.f32.mrf.mxu3  ;;  %v1791_v18 = vadd.f32 %v1743_v11, %v1582_v20  ;;  %2692 = vmatpush.bf16.msra.mxu1 %v11534_v12 }
 0x3fb   : > { %v1590_v42 = vpop.f32.mrf.mxu1  ;;  %v12710_v51 = vpop.f32.mrf.mxu0 }
 0x3fc   : > { %v12712_v44 = vadd.f32 %v1938_v43, %v1791_v18 }
 0x3fe   : > { %2135 = vmatmul.bf16.gmra.mxu1 %v2033_v2  ;;  %2325 = vmatmul.bf16.gmra.mxu2 %v2227_v15  ;;  %v2026_v2 = vld [vmem:[#allocation3 + $0x7b] sm:$0xff] }
 0x3ff   : > { %2520 = vmatmul.bf16.gmra.mxu3 %v2422_v60  ;;  %2693 = vmatpush.bf16.msra.mxu1 %v11533_v19  ;;  %v2220_v19 = vld [vmem:[#allocation3 + $0x74] sm:$0xff] }
 0x401   : > { %v1746_v17 = vpop.f32.mrf.mxu2 }
 0x402   : > { %v1941_v25 = vpop.f32.mrf.mxu3  ;;  %v1792_v52 = vadd.f32 %v1746_v17, %v1585_v28  ;;  %v2025_v17 = vld [vmem:[#allocation3 + $0x73] sm:$0xff] }
 0x403   : > { %v1592_v45 = vpop.f32.mrf.mxu1  ;;  %v12720_v20 = vpop.f32.mrf.mxu0  ;;  %v2035_v41 = vpack.c.bf16 %v2026_v2, %v2025_v17 }
 0x404   : > { %v12722_v35 = vadd.f32 %v1941_v25, %v1792_v52  ;;  %v2218_v52 = vld [vmem:[#allocation3 + $0x64] sm:$0xff] }
 0x405   : > { %v2229_v29 = vpack.c.bf16 %v2219_v13, %v2218_v52  ;;  %v2415_v13 = vld [vmem:[#allocation3 + $0x7e] sm:$0xff] }
 0x406   : > { %5825 = vmatmul.bf16.gmra.mxu0 %v5735_v0  ;;  %v2411_v0 = vld [vmem:[#allocation3 + $0x5e] sm:$0xff] }
 0x407   : > { %v2423_v37 = vpack.c.bf16 %v2412_v1, %v2411_v0  ;;  %v2424_v1 = vpack.c.bf16 %v2414_v55, %v2413_v31 }
 0x409   : > { %v1748_v14 = vpop.f32.mrf.mxu2 }
 0x40a   : > { %v1943_v49 = vpop.f32.mrf.mxu3  ;;  %v1793_v28 = vadd.f32 %v1748_v14, %v1587_v53  ;;  %v11532_v14 = vld [vmem:[%s14324_s3 + $0x180] sm:$0xff] }
 0x40b   : > { %v12730_v54 = vpop.f32.mrf.mxu1  ;;  %v12735_v30 = vpop.f32.mrf.mxu0  ;;  %2694 = vmatpush.bf16.msra.mxu1 %v11532_v14 }
 0x40c   : > { %v12737_v58 = vadd.f32 %v1943_v49, %v1793_v28  ;;  %v11551_v28 = vld [vmem:[%s14324_s3 + $0x218] sm:$0xff] }
 0x40e   : > { %2140 = vmatmul.bf16.gmra.mxu1 %v2034_v32  ;;  %2330 = vmatmul.bf16.gmra.mxu2 %v2228_v47  ;;  %v11542_v32 = vld [vmem:[%s14324_s3 + $0x1d0] sm:$0xff] }
 0x40f   : > { %2525 = vmatmul.bf16.gmra.mxu3 %v2423_v37  ;;  %v11550_v47 = vld [vmem:[%s14324_s3 + $0x210] sm:$0xff] }
 0x411   : > { %v1751_v53 = vpop.f32.mrf.mxu2 }
 0x412   : > { %v1946_v34 = vpop.f32.mrf.mxu3  ;;  %v1794_v11 = vadd.f32 %v1751_v53, %v1590_v42  ;;  %v11553_v42 = vld [vmem:[%s14324_s3 + $0x228] sm:$0xff] }
 0x413   : > { %v1597_v43 = vpop.f32.mrf.mxu1  ;;  %v12754_v18 = vpop.f32.mrf.mxu0  ;;  %3079 = vmatpush.bf16.msra.mxu3 %v11553_v42 }
 0x414   : > { %v12756_v63 = vadd.f32 %v1946_v34, %v1794_v11  ;;  %v2221_v11 = vld [vmem:[#allocation3 + $0x7c] sm:$0xff] }
 0x415   : > { %v2230_v55 = vpack.c.bf16 %v2221_v11, %v2220_v19 }
 0x416   : > { %5830 = vmatmul.bf16.gmra.mxu0 %v5736_v24 }
 0x417   : > { %3080 = vmatpush.bf16.msra.mxu3 %v11552_v57 }
 0x419   : > { %v1753_v15 = vpop.f32.mrf.mxu2 }
 0x41a   : > { %v1948_v60 = vpop.f32.mrf.mxu3  ;;  %v1795_v40 = vadd.f32 %v1753_v15, %v1592_v45  ;;  %v11543_v45 = vld [vmem:[%s14324_s3 + $0x1d8] sm:$0xff]  ;;  %v2036_v15 = vpack.c.bf16 %v2027_v62, %v2027_v62 }
 0x41b   : > { %v1600_v24 = vpop.f32.mrf.mxu1  ;;  %v12773_v25 = vpop.f32.mrf.mxu0  ;;  %2886 = vmatpush.bf16.msra.mxu2 %v11543_v45  ;;  %3081 = vmatpush.bf16.msra.mxu3 %v11551_v28 }
 0x41c   : > { %v12778_v49 = vadd.f32 %v1948_v60, %v1795_v40  ;;  %v5727_v40 = vld [vmem:[#allocation3 + $0x92] sm:$0xff] }
 0x41e   : > { %2145 = vmatmul.bf16.gmra.mxu1 %v2035_v41  ;;  %2335 = vmatmul.bf16.gmra.mxu2 %v2229_v29  ;;  %v5726_v41 = vld [vmem:[#allocation3 + $0x8a] sm:$0xff] }
 0x41f   : > { %2530 = vmatmul.bf16.gmra.mxu3 %v2424_v1  ;;  %2887 = vmatpush.bf16.msra.mxu2 %v11542_v32  ;;  %v5738_v29 = vpack.c.bf16 %v5727_v40, %v5726_v41  ;;  %v2597_v1 = vld [vmem:[#allocation3 + $0x17] sm:$0xff] }
 0x420   : > { %3082 = vmatpush.bf16.msra.mxu3 %v11550_v47 }
 0x421   : > { %v1756_v9 = vpop.f32.mrf.mxu2 }
 0x422   : > { %v1951_v36 = vpop.f32.mrf.mxu3  ;;  %v1796_v56 = vadd.f32 %v1756_v9, %v12730_v54  ;;  %v11541_v54 = vld [vmem:[%s14324_s3 + $0x1c8] sm:$0xff] }
 0x423   : > { %v1602_v0 = vpop.f32.mrf.mxu1  ;;  %v12793_v37 = vpop.f32.mrf.mxu0  ;;  %2888 = vmatpush.bf16.msra.mxu2 %v11541_v54  ;;  %v2222_v9 = vld [vmem:[#allocation3 + $0x84] sm:$0xff] }
 0x424   : > { %v12795_v21 = vadd.f32 %v1951_v36, %v1796_v56  ;;  %3083 = vmatpush.bf16.msra.mxu3 %v11549_v7  ;;  %v2417_v36 = vld [vmem:[#allocation3 + $0x8e] sm:$0xff]  ;;  %v2231_v54 = vpack.c.bf16 %v2222_v9, %v2222_v9 }
 0x425   : > { %v2596_v0 = vld [vmem:[#allocation3 + $0xf] sm:$0xff]  ;;  %v2426_v7 = vpack.c.bf16 %v2417_v36, %v2417_v36 }
 0x426   : > { %5835 = vmatmul.bf16.gmra.mxu0 %v5737_v8  ;;  %v2613_v47 = vpack.c.bf16 %v2597_v1, %v2596_v0  ;;  %v5731_v9 = vld [vmem:[#allocation3 + $0xb2] sm:$0xff]  ;;  %v5730_v0 = vld [vmem:[#allocation3 + $0xaa] sm:$0xff] }
 0x427   : > { %2889 = vmatpush.bf16.msra.mxu2 %v11540_v26 }
 0x428   : > { %3084 = vmatpush.bf16.msra.mxu3 %v11548_v61 }
 0x429   : > { %v1758_v53 = vpop.f32.mrf.mxu2 }
 0x42a   : > { %v1953_v34 = vpop.f32.mrf.mxu3  ;;  %v1797_v12 = vadd.f32 %v1758_v53, %v1597_v43  ;;  %v2425_v43 = vpack.c.bf16 %v2416_v5, %v2415_v13  ;;  %v5729_v53 = vld [vmem:[#allocation3 + $0xa2] sm:$0xff] }
 0x42b   : > { %v2111_v42 = vpop.f32.mrf.mxu1  ;;  %v12812_v8 = vpop.f32.mrf.mxu0 }
 0x42c   : > { %v2172_v2 = vadd.f32 %v2111_v42, %v12646_v39  ;;  %v12815_v60 = vadd.f32 %v1953_v34, %v1797_v12  ;;  %v5728_v12 = vld [vmem:[#allocation3 + $0x9a] sm:$0xff] }
 0x42d   : > { %v5739_v61 = vpack.c.bf16 %v5729_v53, %v5728_v12  ;;  %v2794_v53 = vld [vmem:[#allocation3 + $0x28] sm:$0xff] }
 0x42e   : > { %2150 = vmatmul.bf16.gmra.mxu1 %v2036_v15  ;;  %2340 = vmatmul.bf16.gmra.mxu2 %v2230_v55  ;;  %v2792_v15 = vld [vmem:[#allocation3 + $0x18] sm:$0xff] }
 0x42f   : > { %2535 = vmatmul.bf16.gmra.mxu3 %v2425_v43  ;;  %v2987_v55 = vld [vmem:[#allocation3 + $0x19] sm:$0xff] }
 0x431   : > { %v1761_v3 = vpop.f32.mrf.mxu2 }
 0x432   : > { %v1956_v57 = vpop.f32.mrf.mxu3  ;;  %v1798_v17 = vadd.f32 %v1761_v3, %v1600_v24 }
 0x433   : > { %v2113_v52 = vpop.f32.mrf.mxu1  ;;  %v12817_v31 = vpop.f32.mrf.mxu0 }
 0x434   : > { %v2173_v39 = vadd.f32 %v2113_v52, %v12659_v10  ;;  %v12820_v14 = vadd.f32 %v1956_v57, %v1798_v17  ;;  %v2598_v57 = vld [vmem:[#allocation3 + $0x1f] sm:$0xff]  ;;  %v2986_v17 = vld [vmem:[#allocation3 + $0x11] sm:$0xff] }
 0x435   : > { %v3003_v1 = vpack.c.bf16 %v2987_v55, %v2986_v17 }
 0x436   : > { %5840 = vmatmul.bf16.gmra.mxu0 %v5738_v29 }
 0x439   : > { %v1763_v45 = vpop.f32.mrf.mxu2 }
 0x43a   : > { %v1958_v28 = vpop.f32.mrf.mxu3 }
 0x43b   : > { %v2116_v56 = vpop.f32.mrf.mxu1  ;;  %v12822_v32 = vpop.f32.mrf.mxu0 }
 0x43c   : > { %v2174_v24 = vadd.f32 %v2116_v56, %v12670_v23  ;;  %v2599_v23 = vld [vmem:[#allocation3 + $0x27] sm:$0xff] }
 0x43d   : > { %v2614_v41 = vpack.c.bf16 %v2599_v23, %v2598_v57 }
 0x43e   : > { %2695 = vmatmul.bf16.vlgmr.msra.gmra.mxu1 %v2613_v47  ;;  %2345 = vmatmul.bf16.gmra.mxu2 %v2231_v54 }
 0x43f   : > { %2540 = vmatmul.bf16.gmra.mxu3 %v2426_v7  ;;  %v2601_v7 = vld [vmem:[#allocation3 + $0x37] sm:$0xff] }
 0x441   : > { %v2306_v10 = vpop.f32.mrf.mxu2 }
 0x442   : > { %v2501_v62 = vpop.f32.mrf.mxu3  ;;  %v2367_v34 = vadd.f32 %v2306_v10, %v2172_v2  ;;  %v2791_v2 = vld [vmem:[#allocation3 + $0x10] sm:$0xff] }
 0x443   : > { %v2118_v11 = vpop.f32.mrf.mxu1  ;;  %v12825_v5 = vpop.f32.mrf.mxu0  ;;  %v2808_v29 = vpack.c.bf16 %v2792_v15, %v2791_v2  ;;  %v5732_v2 = vld [vmem:[#allocation3 + $0xba] sm:$0xff] }
 0x444   : > { %v2175_v42 = vadd.f32 %v2118_v11, %v12674_v48  ;;  %v12828_v26 = vadd.f32 %v2501_v62, %v2367_v34  ;;  %v2989_v34 = vld [vmem:[#allocation3 + $0x29] sm:$0xff] }
 0x446   : > { %5845 = vmatmul.bf16.gmra.mxu0 %v5739_v61  ;;  %v2600_v61 = vld [vmem:[#allocation3 + $0x2f] sm:$0xff] }
 0x447   : > { %v2615_v15 = vpack.c.bf16 %v2601_v7, %v2600_v61  ;;  %v2602_v7 = vld [vmem:[#allocation3 + $0x3f] sm:$0xff] }
 0x449   : > { %v2308_v19 = vpop.f32.mrf.mxu2 }
 0x44a   : > { %v2503_v13 = vpop.f32.mrf.mxu3  ;;  %v2368_v43 = vadd.f32 %v2308_v19, %v2173_v39  ;;  %v2988_v19 = vld [vmem:[#allocation3 + $0x21] sm:$0xff] }
 0x44b   : > { %v2121_v3 = vpop.f32.mrf.mxu1  ;;  %v12830_v40 = vpop.f32.mrf.mxu0 }
 0x44c   : > { %v2176_v52 = vadd.f32 %v2121_v3, %v12679_v6  ;;  %v12833_v48 = vadd.f32 %v2503_v13, %v2368_v43  ;;  %v5740_v6 = vpack.c.bf16 %v5731_v9, %v5730_v0  ;;  %v3004_v43 = vpack.c.bf16 %v2989_v34, %v2988_v19 }
 0x44e   : > { %2700 = vmatmul.bf16.gmra.mxu1 %v2614_v41  ;;  %2890 = vmatmul.bf16.vlgmr.msra.gmra.mxu2 %v2808_v29 }
 0x44f   : > { %3085 = vmatmul.bf16.vlgmr.msra.gmra.mxu3 %v3003_v1 }
 0x451   : > { %v2311_v45 = vpop.f32.mrf.mxu2 }
 0x452   : > { %v2506_v28 = vpop.f32.mrf.mxu3  ;;  %v2369_v39 = vadd.f32 %v2311_v45, %v2174_v24  ;;  %v2793_v24 = vld [vmem:[#allocation3 + $0x20] sm:$0xff] }
 0x453   : > { %v2123_v36 = vpop.f32.mrf.mxu1  ;;  %v12835_v56 = vpop.f32.mrf.mxu0  ;;  %v2603_v45 = vld [vmem:[#allocation3 + $0x47] sm:$0xff] }
 0x454   : > { %v2177_v47 = vadd.f32 %v2123_v36, %v12684_v38  ;;  %v12838_v54 = vadd.f32 %v2506_v28, %v2369_v39  ;;  %v2809_v38 = vpack.c.bf16 %v2794_v53, %v2793_v24  ;;  %v2796_v39 = vld [vmem:[#allocation3 + $0x38] sm:$0xff]  ;;  %v2616_v34 = vpack.c.bf16 %v2603_v45, %v2602_v7 }
 0x455   : > { %v2991_v36 = vld [vmem:[#allocation3 + $0x39] sm:$0xff] }
 0x456   : > { %5850 = vmatmul.bf16.gmra.mxu0 %v5740_v6  ;;  %v11571_v7 = vld [vmem:[%s14324_s3 + $0x2b8] sm:$0xff] }
 0x457   : > { %3467 = vmatpush.bf16.msrb.mxu2 %v11571_v7 }
 0x459   : > { %v2313_v10 = vpop.f32.mrf.mxu2 }
 0x45a   : > { %v2508_v62 = vpop.f32.mrf.mxu3  ;;  %v2370_v11 = vadd.f32 %v2313_v10, %v2175_v42 }
 0x45b   : > { %v2126_v12 = vpop.f32.mrf.mxu1  ;;  %v5078_v23 = vpop.f32.mrf.mxu0 }
 0x45c   : > { %v2178_v13 = vadd.f32 %v2126_v12, %v12688_v27  ;;  %v12841_v55 = vadd.f32 %v2508_v62, %v2370_v11  ;;  %v5741_v27 = vpack.c.bf16 %v5732_v2, %v5732_v2  ;;  %v2990_v62 = vld [vmem:[#allocation3 + $0x31] sm:$0xff]  ;;  %v2798_v2 = vld [vmem:[#allocation3 + $0x48] sm:$0xff] }
 0x45d   : > { %v3005_v12 = vpack.c.bf16 %v2991_v36, %v2990_v62 }
 0x45e   : > { %2705 = vmatmul.bf16.gmra.mxu1 %v2615_v15  ;;  %2895 = vmatmul.bf16.gmra.mxu2 %v2809_v38 }
 0x45f   : > { %3090 = vmatmul.bf16.gmra.mxu3 %v3004_v43  ;;  %v2605_v43 = vld [vmem:[#allocation3 + $0x57] sm:$0xff] }
 0x461   : > { %v2316_v3 = vpop.f32.mrf.mxu2 }
 0x462   : > { %v2511_v57 = vpop.f32.mrf.mxu3  ;;  %v2371_v17 = vadd.f32 %v2316_v3, %v2176_v52  ;;  %v2795_v52 = vld [vmem:[#allocation3 + $0x30] sm:$0xff] }
 0x463   : > { %v2128_v42 = vpop.f32.mrf.mxu1  ;;  %v12843_v41 = vpop.f32.mrf.mxu0  ;;  %v2810_v11 = vpack.c.bf16 %v2796_v39, %v2795_v52 }
 0x464   : > { %v2179_v29 = vadd.f32 %v2128_v42, %v12698_v4  ;;  %v12846_v1 = vadd.f32 %v2511_v57, %v2371_v17  ;;  %v2993_v17 = vld [vmem:[#allocation3 + $0x49] sm:$0xff] }
 0x466   : > { %5855 = vmatmul.bf16.gmra.mxu0 %v5741_v27 }
 0x469   : > { %v2318_v28 = vpop.f32.mrf.mxu2 }
 0x46a   : > { %v2513_v9 = vpop.f32.mrf.mxu3  ;;  %v2372_v0 = vadd.f32 %v2318_v28, %v2177_v47  ;;  %v2797_v28 = vld [vmem:[#allocation3 + $0x40] sm:$0xff] }
 0x46b   : > { %v2131_v6 = vpop.f32.mrf.mxu1  ;;  %v12848_v10 = vpop.f32.mrf.mxu0 }
 0x46c   : > { %v2180_v53 = vadd.f32 %v2131_v6, %v12705_v50  ;;  %v12851_v4 = vadd.f32 %v2513_v9, %v2372_v0  ;;  %v11563_v50 = vld [vmem:[%s14324_s3 + $0x278] sm:$0xff]  ;;  %v2992_v9 = vld [vmem:[#allocation3 + $0x41] sm:$0xff]  ;;  %v2811_v0 = vpack.c.bf16 %v2798_v2, %v2797_v28 }
 0x46d   : > { %3272 = vmatpush.bf16.msrb.mxu1 %v11563_v50  ;;  %v3006_v6 = vpack.c.bf16 %v2993_v17, %v2992_v9  ;;  %v2995_v50 = vld [vmem:[#allocation3 + $0x59] sm:$0xff]  ;;  %v2799_v17 = vld [vmem:[#allocation3 + $0x50] sm:$0xff] }
 0x46e   : > { %2710 = vmatmul.bf16.gmra.mxu1 %v2616_v34  ;;  %2900 = vmatmul.bf16.gmra.mxu2 %v2810_v11  ;;  %v11562_v9 = vld [vmem:[%s14324_s3 + $0x270] sm:$0xff] }
 0x46f   : > { %3095 = vmatmul.bf16.gmra.mxu3 %v3005_v12 }
 0x471   : > { %v2321_v61 = vpop.f32.mrf.mxu2  ;;  %3273 = vmatpush.bf16.msrb.mxu1 %v11562_v9  ;;  %v11560_v9 = vld [vmem:[%s14324_s3 + $0x260] sm:$0xff] }
 0x472   : > { %v2516_v23 = vpop.f32.mrf.mxu3  ;;  %v2373_v24 = vadd.f32 %v2321_v61, %v2178_v13  ;;  %v2604_v13 = vld [vmem:[#allocation3 + $0x4f] sm:$0xff]  ;;  %v2607_v61 = vld [vmem:[#allocation3 + $0x67] sm:$0xff] }
 0x473   : > { %v2133_v47 = vpop.f32.mrf.mxu1  ;;  %v12853_v19 = vpop.f32.mrf.mxu0  ;;  %v2617_v39 = vpack.c.bf16 %v2605_v43, %v2604_v13 }
 0x474   : > { %v2181_v15 = vadd.f32 %v2133_v47, %v12712_v44  ;;  %v12856_v38 = vadd.f32 %v2516_v23, %v2373_v24  ;;  %v2800_v47 = vld [vmem:[#allocation3 + $0x58] sm:$0xff] }
 0x479   : > { %v2323_v3 = vpop.f32.mrf.mxu2 }
 0x47a   : > { %v2518_v57 = vpop.f32.mrf.mxu3  ;;  %v2374_v42 = vadd.f32 %v2323_v3, %v2179_v29 }
 0x47b   : > { %v2136_v27 = vpop.f32.mrf.mxu1  ;;  %v12861_v45 = vpop.f32.mrf.mxu0 }
 0x47c   : > { %v2182_v44 = vadd.f32 %v2136_v27, %v12722_v35  ;;  %v12864_v36 = vadd.f32 %v2518_v57, %v2374_v42  ;;  %v2606_v57 = vld [vmem:[#allocation3 + $0x5f] sm:$0xff]  ;;  %v2994_v42 = vld [vmem:[#allocation3 + $0x51] sm:$0xff] }
 0x47d   : > { %v2618_v27 = vpack.c.bf16 %v2607_v61, %v2606_v57  ;;  %v3007_v28 = vpack.c.bf16 %v2995_v50, %v2994_v42  ;;  %v2801_v57 = vld [vmem:[#allocation3 + $0x60] sm:$0xff] }
 0x47e   : > { %2715 = vmatmul.bf16.gmra.mxu1 %v2617_v39  ;;  %2905 = vmatmul.bf16.gmra.mxu2 %v2811_v0 }
 0x47f   : > { %3100 = vmatmul.bf16.gmra.mxu3 %v3006_v6 }
 0x481   : > { %v2326_v29 = vpop.f32.mrf.mxu2 }
 0x482   : > { %v2521_v52 = vpop.f32.mrf.mxu3  ;;  %v2375_v62 = vadd.f32 %v2326_v29, %v2180_v53 }
 0x483   : > { %v2138_v34 = vpop.f32.mrf.mxu1  ;;  %v12869_v11 = vpop.f32.mrf.mxu0 }
 0x484   : > { %v2183_v35 = vadd.f32 %v2138_v34, %v12737_v58  ;;  %v12872_v12 = vadd.f32 %v2521_v52, %v2375_v62  ;;  %v2812_v58 = vpack.c.bf16 %v2800_v47, %v2799_v17  ;;  %v2609_v62 = vld [vmem:[#allocation3 + $0x77] sm:$0xff]  ;;  %v11561_v34 = vld [vmem:[%s14324_s3 + $0x268] sm:$0xff] }
 0x485   : > { %v2997_v47 = vld [vmem:[#allocation3 + $0x69] sm:$0xff]  ;;  %3274 = vmatpush.bf16.msrb.mxu1 %v11561_v34  ;;  %v2996_v17 = vld [vmem:[#allocation3 + $0x61] sm:$0xff] }
 0x489   : > { %v2328_v23 = vpop.f32.mrf.mxu2  ;;  %3275 = vmatpush.bf16.msrb.mxu1 %v11560_v9 }
 0x48a   : > { %v2523_v24 = vpop.f32.mrf.mxu3  ;;  %v2376_v43 = vadd.f32 %v2328_v23, %v2181_v15  ;;  %v11570_v15 = vld [vmem:[%s14324_s3 + $0x2b0] sm:$0xff] }
 0x48b   : > { %v2141_v3 = vpop.f32.mrf.mxu1  ;;  %v12874_v2 = vpop.f32.mrf.mxu0  ;;  %3468 = vmatpush.bf16.msrb.mxu2 %v11570_v15  ;;  %v11559_v15 = vld [vmem:[%s14324_s3 + $0x258] sm:$0xff] }
 0x48c   : > { %v2184_v53 = vadd.f32 %v2141_v3, %v12756_v63  ;;  %v12877_v13 = vadd.f32 %v2523_v24, %v2376_v43  ;;  %v2802_v24 = vld [vmem:[#allocation3 + $0x68] sm:$0xff] }
 0x48d   : > { %v2608_v3 = vld [vmem:[#allocation3 + $0x6f] sm:$0xff]  ;;  %3276 = vmatpush.bf16.msrb.mxu1 %v11559_v15 }
 0x48e   : > { %2720 = vmatmul.bf16.gmra.mxu1 %v2618_v27  ;;  %2910 = vmatmul.bf16.gmra.mxu2 %v2812_v58  ;;  %v2619_v42 = vpack.c.bf16 %v2609_v62, %v2608_v3  ;;  %v2813_v58 = vpack.c.bf16 %v2802_v24, %v2801_v57  ;;  %v11558_v24 = vld [vmem:[%s14324_s3 + $0x250] sm:$0xff]  ;;  %v2804_v3 = vld [vmem:[#allocation3 + $0x78] sm:$0xff] }
 0x48f   : > { %3105 = vmatmul.bf16.gmra.mxu3 %v3007_v28  ;;  %v3008_v28 = vpack.c.bf16 %v2997_v47, %v2996_v17  ;;  %v2611_v47 = vld [vmem:[#allocation3 + $0x87] sm:$0xff]  ;;  %v2999_v57 = vld [vmem:[#allocation3 + $0x79] sm:$0xff] }
 0x490   : > { %v11568_v17 = vld [vmem:[%s14324_s3 + $0x2a0] sm:$0xff] }
 0x491   : > { %v2331_v39 = vpop.f32.mrf.mxu2  ;;  %3277 = vmatpush.bf16.msrb.mxu1 %v11558_v24  ;;  %v11575_v24 = vld [vmem:[%s14324_s3 + $0x2d8] sm:$0xff] }
 0x492   : > { %v2526_v63 = vpop.f32.mrf.mxu3  ;;  %v2377_v0 = vadd.f32 %v2331_v39, %v2182_v44 }
 0x493   : > { %v2143_v6 = vpop.f32.mrf.mxu1  ;;  %v12885_v7 = vpop.f32.mrf.mxu0 }
 0x494   : > { %v2185_v29 = vadd.f32 %v2143_v6, %v12778_v49  ;;  %v12888_v52 = vadd.f32 %v2526_v63, %v2377_v0 }
 0x499   : > { %v2333_v61 = vpop.f32.mrf.mxu2 }
 0x49a   : > { %v2528_v23 = vpop.f32.mrf.mxu3  ;;  %v2378_v50 = vadd.f32 %v2333_v61, %v2183_v35  ;;  %v11569_v35 = vld [vmem:[%s14324_s3 + $0x2a8] sm:$0xff] }
 0x49b   : > { %v2146_v43 = vpop.f32.mrf.mxu1  ;;  %v12893_v44 = vpop.f32.mrf.mxu0  ;;  %3469 = vmatpush.bf16.msrb.mxu2 %v11569_v35  ;;  %v2803_v35 = vld [vmem:[#allocation3 + $0x70] sm:$0xff] }
 0x49c   : > { %v2186_v49 = vadd.f32 %v2146_v43, %v12795_v21  ;;  %v12896_v27 = vadd.f32 %v2528_v23, %v2378_v50  ;;  %v11579_v21 = vld [vmem:[%s14324_s3 + $0x2f8] sm:$0xff]  ;;  %v11578_v23 = vld [vmem:[%s14324_s3 + $0x2f0] sm:$0xff] }
 0x49d   : > { %3662 = vmatpush.bf16.msrb.mxu3 %v11579_v21  ;;  %v2998_v21 = vld [vmem:[#allocation3 + $0x71] sm:$0xff] }
 0x49e   : > { %2725 = vmatmul.bf16.gmra.mxu1 %v2619_v42  ;;  %2915 = vmatmul.bf16.gmra.mxu2 %v2813_v58 }
 0x49f   : > { %3110 = vmatmul.bf16.gmra.mxu3 %v3008_v28  ;;  %v2610_v28 = vld [vmem:[#allocation3 + $0x7f] sm:$0xff]  ;;  %3470 = vmatpush.bf16.msrb.mxu2 %v11568_v17  ;;  %v11574_v17 = vld [vmem:[%s14324_s3 + $0x2d0] sm:$0xff] }
 0x4a1   : > { %v2336_v39 = vpop.f32.mrf.mxu2  ;;  %3663 = vmatpush.bf16.msrb.mxu3 %v11578_v23  ;;  %v11556_v23 = vld [vmem:[%s14324_s3 + $0x240] sm:$0xff] }
 0x4a2   : > { %v2531_v63 = vpop.f32.mrf.mxu3  ;;  %v2379_v0 = vadd.f32 %v2336_v39, %v2184_v53  ;;  %v11577_v53 = vld [vmem:[%s14324_s3 + $0x2e8] sm:$0xff]  ;;  %v2620_v39 = vpack.c.bf16 %v2611_v47, %v2610_v28 }
 0x4a3   : > { %v2148_v6 = vpop.f32.mrf.mxu1  ;;  %v12910_v62 = vpop.f32.mrf.mxu0 }
 0x4a4   : > { %14362 = vst [vmem:[#allocation9_spill] sm:$0xff] %v12910_v62  ;;  %v2187_v34 = vadd.f32 %v2148_v6, %v12815_v60  ;;  %v12913_v61 = vadd.f32 %v2531_v63, %v2379_v0  ;;  %v11557_v60 = vld [vmem:[%s14324_s3 + $0x248] sm:$0xff]  ;;  %v11576_v63 = vld [vmem:[%s14324_s3 + $0x2e0] sm:$0xff]  ;;  %v2814_v6 = vpack.c.bf16 %v2804_v3, %v2803_v35 }
 0x4a5   : > { %3664 = vmatpush.bf16.msrb.mxu3 %v11577_v53  ;;  %3278 = vmatpush.bf16.msrb.mxu1 %v11557_v60 }
 0x4a9   : > { %v2338_v50 = vpop.f32.mrf.mxu2  ;;  %3665 = vmatpush.bf16.msrb.mxu3 %v11576_v63  ;;  %3279 = vmatpush.bf16.msrb.mxu1 %v11556_v23  ;;  %v2805_v23 = vld [vmem:[#allocation3 + $0x80] sm:$0xff] }
 0x4aa   : > { %v2533_v43 = vpop.f32.mrf.mxu3  ;;  %v2380_v42 = vadd.f32 %v2338_v50, %v2185_v29  ;;  %v3009_v29 = vpack.c.bf16 %v2999_v57, %v2998_v21  ;;  %v11566_v57 = vld [vmem:[%s14324_s3 + $0x290] sm:$0xff]  ;;  %v2806_v21 = vld [vmem:[#allocation3 + $0x88] sm:$0xff] }
 0x4ab   : > { %v2151_v58 = vpop.f32.mrf.mxu1  ;;  %v12930_v9 = vpop.f32.mrf.mxu0 }
 0x4ac   : > { %14363 = vst [vmem:[#allocation14_spill] sm:$0xff] %v12930_v9  ;;  %v2188_v15 = vadd.f32 %v2151_v58, %v12820_v14  ;;  %v12936_v0 = vadd.f32 %v2533_v43, %v2380_v42  ;;  %v11567_v14 = vld [vmem:[%s14324_s3 + $0x298] sm:$0xff]  ;;  %v11565_v42 = vld [vmem:[%s14324_s3 + $0x288] sm:$0xff] }
 0x4ad   : > { %3471 = vmatpush.bf16.msrb.mxu2 %v11567_v14  ;;  %3666 = vmatpush.bf16.msrb.mxu3 %v11575_v24  ;;  %v2612_v58 = vld [vmem:[#allocation3 + $0x8f] sm:$0xff]  ;;  %v3000_v14 = vld [vmem:[#allocation3 + $0x81] sm:$0xff] }
 0x4ae   : > { %2730 = vmatmul.bf16.gmra.mxu1 %v2620_v39  ;;  %2920 = vmatmul.bf16.gmra.mxu2 %v2814_v6  ;;  %v3001_v39 = vld [vmem:[#allocation3 + $0x89] sm:$0xff]  ;;  %v3186_v9 = vld [vmem:[#allocation3 + $0x3a] sm:$0xff] }
 0x4af   : > { %3115 = vmatmul.bf16.gmra.mxu3 %v3009_v29 }
 0x4b1   : > { %v2341_v53 = vpop.f32.mrf.mxu2  ;;  %3472 = vmatpush.bf16.msrb.mxu2 %v11566_v57  ;;  %3667 = vmatpush.bf16.msrb.mxu3 %v11574_v17  ;;  %v11564_v57 = vld [vmem:[%s14324_s3 + $0x280] sm:$0xff] }
 0x4b2   : > { %v2536_v47 = vpop.f32.mrf.mxu3  ;;  %v2381_v60 = vadd.f32 %v2341_v53, %v2186_v49  ;;  %v11573_v49 = vld [vmem:[%s14324_s3 + $0x2c8] sm:$0xff]  ;;  %v2621_v53 = vpack.c.bf16 %v2612_v58, %v2612_v58 }
 0x4b3   : > { %v2153_v50 = vpop.f32.mrf.mxu1  ;;  %v12947_v43 = vpop.f32.mrf.mxu0 }
 0x4b4   : > { %14364 = vst [vmem:[#allocation10_spill] sm:$0xff] %v12947_v43  ;;  %v12949_v3 = vadd.f32 %v2536_v47, %v2381_v60  ;;  %v2815_v60 = vpack.c.bf16 %v2806_v21, %v2805_v23  ;;  %v3010_v50 = vpack.c.bf16 %v3001_v39, %v3000_v14  ;;  %v3182_v21 = vld [vmem:[#allocation3 + $0x1a] sm:$0xff]  ;;  %v3002_v23 = vld [vmem:[#allocation3 + $0x91] sm:$0xff] }
 0x4b5   : > { %3473 = vmatpush.bf16.msrb.mxu2 %v11565_v42  ;;  %3668 = vmatpush.bf16.msrb.mxu3 %v11573_v49 }
 0x4b9   : > { %v2343_v28 = vpop.f32.mrf.mxu2  ;;  %3474 = vmatpush.bf16.msrb.mxu2 %v11564_v57 }
 0x4ba   : > { %v2538_v35 = vpop.f32.mrf.mxu3  ;;  %v2382_v63 = vadd.f32 %v2343_v28, %v2187_v34  ;;  %v11572_v34 = vld [vmem:[%s14324_s3 + $0x2c0] sm:$0xff] }
 0x4bb   : > { %v2696_v6 = vpop.f32.mrf.mxu1  ;;  %v12963_v29 = vpop.f32.mrf.mxu0  ;;  %3669 = vmatpush.bf16.msrb.mxu3 %v11572_v34  ;;  %v3011_v34 = vpack.c.bf16 %v3002_v23, %v3002_v23 }
 0x4bc   : > { %14365 = vst [vmem:[#allocation15_spill] sm:$0xff] %v12963_v29  ;;  %v2757_v24 = vadd.f32 %v2696_v6, %v12828_v26  ;;  %v12966_v47 = vadd.f32 %v2538_v35, %v2382_v63  ;;  %v2807_v6 = vld [vmem:[#allocation3 + $0x90] sm:$0xff] }
 0x4be   : > { %2735 = vmatmul.bf16.gmra.mxu1 %v2621_v53  ;;  %2925 = vmatmul.bf16.gmra.mxu2 %v2815_v60  ;;  %v3181_v53 = vld [vmem:[#allocation3 + $0x12] sm:$0xff] }
 0x4bf   : > { %3120 = vmatmul.bf16.gmra.mxu3 %v3010_v50  ;;  %v3198_v57 = vpack.c.bf16 %v3182_v21, %v3181_v53  ;;  %v3572_v21 = vld [vmem:[#allocation3 + $0x25] sm:$0xff] }
 0x4c1   : > { %v2346_v26 = vpop.f32.mrf.mxu2 }
 0x4c2   : > { %v2541_v17 = vpop.f32.mrf.mxu3  ;;  %v2383_v42 = vadd.f32 %v2346_v26, %v2188_v15  ;;  %v2816_v15 = vpack.c.bf16 %v2807_v6, %v2807_v6 }
 0x4c3   : > { %v2698_v49 = vpop.f32.mrf.mxu1  ;;  %v12974_v58 = vpop.f32.mrf.mxu0 }
 0x4c4   : > { %14366 = vst [vmem:[#allocation11_spill] sm:$0xff] %v12974_v58  ;;  %v2758_v28 = vadd.f32 %v2698_v49, %v12833_v48  ;;  %v12977_v35 = vadd.f32 %v2541_v17, %v2383_v42  ;;  %v3184_v58 = vld [vmem:[#allocation3 + $0x2a] sm:$0xff] }
 0x4c9   : > { %v2348_v39 = vpop.f32.mrf.mxu2 }
 0x4ca   : > { %v2543_v63 = vpop.f32.mrf.mxu3 }
 0x4cb   : > { %v2701_v14 = vpop.f32.mrf.mxu1  ;;  %v12979_v60 = vpop.f32.mrf.mxu0 }
 0x4cc   : > { %14367 = vst [vmem:[#allocation16_spill] sm:$0xff] %v12979_v60  ;;  %v2759_v50 = vadd.f32 %v2701_v14, %v12838_v54  ;;  %v3377_v54 = vld [vmem:[#allocation3 + $0x24] sm:$0xff] }
 0x4cd   : > { %v3183_v14 = vld [vmem:[#allocation3 + $0x22] sm:$0xff] }
 0x4ce   : > { %3280 = vmatmul.bf16.vlgmr.msrb.gmra.mxu1 %v3198_v57  ;;  %2930 = vmatmul.bf16.gmra.mxu2 %v2816_v15  ;;  %v3376_v57 = vld [vmem:[#allocation3 + $0x1c] sm:$0xff] }
 0x4cf   : > { %3125 = vmatmul.bf16.gmra.mxu3 %v3011_v34  ;;  %v3571_v15 = vld [vmem:[#allocation3 + $0x1d] sm:$0xff]  ;;  %v3199_v34 = vpack.c.bf16 %v3184_v58, %v3183_v14 }
 0x4d1   : > { %v2891_v48 = vpop.f32.mrf.mxu2 }
 0x4d2   : > { %v3086_v26 = vpop.f32.mrf.mxu3  ;;  %v2952_v17 = vadd.f32 %v2891_v48, %v2757_v24 }
 0x4d3   : > { %v2703_v42 = vpop.f32.mrf.mxu1  ;;  %v12982_v49 = vpop.f32.mrf.mxu0 }
 0x4d4   : > { %14368 = vst [vmem:[#allocation12_spill] sm:$0xff] %v12982_v49  ;;  %v2760_v39 = vadd.f32 %v2703_v42, %v12841_v55  ;;  %v12985_v63 = vadd.f32 %v3086_v26, %v2952_v17  ;;  %v3393_v55 = vpack.c.bf16 %v3377_v54, %v3376_v57  ;;  %v3588_v26 = vpack.c.bf16 %v3572_v21, %v3571_v15  ;;  %v3378_v57 = vld [vmem:[#allocation3 + $0x2c] sm:$0xff] }
 0x4d5   : > { %v3573_v15 = vld [vmem:[#allocation3 + $0x2d] sm:$0xff] }
 0x4d9   : > { %v2893_v60 = vpop.f32.mrf.mxu2 }
 0x4da   : > { %v3088_v29 = vpop.f32.mrf.mxu3  ;;  %v2953_v6 = vadd.f32 %v2893_v60, %v2758_v28 }
 0x4db   : > { %v2706_v23 = vpop.f32.mrf.mxu1  ;;  %v12987_v53 = vpop.f32.mrf.mxu0 }
 0x4dc   : > { %14369 = vst [vmem:[#allocation17_spill] sm:$0xff] %v12987_v53  ;;  %v2761_v24 = vadd.f32 %v2706_v23, %v12846_v1  ;;  %v12990_v48 = vadd.f32 %v3088_v29, %v2953_v6  ;;  %v3379_v29 = vld [vmem:[#allocation3 + $0x34] sm:$0xff] }
 0x4dd   : > { %v3574_v6 = vld [vmem:[#allocation3 + $0x35] sm:$0xff] }
 0x4de   : > { %3285 = vmatmul.bf16.gmra.mxu1 %v3199_v34  ;;  %3475 = vmatmul.bf16.vlgmr.msrb.gmra.mxu2 %v3393_v55  ;;  %v3185_v23 = vld [vmem:[#allocation3 + $0x32] sm:$0xff] }
 0x4df   : > { %3670 = vmatmul.bf16.vlgmr.msrb.gmra.mxu3 %v3588_v26  ;;  %v3200_v34 = vpack.c.bf16 %v3186_v9, %v3185_v23  ;;  %v3394_v26 = vpack.c.bf16 %v3379_v29, %v3378_v57  ;;  %v3576_v9 = vld [vmem:[#allocation3 + $0x45] sm:$0xff] }
 0x4e0   : > { %v3187_v29 = vld [vmem:[#allocation3 + $0x42] sm:$0xff] }
 0x4e1   : > { %v2896_v17 = vpop.f32.mrf.mxu2 }
 0x4e2   : > { %v3091_v42 = vpop.f32.mrf.mxu3  ;;  %v2954_v49 = vadd.f32 %v2896_v17, %v2759_v50 }
 0x4e3   : > { %v2708_v28 = vpop.f32.mrf.mxu1  ;;  %v12992_v60 = vpop.f32.mrf.mxu0 }
 0x4e4   : > { %14370 = vst [vmem:[#allocation13_spill] sm:$0xff] %v12992_v60  ;;  %v2762_v53 = vadd.f32 %v2708_v28, %v12851_v4  ;;  %v12995_v43 = vadd.f32 %v3091_v42, %v2954_v49  ;;  %v3589_v4 = vpack.c.bf16 %v3574_v6, %v3573_v15  ;;  %v3380_v6 = vld [vmem:[#allocation3 + $0x3c] sm:$0xff] }
 0x4e9   : > { %v2898_v1 = vpop.f32.mrf.mxu2 }
 0x4ea   : > { %v3093_v58 = vpop.f32.mrf.mxu3  ;;  %v2955_v54 = vadd.f32 %v2898_v1, %v2760_v39 }
 0x4eb   : > { %v2711_v21 = vpop.f32.mrf.mxu1  ;;  %v5858_v14 = vpop.f32.mrf.mxu0 }
 0x4ec   : > { %v2763_v50 = vadd.f32 %v2711_v21, %v12856_v38  ;;  %v12998_v55 = vadd.f32 %v3093_v58, %v2955_v54  ;;  %v3188_v14 = vld [vmem:[#allocation3 + $0x4a] sm:$0xff]  ;;  %v3575_v21 = vld [vmem:[#allocation3 + $0x3d] sm:$0xff] }
 0x4ed   : > { %v3381_v38 = vld [vmem:[#allocation3 + $0x44] sm:$0xff]  ;;  %v3201_v57 = vpack.c.bf16 %v3188_v14, %v3187_v29  ;;  %v3578_v14 = vld [vmem:[#allocation3 + $0x55] sm:$0xff] }
 0x4ee   : > { %3290 = vmatmul.bf16.gmra.mxu1 %v3200_v34  ;;  %3480 = vmatmul.bf16.gmra.mxu2 %v3394_v26  ;;  %v3590_v34 = vpack.c.bf16 %v3576_v9, %v3575_v21 }
 0x4ef   : > { %3675 = vmatmul.bf16.gmra.mxu3 %v3589_v4 }
 0x4f1   : > { %v2901_v49 = vpop.f32.mrf.mxu2 }
 0x4f2   : > { %v3096_v17 = vpop.f32.mrf.mxu3  ;;  %v2956_v42 = vadd.f32 %v2901_v49, %v2761_v24  ;;  %v3395_v24 = vpack.c.bf16 %v3381_v38, %v3380_v6 }
 0x4f3   : > { %v2713_v28 = vpop.f32.mrf.mxu1 }
 0x4f4   : > { %v2764_v39 = vadd.f32 %v2713_v28, %v12864_v36  ;;  %v13001_v1 = vadd.f32 %v3096_v17, %v2956_v42  ;;  %v3383_v28 = vld [vmem:[#allocation3 + $0x54] sm:$0xff] }
 0x4f9   : > { %v2903_v60 = vpop.f32.mrf.mxu2 }
 0x4fa   : > { %v3098_v62 = vpop.f32.mrf.mxu3  ;;  %v2957_v58 = vadd.f32 %v2903_v60, %v2762_v53 }
 0x4fb   : > { %v2716_v54 = vpop.f32.mrf.mxu1 }
 0x4fc   : > { %v2765_v23 = vadd.f32 %v2716_v54, %v12872_v12  ;;  %v13004_v15 = vadd.f32 %v3098_v62, %v2957_v58  ;;  %v11587_v12 = vld [vmem:[%s14324_s3 + $0x338] sm:$0xff]  ;;  %v3382_v54 = vld [vmem:[#allocation3 + $0x4c] sm:$0xff] }
 0x4fd   : > { %3857 = vmatpush.bf16.msra.mxu1 %v11587_v12  ;;  %v3190_v62 = vld [vmem:[#allocation3 + $0x5a] sm:$0xff]  ;;  %v3189_v58 = vld [vmem:[#allocation3 + $0x52] sm:$0xff]  ;;  %v3396_v21 = vpack.c.bf16 %v3383_v28, %v3382_v54 }
 0x4fe   : > { %3295 = vmatmul.bf16.gmra.mxu1 %v3201_v57  ;;  %3485 = vmatmul.bf16.gmra.mxu2 %v3395_v24  ;;  %v11595_v24 = vld [vmem:[%s14324_s3 + $0x378] sm:$0xff] }
 0x4ff   : > { %3680 = vmatmul.bf16.gmra.mxu3 %v3590_v34  ;;  %4052 = vmatpush.bf16.msra.mxu2 %v11595_v24 }
 0x501   : > { %v2906_v36 = vpop.f32.mrf.mxu2 }
 0x502   : > { %v3101_v26 = vpop.f32.mrf.mxu3  ;;  %v2958_v4 = vadd.f32 %v2906_v36, %v2763_v50  ;;  %v3577_v50 = vld [vmem:[#allocation3 + $0x4d] sm:$0xff] }
 0x503   : > { %v2718_v49 = vpop.f32.mrf.mxu1  ;;  %v3591_v57 = vpack.c.bf16 %v3578_v14, %v3577_v50 }
 0x504   : > { %v2766_v53 = vadd.f32 %v2718_v49, %v12877_v13  ;;  %v13007_v60 = vadd.f32 %v3101_v26, %v2958_v4  ;;  %v3202_v13 = vpack.c.bf16 %v3190_v62, %v3189_v58  ;;  %v3192_v49 = vld [vmem:[#allocation3 + $0x6a] sm:$0xff]  ;;  %v3579_v58 = vld [vmem:[#allocation3 + $0x5d] sm:$0xff] }
 0x509   : > { %v2908_v17 = vpop.f32.mrf.mxu2 }
 0x50a   : > { %v3103_v42 = vpop.f32.mrf.mxu3  ;;  %v2959_v38 = vadd.f32 %v2908_v17, %v2764_v39  ;;  %v3385_v17 = vld [vmem:[#allocation3 + $0x64] sm:$0xff] }
 0x50b   : > { %v2721_v9 = vpop.f32.mrf.mxu1 }
 0x50c   : > { %v2767_v29 = vadd.f32 %v2721_v9, %v12888_v52  ;;  %v13013_v6 = vadd.f32 %v3103_v42, %v2959_v38  ;;  %v3580_v42 = vld [vmem:[#allocation3 + $0x65] sm:$0xff]  ;;  %v3384_v9 = vld [vmem:[#allocation3 + $0x5c] sm:$0xff] }
 0x50d   : > { %v3191_v38 = vld [vmem:[#allocation3 + $0x62] sm:$0xff] }
 0x50e   : > { %3300 = vmatmul.bf16.gmra.mxu1 %v3202_v13  ;;  %3490 = vmatmul.bf16.gmra.mxu2 %v3396_v21  ;;  %v3203_v50 = vpack.c.bf16 %v3192_v49, %v3191_v38  ;;  %v3592_v21 = vpack.c.bf16 %v3580_v42, %v3579_v58  ;;  %v11585_v42 = vld [vmem:[%s14324_s3 + $0x328] sm:$0xff]  ;;  %v3193_v38 = vld [vmem:[#allocation3 + $0x72] sm:$0xff] }
 0x50f   : > { %3685 = vmatmul.bf16.gmra.mxu3 %v3591_v57  ;;  %v11594_v57 = vld [vmem:[%s14324_s3 + $0x370] sm:$0xff] }
 0x510   : > { %4053 = vmatpush.bf16.msra.mxu2 %v11594_v57  ;;  %v3581_v58 = vld [vmem:[#allocation3 + $0x6d] sm:$0xff] }
 0x511   : > { %v2911_v39 = vpop.f32.mrf.mxu2 }
 0x512   : > { %v3106_v34 = vpop.f32.mrf.mxu3  ;;  %v2960_v36 = vadd.f32 %v2911_v39, %v2765_v23  ;;  %v3397_v23 = vpack.c.bf16 %v3385_v17, %v3384_v9  ;;  %v3582_v17 = vld [vmem:[#allocation3 + $0x75] sm:$0xff]  ;;  %v3386_v9 = vld [vmem:[#allocation3 + $0x6c] sm:$0xff] }
 0x513   : > { %v2723_v26 = vpop.f32.mrf.mxu1 }
 0x514   : > { %v2768_v4 = vadd.f32 %v2723_v26, %v12896_v27  ;;  %v13019_v52 = vadd.f32 %v3106_v34, %v2960_v36  ;;  %v11586_v27 = vld [vmem:[%s14324_s3 + $0x330] sm:$0xff]  ;;  %v3194_v26 = vld [vmem:[#allocation3 + $0x7a] sm:$0xff] }
 0x515   : > { %3858 = vmatpush.bf16.msra.mxu1 %v11586_v27  ;;  %v11584_v27 = vld [vmem:[%s14324_s3 + $0x320] sm:$0xff] }
 0x519   : > { %v2913_v12 = vpop.f32.mrf.mxu2  ;;  %3859 = vmatpush.bf16.msra.mxu1 %v11585_v42  ;;  %v3196_v42 = vld [vmem:[#allocation3 + $0x8a] sm:$0xff] }
 0x51a   : > { %v3108_v62 = vpop.f32.mrf.mxu3  ;;  %v2961_v28 = vadd.f32 %v2913_v12, %v2766_v53 }
 0x51b   : > { %v2726_v14 = vpop.f32.mrf.mxu1 }
 0x51c   : > { %v2769_v54 = vadd.f32 %v2726_v14, %v12913_v61  ;;  %v13022_v13 = vadd.f32 %v3108_v62, %v2961_v28  ;;  %v3387_v62 = vld [vmem:[#allocation3 + $0x74] sm:$0xff] }
 0x51d   : > { %3860 = vmatpush.bf16.msra.mxu1 %v11584_v27  ;;  %v3583_v27 = vld [vmem:[#allocation3 + $0x7d] sm:$0xff] }
 0x51e   : > { %3305 = vmatmul.bf16.gmra.mxu1 %v3203_v50  ;;  %3495 = vmatmul.bf16.gmra.mxu2 %v3397_v23  ;;  %v3204_v50 = vpack.c.bf16 %v3194_v26, %v3193_v38  ;;  %v3398_v23 = vpack.c.bf16 %v3387_v62, %v3386_v9  ;;  %v11582_v62 = vld [vmem:[%s14324_s3 + $0x310] sm:$0xff]  ;;  %v11592_v38 = vld [vmem:[%s14324_s3 + $0x360] sm:$0xff]  ;;  %v11581_v9 = vld [vmem:[%s14324_s3 + $0x308] sm:$0xff] }
 0x51f   : > { %3690 = vmatmul.bf16.gmra.mxu3 %v3592_v21  ;;  %v3593_v21 = vpack.c.bf16 %v3582_v17, %v3581_v58  ;;  %v11601_v17 = vld [vmem:[%s14324_s3 + $0x3a8] sm:$0xff] }
 0x521   : > { %v2916_v53 = vpop.f32.mrf.mxu2 }
 0x522   : > { %v3111_v61 = vpop.f32.mrf.mxu3  ;;  %v2962_v24 = vadd.f32 %v2916_v53, %v2767_v29 }
 0x523   : > { %v2728_v39 = vpop.f32.mrf.mxu1 }
 0x524   : > { %v2770_v34 = vadd.f32 %v2728_v39, %v12936_v0  ;;  %v13031_v36 = vadd.f32 %v3111_v61, %v2962_v24  ;;  %v11583_v61 = vld [vmem:[%s14324_s3 + $0x318] sm:$0xff] }
 0x525   : > { %3861 = vmatpush.bf16.msra.mxu1 %v11583_v61 }
 0x529   : > { %v2918_v49 = vpop.f32.mrf.mxu2  ;;  %3862 = vmatpush.bf16.msra.mxu1 %v11582_v62 }
 0x52a   : > { %v3113_v12 = vpop.f32.mrf.mxu3  ;;  %v2963_v28 = vadd.f32 %v2918_v49, %v2768_v4  ;;  %v11593_v4 = vld [vmem:[%s14324_s3 + $0x368] sm:$0xff] }
 0x52b   : > { %v2731_v14 = vpop.f32.mrf.mxu1  ;;  %4054 = vmatpush.bf16.msra.mxu2 %v11593_v4 }
 0x52c   : > { %v2771_v29 = vadd.f32 %v2731_v14, %v12949_v3  ;;  %v13037_v0 = vadd.f32 %v3113_v12, %v2963_v28  ;;  %v11603_v3 = vld [vmem:[%s14324_s3 + $0x3b8] sm:$0xff]  ;;  %v11602_v12 = vld [vmem:[%s14324_s3 + $0x3b0] sm:$0xff]  ;;  %v3584_v14 = vld [vmem:[#allocation3 + $0x85] sm:$0xff] }
 0x52d   : > { %4247 = vmatpush.bf16.msra.mxu3 %v11603_v3  ;;  %3863 = vmatpush.bf16.msra.mxu1 %v11581_v9 }
 0x52e   : > { %3310 = vmatmul.bf16.gmra.mxu1 %v3204_v50  ;;  %3500 = vmatmul.bf16.gmra.mxu2 %v3398_v23  ;;  %v3195_v23 = vld [vmem:[#allocation3 + $0x82] sm:$0xff] }
 0x52f   : > { %3695 = vmatmul.bf16.gmra.mxu3 %v3593_v21  ;;  %v3388_v21 = vld [vmem:[#allocation3 + $0x7c] sm:$0xff]  ;;  %v3205_v3 = vpack.c.bf16 %v3196_v42, %v3195_v23  ;;  %4055 = vmatpush.bf16.msra.mxu2 %v11592_v38  ;;  %v3197_v38 = vld [vmem:[#allocation3 + $0x92] sm:$0xff] }
 0x530   : > { %v3586_v23 = vld [vmem:[#allocation3 + $0x95] sm:$0xff] }
 0x531   : > { %v2921_v57 = vpop.f32.mrf.mxu2  ;;  %4248 = vmatpush.bf16.msra.mxu3 %v11602_v12 }
 0x532   : > { %v3116_v53 = vpop.f32.mrf.mxu3  ;;  %v2964_v24 = vadd.f32 %v2921_v57, %v2769_v54  ;;  %v3389_v54 = vld [vmem:[#allocation3 + $0x84] sm:$0xff] }
 0x533   : > { %v2733_v39 = vpop.f32.mrf.mxu1  ;;  %v11600_v57 = vld [vmem:[%s14324_s3 + $0x3a0] sm:$0xff]  ;;  %v3399_v61 = vpack.c.bf16 %v3389_v54, %v3388_v21 }
 0x534   : > { %v2772_v26 = vadd.f32 %v2733_v39, %v12966_v47  ;;  %v13052_v49 = vadd.f32 %v3116_v53, %v2964_v24  ;;  %v3594_v24 = vpack.c.bf16 %v3584_v14, %v3583_v27  ;;  %v11599_v39 = vld [vmem:[%s14324_s3 + $0x398] sm:$0xff]  ;;  %v11589_v14 = vld [vmem:[%s14324_s3 + $0x348] sm:$0xff] }
 0x535   : > { %4249 = vmatpush.bf16.msra.mxu3 %v11601_v17 }
 0x539   : > { %v2923_v47 = vpop.f32.mrf.mxu2  ;;  %4250 = vmatpush.bf16.msra.mxu3 %v11600_v57  ;;  %v3585_v57 = vld [vmem:[#allocation3 + $0x8d] sm:$0xff] }
 0x53a   : > { %v3118_v28 = vpop.f32.mrf.mxu3  ;;  %v2965_v58 = vadd.f32 %v2923_v47, %v2770_v34  ;;  %v11580_v34 = vld [vmem:[%s14324_s3 + $0x300] sm:$0xff]  ;;  %v11590_v47 = vld [vmem:[%s14324_s3 + $0x350] sm:$0xff] }
 0x53b   : > { %v2736_v50 = vpop.f32.mrf.mxu1  ;;  %3864 = vmatpush.bf16.msra.mxu1 %v11580_v34 }
 0x53c   : > { %v2773_v4 = vadd.f32 %v2736_v50, %v12977_v35  ;;  %v13073_v53 = vadd.f32 %v3118_v28, %v2965_v58  ;;  %v11591_v35 = vld [vmem:[%s14324_s3 + $0x358] sm:$0xff]  ;;  %v11598_v28 = vld [vmem:[%s14324_s3 + $0x390] sm:$0xff] }
 0x53d   : > { %4056 = vmatpush.bf16.msra.mxu2 %v11591_v35  ;;  %4251 = vmatpush.bf16.msra.mxu3 %v11599_v39  ;;  %v3391_v50 = vld [vmem:[#allocation3 + $0x94] sm:$0xff]  ;;  %v3595_v39 = vpack.c.bf16 %v3586_v23, %v3585_v57  ;;  %v3766_v23 = vld [vmem:[#allocation3 + $0x1e] sm:$0xff] }
 0x53e   : > { %3315 = vmatmul.bf16.gmra.mxu1 %v3205_v3  ;;  %3505 = vmatmul.bf16.gmra.mxu2 %v3399_v61  ;;  %v3390_v3 = vld [vmem:[#allocation3 + $0x8c] sm:$0xff] }
 0x53f   : > { %3700 = vmatmul.bf16.gmra.mxu3 %v3594_v24  ;;  %v3206_v24 = vpack.c.bf16 %v3197_v38, %v3197_v38  ;;  %v3400_v35 = vpack.c.bf16 %v3391_v50, %v3390_v3 }
 0x541   : > { %v2926_v12 = vpop.f32.mrf.mxu2  ;;  %4057 = vmatpush.bf16.msra.mxu2 %v11590_v47  ;;  %4252 = vmatpush.bf16.msra.mxu3 %v11598_v28 }
 0x542   : > { %v3121_v62 = vpop.f32.mrf.mxu3  ;;  %v2966_v17 = vadd.f32 %v2926_v12, %v2771_v29  ;;  %v11597_v29 = vld [vmem:[%s14324_s3 + $0x388] sm:$0xff]  ;;  %v11588_v12 = vld [vmem:[%s14324_s3 + $0x340] sm:$0xff] }
 0x543   : > { %v2738_v54 = vpop.f32.mrf.mxu1 }
 0x544   : > { %v13084_v42 = vadd.f32 %v3121_v62, %v2966_v17 }
 0x545   : > { %4058 = vmatpush.bf16.msra.mxu2 %v11589_v14  ;;  %4253 = vmatpush.bf16.msra.mxu3 %v11597_v29  ;;  %v3767_v14 = vld [vmem:[#allocation3 + $0x26] sm:$0xff] }
 0x549   : > { %v2928_v9 = vpop.f32.mrf.mxu2  ;;  %4059 = vmatpush.bf16.msra.mxu2 %v11588_v12 }
 0x54a   : > { %v3123_v58 = vpop.f32.mrf.mxu3  ;;  %v2967_v21 = vadd.f32 %v2928_v9, %v2772_v26  ;;  %v11596_v26 = vld [vmem:[%s14324_s3 + $0x380] sm:$0xff] }
 0x54b   : > { %v3281_v27 = vpop.f32.mrf.mxu1  ;;  %4254 = vmatpush.bf16.msra.mxu3 %v11596_v26  ;;  %v3392_v9 = vld [vmem:[#allocation3 + $0x9c] sm:$0xff] }
 0x54c   : > { %v3342_v61 = vadd.f32 %v3281_v27, %v12985_v63  ;;  %v13099_v34 = vadd.f32 %v3123_v58, %v2967_v21  ;;  %v3587_v58 = vld [vmem:[#allocation3 + $0x9d] sm:$0xff]  ;;  %v3783_v27 = vpack.c.bf16 %v3767_v14, %v3766_v23  ;;  %v3401_v3 = vpack.c.bf16 %v3392_v9, %v3392_v9 }
 0x54d   : > { %v3596_v57 = vpack.c.bf16 %v3587_v58, %v3587_v58  ;;  %v3769_v26 = vld [vmem:[#allocation3 + $0x36] sm:$0xff]  ;;  %v4156_v9 = vld [vmem:[#allocation3 + $0x20] sm:$0xff] }
 0x54e   : > { %3320 = vmatmul.bf16.gmra.mxu1 %v3206_v24  ;;  %3510 = vmatmul.bf16.gmra.mxu2 %v3400_v35 }
 0x54f   : > { %3705 = vmatmul.bf16.gmra.mxu3 %v3595_v39 }
 0x551   : > { %v2931_v63 = vpop.f32.mrf.mxu2 }
 0x552   : > { %v3126_v62 = vpop.f32.mrf.mxu3  ;;  %v2968_v17 = vadd.f32 %v2931_v63, %v2773_v4 }
 0x553   : > { %v3283_v54 = vpop.f32.mrf.mxu1 }
 0x554   : > { %v3343_v47 = vadd.f32 %v3283_v54, %v12990_v48  ;;  %v13108_v28 = vadd.f32 %v3126_v62, %v2968_v17  ;;  %v3962_v17 = vld [vmem:[#allocation3 + $0x27] sm:$0xff] }
 0x555   : > { %v4157_v54 = vld [vmem:[#allocation3 + $0x28] sm:$0xff] }
 0x559   : > { %v2933_v29 = vpop.f32.mrf.mxu2 }
 0x55a   : > { %v3128_v38 = vpop.f32.mrf.mxu3  ;;  %v3768_v29 = vld [vmem:[#allocation3 + $0x2e] sm:$0xff] }
 0x55b   : > { %v3286_v50 = vpop.f32.mrf.mxu1  ;;  %v3961_v38 = vld [vmem:[#allocation3 + $0x1f] sm:$0xff] }
 0x55c   : > { %v3344_v21 = vadd.f32 %v3286_v50, %v12995_v43  ;;  %v3784_v50 = vpack.c.bf16 %v3769_v26, %v3768_v29  ;;  %v4159_v26 = vld [vmem:[#allocation3 + $0x38] sm:$0xff] }
 0x55e   : > { %3865 = vmatmul.bf16.vlgmr.msra.gmra.mxu1 %v3783_v27  ;;  %3515 = vmatmul.bf16.gmra.mxu2 %v3401_v3  ;;  %v4173_v27 = vpack.c.bf16 %v4157_v54, %v4156_v9  ;;  %v3963_v54 = vld [vmem:[#allocation3 + $0x2f] sm:$0xff] }
 0x55f   : > { %3710 = vmatmul.bf16.gmra.mxu3 %v3596_v57 }
 0x561   : > { %v3476_v4 = vpop.f32.mrf.mxu2 }
 0x562   : > { %v3671_v24 = vpop.f32.mrf.mxu3  ;;  %v3537_v48 = vadd.f32 %v3476_v4, %v3342_v61  ;;  %v3978_v61 = vpack.c.bf16 %v3962_v17, %v3961_v38  ;;  %v3770_v17 = vld [vmem:[#allocation3 + $0x3e] sm:$0xff] }
 0x563   : > { %v3288_v35 = vpop.f32.mrf.mxu1 }
 0x564   : > { %v3345_v39 = vadd.f32 %v3288_v35, %v12998_v55  ;;  %v13112_v12 = vadd.f32 %v3671_v24, %v3537_v48  ;;  %v3771_v48 = vld [vmem:[#allocation3 + $0x46] sm:$0xff] }
 0x565   : > { %v3785_v38 = vpack.c.bf16 %v3771_v48, %v3770_v17  ;;  %v4161_v48 = vld [vmem:[#allocation3 + $0x48] sm:$0xff] }
 0x569   : > { %v3478_v63 = vpop.f32.mrf.mxu2 }
 0x56a   : > { %v3673_v62 = vpop.f32.mrf.mxu3  ;;  %v3538_v43 = vadd.f32 %v3478_v63, %v3343_v47 }
 0x56b   : > { %v3291_v14 = vpop.f32.mrf.mxu1 }
 0x56c   : > { %v3346_v58 = vadd.f32 %v3291_v14, %v13001_v1  ;;  %v13115_v23 = vadd.f32 %v3673_v62, %v3538_v43  ;;  %v3964_v1 = vld [vmem:[#allocation3 + $0x37] sm:$0xff] }
 0x56d   : > { %v4158_v14 = vld [vmem:[#allocation3 + $0x30] sm:$0xff] }
 0x56e   : > { %3870 = vmatmul.bf16.gmra.mxu1 %v3784_v50  ;;  %4060 = vmatmul.bf16.vlgmr.msra.gmra.mxu2 %v3978_v61  ;;  %v4174_v50 = vpack.c.bf16 %v4159_v26, %v4158_v14  ;;  %v3965_v26 = vld [vmem:[#allocation3 + $0x3f] sm:$0xff] }
 0x56f   : > { %4255 = vmatmul.bf16.vlgmr.msra.gmra.mxu3 %v4173_v27 }
 0x571   : > { %v3481_v55 = vpop.f32.mrf.mxu2 }
 0x572   : > { %v3676_v3 = vpop.f32.mrf.mxu3  ;;  %v3539_v57 = vadd.f32 %v3481_v55, %v3344_v21  ;;  %v3979_v21 = vpack.c.bf16 %v3964_v1, %v3963_v54  ;;  %v3772_v1 = vld [vmem:[#allocation3 + $0x4e] sm:$0xff] }
 0x573   : > { %v3293_v4 = vpop.f32.mrf.mxu1 }
 0x574   : > { %v3347_v47 = vadd.f32 %v3293_v4, %v13004_v15  ;;  %v13118_v24 = vadd.f32 %v3676_v3, %v3539_v57  ;;  %v3773_v57 = vld [vmem:[#allocation3 + $0x56] sm:$0xff] }
 0x575   : > { %v3786_v54 = vpack.c.bf16 %v3773_v57, %v3772_v1 }
 0x579   : > { %v3483_v35 = vpop.f32.mrf.mxu2 }
 0x57a   : > { %v3678_v63 = vpop.f32.mrf.mxu3  ;;  %v3540_v62 = vadd.f32 %v3483_v35, %v3345_v39 }
 0x57b   : > { %v3296_v43 = vpop.f32.mrf.mxu1 }
 0x57c   : > { %v3348_v29 = vadd.f32 %v3296_v43, %v13007_v60  ;;  %v13121_v9 = vadd.f32 %v3678_v63, %v3540_v62  ;;  %v3966_v60 = vld [vmem:[#allocation3 + $0x47] sm:$0xff] }
 0x57d   : > { %v4160_v43 = vld [vmem:[#allocation3 + $0x40] sm:$0xff] }
 0x57e   : > { %3875 = vmatmul.bf16.gmra.mxu1 %v3785_v38  ;;  %4065 = vmatmul.bf16.gmra.mxu2 %v3979_v21  ;;  %v4175_v38 = vpack.c.bf16 %v4161_v48, %v4160_v43 }
 0x57f   : > { %4260 = vmatmul.bf16.gmra.mxu3 %v4174_v50 }
 0x581   : > { %v3486_v15 = vpop.f32.mrf.mxu2 }
 0x582   : > { %v3681_v61 = vpop.f32.mrf.mxu3  ;;  %v3541_v27 = vadd.f32 %v3486_v15, %v3346_v58  ;;  %v3980_v58 = vpack.c.bf16 %v3966_v60, %v3965_v26 }
 0x583   : > { %v3298_v55 = vpop.f32.mrf.mxu1 }
 0x584   : > { %v3349_v39 = vadd.f32 %v3298_v55, %v13013_v6  ;;  %v13124_v3 = vadd.f32 %v3681_v61, %v3541_v27  ;;  %v3775_v27 = vld [vmem:[#allocation3 + $0x66] sm:$0xff] }
 0x589   : > { %v3488_v4 = vpop.f32.mrf.mxu2 }
 0x58a   : > { %v3683_v35 = vpop.f32.mrf.mxu3  ;;  %v3542_v63 = vadd.f32 %v3488_v4, %v3347_v47  ;;  %v3968_v4 = vld [vmem:[#allocation3 + $0x57] sm:$0xff] }
 0x58b   : > { %v3301_v62 = vpop.f32.mrf.mxu1 }
 0x58c   : > { %v3350_v17 = vadd.f32 %v3301_v62, %v13019_v52  ;;  %v13127_v14 = vadd.f32 %v3683_v35, %v3542_v63  ;;  %v11611_v52 = vld [vmem:[%s14324_s3 + $0x3f8] sm:$0xff]  ;;  %v3967_v62 = vld [vmem:[#allocation3 + $0x4f] sm:$0xff] }
 0x58d   : > { %4442 = vmatpush.bf16.msrb.mxu1 %v11611_v52  ;;  %v4163_v35 = vld [vmem:[#allocation3 + $0x58] sm:$0xff]  ;;  %v3981_v43 = vpack.c.bf16 %v3968_v4, %v3967_v62 }
 0x58e   : > { %3880 = vmatmul.bf16.gmra.mxu1 %v3786_v54  ;;  %4070 = vmatmul.bf16.gmra.mxu2 %v3980_v58  ;;  %v3774_v63 = vld [vmem:[#allocation3 + $0x5e] sm:$0xff] }
 0x58f   : > { %4265 = vmatmul.bf16.gmra.mxu3 %v4175_v38  ;;  %v11619_v58 = vld [vmem:[%s14324_s3 + $0x438] sm:$0xff] }
 0x590   : > { %4637 = vmatpush.bf16.msrb.mxu2 %v11619_v58 }
 0x591   : > { %v3491_v6 = vpop.f32.mrf.mxu2 }
 0x592   : > { %v3686_v21 = vpop.f32.mrf.mxu3  ;;  %v3543_v50 = vadd.f32 %v3491_v6, %v3348_v29  ;;  %v4162_v29 = vld [vmem:[#allocation3 + $0x50] sm:$0xff] }
 0x593   : > { %v3303_v15 = vpop.f32.mrf.mxu1  ;;  %v4176_v54 = vpack.c.bf16 %v4163_v35, %v4162_v29 }
 0x594   : > { %v3351_v47 = vadd.f32 %v3303_v15, %v13022_v13  ;;  %v13130_v61 = vadd.f32 %v3686_v21, %v3543_v50  ;;  %v3787_v13 = vpack.c.bf16 %v3775_v27, %v3774_v63  ;;  %v3777_v15 = vld [vmem:[#allocation3 + $0x76] sm:$0xff]  ;;  %v4164_v63 = vld [vmem:[#allocation3 + $0x60] sm:$0xff] }
 0x599   : > { %v3493_v55 = vpop.f32.mrf.mxu2 }
 0x59a   : > { %v3688_v57 = vpop.f32.mrf.mxu3  ;;  %v3544_v60 = vadd.f32 %v3493_v55, %v3349_v39  ;;  %v3970_v55 = vld [vmem:[#allocation3 + $0x67] sm:$0xff] }
 0x59b   : > { %v3306_v48 = vpop.f32.mrf.mxu1 }
 0x59c   : > { %v3352_v1 = vadd.f32 %v3306_v48, %v13031_v36  ;;  %v13136_v26 = vadd.f32 %v3688_v57, %v3544_v60  ;;  %v4165_v57 = vld [vmem:[#allocation3 + $0x68] sm:$0xff]  ;;  %v3969_v48 = vld [vmem:[#allocation3 + $0x5f] sm:$0xff] }
 0x59d   : > { %v3776_v60 = vld [vmem:[#allocation3 + $0x6e] sm:$0xff] }
 0x59e   : > { %3885 = vmatmul.bf16.gmra.mxu1 %v3787_v13  ;;  %4075 = vmatmul.bf16.gmra.mxu2 %v3981_v43  ;;  %v3788_v29 = vpack.c.bf16 %v3777_v15, %v3776_v60  ;;  %v4177_v43 = vpack.c.bf16 %v4165_v57, %v4164_v63  ;;  %v11609_v60 = vld [vmem:[%s14324_s3 + $0x3e8] sm:$0xff]  ;;  %v4166_v63 = vld [vmem:[#allocation3 + $0x70] sm:$0xff] }
 0x59f   : > { %4270 = vmatmul.bf16.gmra.mxu3 %v4176_v54  ;;  %v11618_v54 = vld [vmem:[%s14324_s3 + $0x430] sm:$0xff] }
 0x5a0   : > { %4638 = vmatpush.bf16.msrb.mxu2 %v11618_v54 }
 0x5a1   : > { %v3496_v39 = vpop.f32.mrf.mxu2 }
 0x5a2   : > { %v3691_v38 = vpop.f32.mrf.mxu3  ;;  %v3545_v6 = vadd.f32 %v3496_v39, %v3350_v17  ;;  %v3982_v17 = vpack.c.bf16 %v3970_v55, %v3969_v48  ;;  %v4167_v55 = vld [vmem:[#allocation3 + $0x78] sm:$0xff]  ;;  %v3971_v48 = vld [vmem:[#allocation3 + $0x6f] sm:$0xff] }
 0x5a3   : > { %v3308_v21 = vpop.f32.mrf.mxu1 }
 0x5a4   : > { %v3353_v50 = vadd.f32 %v3308_v21, %v13037_v0  ;;  %v13142_v36 = vadd.f32 %v3691_v38, %v3545_v6  ;;  %v11610_v0 = vld [vmem:[%s14324_s3 + $0x3f0] sm:$0xff]  ;;  %v3779_v21 = vld [vmem:[#allocation3 + $0x86] sm:$0xff] }
 0x5a5   : > { %4443 = vmatpush.bf16.msrb.mxu1 %v11610_v0  ;;  %v11627_v0 = vld [vmem:[%s14324_s3 + $0x478] sm:$0xff] }
 0x5a6   : > { %4832 = vmatpush.bf16.msrb.mxu3 %v11627_v0 }
 0x5a9   : > { %v3498_v52 = vpop.f32.mrf.mxu2  ;;  %4444 = vmatpush.bf16.msrb.mxu1 %v11609_v60  ;;  %v11616_v60 = vld [vmem:[%s14324_s3 + $0x420] sm:$0xff] }
 0x5aa   : > { %v3693_v27 = vpop.f32.mrf.mxu3  ;;  %v3546_v4 = vadd.f32 %v3498_v52, %v3351_v47 }
 0x5ab   : > { %v3311_v35 = vpop.f32.mrf.mxu1 }
 0x5ac   : > { %v3354_v62 = vadd.f32 %v3311_v35, %v13052_v49  ;;  %v13145_v13 = vadd.f32 %v3693_v27, %v3546_v4  ;;  %v3972_v27 = vld [vmem:[#allocation3 + $0x77] sm:$0xff] }
 0x5ad   : > { %v3778_v35 = vld [vmem:[#allocation3 + $0x7e] sm:$0xff] }
 0x5ae   : > { %3890 = vmatmul.bf16.gmra.mxu1 %v3788_v29  ;;  %4080 = vmatmul.bf16.gmra.mxu2 %v3982_v17  ;;  %v3789_v29 = vpack.c.bf16 %v3779_v21, %v3778_v35  ;;  %v3983_v17 = vpack.c.bf16 %v3972_v27, %v3971_v48  ;;  %v11625_v27 = vld [vmem:[%s14324_s3 + $0x468] sm:$0xff] }
 0x5af   : > { %4275 = vmatmul.bf16.gmra.mxu3 %v4177_v43  ;;  %v4178_v43 = vpack.c.bf16 %v4167_v55, %v4166_v63  ;;  %v3781_v55 = vld [vmem:[#allocation3 + $0x96] sm:$0xff]  ;;  %v4169_v35 = vld [vmem:[#allocation3 + $0x88] sm:$0xff]  ;;  %v3973_v63 = vld [vmem:[#allocation3 + $0x7f] sm:$0xff] }
 0x5b1   : > { %v3501_v47 = vpop.f32.mrf.mxu2 }
 0x5b2   : > { %v3696_v49 = vpop.f32.mrf.mxu3  ;;  %v3547_v58 = vadd.f32 %v3501_v47, %v3352_v1 }
 0x5b3   : > { %v3313_v39 = vpop.f32.mrf.mxu1 }
 0x5b4   : > { %v3355_v38 = vadd.f32 %v3313_v39, %v13073_v53  ;;  %v13154_v6 = vadd.f32 %v3696_v49, %v3547_v58  ;;  %v11607_v39 = vld [vmem:[%s14324_s3 + $0x3d8] sm:$0xff] }
 0x5b9   : > { %v3503_v15 = vpop.f32.mrf.mxu2 }
 0x5ba   : > { %v3698_v52 = vpop.f32.mrf.mxu3  ;;  %v3548_v57 = vadd.f32 %v3503_v15, %v3353_v50  ;;  %v11617_v50 = vld [vmem:[%s14324_s3 + $0x428] sm:$0xff] }
 0x5bb   : > { %v3316_v4 = vpop.f32.mrf.mxu1  ;;  %4639 = vmatpush.bf16.msrb.mxu2 %v11617_v50 }
 0x5bc   : > { %v3356_v1 = vadd.f32 %v3316_v4, %v13084_v42  ;;  %v13160_v53 = vadd.f32 %v3698_v52, %v3548_v57  ;;  %v11608_v42 = vld [vmem:[%s14324_s3 + $0x3e0] sm:$0xff]  ;;  %v11626_v52 = vld [vmem:[%s14324_s3 + $0x470] sm:$0xff] }
 0x5bd   : > { %4445 = vmatpush.bf16.msrb.mxu1 %v11608_v42  ;;  %4833 = vmatpush.bf16.msrb.mxu3 %v11626_v52  ;;  %v11624_v42 = vld [vmem:[%s14324_s3 + $0x460] sm:$0xff] }
 0x5be   : > { %3895 = vmatmul.bf16.gmra.mxu1 %v3789_v29  ;;  %4085 = vmatmul.bf16.gmra.mxu2 %v3983_v17  ;;  %v3780_v17 = vld [vmem:[#allocation3 + $0x8e] sm:$0xff] }
 0x5bf   : > { %4280 = vmatmul.bf16.gmra.mxu3 %v4178_v43  ;;  %v4168_v43 = vld [vmem:[#allocation3 + $0x80] sm:$0xff]  ;;  %v3790_v0 = vpack.c.bf16 %v3781_v55, %v3780_v17  ;;  %4640 = vmatpush.bf16.msrb.mxu2 %v11616_v60  ;;  %v4171_v17 = vld [vmem:[#allocation3 + $0x98] sm:$0xff] }
 0x5c0   : > { %v3782_v60 = vld [vmem:[#allocation3 + $0x9e] sm:$0xff] }
 0x5c1   : > { %v3506_v54 = vpop.f32.mrf.mxu2  ;;  %4446 = vmatpush.bf16.msrb.mxu1 %v11607_v39  ;;  %4834 = vmatpush.bf16.msrb.mxu3 %v11625_v27  ;;  %v11604_v39 = vld [vmem:[%s14324_s3 + $0x3c0] sm:$0xff] }
 0x5c2   : > { %v3701_v47 = vpop.f32.mrf.mxu3  ;;  %v3549_v49 = vadd.f32 %v3506_v54, %v3354_v62  ;;  %v11606_v62 = vld [vmem:[%s14324_s3 + $0x3d0] sm:$0xff]  ;;  %v11605_v54 = vld [vmem:[%s14324_s3 + $0x3c8] sm:$0xff] }
 0x5c3   : > { %v3318_v58 = vpop.f32.mrf.mxu1 }
 0x5c4   : > { %v3357_v21 = vadd.f32 %v3318_v58, %v13099_v34  ;;  %v13175_v15 = vadd.f32 %v3701_v47, %v3549_v49  ;;  %v3974_v34 = vld [vmem:[#allocation3 + $0x87] sm:$0xff]  ;;  %v4179_v49 = vpack.c.bf16 %v4169_v35, %v4168_v43  ;;  %v11623_v58 = vld [vmem:[%s14324_s3 + $0x458] sm:$0xff] }
 0x5c5   : > { %4447 = vmatpush.bf16.msrb.mxu1 %v11606_v62  ;;  %4835 = vmatpush.bf16.msrb.mxu3 %v11624_v42  ;;  %v11613_v35 = vld [vmem:[%s14324_s3 + $0x408] sm:$0xff] }
 0x5c6   : > { %v3975_v42 = vld [vmem:[#allocation3 + $0x8f] sm:$0xff] }
 0x5c9   : > { %v3508_v57 = vpop.f32.mrf.mxu2  ;;  %4448 = vmatpush.bf16.msrb.mxu1 %v11605_v54  ;;  %4836 = vmatpush.bf16.msrb.mxu3 %v11623_v58  ;;  %v4170_v54 = vld [vmem:[#allocation3 + $0x90] sm:$0xff] }
 0x5ca   : > { %v3703_v4 = vpop.f32.mrf.mxu3  ;;  %v3550_v48 = vadd.f32 %v3508_v57, %v3355_v38  ;;  %v3984_v38 = vpack.c.bf16 %v3974_v34, %v3973_v63  ;;  %v11622_v34 = vld [vmem:[%s14324_s3 + $0x450] sm:$0xff] }
 0x5cb   : > { %v3321_v29 = vpop.f32.mrf.mxu1 }
 0x5cc   : > { %v3358_v50 = vadd.f32 %v3321_v29, %v13108_v28  ;;  %v13196_v47 = vadd.f32 %v3703_v4, %v3550_v48  ;;  %v11615_v28 = vld [vmem:[%s14324_s3 + $0x418] sm:$0xff]  ;;  %v11614_v4 = vld [vmem:[%s14324_s3 + $0x410] sm:$0xff] }
 0x5cd   : > { %4641 = vmatpush.bf16.msrb.mxu2 %v11615_v28  ;;  %4449 = vmatpush.bf16.msrb.mxu1 %v11604_v39  ;;  %v3976_v29 = vld [vmem:[#allocation3 + $0x97] sm:$0xff]  ;;  %v4180_v39 = vpack.c.bf16 %v4171_v17, %v4170_v54  ;;  %v4351_v17 = vld [vmem:[#allocation3 + $0x2a] sm:$0xff] }
 0x5ce   : > { %3900 = vmatmul.bf16.gmra.mxu1 %v3790_v0  ;;  %4090 = vmatmul.bf16.gmra.mxu2 %v3984_v38  ;;  %v3985_v58 = vpack.c.bf16 %v3976_v29, %v3975_v42 }
 0x5cf   : > { %4285 = vmatmul.bf16.gmra.mxu3 %v4179_v49  ;;  %v3791_v49 = vpack.c.bf16 %v3782_v60, %v3782_v60 }
 0x5d0   : > { %4837 = vmatpush.bf16.msrb.mxu3 %v11622_v34 }
 0x5d1   : > { %v3511_v52 = vpop.f32.mrf.mxu2  ;;  %4642 = vmatpush.bf16.msrb.mxu2 %v11614_v4 }
 0x5d2   : > { %v3706_v27 = vpop.f32.mrf.mxu3  ;;  %v3551_v62 = vadd.f32 %v3511_v52, %v3356_v1  ;;  %v11621_v1 = vld [vmem:[%s14324_s3 + $0x448] sm:$0xff]  ;;  %v11612_v52 = vld [vmem:[%s14324_s3 + $0x400] sm:$0xff] }
 0x5d3   : > { %v3323_v55 = vpop.f32.mrf.mxu1 }
 0x5d4   : > { %v13207_v57 = vadd.f32 %v3706_v27, %v3551_v62  ;;  %4838 = vmatpush.bf16.msrb.mxu3 %v11621_v1 }
 0x5d5   : > { %4643 = vmatpush.bf16.msrb.mxu2 %v11613_v35  ;;  %v4352_v35 = vld [vmem:[#allocation3 + $0x32] sm:$0xff] }
 0x5d9   : > { %v3513_v48 = vpop.f32.mrf.mxu2  ;;  %4644 = vmatpush.bf16.msrb.mxu2 %v11612_v52 }
 0x5da   : > { %v3708_v63 = vpop.f32.mrf.mxu3  ;;  %v3552_v43 = vadd.f32 %v3513_v48, %v3357_v21  ;;  %v11620_v21 = vld [vmem:[%s14324_s3 + $0x440] sm:$0xff] }
 0x5db   : > { %v3866_v0 = vpop.f32.mrf.mxu1  ;;  %4839 = vmatpush.bf16.msrb.mxu3 %v11620_v21  ;;  %v3977_v48 = vld [vmem:[#allocation3 + $0x9f] sm:$0xff] }
 0x5dc   : > { %v3927_v38 = vadd.f32 %v3866_v0, %v13112_v12  ;;  %v13222_v28 = vadd.f32 %v3708_v63, %v3552_v43  ;;  %v4172_v63 = vld [vmem:[#allocation3 + $0xa0] sm:$0xff]  ;;  %v4368_v0 = vpack.c.bf16 %v4352_v35, %v4351_v17  ;;  %v3986_v42 = vpack.c.bf16 %v3977_v48, %v3977_v48  ;;  %v4741_v48 = vld [vmem:[#allocation3 + $0x2c] sm:$0xff] }
 0x5dd   : > { %v4181_v54 = vpack.c.bf16 %v4172_v63, %v4172_v63  ;;  %v4354_v21 = vld [vmem:[#allocation3 + $0x42] sm:$0xff] }
 0x5de   : > { %3905 = vmatmul.bf16.gmra.mxu1 %v3791_v49  ;;  %4095 = vmatmul.bf16.gmra.mxu2 %v3985_v58 }
 0x5df   : > { %4290 = vmatmul.bf16.gmra.mxu3 %v4180_v39 }
 0x5e1   : > { %v3516_v12 = vpop.f32.mrf.mxu2 }
 0x5e2   : > { %v3711_v27 = vpop.f32.mrf.mxu3  ;;  %v3553_v62 = vadd.f32 %v3516_v12, %v3358_v50 }
 0x5e3   : > { %v3868_v55 = vpop.f32.mrf.mxu1 }
 0x5e4   : > { %v3928_v4 = vadd.f32 %v3868_v55, %v13115_v23  ;;  %v13231_v34 = vadd.f32 %v3711_v27, %v3553_v62  ;;  %v4547_v62 = vld [vmem:[#allocation3 + $0x33] sm:$0xff] }
 0x5e5   : > { %v4742_v55 = vld [vmem:[#allocation3 + $0x34] sm:$0xff] }
 0x5e9   : > { %v3518_v1 = vpop.f32.mrf.mxu2 }
 0x5ea   : > { %v3713_v60 = vpop.f32.mrf.mxu3  ;;  %v4353_v1 = vld [vmem:[#allocation3 + $0x3a] sm:$0xff] }
 0x5eb   : > { %v3871_v29 = vpop.f32.mrf.mxu1  ;;  %v4546_v60 = vld [vmem:[#allocation3 + $0x2b] sm:$0xff] }
 0x5ec   : > { %v3929_v43 = vadd.f32 %v3871_v29, %v13118_v24  ;;  %v4369_v29 = vpack.c.bf16 %v4354_v21, %v4353_v1  ;;  %v4744_v21 = vld [vmem:[#allocation3 + $0x44] sm:$0xff] }
 0x5ee   : > { %4450 = vmatmul.bf16.vlgmr.msrb.gmra.mxu1 %v4368_v0  ;;  %4100 = vmatmul.bf16.gmra.mxu2 %v3986_v42  ;;  %v4758_v0 = vpack.c.bf16 %v4742_v55, %v4741_v48  ;;  %v4548_v55 = vld [vmem:[#allocation3 + $0x3b] sm:$0xff] }
 0x5ef   : > { %4295 = vmatmul.bf16.gmra.mxu3 %v4181_v54 }
 0x5f1   : > { %v4061_v50 = vpop.f32.mrf.mxu2 }
 0x5f2   : > { %v4256_v49 = vpop.f32.mrf.mxu3  ;;  %v4122_v23 = vadd.f32 %v4061_v50, %v3927_v38  ;;  %v4563_v38 = vpack.c.bf16 %v4547_v62, %v4546_v60  ;;  %v4355_v62 = vld [vmem:[#allocation3 + $0x4a] sm:$0xff] }
 0x5f3   : > { %v3873_v58 = vpop.f32.mrf.mxu1 }
 0x5f4   : > { %v3930_v39 = vadd.f32 %v3873_v58, %v13121_v9  ;;  %v13235_v52 = vadd.f32 %v4256_v49, %v4122_v23  ;;  %v4356_v23 = vld [vmem:[#allocation3 + $0x52] sm:$0xff] }
 0x5f5   : > { %v4370_v60 = vpack.c.bf16 %v4356_v23, %v4355_v62  ;;  %v4746_v23 = vld [vmem:[#allocation3 + $0x54] sm:$0xff] }
 0x5f9   : > { %v4063_v12 = vpop.f32.mrf.mxu2 }
 0x5fa   : > { %v4258_v27 = vpop.f32.mrf.mxu3  ;;  %v4123_v24 = vadd.f32 %v4063_v12, %v3928_v4 }
 0x5fb   : > { %v3876_v35 = vpop.f32.mrf.mxu1 }
 0x5fc   : > { %v3931_v63 = vadd.f32 %v3876_v35, %v13124_v3  ;;  %v13238_v17 = vadd.f32 %v4258_v27, %v4123_v24  ;;  %v4549_v3 = vld [vmem:[#allocation3 + $0x43] sm:$0xff] }
 0x5fd   : > { %v4743_v35 = vld [vmem:[#allocation3 + $0x3c] sm:$0xff] }
 0x5fe   : > { %4455 = vmatmul.bf16.gmra.mxu1 %v4369_v29  ;;  %4645 = vmatmul.bf16.vlgmr.msrb.gmra.mxu2 %v4563_v38  ;;  %v4759_v29 = vpack.c.bf16 %v4744_v21, %v4743_v35  ;;  %v4550_v21 = vld [vmem:[#allocation3 + $0x4b] sm:$0xff] }
 0x5ff   : > { %4840 = vmatmul.bf16.vlgmr.msrb.gmra.mxu3 %v4758_v0 }
 0x601   : > { %v4066_v9 = vpop.f32.mrf.mxu2 }
 0x602   : > { %v4261_v42 = vpop.f32.mrf.mxu3  ;;  %v4124_v54 = vadd.f32 %v4066_v9, %v3929_v43  ;;  %v4564_v43 = vpack.c.bf16 %v4549_v3, %v4548_v55  ;;  %v4357_v3 = vld [vmem:[#allocation3 + $0x5a] sm:$0xff] }
 0x603   : > { %v3878_v50 = vpop.f32.mrf.mxu1 }
 0x604   : > { %v3932_v4 = vadd.f32 %v3878_v50, %v13127_v14  ;;  %v13241_v49 = vadd.f32 %v4261_v42, %v4124_v54  ;;  %v4358_v54 = vld [vmem:[#allocation3 + $0x62] sm:$0xff] }
 0x605   : > { %v4371_v55 = vpack.c.bf16 %v4358_v54, %v4357_v3 }
 0x609   : > { %v4068_v58 = vpop.f32.mrf.mxu2 }
 0x60a   : > { %v4263_v12 = vpop.f32.mrf.mxu3  ;;  %v4125_v27 = vadd.f32 %v4068_v58, %v3930_v39 }
 0x60b   : > { %v3881_v24 = vpop.f32.mrf.mxu1 }
 0x60c   : > { %v3933_v1 = vadd.f32 %v3881_v24, %v13130_v61  ;;  %v13244_v48 = vadd.f32 %v4263_v12, %v4125_v27  ;;  %v4551_v61 = vld [vmem:[#allocation3 + $0x53] sm:$0xff] }
 0x60d   : > { %v4745_v24 = vld [vmem:[#allocation3 + $0x4c] sm:$0xff] }
 0x60e   : > { %4460 = vmatmul.bf16.gmra.mxu1 %v4370_v60  ;;  %4650 = vmatmul.bf16.gmra.mxu2 %v4564_v43  ;;  %v4760_v60 = vpack.c.bf16 %v4746_v23, %v4745_v24 }
 0x60f   : > { %4845 = vmatmul.bf16.gmra.mxu3 %v4759_v29 }
 0x611   : > { %v4071_v14 = vpop.f32.mrf.mxu2 }
 0x612   : > { %v4266_v38 = vpop.f32.mrf.mxu3  ;;  %v4126_v0 = vadd.f32 %v4071_v14, %v3931_v63  ;;  %v4565_v63 = vpack.c.bf16 %v4551_v61, %v4550_v21 }
 0x613   : > { %v3883_v9 = vpop.f32.mrf.mxu1 }
 0x614   : > { %v3934_v39 = vadd.f32 %v3883_v9, %v13136_v26  ;;  %v13247_v42 = vadd.f32 %v4266_v38, %v4126_v0  ;;  %v4360_v0 = vld [vmem:[#allocation3 + $0x72] sm:$0xff] }
 0x619   : > { %v4073_v50 = vpop.f32.mrf.mxu2 }
 0x61a   : > { %v4268_v58 = vpop.f32.mrf.mxu3  ;;  %v4127_v12 = vadd.f32 %v4073_v50, %v3932_v4  ;;  %v4553_v50 = vld [vmem:[#allocation3 + $0x63] sm:$0xff] }
 0x61b   : > { %v3886_v27 = vpop.f32.mrf.mxu1 }
 0x61c   : > { %v3935_v62 = vadd.f32 %v3886_v27, %v13142_v36  ;;  %v13250_v35 = vadd.f32 %v4268_v58, %v4127_v12  ;;  %v11643_v36 = vld [vmem:[%s14324_s3 + $0x4f8] sm:$0xff]  ;;  %v4748_v58 = vld [vmem:[#allocation3 + $0x64] sm:$0xff] }
 0x61d   : > { %5222 = vmatpush.bf16.msra.mxu1 %v11643_v36  ;;  %v4359_v12 = vld [vmem:[#allocation3 + $0x6a] sm:$0xff]  ;;  %v4552_v27 = vld [vmem:[#allocation3 + $0x5b] sm:$0xff] }
 0x61e   : > { %4465 = vmatmul.bf16.gmra.mxu1 %v4371_v55  ;;  %4655 = vmatmul.bf16.gmra.mxu2 %v4565_v63  ;;  %v4566_v24 = vpack.c.bf16 %v4553_v50, %v4552_v27  ;;  %v11651_v63 = vld [vmem:[%s14324_s3 + $0x538] sm:$0xff] }
 0x61f   : > { %4850 = vmatmul.bf16.gmra.mxu3 %v4760_v60  ;;  %5417 = vmatpush.bf16.msra.mxu2 %v11651_v63 }
 0x621   : > { %v4076_v26 = vpop.f32.mrf.mxu2 }
 0x622   : > { %v4271_v43 = vpop.f32.mrf.mxu3  ;;  %v4128_v29 = vadd.f32 %v4076_v26, %v3933_v1  ;;  %v4747_v1 = vld [vmem:[#allocation3 + $0x5c] sm:$0xff] }
 0x623   : > { %v3888_v14 = vpop.f32.mrf.mxu1  ;;  %v4761_v55 = vpack.c.bf16 %v4748_v58, %v4747_v1 }
 0x624   : > { %v3936_v4 = vadd.f32 %v3888_v14, %v13145_v13  ;;  %v13253_v38 = vadd.f32 %v4271_v43, %v4128_v29  ;;  %v4372_v13 = vpack.c.bf16 %v4360_v0, %v4359_v12  ;;  %v4362_v14 = vld [vmem:[#allocation3 + $0x82] sm:$0xff]  ;;  %v4749_v12 = vld [vmem:[#allocation3 + $0x6c] sm:$0xff] }
 0x629   : > { %v4078_v9 = vpop.f32.mrf.mxu2 }
 0x62a   : > { %v4273_v54 = vpop.f32.mrf.mxu3  ;;  %v4129_v61 = vadd.f32 %v4078_v9, %v3934_v39  ;;  %v4555_v9 = vld [vmem:[#allocation3 + $0x73] sm:$0xff] }
 0x62b   : > { %v3891_v23 = vpop.f32.mrf.mxu1 }
 0x62c   : > { %v3937_v3 = vadd.f32 %v3891_v23, %v13154_v6  ;;  %v13259_v21 = vadd.f32 %v4273_v54, %v4129_v61  ;;  %v4750_v54 = vld [vmem:[#allocation3 + $0x74] sm:$0xff]  ;;  %v4554_v23 = vld [vmem:[#allocation3 + $0x6b] sm:$0xff] }
 0x62d   : > { %v4361_v61 = vld [vmem:[#allocation3 + $0x7a] sm:$0xff] }
 0x62e   : > { %4470 = vmatmul.bf16.gmra.mxu1 %v4372_v13  ;;  %4660 = vmatmul.bf16.gmra.mxu2 %v4566_v24  ;;  %v4373_v1 = vpack.c.bf16 %v4362_v14, %v4361_v61  ;;  %v4762_v24 = vpack.c.bf16 %v4750_v54, %v4749_v12  ;;  %v4556_v61 = vld [vmem:[#allocation3 + $0x7b] sm:$0xff] }
 0x62f   : > { %4855 = vmatmul.bf16.gmra.mxu3 %v4761_v55  ;;  %v11650_v55 = vld [vmem:[%s14324_s3 + $0x530] sm:$0xff] }
 0x630   : > { %5418 = vmatpush.bf16.msra.mxu2 %v11650_v55 }
 0x631   : > { %v4081_v39 = vpop.f32.mrf.mxu2 }
 0x632   : > { %v4276_v60 = vpop.f32.mrf.mxu3  ;;  %v4130_v26 = vadd.f32 %v4081_v39, %v3935_v62  ;;  %v4567_v62 = vpack.c.bf16 %v4555_v9, %v4554_v23  ;;  %v4752_v9 = vld [vmem:[#allocation3 + $0x84] sm:$0xff]  ;;  %v4751_v23 = vld [vmem:[#allocation3 + $0x7c] sm:$0xff] }
 0x633   : > { %v3893_v43 = vpop.f32.mrf.mxu1 }
 0x634   : > { %v3938_v29 = vadd.f32 %v3893_v43, %v13160_v53  ;;  %v13265_v6 = vadd.f32 %v4276_v60, %v4130_v26  ;;  %v11642_v53 = vld [vmem:[%s14324_s3 + $0x4f0] sm:$0xff] }
 0x635   : > { %5223 = vmatpush.bf16.msra.mxu1 %v11642_v53  ;;  %v4364_v43 = vld [vmem:[#allocation3 + $0x92] sm:$0xff] }
 0x639   : > { %v4083_v36 = vpop.f32.mrf.mxu2 }
 0x63a   : > { %v4278_v0 = vpop.f32.mrf.mxu3  ;;  %v4131_v50 = vadd.f32 %v4083_v36, %v3936_v4 }
 0x63b   : > { %v3896_v58 = vpop.f32.mrf.mxu1 }
 0x63c   : > { %v3939_v27 = vadd.f32 %v3896_v58, %v13175_v15  ;;  %v13268_v13 = vadd.f32 %v4278_v0, %v4131_v50  ;;  %v4557_v0 = vld [vmem:[#allocation3 + $0x83] sm:$0xff] }
 0x63d   : > { %v4363_v58 = vld [vmem:[#allocation3 + $0x8a] sm:$0xff] }
 0x63e   : > { %4475 = vmatmul.bf16.gmra.mxu1 %v4373_v1  ;;  %4665 = vmatmul.bf16.gmra.mxu2 %v4567_v62  ;;  %v4374_v1 = vpack.c.bf16 %v4364_v43, %v4363_v58  ;;  %v11638_v58 = vld [vmem:[%s14324_s3 + $0x4d0] sm:$0xff] }
 0x63f   : > { %4860 = vmatmul.bf16.gmra.mxu3 %v4762_v24  ;;  %v4763_v24 = vpack.c.bf16 %v4752_v9, %v4751_v23  ;;  %v4366_v9 = vld [vmem:[#allocation3 + $0xa2] sm:$0xff] }
 0x641   : > { %v4086_v4 = vpop.f32.mrf.mxu2 }
 0x642   : > { %v4281_v15 = vpop.f32.mrf.mxu3  ;;  %v4132_v63 = vadd.f32 %v4086_v4, %v3937_v3  ;;  %v4568_v3 = vpack.c.bf16 %v4557_v0, %v4556_v61  ;;  %v4559_v0 = vld [vmem:[#allocation3 + $0x93] sm:$0xff]  ;;  %v11648_v61 = vld [vmem:[%s14324_s3 + $0x520] sm:$0xff] }
 0x643   : > { %v3898_v39 = vpop.f32.mrf.mxu1 }
 0x644   : > { %v3940_v60 = vadd.f32 %v3898_v39, %v13196_v47  ;;  %v13277_v26 = vadd.f32 %v4281_v15, %v4132_v63  ;;  %v11641_v47 = vld [vmem:[%s14324_s3 + $0x4e8] sm:$0xff]  ;;  %v11640_v63 = vld [vmem:[%s14324_s3 + $0x4e0] sm:$0xff] }
 0x645   : > { %5224 = vmatpush.bf16.msra.mxu1 %v11641_v47  ;;  %v4753_v47 = vld [vmem:[#allocation3 + $0x8c] sm:$0xff] }
 0x649   : > { %v4088_v14 = vpop.f32.mrf.mxu2  ;;  %5225 = vmatpush.bf16.msra.mxu1 %v11640_v63  ;;  %v11655_v63 = vld [vmem:[%s14324_s3 + $0x558] sm:$0xff] }
 0x64a   : > { %v4283_v36 = vpop.f32.mrf.mxu3  ;;  %v4133_v54 = vadd.f32 %v4088_v14, %v3938_v29  ;;  %v11649_v29 = vld [vmem:[%s14324_s3 + $0x528] sm:$0xff]  ;;  %v11658_v14 = vld [vmem:[%s14324_s3 + $0x570] sm:$0xff] }
 0x64b   : > { %v3901_v50 = vpop.f32.mrf.mxu1  ;;  %5419 = vmatpush.bf16.msra.mxu2 %v11649_v29 }
 0x64c   : > { %v3941_v12 = vadd.f32 %v3901_v50, %v13207_v57  ;;  %v13280_v62 = vadd.f32 %v4283_v36, %v4133_v54  ;;  %v11659_v57 = vld [vmem:[%s14324_s3 + $0x578] sm:$0xff] }
 0x64d   : > { %5612 = vmatpush.bf16.msra.mxu3 %v11659_v57  ;;  %v11639_v36 = vld [vmem:[%s14324_s3 + $0x4d8] sm:$0xff] }
 0x64e   : > { %4480 = vmatmul.bf16.gmra.mxu1 %v4374_v1  ;;  %4670 = vmatmul.bf16.gmra.mxu2 %v4568_v3  ;;  %v4754_v50 = vld [vmem:[#allocation3 + $0x94] sm:$0xff] }
 0x64f   : > { %4865 = vmatmul.bf16.gmra.mxu3 %v4763_v24  ;;  %5226 = vmatpush.bf16.msra.mxu1 %v11639_v36  ;;  %v4365_v3 = vld [vmem:[#allocation3 + $0x9a] sm:$0xff]  ;;  %v4558_v24 = vld [vmem:[#allocation3 + $0x8b] sm:$0xff] }
 0x650   : > { %v4375_v57 = vpack.c.bf16 %v4366_v9, %v4365_v3  ;;  %5420 = vmatpush.bf16.msra.mxu2 %v11648_v61  ;;  %v11636_v9 = vld [vmem:[%s14324_s3 + $0x4c0] sm:$0xff]  ;;  %v4367_v61 = vld [vmem:[#allocation3 + $0xaa] sm:$0xff] }
 0x651   : > { %v4091_v53 = vpop.f32.mrf.mxu2  ;;  %5613 = vmatpush.bf16.msra.mxu3 %v11658_v14  ;;  %v4561_v3 = vld [vmem:[#allocation3 + $0xa3] sm:$0xff] }
 0x652   : > { %v4286_v55 = vpop.f32.mrf.mxu3  ;;  %v4134_v4 = vadd.f32 %v4091_v53, %v3939_v27  ;;  %v11657_v27 = vld [vmem:[%s14324_s3 + $0x568] sm:$0xff]  ;;  %v11656_v53 = vld [vmem:[%s14324_s3 + $0x560] sm:$0xff] }
 0x653   : > { %v3903_v15 = vpop.f32.mrf.mxu1  ;;  %5227 = vmatpush.bf16.msra.mxu1 %v11638_v58  ;;  %v11653_v58 = vld [vmem:[%s14324_s3 + $0x548] sm:$0xff] }
 0x654   : > { %v3942_v39 = vadd.f32 %v3903_v15, %v13222_v28  ;;  %v13295_v43 = vadd.f32 %v4286_v55, %v4134_v4  ;;  %v4569_v4 = vpack.c.bf16 %v4559_v0, %v4558_v24  ;;  %v4764_v15 = vpack.c.bf16 %v4754_v50, %v4753_v47  ;;  %v11654_v50 = vld [vmem:[%s14324_s3 + $0x550] sm:$0xff]  ;;  %v4756_v24 = vld [vmem:[#allocation3 + $0xa4] sm:$0xff] }
 0x655   : > { %5614 = vmatpush.bf16.msra.mxu3 %v11657_v27 }
 0x659   : > { %v4093_v28 = vpop.f32.mrf.mxu2  ;;  %5615 = vmatpush.bf16.msra.mxu3 %v11656_v53  ;;  %v4560_v53 = vld [vmem:[#allocation3 + $0x9b] sm:$0xff] }
 0x65a   : > { %v4288_v54 = vpop.f32.mrf.mxu3  ;;  %v4135_v23 = vadd.f32 %v4093_v28, %v3940_v60  ;;  %v11637_v60 = vld [vmem:[%s14324_s3 + $0x4c8] sm:$0xff] }
 0x65b   : > { %v3906_v1 = vpop.f32.mrf.mxu1  ;;  %5228 = vmatpush.bf16.msra.mxu1 %v11637_v60  ;;  %v4376_v60 = vpack.c.bf16 %v4367_v61, %v4367_v61 }
 0x65c   : > { %v3943_v29 = vadd.f32 %v3906_v1, %v13231_v34  ;;  %v13316_v55 = vadd.f32 %v4288_v54, %v4135_v23  ;;  %v11647_v34 = vld [vmem:[%s14324_s3 + $0x518] sm:$0xff]  ;;  %v11646_v54 = vld [vmem:[%s14324_s3 + $0x510] sm:$0xff] }
 0x65d   : > { %5421 = vmatpush.bf16.msra.mxu2 %v11647_v34  ;;  %5616 = vmatpush.bf16.msra.mxu3 %v11655_v63  ;;  %v4570_v63 = vpack.c.bf16 %v4561_v3, %v4560_v53 }
 0x65e   : > { %4485 = vmatmul.bf16.gmra.mxu1 %v4375_v57  ;;  %4675 = vmatmul.bf16.gmra.mxu2 %v4569_v4  ;;  %v4755_v4 = vld [vmem:[#allocation3 + $0x9c] sm:$0xff] }
 0x65f   : > { %4870 = vmatmul.bf16.gmra.mxu3 %v4764_v15  ;;  %5229 = vmatpush.bf16.msra.mxu1 %v11636_v9 }
 0x661   : > { %v4096_v14 = vpop.f32.mrf.mxu2  ;;  %5422 = vmatpush.bf16.msra.mxu2 %v11646_v54  ;;  %5617 = vmatpush.bf16.msra.mxu3 %v11654_v50 }
 0x662   : > { %v4291_v36 = vpop.f32.mrf.mxu3  ;;  %v4136_v27 = vadd.f32 %v4096_v14, %v3941_v12  ;;  %v11645_v12 = vld [vmem:[%s14324_s3 + $0x508] sm:$0xff]  ;;  %v4765_v14 = vpack.c.bf16 %v4756_v24, %v4755_v4 }
 0x663   : > { %v3908_v0 = vpop.f32.mrf.mxu1  ;;  %v5131_v24 = vld [vmem:[#allocation3 + $0x2e] sm:$0xff] }
 0x664   : > { %v13330_v28 = vadd.f32 %v4291_v36, %v4136_v27  ;;  %v11644_v36 = vld [vmem:[%s14324_s3 + $0x500] sm:$0xff] }
 0x665   : > { %5423 = vmatpush.bf16.msra.mxu2 %v11645_v12  ;;  %5618 = vmatpush.bf16.msra.mxu3 %v11653_v58  ;;  %v5132_v12 = vld [vmem:[#allocation3 + $0x36] sm:$0xff] }
 0x669   : > { %v4098_v23 = vpop.f32.mrf.mxu2  ;;  %5424 = vmatpush.bf16.msra.mxu2 %v11644_v36 }
 0x66a   : > { %v4293_v1 = vpop.f32.mrf.mxu3  ;;  %v4137_v47 = vadd.f32 %v4098_v23, %v3942_v39  ;;  %v11652_v39 = vld [vmem:[%s14324_s3 + $0x540] sm:$0xff]  ;;  %v4562_v23 = vld [vmem:[#allocation3 + $0xab] sm:$0xff] }
 0x66b   : > { %v4451_v57 = vpop.f32.mrf.mxu1  ;;  %5619 = vmatpush.bf16.msra.mxu3 %v11652_v39  ;;  %v4571_v53 = vpack.c.bf16 %v4562_v23, %v4562_v23  ;;  %v5134_v39 = vld [vmem:[#allocation3 + $0x46] sm:$0xff]  ;;  %v5521_v23 = vld [vmem:[#allocation3 + $0x39] sm:$0xff] }
 0x66c   : > { %v4512_v15 = vadd.f32 %v4451_v57, %v13235_v52  ;;  %v13345_v34 = vadd.f32 %v4293_v1, %v4137_v47  ;;  %v4757_v1 = vld [vmem:[#allocation3 + $0xac] sm:$0xff]  ;;  %v5148_v57 = vpack.c.bf16 %v5132_v12, %v5131_v24 }
 0x66d   : > { %v4766_v4 = vpack.c.bf16 %v4757_v1, %v4757_v1 }
 0x66e   : > { %4490 = vmatmul.bf16.gmra.mxu1 %v4376_v60  ;;  %4680 = vmatmul.bf16.gmra.mxu2 %v4570_v63 }
 0x66f   : > { %4875 = vmatmul.bf16.gmra.mxu3 %v4765_v14 }
 0x671   : > { %v4101_v52 = vpop.f32.mrf.mxu2 }
 0x672   : > { %v4296_v27 = vpop.f32.mrf.mxu3  ;;  %v4138_v0 = vadd.f32 %v4101_v52, %v3943_v29 }
 0x673   : > { %v4453_v9 = vpop.f32.mrf.mxu1 }
 0x674   : > { %v4513_v54 = vadd.f32 %v4453_v9, %v13238_v17  ;;  %v13354_v50 = vadd.f32 %v4296_v27, %v4138_v0  ;;  %v5327_v0 = vld [vmem:[#allocation3 + $0x40] sm:$0xff] }
 0x675   : > { %v5522_v9 = vld [vmem:[#allocation3 + $0x41] sm:$0xff] }
 0x679   : > { %v4103_v58 = vpop.f32.mrf.mxu2 }
 0x67a   : > { %v4298_v61 = vpop.f32.mrf.mxu3  ;;  %v5133_v58 = vld [vmem:[#allocation3 + $0x3e] sm:$0xff] }
 0x67b   : > { %v4456_v3 = vpop.f32.mrf.mxu1  ;;  %v5326_v61 = vld [vmem:[#allocation3 + $0x38] sm:$0xff] }
 0x67c   : > { %v4514_v47 = vadd.f32 %v4456_v3, %v13241_v49  ;;  %v5149_v3 = vpack.c.bf16 %v5134_v39, %v5133_v58  ;;  %v5524_v39 = vld [vmem:[#allocation3 + $0x51] sm:$0xff] }
 0x67e   : > { %5230 = vmatmul.bf16.vlgmr.msra.gmra.mxu1 %v5148_v57  ;;  %4685 = vmatmul.bf16.gmra.mxu2 %v4571_v53  ;;  %v5538_v57 = vpack.c.bf16 %v5522_v9, %v5521_v23  ;;  %v5328_v9 = vld [vmem:[#allocation3 + $0x48] sm:$0xff] }
 0x67f   : > { %4880 = vmatmul.bf16.gmra.mxu3 %v4766_v4 }
 0x681   : > { %v4646_v29 = vpop.f32.mrf.mxu2 }
 0x682   : > { %v4841_v60 = vpop.f32.mrf.mxu3  ;;  %v4707_v17 = vadd.f32 %v4646_v29, %v4512_v15  ;;  %v5343_v15 = vpack.c.bf16 %v5327_v0, %v5326_v61  ;;  %v5135_v0 = vld [vmem:[#allocation3 + $0x4e] sm:$0xff] }
 0x683   : > { %v4458_v63 = vpop.f32.mrf.mxu1 }
 0x684   : > { %v4515_v14 = vadd.f32 %v4458_v63, %v13244_v48  ;;  %v13358_v36 = vadd.f32 %v4841_v60, %v4707_v17  ;;  %v5136_v17 = vld [vmem:[#allocation3 + $0x56] sm:$0xff] }
 0x685   : > { %v5150_v61 = vpack.c.bf16 %v5136_v17, %v5135_v0  ;;  %v5526_v17 = vld [vmem:[#allocation3 + $0x61] sm:$0xff] }
 0x689   : > { %v4648_v52 = vpop.f32.mrf.mxu2 }
 0x68a   : > { %v4843_v27 = vpop.f32.mrf.mxu3  ;;  %v4708_v49 = vadd.f32 %v4648_v52, %v4513_v54 }
 0x68b   : > { %v4461_v12 = vpop.f32.mrf.mxu1 }
 0x68c   : > { %v4516_v1 = vadd.f32 %v4461_v12, %v13247_v42  ;;  %v13361_v24 = vadd.f32 %v4843_v27, %v4708_v49  ;;  %v5329_v42 = vld [vmem:[#allocation3 + $0x50] sm:$0xff] }
 0x68d   : > { %v5523_v12 = vld [vmem:[#allocation3 + $0x49] sm:$0xff] }
 0x68e   : > { %5235 = vmatmul.bf16.gmra.mxu1 %v5149_v3  ;;  %5425 = vmatmul.bf16.vlgmr.msra.gmra.mxu2 %v5343_v15  ;;  %v5539_v3 = vpack.c.bf16 %v5524_v39, %v5523_v12  ;;  %v5330_v39 = vld [vmem:[#allocation3 + $0x58] sm:$0xff] }
 0x68f   : > { %5620 = vmatmul.bf16.vlgmr.msra.gmra.mxu3 %v5538_v57 }
 0x691   : > { %v4651_v48 = vpop.f32.mrf.mxu2 }
 0x692   : > { %v4846_v53 = vpop.f32.mrf.mxu3  ;;  %v4709_v4 = vadd.f32 %v4651_v48, %v4514_v47  ;;  %v5344_v47 = vpack.c.bf16 %v5329_v42, %v5328_v9  ;;  %v5137_v42 = vld [vmem:[#allocation3 + $0x5e] sm:$0xff] }
 0x693   : > { %v4463_v29 = vpop.f32.mrf.mxu1 }
 0x694   : > { %v4517_v54 = vadd.f32 %v4463_v29, %v13250_v35  ;;  %v13364_v60 = vadd.f32 %v4846_v53, %v4709_v4  ;;  %v5138_v4 = vld [vmem:[#allocation3 + $0x66] sm:$0xff] }
 0x695   : > { %v5151_v9 = vpack.c.bf16 %v5138_v4, %v5137_v42 }
 0x699   : > { %v4653_v63 = vpop.f32.mrf.mxu2 }
 0x69a   : > { %v4848_v52 = vpop.f32.mrf.mxu3  ;;  %v4710_v27 = vadd.f32 %v4653_v63, %v4515_v14 }
 0x69b   : > { %v4466_v49 = vpop.f32.mrf.mxu1 }
 0x69c   : > { %v4518_v58 = vadd.f32 %v4466_v49, %v13253_v38  ;;  %v13367_v23 = vadd.f32 %v4848_v52, %v4710_v27  ;;  %v5331_v38 = vld [vmem:[#allocation3 + $0x60] sm:$0xff] }
 0x69d   : > { %v5525_v49 = vld [vmem:[#allocation3 + $0x59] sm:$0xff] }
 0x69e   : > { %5240 = vmatmul.bf16.gmra.mxu1 %v5150_v61  ;;  %5430 = vmatmul.bf16.gmra.mxu2 %v5344_v47  ;;  %v5540_v61 = vpack.c.bf16 %v5526_v17, %v5525_v49 }
 0x69f   : > { %5625 = vmatmul.bf16.gmra.mxu3 %v5539_v3 }
 0x6a1   : > { %v4656_v35 = vpop.f32.mrf.mxu2 }
 0x6a2   : > { %v4851_v15 = vpop.f32.mrf.mxu3  ;;  %v4711_v57 = vadd.f32 %v4656_v35, %v4516_v1  ;;  %v5345_v1 = vpack.c.bf16 %v5331_v38, %v5330_v39 }
 0x6a3   : > { %v4468_v48 = vpop.f32.mrf.mxu1 }
 0x6a4   : > { %v4519_v14 = vadd.f32 %v4468_v48, %v13259_v21  ;;  %v13370_v53 = vadd.f32 %v4851_v15, %v4711_v57  ;;  %v5140_v57 = vld [vmem:[#allocation3 + $0x76] sm:$0xff] }
 0x6a9   : > { %v4658_v29 = vpop.f32.mrf.mxu2 }
 0x6aa   : > { %v4853_v63 = vpop.f32.mrf.mxu3  ;;  %v4712_v52 = vadd.f32 %v4658_v29, %v4517_v54  ;;  %v5333_v29 = vld [vmem:[#allocation3 + $0x70] sm:$0xff] }
 0x6ab   : > { %v4471_v27 = vpop.f32.mrf.mxu1 }
 0x6ac   : > { %v4520_v0 = vadd.f32 %v4471_v27, %v13265_v6  ;;  %v13373_v12 = vadd.f32 %v4853_v63, %v4712_v52  ;;  %v11675_v6 = vld [vmem:[%s14324_s3 + $0x5f8] sm:$0xff]  ;;  %v5139_v52 = vld [vmem:[#allocation3 + $0x6e] sm:$0xff] }
 0x6ad   : > { %6002 = vmatpush.bf16.msrb.mxu1 %v11675_v6  ;;  %v5528_v63 = vld [vmem:[#allocation3 + $0x71] sm:$0xff]  ;;  %v5332_v27 = vld [vmem:[#allocation3 + $0x68] sm:$0xff] }
 0x6ae   : > { %5245 = vmatmul.bf16.gmra.mxu1 %v5151_v9  ;;  %5435 = vmatmul.bf16.gmra.mxu2 %v5345_v1  ;;  %v5346_v49 = vpack.c.bf16 %v5333_v29, %v5332_v27  ;;  %v11683_v1 = vld [vmem:[%s14324_s3 + $0x638] sm:$0xff] }
 0x6af   : > { %5630 = vmatmul.bf16.gmra.mxu3 %v5540_v61  ;;  %6197 = vmatpush.bf16.msrb.mxu2 %v11683_v1 }
 0x6b1   : > { %v4661_v21 = vpop.f32.mrf.mxu2 }
 0x6b2   : > { %v4856_v47 = vpop.f32.mrf.mxu3  ;;  %v4713_v3 = vadd.f32 %v4661_v21, %v4518_v58  ;;  %v5527_v58 = vld [vmem:[#allocation3 + $0x69] sm:$0xff] }
 0x6b3   : > { %v4473_v35 = vpop.f32.mrf.mxu1  ;;  %v5541_v9 = vpack.c.bf16 %v5528_v63, %v5527_v58 }
 0x6b4   : > { %v4521_v54 = vadd.f32 %v4473_v35, %v13268_v13  ;;  %v13376_v15 = vadd.f32 %v4856_v47, %v4713_v3  ;;  %v5152_v13 = vpack.c.bf16 %v5140_v57, %v5139_v52  ;;  %v5142_v35 = vld [vmem:[#allocation3 + $0x86] sm:$0xff]  ;;  %v5529_v52 = vld [vmem:[#allocation3 + $0x79] sm:$0xff] }
 0x6b9   : > { %v4663_v48 = vpop.f32.mrf.mxu2 }
 0x6ba   : > { %v4858_v4 = vpop.f32.mrf.mxu3  ;;  %v4714_v38 = vadd.f32 %v4663_v48, %v4519_v14  ;;  %v5335_v48 = vld [vmem:[#allocation3 + $0x80] sm:$0xff] }
 0x6bb   : > { %v4476_v17 = vpop.f32.mrf.mxu1 }
 0x6bc   : > { %v4522_v42 = vadd.f32 %v4476_v17, %v13277_v26  ;;  %v13382_v39 = vadd.f32 %v4858_v4, %v4714_v38  ;;  %v5530_v4 = vld [vmem:[#allocation3 + $0x81] sm:$0xff]  ;;  %v5334_v17 = vld [vmem:[#allocation3 + $0x78] sm:$0xff] }
 0x6bd   : > { %v5141_v38 = vld [vmem:[#allocation3 + $0x7e] sm:$0xff] }
 0x6be   : > { %5250 = vmatmul.bf16.gmra.mxu1 %v5152_v13  ;;  %5440 = vmatmul.bf16.gmra.mxu2 %v5346_v49  ;;  %v5153_v58 = vpack.c.bf16 %v5142_v35, %v5141_v38  ;;  %v5542_v49 = vpack.c.bf16 %v5530_v4, %v5529_v52  ;;  %v5336_v38 = vld [vmem:[#allocation3 + $0x88] sm:$0xff] }
 0x6bf   : > { %5635 = vmatmul.bf16.gmra.mxu3 %v5541_v9  ;;  %v11682_v9 = vld [vmem:[%s14324_s3 + $0x630] sm:$0xff] }
 0x6c0   : > { %6198 = vmatpush.bf16.msrb.mxu2 %v11682_v9 }
 0x6c1   : > { %v4666_v14 = vpop.f32.mrf.mxu2 }
 0x6c2   : > { %v4861_v61 = vpop.f32.mrf.mxu3  ;;  %v4715_v21 = vadd.f32 %v4666_v14, %v4520_v0  ;;  %v5347_v0 = vpack.c.bf16 %v5335_v48, %v5334_v17  ;;  %v5532_v48 = vld [vmem:[#allocation3 + $0x91] sm:$0xff]  ;;  %v5531_v17 = vld [vmem:[#allocation3 + $0x89] sm:$0xff] }
 0x6c3   : > { %v4478_v47 = vpop.f32.mrf.mxu1 }
 0x6c4   : > { %v4523_v3 = vadd.f32 %v4478_v47, %v13280_v62  ;;  %v13388_v26 = vadd.f32 %v4861_v61, %v4715_v21  ;;  %v11674_v62 = vld [vmem:[%s14324_s3 + $0x5f0] sm:$0xff] }
 0x6c5   : > { %6003 = vmatpush.bf16.msrb.mxu1 %v11674_v62  ;;  %v5144_v47 = vld [vmem:[#allocation3 + $0x96] sm:$0xff] }
 0x6c9   : > { %v4668_v6 = vpop.f32.mrf.mxu2 }
 0x6ca   : > { %v4863_v57 = vpop.f32.mrf.mxu3  ;;  %v4716_v29 = vadd.f32 %v4668_v6, %v4521_v54 }
 0x6cb   : > { %v4481_v63 = vpop.f32.mrf.mxu1 }
 0x6cc   : > { %v4524_v27 = vadd.f32 %v4481_v63, %v13295_v43  ;;  %v13391_v13 = vadd.f32 %v4863_v57, %v4716_v29  ;;  %v5337_v57 = vld [vmem:[#allocation3 + $0x90] sm:$0xff] }
 0x6cd   : > { %v5143_v63 = vld [vmem:[#allocation3 + $0x8e] sm:$0xff] }
 0x6ce   : > { %5255 = vmatmul.bf16.gmra.mxu1 %v5153_v58  ;;  %5445 = vmatmul.bf16.gmra.mxu2 %v5347_v0  ;;  %v5154_v58 = vpack.c.bf16 %v5144_v47, %v5143_v63  ;;  %v11671_v47 = vld [vmem:[%s14324_s3 + $0x5d8] sm:$0xff] }
 0x6cf   : > { %5640 = vmatmul.bf16.gmra.mxu3 %v5542_v49  ;;  %v5543_v49 = vpack.c.bf16 %v5532_v48, %v5531_v17  ;;  %v5339_v48 = vld [vmem:[#allocation3 + $0xa0] sm:$0xff] }
 0x6d0   : > { %v5145_v63 = vld [vmem:[#allocation3 + $0x9e] sm:$0xff] }
 0x6d1   : > { %v4671_v54 = vpop.f32.mrf.mxu2  ;;  %v5533_v17 = vld [vmem:[#allocation3 + $0x99] sm:$0xff] }
 0x6d2   : > { %v4866_v43 = vpop.f32.mrf.mxu3  ;;  %v4717_v1 = vadd.f32 %v4671_v54, %v4522_v42  ;;  %v5348_v42 = vpack.c.bf16 %v5337_v57, %v5336_v38  ;;  %v5338_v38 = vld [vmem:[#allocation3 + $0x98] sm:$0xff] }
 0x6d3   : > { %v4483_v14 = vpop.f32.mrf.mxu1 }
 0x6d4   : > { %v4525_v61 = vadd.f32 %v4483_v14, %v13316_v55  ;;  %v13400_v21 = vadd.f32 %v4866_v43, %v4717_v1  ;;  %v11673_v55 = vld [vmem:[%s14324_s3 + $0x5e8] sm:$0xff]  ;;  %v11672_v14 = vld [vmem:[%s14324_s3 + $0x5e0] sm:$0xff] }
 0x6d5   : > { %6004 = vmatpush.bf16.msrb.mxu1 %v11673_v55  ;;  %v5349_v55 = vpack.c.bf16 %v5339_v48, %v5338_v38  ;;  %v5147_v48 = vld [vmem:[#allocation3 + $0xae] sm:$0xff] }
 0x6d9   : > { %v4673_v35 = vpop.f32.mrf.mxu2  ;;  %6005 = vmatpush.bf16.msrb.mxu1 %v11672_v14 }
 0x6da   : > { %v4868_v6 = vpop.f32.mrf.mxu3  ;;  %v4718_v4 = vadd.f32 %v4673_v35, %v4523_v3  ;;  %v11681_v3 = vld [vmem:[%s14324_s3 + $0x628] sm:$0xff] }
 0x6db   : > { %v4486_v29 = vpop.f32.mrf.mxu1  ;;  %6199 = vmatpush.bf16.msrb.mxu2 %v11681_v3  ;;  %v5146_v35 = vld [vmem:[#allocation3 + $0xa6] sm:$0xff] }
 0x6dc   : > { %v4526_v52 = vadd.f32 %v4486_v29, %v13330_v28  ;;  %v13403_v0 = vadd.f32 %v4868_v6, %v4718_v4 }
 0x6dd   : > { %6006 = vmatpush.bf16.msrb.mxu1 %v11671_v47  ;;  %v11668_v47 = vld [vmem:[%s14324_s3 + $0x5c0] sm:$0xff] }
 0x6de   : > { %5260 = vmatmul.bf16.gmra.mxu1 %v5154_v58  ;;  %5450 = vmatmul.bf16.gmra.mxu2 %v5348_v42  ;;  %v5155_v42 = vpack.c.bf16 %v5146_v35, %v5145_v63  ;;  %v11678_v35 = vld [vmem:[%s14324_s3 + $0x610] sm:$0xff]  ;;  %v5097_v63 = vadd.f32 %v12677_v16, %v13358_v36  ;;  %v5098_v36 = vadd.f32 %v12682_v33, %v13361_v24 }
 0x6df   : > { %5645 = vmatmul.bf16.gmra.mxu3 %v5543_v49  ;;  %v11670_v49 = vld [vmem:[%s14324_s3 + $0x5d0] sm:$0xff] }
 0x6e1   : > { %v4676_v62 = vpop.f32.mrf.mxu2  ;;  %6007 = vmatpush.bf16.msrb.mxu1 %v11670_v49  ;;  %v5535_v49 = vld [vmem:[#allocation3 + $0xa9] sm:$0xff] }
 0x6e2   : > { %v4871_v28 = vpop.f32.mrf.mxu3  ;;  %v4719_v9 = vadd.f32 %v4676_v62, %v4524_v27  ;;  %v5534_v27 = vld [vmem:[#allocation3 + $0xa1] sm:$0xff] }
 0x6e3   : > { %v4488_v54 = vpop.f32.mrf.mxu1  ;;  %v5544_v3 = vpack.c.bf16 %v5534_v27, %v5533_v17 }
 0x6e4   : > { %v4527_v43 = vadd.f32 %v4488_v54, %v13345_v34  ;;  %v13412_v1 = vadd.f32 %v4871_v28, %v4719_v9  ;;  %v11680_v34 = vld [vmem:[%s14324_s3 + $0x620] sm:$0xff] }
 0x6e5   : > { %6200 = vmatpush.bf16.msrb.mxu2 %v11680_v34  ;;  %v5341_v34 = vld [vmem:[#allocation3 + $0xb0] sm:$0xff] }
 0x6e9   : > { %v4678_v6 = vpop.f32.mrf.mxu2 }
 0x6ea   : > { %v13420_v57 = vpop.f32.mrf.mxu3  ;;  %v13425_v4 = vadd.f32 %v4678_v6, %v4525_v61  ;;  %v11679_v61 = vld [vmem:[%s14324_s3 + $0x618] sm:$0xff]  ;;  %v11677_v6 = vld [vmem:[%s14324_s3 + $0x608] sm:$0xff] }
 0x6eb   : > { %v4491_v29 = vpop.f32.mrf.mxu1  ;;  %6201 = vmatpush.bf16.msrb.mxu2 %v11679_v61 }
 0x6ec   : > { %v4528_v58 = vadd.f32 %v4491_v29, %v13354_v50  ;;  %v11669_v50 = vld [vmem:[%s14324_s3 + $0x5c8] sm:$0xff]  ;;  %v5536_v29 = vld [vmem:[#allocation3 + $0xb1] sm:$0xff] }
 0x6ed   : > { %6008 = vmatpush.bf16.msrb.mxu1 %v11669_v50  ;;  %v5545_v50 = vpack.c.bf16 %v5536_v29, %v5535_v49  ;;  %v5099_v29 = vadd.f32 %v12686_v22, %v13364_v60  ;;  %v5914_v22 = vld [vmem:[#allocation3 + $0x53] sm:$0xff] }
 0x6ee   : > { %5265 = vmatmul.bf16.gmra.mxu1 %v5155_v42  ;;  %5455 = vmatmul.bf16.gmra.mxu2 %v5349_v55  ;;  %v5340_v42 = vld [vmem:[#allocation3 + $0xa8] sm:$0xff] }
 0x6ef   : > { %5650 = vmatmul.bf16.gmra.mxu3 %v5544_v3  ;;  %6202 = vmatpush.bf16.msrb.mxu2 %v11678_v35  ;;  %v5156_v3 = vpack.c.bf16 %v5147_v48, %v5147_v48  ;;  %v5350_v61 = vpack.c.bf16 %v5341_v34, %v5340_v42  ;;  %v5912_v35 = vld [vmem:[#allocation3 + $0x43] sm:$0xff]  ;;  %v5537_v34 = vld [vmem:[#allocation3 + $0xb9] sm:$0xff] }
 0x6f1   : > { %v4681_v62 = vpop.f32.mrf.mxu2  ;;  %6009 = vmatpush.bf16.msrb.mxu1 %v11668_v47 }
 0x6f2   : > { %v4876_v28 = vpop.f32.mrf.mxu3  ;;  %v4721_v9 = vadd.f32 %v4681_v62, %v4526_v52  ;;  %v11676_v62 = vld [vmem:[%s14324_s3 + $0x600] sm:$0xff] }
 0x6f3   : > { %v4493_v54 = vpop.f32.mrf.mxu1  ;;  %6203 = vmatpush.bf16.msrb.mxu2 %v11677_v6 }
 0x6f4   : > { %v13437_v14 = vadd.f32 %v4876_v28, %v4721_v9 }
 0x6f7   : > { %6204 = vmatpush.bf16.msrb.mxu2 %v11676_v62 }
 0x6f9   : > { %v4683_v52 = vpop.f32.mrf.mxu2 }
 0x6fa   : > { %v13448_v27 = vpop.f32.mrf.mxu3  ;;  %v13452_v38 = vadd.f32 %v4683_v52, %v4527_v43  ;;  %v5342_v52 = vld [vmem:[#allocation3 + $0xb8] sm:$0xff] }
 0x6fb   : > { %v5231_v17 = vpop.f32.mrf.mxu1 }
 0x6fc   : > { %v5292_v55 = vadd.f32 %v5231_v17, %v5097_v63  ;;  %v5911_v17 = vld [vmem:[#allocation3 + $0x3b] sm:$0xff] }
 0x6fd   : > { %v5928_v49 = vpack.c.bf16 %v5912_v35, %v5911_v17 }
 0x6fe   : > { %5270 = vmatmul.bf16.gmra.mxu1 %v5156_v3  ;;  %5460 = vmatmul.bf16.gmra.mxu2 %v5350_v61  ;;  %v5351_v3 = vpack.c.bf16 %v5342_v52, %v5342_v52  ;;  %v5546_v61 = vpack.c.bf16 %v5537_v34, %v5537_v34  ;;  %v6106_v52 = vld [vmem:[#allocation3 + $0x3c] sm:$0xff] }
 0x6ff   : > { %5655 = vmatmul.bf16.gmra.mxu3 %v5545_v50 }
 0x701   : > { %v4686_v28 = vpop.f32.mrf.mxu2 }
 0x702   : > { %v4881_v16 = vpop.f32.mrf.mxu3  ;;  %v4723_v43 = vadd.f32 %v4686_v28, %v4528_v58  ;;  %v5100_v58 = vadd.f32 %v12696_v46, %v13367_v23 }
 0x703   : > { %v5233_v9 = vpop.f32.mrf.mxu1 }
 0x704   : > { %v5293_v54 = vadd.f32 %v5233_v9, %v5098_v36  ;;  %v13459_v47 = vadd.f32 %v4881_v16, %v4723_v43  ;;  %v6107_v43 = vld [vmem:[#allocation3 + $0x44] sm:$0xff]  ;;  %v5101_v9 = vadd.f32 %v12703_v59, %v13370_v53 }
 0x705   : > { %v6123_v23 = vpack.c.bf16 %v6107_v43, %v6106_v52  ;;  %v5916_v59 = vld [vmem:[#allocation3 + $0x63] sm:$0xff] }
 0x709   : > { %v4688_v6 = vpop.f32.mrf.mxu2 }
 0x70a   : > { %v4883_v48 = vpop.f32.mrf.mxu3 }
 0x70b   : > { %v5236_v63 = vpop.f32.mrf.mxu1  ;;  %v5913_v48 = vld [vmem:[#allocation3 + $0x4b] sm:$0xff] }
 0x70c   : > { %v5294_v42 = vadd.f32 %v5236_v63, %v5099_v29  ;;  %v5929_v46 = vpack.c.bf16 %v5914_v22, %v5913_v48  ;;  %v5102_v63 = vadd.f32 %v12710_v51, %v13373_v12  ;;  %v6108_v22 = vld [vmem:[#allocation3 + $0x4c] sm:$0xff] }
 0x70e   : > { %6010 = vmatmul.bf16.vlgmr.msrb.gmra.mxu1 %v5928_v49  ;;  %5465 = vmatmul.bf16.gmra.mxu2 %v5351_v3 }
 0x70f   : > { %5660 = vmatmul.bf16.gmra.mxu3 %v5546_v61 }
 0x711   : > { %v5426_v33 = vpop.f32.mrf.mxu2 }
 0x712   : > { %v5621_v24 = vpop.f32.mrf.mxu3  ;;  %v5487_v50 = vadd.f32 %v5426_v33, %v5292_v55  ;;  %v6109_v33 = vld [vmem:[#allocation3 + $0x54] sm:$0xff] }
 0x713   : > { %v5238_v62 = vpop.f32.mrf.mxu1  ;;  %v6124_v12 = vpack.c.bf16 %v6109_v33, %v6108_v22 }
 0x714   : > { %v5295_v28 = vadd.f32 %v5238_v62, %v5100_v58  ;;  %v13465_v16 = vadd.f32 %v5621_v24, %v5487_v50  ;;  %v5103_v24 = vadd.f32 %v12720_v20, %v13376_v15  ;;  %v5915_v62 = vld [vmem:[#allocation3 + $0x5b] sm:$0xff]  ;;  %v5918_v20 = vld [vmem:[#allocation3 + $0x73] sm:$0xff] }
 0x715   : > { %v5930_v51 = vpack.c.bf16 %v5916_v59, %v5915_v62  ;;  %v5920_v62 = vld [vmem:[#allocation3 + $0x83] sm:$0xff] }
 0x719   : > { %v5428_v60 = vpop.f32.mrf.mxu2 }
 0x71a   : > { %v13467_v36 = vpop.f32.mrf.mxu3  ;;  %v13471_v35 = vadd.f32 %v5428_v60, %v5293_v54 }
 0x71b   : > { %v5241_v6 = vpop.f32.mrf.mxu1 }
 0x71c   : > { %v5296_v34 = vadd.f32 %v5241_v6, %v5101_v9  ;;  %v5104_v9 = vadd.f32 %v12735_v30, %v13382_v39 }
 0x71e   : > { %6015 = vmatmul.bf16.gmra.mxu1 %v5929_v46  ;;  %6205 = vmatmul.bf16.vlgmr.msrb.gmra.mxu2 %v6123_v23  ;;  %v6111_v23 = vld [vmem:[#allocation3 + $0x64] sm:$0xff] }
 0x721   : > { %v5431_v55 = vpop.f32.mrf.mxu2 }
 0x722   : > { %v5626_v29 = vpop.f32.mrf.mxu3  ;;  %v5489_v17 = vadd.f32 %v5431_v55, %v5294_v42  ;;  %v5105_v55 = vadd.f32 %v12754_v18, %v13388_v26  ;;  %v6113_v18 = vld [vmem:[#allocation3 + $0x74] sm:$0xff] }
 0x723   : > { %v5243_v49 = vpop.f32.mrf.mxu1 }
 0x724   : > { %v5297_v3 = vadd.f32 %v5243_v49, %v5102_v63  ;;  %v13475_v61 = vadd.f32 %v5626_v29, %v5489_v17  ;;  %v5917_v17 = vld [vmem:[#allocation3 + $0x6b] sm:$0xff]  ;;  %v6110_v49 = vld [vmem:[#allocation3 + $0x5c] sm:$0xff] }
 0x725   : > { %v5931_v30 = vpack.c.bf16 %v5918_v20, %v5917_v17  ;;  %v6125_v39 = vpack.c.bf16 %v6111_v23, %v6110_v49  ;;  %v5106_v23 = vadd.f32 %v12773_v25, %v13391_v13  ;;  %v6115_v49 = vld [vmem:[#allocation3 + $0x84] sm:$0xff] }
 0x729   : > { %v5433_v53 = vpop.f32.mrf.mxu2 }
 0x72a   : > { %v13477_v54 = vpop.f32.mrf.mxu3  ;;  %v13481_v58 = vadd.f32 %v5433_v53, %v5295_v28 }
 0x72b   : > { %v5246_v50 = vpop.f32.mrf.mxu1 }
 0x72c   : > { %v5298_v60 = vadd.f32 %v5246_v50, %v5103_v24 }
 0x72e   : > { %6020 = vmatmul.bf16.gmra.mxu1 %v5930_v51  ;;  %6210 = vmatmul.bf16.gmra.mxu2 %v6124_v12  ;;  %v5919_v12 = vld [vmem:[#allocation3 + $0x7b] sm:$0xff] }
 0x731   : > { %v5436_v42 = vpop.f32.mrf.mxu2 }
 0x732   : > { %v5631_v43 = vpop.f32.mrf.mxu3  ;;  %v5491_v6 = vadd.f32 %v5436_v42, %v5296_v34  ;;  %v6112_v42 = vld [vmem:[#allocation3 + $0x6c] sm:$0xff] }
 0x733   : > { %v5248_v48 = vpop.f32.mrf.mxu1 }
 0x734   : > { %v5299_v52 = vadd.f32 %v5248_v48, %v5104_v9  ;;  %v13485_v46 = vadd.f32 %v5631_v43, %v5491_v6  ;;  %v5932_v43 = vpack.c.bf16 %v5920_v62, %v5919_v12  ;;  %v6126_v9 = vpack.c.bf16 %v6113_v18, %v6112_v42 }
 0x739   : > { %v5438_v15 = vpop.f32.mrf.mxu2 }
 0x73a   : > { %v13487_v28 = vpop.f32.mrf.mxu3  ;;  %v13491_v29 = vadd.f32 %v5438_v15, %v5297_v3 }
 0x73b   : > { %v5251_v63 = vpop.f32.mrf.mxu1 }
 0x73c   : > { %v5300_v59 = vadd.f32 %v5251_v63, %v5105_v55  ;;  %v5922_v63 = vld [vmem:[#allocation3 + $0x93] sm:$0xff] }
 0x73e   : > { %6025 = vmatmul.bf16.gmra.mxu1 %v5931_v30  ;;  %6215 = vmatmul.bf16.gmra.mxu2 %v6125_v39 }
 0x741   : > { %v5441_v34 = vpop.f32.mrf.mxu2 }
 0x742   : > { %v5636_v53 = vpop.f32.mrf.mxu3  ;;  %v5493_v33 = vadd.f32 %v5441_v34, %v5298_v60  ;;  %v5921_v34 = vld [vmem:[#allocation3 + $0x8b] sm:$0xff] }
 0x743   : > { %v5253_v24 = vpop.f32.mrf.mxu1 }
 0x744   : > { %v13493_v50 = vadd.f32 %v5636_v53, %v5493_v33  ;;  %v5301_v55 = vadd.f32 %v5253_v24, %v5106_v23  ;;  %v6114_v53 = vld [vmem:[#allocation3 + $0x7c] sm:$0xff]  ;;  %v5933_v33 = vpack.c.bf16 %v5922_v63, %v5921_v34  ;;  %v6116_v63 = vld [vmem:[#allocation3 + $0x8c] sm:$0xff] }
 0x745   : > { %v11714_v34 = vld [vmem:[%s14326_s5 + $0xf0] sm:$0xff] }
 0x749   : > { %v5443_v22 = vpop.f32.mrf.mxu2 }
 0x74a   : > { %v13495_v51 = vpop.f32.mrf.mxu3  ;;  %v13497_v26 = vadd.f32 %v5443_v22, %v5299_v52  ;;  %v6127_v22 = vpack.c.bf16 %v6115_v49, %v6114_v53 }
 0x74b   : > { %v5256_v3 = vpop.f32.mrf.mxu1 }
 0x74e   : > { %6030 = vmatmul.bf16.gmra.mxu1 %v5932_v43  ;;  %6220 = vmatmul.bf16.gmra.mxu2 %v6126_v9  ;;  %v5108_v43 = vadd.f32 %v12812_v8, %v13403_v0  ;;  %v11699_v9 = vld [vmem:[%s14326_s5 + $0x78] sm:$0xff]  ;;  %v5109_v8 = vadd.f32 %v12817_v31, %v13412_v1  ;;  %v4915_v31 = vadd.f32 %v13420_v57, %v13425_v4  ;;  %v11696_v57 = vld [vmem:[%s14326_s5 + $0x60] sm:$0xff] }
 0x74f   : > { %6403 = vmatpush.bf16.msrb.mxu3 %v11699_v9  ;;  %v11715_v0 = vld [vmem:[%s14326_s5 + $0xf8] sm:$0xff] }
 0x750   : > { %6641 = vmatpush.bf16.msrb.mxu0 %v11715_v0  ;;  %v4917_v0 = vadd.f32 %v13448_v27, %v13452_v38  ;;  %v11692_v27 = vld [vmem:[%s14326_s5 + $0x40] sm:$0xff] }
 0x751   : > { %v5446_v6 = vpop.f32.mrf.mxu2  ;;  %v11708_v38 = vld [vmem:[%s14326_s5 + $0xc0] sm:$0xff] }
 0x752   : > { %v5641_v48 = vpop.f32.mrf.mxu3  ;;  %v5495_v60 = vadd.f32 %v5446_v6, %v5300_v59  ;;  %v5107_v59 = vadd.f32 %v12793_v37, %v13400_v21 }
 0x753   : > { %v5258_v20 = vpop.f32.mrf.mxu1 }
 0x754   : > { %v13499_v15 = vadd.f32 %v5641_v48, %v5495_v60  ;;  %v5302_v18 = vadd.f32 %v5256_v3, %v5107_v59  ;;  %v5303_v6 = vadd.f32 %v5258_v20, %v5108_v43  ;;  %v5924_v48 = vld [vmem:[#allocation3 + $0xa3] sm:$0xff]  ;;  %v6117_v60 = vld [vmem:[#allocation3 + $0x94] sm:$0xff]  ;;  %6642 = vmatpush.bf16.msrb.mxu0 %v11714_v34  ;;  %v5110_v59 = vadd.f32 %v12822_v32, %v4915_v31 }
 0x755   : > { %v6128_v49 = vpack.c.bf16 %v6117_v60, %v6116_v63  ;;  %v11698_v20 = vld [vmem:[%s14326_s5 + $0x70] sm:$0xff]  ;;  %v11712_v32 = vld [vmem:[%s14326_s5 + $0xe0] sm:$0xff]  ;;  %v11695_v60 = vld [vmem:[%s14326_s5 + $0x58] sm:$0xff]  ;;  %v5112_v34 = vadd.f32 %v12830_v40, %v4917_v0 }
 0x756   : > { %6404 = vmatpush.bf16.msrb.mxu3 %v11698_v20 }
 0x759   : > { %v5448_v52 = vpop.f32.mrf.mxu2 }
 0x75a   : > { %v5643_v17 = vpop.f32.mrf.mxu3  ;;  %v5496_v30 = vadd.f32 %v5448_v52, %v5301_v55  ;;  %v5923_v55 = vld [vmem:[#allocation3 + $0x9b] sm:$0xff] }
 0x75b   : > { %v5261_v39 = vpop.f32.mrf.mxu1  ;;  %v5934_v52 = vpack.c.bf16 %v5924_v48, %v5923_v55  ;;  %v6118_v48 = vld [vmem:[#allocation3 + $0x9c] sm:$0xff]  ;;  %v5111_v55 = vadd.f32 %v12825_v5, %v13437_v14 }
 0x75c   : > { %v5691_v62 = vadd.f32 %v5643_v17, %v5496_v30  ;;  %v5304_v30 = vadd.f32 %v5261_v39, %v5109_v8  ;;  %v11697_v39 = vld [vmem:[%s14326_s5 + $0x68] sm:$0xff] }
 0x75d   : > { %6405 = vmatpush.bf16.msrb.mxu3 %v11697_v39 }
 0x75e   : > { %6035 = vmatmul.bf16.gmra.mxu1 %v5933_v33  ;;  %5708 = vst [vmem:[#allocation4 + $0x48] sm:$0xff] %v5691_v62  ;;  %6225 = vmatmul.bf16.gmra.mxu2 %v6127_v22 }
 0x761   : > { %v5451_v25 = vpop.f32.mrf.mxu2  ;;  %6406 = vmatpush.bf16.msrb.mxu3 %v11696_v57  ;;  %v11731_v57 = vld [vmem:[%s14326_s5 + $0x178] sm:$0xff] }
 0x762   : > { %v5646_v13 = vpop.f32.mrf.mxu3  ;;  %v5497_v24 = vadd.f32 %v5451_v25, %v5302_v18  ;;  %v11713_v18 = vld [vmem:[%s14326_s5 + $0xe8] sm:$0xff] }
 0x763   : > { %v5263_v12 = vpop.f32.mrf.mxu1  ;;  %6643 = vmatpush.bf16.msrb.mxu0 %v11713_v18  ;;  %v6120_v18 = vld [vmem:[#allocation3 + $0xac] sm:$0xff] }
 0x764   : > { %v5692_v42 = vadd.f32 %v5646_v13, %v5497_v24  ;;  %v5305_v25 = vadd.f32 %v5263_v12, %v5110_v59  ;;  %v5926_v13 = vld [vmem:[#allocation3 + $0xb3] sm:$0xff] }
 0x765   : > { %6407 = vmatpush.bf16.msrb.mxu3 %v11695_v60  ;;  %v11729_v60 = vld [vmem:[%s14326_s5 + $0x168] sm:$0xff] }
 0x766   : > { %5709 = vst [vmem:[#allocation4 + $0x50] sm:$0xff] %v5692_v42  ;;  %v6119_v42 = vld [vmem:[#allocation3 + $0xa4] sm:$0xff] }
 0x767   : > { %6644 = vmatpush.bf16.msrb.mxu0 %v11712_v32  ;;  %v11755_v32 = vld [vmem:[%s14326_s5 + $0x238] sm:$0xff] }
 0x768   : > { %7086 = vmatpush.bf16.msra.mxu1 %v11755_v32  ;;  %v11760_v32 = vld [vmem:[%s14326_s5 + $0x260] sm:$0xff] }
 0x769   : > { %v5453_v37 = vpop.f32.mrf.mxu2 }
 0x76a   : > { %v5648_v21 = vpop.f32.mrf.mxu3  ;;  %v5498_v3 = vadd.f32 %v5453_v37, %v5303_v6  ;;  %v5925_v6 = vld [vmem:[#allocation3 + $0xab] sm:$0xff] }
 0x76b   : > { %v5266_v23 = vpop.f32.mrf.mxu1  ;;  %v5935_v37 = vpack.c.bf16 %v5926_v13, %v5925_v6  ;;  %v11691_v13 = vld [vmem:[%s14326_s5 + $0x38] sm:$0xff] }
 0x76c   : > { %v5693_v17 = vadd.f32 %v5648_v21, %v5498_v3  ;;  %v6129_v21 = vpack.c.bf16 %v6119_v42, %v6118_v48  ;;  %v11711_v3 = vld [vmem:[%s14326_s5 + $0xd8] sm:$0xff]  ;;  %v5306_v63 = vadd.f32 %v5266_v23, %v5111_v55  ;;  %v11693_v23 = vld [vmem:[%s14326_s5 + $0x48] sm:$0xff]  ;;  %v11730_v42 = vld [vmem:[%s14326_s5 + $0x170] sm:$0xff] }
 0x76d   : > { %6645 = vmatpush.bf16.msrb.mxu0 %v11711_v3  ;;  %v11688_v3 = vld [vmem:[%s14326_s5 + $0x20] sm:$0xff] }
 0x76e   : > { %6040 = vmatmul.bf16.gmra.mxu1 %v5934_v52  ;;  %5710 = vst [vmem:[#allocation4 + $0x58] sm:$0xff] %v5693_v17  ;;  %6230 = vmatmul.bf16.gmra.mxu2 %v6128_v49  ;;  %v11694_v52 = vld [vmem:[%s14326_s5 + $0x50] sm:$0xff]  ;;  %v11728_v55 = vld [vmem:[%s14326_s5 + $0x160] sm:$0xff] }
 0x76f   : > { %v11710_v17 = vld [vmem:[%s14326_s5 + $0xd0] sm:$0xff]  ;;  %6408 = vmatpush.bf16.msrb.mxu3 %v11694_v52 }
 0x771   : > { %v5456_v53 = vpop.f32.mrf.mxu2  ;;  %6646 = vmatpush.bf16.msrb.mxu0 %v11710_v17 }
 0x772   : > { %v5651_v33 = vpop.f32.mrf.mxu3  ;;  %v5499_v1 = vadd.f32 %v5456_v53, %v5304_v30  ;;  %v11709_v30 = vld [vmem:[%s14326_s5 + $0xc8] sm:$0xff] }
 0x773   : > { %v5268_v62 = vpop.f32.mrf.mxu1  ;;  %6409 = vmatpush.bf16.msrb.mxu3 %v11693_v23  ;;  %v11763_v23 = vld [vmem:[%s14326_s5 + $0x278] sm:$0xff] }
 0x774   : > { %v5694_v22 = vadd.f32 %v5651_v33, %v5499_v1  ;;  %v5307_v53 = vadd.f32 %v5268_v62, %v5112_v34  ;;  %v5927_v33 = vld [vmem:[#allocation3 + $0xbb] sm:$0xff]  ;;  %v11686_v34 = vld [vmem:[%s14326_s5 + $0x10] sm:$0xff]  ;;  %7175 = vmatpush.bf16.msra.mxu2 %v11763_v23 }
 0x775   : > { %6647 = vmatpush.bf16.msrb.mxu0 %v11709_v30  ;;  %v5936_v40 = vpack.c.bf16 %v5927_v33, %v5927_v33  ;;  %v5877_v30 = vadd.f32 %v12843_v41, %v13465_v16  ;;  %v11750_v33 = vld [vmem:[%s14326_s5 + $0x210] sm:$0xff]  ;;  %v5683_v41 = vadd.f32 %v13467_v36, %v13471_v35  ;;  %v11749_v36 = vld [vmem:[%s14326_s5 + $0x208] sm:$0xff]  ;;  %v11783_v23 = vld [vmem:[%s14326_s5 + $0x318] sm:$0xff] }
 0x776   : > { %5711 = vst [vmem:[#allocation4 + $0x60] sm:$0xff] %v5694_v22  ;;  %v6121_v22 = vld [vmem:[#allocation3 + $0xb4] sm:$0xff] }
 0x777   : > { %v6130_v62 = vpack.c.bf16 %v6121_v22, %v6120_v18  ;;  %6410 = vmatpush.bf16.msrb.mxu3 %v11692_v27  ;;  %v11725_v22 = vld [vmem:[%s14326_s5 + $0x148] sm:$0xff]  ;;  %v5878_v35 = vadd.f32 %v12848_v10, %v5683_v41  ;;  %v11748_v10 = vld [vmem:[%s14326_s5 + $0x200] sm:$0xff] }
 0x778   : > { %v11761_v18 = vld [vmem:[%s14326_s5 + $0x268] sm:$0xff]  ;;  %v13703_v41 = vld [vmem:[%s14325_s4] sm:$0x1] }
 0x779   : > { %v5458_v4 = vpop.f32.mrf.mxu2  ;;  %6648 = vmatpush.bf16.msrb.mxu0 %v11708_v38 }
 0x77a   : > { %v5653_v24 = vpop.f32.mrf.mxu3  ;;  %v5500_v43 = vadd.f32 %v5458_v4, %v5305_v25  ;;  %v5113_v4 = vadd.f32 %v12835_v56, %v13459_v47 }
 0x77b   : > { %v5271_v9 = vpop.f32.mrf.mxu1  ;;  %6464 = vmatpush.bf16.msra.mxu3 %v11691_v13 }
 0x77c   : > { %v5695_v12 = vadd.f32 %v5653_v24, %v5500_v43  ;;  %v11690_v24 = vld [vmem:[%s14326_s5 + $0x30] sm:$0xff]  ;;  %v5308_v6 = vadd.f32 %v5271_v9, %v5113_v4  ;;  %v11753_v9 = vld [vmem:[%s14326_s5 + $0x228] sm:$0xff]  ;;  %v11787_v4 = vld [vmem:[%s14326_s5 + $0x338] sm:$0xff] }
 0x77d   : > { %6819 = vmatpush.bf16.msra.mxu0 %v11731_v57  ;;  %v11754_v43 = vld [vmem:[%s14326_s5 + $0x230] sm:$0xff] }
 0x77e   : > { %6045 = vmatmul.bf16.gmra.mxu1 %v5935_v37  ;;  %5712 = vst [vmem:[#allocation4 + $0x68] sm:$0xff] %v5695_v12  ;;  %6235 = vmatmul.bf16.gmra.mxu2 %v6129_v21  ;;  %v11689_v21 = vld [vmem:[%s14326_s5 + $0x28] sm:$0xff] }
 0x77f   : > { %6465 = vmatpush.bf16.msra.mxu3 %v11690_v24  ;;  %7087 = vmatpush.bf16.msra.mxu1 %v11754_v43  ;;  %v5879_v24 = vadd.f32 %v12853_v19, %v13475_v61  ;;  %v11786_v43 = vld [vmem:[%s14326_s5 + $0x330] sm:$0xff]  ;;  %v11785_v61 = vld [vmem:[%s14326_s5 + $0x328] sm:$0xff] }
 0x780   : > { %v11758_v19 = vld [vmem:[%s14326_s5 + $0x250] sm:$0xff] }
 0x781   : > { %v5461_v49 = vpop.f32.mrf.mxu2  ;;  %6820 = vmatpush.bf16.msra.mxu0 %v11730_v42  ;;  %v11759_v42 = vld [vmem:[%s14326_s5 + $0x258] sm:$0xff] }
 0x782   : > { %v5656_v8 = vpop.f32.mrf.mxu3  ;;  %v5501_v20 = vadd.f32 %v5461_v49, %v5306_v63  ;;  %v11752_v63 = vld [vmem:[%s14326_s5 + $0x220] sm:$0xff] }
 0x783   : > { %v5273_v5 = vpop.f32.mrf.mxu1  ;;  %6466 = vmatpush.bf16.msra.mxu3 %v11689_v21  ;;  %7088 = vmatpush.bf16.msra.mxu1 %v11753_v9  ;;  %v6122_v49 = vld [vmem:[#allocation3 + $0xbc] sm:$0xff] }
 0x784   : > { %v5696_v14 = vadd.f32 %v5656_v8, %v5501_v20  ;;  %v6131_v0 = vpack.c.bf16 %v6122_v49, %v6122_v49  ;;  %v11687_v20 = vld [vmem:[%s14326_s5 + $0x18] sm:$0xff] }
 0x785   : > { %6821 = vmatpush.bf16.msra.mxu0 %v11729_v60  ;;  %v11727_v5 = vld [vmem:[%s14326_s5 + $0x158] sm:$0xff] }
 0x786   : > { %5713 = vst [vmem:[#allocation4 + $0x70] sm:$0xff] %v5696_v14  ;;  %v11751_v14 = vld [vmem:[%s14326_s5 + $0x218] sm:$0xff] }
 0x787   : > { %6467 = vmatpush.bf16.msra.mxu3 %v11688_v3  ;;  %7089 = vmatpush.bf16.msra.mxu1 %v11752_v63 }
 0x789   : > { %v5463_v31 = vpop.f32.mrf.mxu2  ;;  %6822 = vmatpush.bf16.msra.mxu0 %v11728_v55 }
 0x78a   : > { %v5658_v1 = vpop.f32.mrf.mxu3  ;;  %v5502_v59 = vadd.f32 %v5463_v31, %v5307_v53  ;;  %v11726_v53 = vld [vmem:[%s14326_s5 + $0x150] sm:$0xff] }
 0x78b   : > { %v6011_v39 = vpop.f32.mrf.mxu1  ;;  %6468 = vmatpush.bf16.msra.mxu3 %v11687_v20  ;;  %7090 = vmatpush.bf16.msra.mxu1 %v11751_v14  ;;  %v11756_v14 = vld [vmem:[%s14326_s5 + $0x240] sm:$0xff] }
 0x78c   : > { %v5697_v25 = vadd.f32 %v5658_v1, %v5502_v59  ;;  %v6072_v27 = vadd.f32 %v6011_v39, %v5877_v30  ;;  %v11685_v1 = vld [vmem:[%s14326_s5 + $0x8] sm:$0xff]  ;;  %v11762_v59 = vld [vmem:[%s14326_s5 + $0x270] sm:$0xff]  ;;  %v11684_v39 = vld [vmem:[%s14326_s5] sm:$0xff] }
 0x78d   : > { %6823 = vmatpush.bf16.msra.mxu0 %v11727_v5  ;;  %7176 = vmatpush.bf16.msra.mxu2 %v11762_v59 }
 0x78e   : > { %6050 = vmatmul.bf16.gmra.mxu1 %v5936_v40  ;;  %5714 = vst [vmem:[#allocation4 + $0x78] sm:$0xff] %v5697_v25  ;;  %6240 = vmatmul.bf16.gmra.mxu2 %v6130_v62  ;;  %v11724_v40 = vld [vmem:[%s14326_s5 + $0x140] sm:$0xff] }
 0x78f   : > { %6469 = vmatpush.bf16.msra.mxu3 %v11686_v34  ;;  %7091 = vmatpush.bf16.msra.mxu1 %v11750_v33  ;;  %v5881_v33 = vadd.f32 %v12869_v11, %v13485_v46  ;;  %v11794_v11 = vld [vmem:[%s14326_s5 + $0x370] sm:$0xff] }
 0x791   : > { %v5466_v48 = vpop.f32.mrf.mxu2  ;;  %6824 = vmatpush.bf16.msra.mxu0 %v11726_v53  ;;  %7177 = vmatpush.bf16.msra.mxu2 %v11761_v18  ;;  %v11795_v53 = vld [vmem:[%s14326_s5 + $0x378] sm:$0xff] }
 0x792   : > { %v5661_v56 = vpop.f32.mrf.mxu3  ;;  %v5503_v47 = vadd.f32 %v5466_v48, %v5308_v6 }
 0x793   : > { %v6013_v37 = vpop.f32.mrf.mxu1  ;;  %6470 = vmatpush.bf16.msra.mxu3 %v11685_v1  ;;  %7092 = vmatpush.bf16.msra.mxu1 %v11749_v36 }
 0x794   : > { %v5698_v12 = vadd.f32 %v5661_v56, %v5503_v47  ;;  %v6073_v25 = vadd.f32 %v6013_v37, %v5878_v35  ;;  %v5685_v56 = vadd.f32 %v13477_v54, %v13481_v58  ;;  %v11757_v54 = vld [vmem:[%s14326_s5 + $0x248] sm:$0xff]  ;;  %v11784_v58 = vld [vmem:[%s14326_s5 + $0x320] sm:$0xff]  ;;  %v5687_v35 = vadd.f32 %v13487_v28, %v13491_v29 }
 0x795   : > { %6825 = vmatpush.bf16.msra.mxu0 %v11725_v22  ;;  %7178 = vmatpush.bf16.msra.mxu2 %v11760_v32  ;;  %v11747_v32 = vld [vmem:[%s14326_s5 + $0x1f8] sm:$0xff]  ;;  %v11781_v29 = vld [vmem:[%s14326_s5 + $0x308] sm:$0xff] }
 0x796   : > { %5715 = vst [vmem:[#allocation4 + $0x80] sm:$0xff] %v5698_v12  ;;  %v5880_v12 = vadd.f32 %v12861_v45, %v5685_v56 }
 0x797   : > { %6471 = vmatpush.bf16.msra.mxu3 %v11684_v39  ;;  %7093 = vmatpush.bf16.msra.mxu1 %v11748_v10 }
 0x799   : > { %v5468_v52 = vpop.f32.mrf.mxu2  ;;  %6826 = vmatpush.bf16.msra.mxu0 %v11724_v40  ;;  %7179 = vmatpush.bf16.msra.mxu2 %v11759_v42  ;;  %v5882_v42 = vadd.f32 %v12874_v2, %v5687_v35  ;;  %v11746_v2 = vld [vmem:[%s14326_s5 + $0x1f0] sm:$0xff] }
 0x79a   : > { %v5663_v17 = vpop.f32.mrf.mxu3 }
 0x79b   : > { %v6016_v8 = vpop.f32.mrf.mxu1  ;;  %7442 = vmatpush.bf16.msrb.mxu1 %v11787_v4 }
 0x79c   : > { %v6074_v6 = vadd.f32 %v6016_v8, %v5879_v24  ;;  %v11793_v24 = vld [vmem:[%s14326_s5 + $0x368] sm:$0xff] }
 0x79d   : > { %7180 = vmatpush.bf16.msra.mxu2 %v11758_v19  ;;  %v11792_v19 = vld [vmem:[%s14326_s5 + $0x360] sm:$0xff] }
 0x79e   : > { %6245 = vmatmul.bf16.gmra.mxu2 %v6131_v0 }
 0x79f   : > { %7443 = vmatpush.bf16.msrb.mxu1 %v11786_v43 }
 0x7a1   : > { %v6206_v38 = vpop.f32.mrf.mxu2  ;;  %7181 = vmatpush.bf16.msra.mxu2 %v11757_v54 }
 0x7a2   : > { %v6267_v16 = vadd.f32 %v6206_v38, %v6072_v27  ;;  %v11782_v38 = vld [vmem:[%s14326_s5 + $0x310] sm:$0xff] }
 0x7a3   : > { %v6018_v31 = vpop.f32.mrf.mxu1  ;;  %7444 = vmatpush.bf16.msrb.mxu1 %v11785_v61 }
 0x7a4   : > { %6284 = vst [vmem:[#allocation4] sm:$0xff] %v6267_v16  ;;  %v6075_v21 = vadd.f32 %v6018_v31, %v5880_v12 }
 0x7a5   : > { %7182 = vmatpush.bf16.msra.mxu2 %v11756_v14 }
 0x7a7   : > { %7445 = vmatpush.bf16.msrb.mxu1 %v11784_v58  ;;  %v11745_v58 = vld [vmem:[%s14326_s5 + $0x1e8] sm:$0xff] }
 0x7a9   : > { %v6208_v62 = vpop.f32.mrf.mxu2  ;;  %7531 = vmatpush.bf16.msrb.mxu2 %v11795_v53 }
 0x7aa   : > { %v6268_v13 = vadd.f32 %v6208_v62, %v6073_v25  ;;  %v11707_v25 = vld [vmem:[%s14326_s5 + $0xb8] sm:$0xff] }
 0x7ab   : > { %v6021_v57 = vpop.f32.mrf.mxu1  ;;  %v6328_v9 = vld [vmem:[#allocation4 + $0x2] sm:$0x1]  ;;  %v6329_v3 = vld [vmem:[#allocation4 + $0x3] sm:$0x1]  ;;  %v6566_v52 = vld [vmem:[#allocation4 + $0x6] sm:$0x1]  ;;  %7446 = vmatpush.bf16.msrb.mxu1 %v11783_v23 }
 0x7ac   : > { %6285 = vst [vmem:[#allocation4 + $0x8] sm:$0xff] %v6268_v13  ;;  %v6567_v17 = vld [vmem:[#allocation4 + $0x7] sm:$0x1]  ;;  %v6330_v0 = vmax.f32 %v6328_v9, %v6329_v3  ;;  %v6076_v31 = vadd.f32 %v6021_v57, %v5881_v33  ;;  %v6301_v62 = vld [vmem:[#allocation4] sm:$0x1]  ;;  %v5883_v9 = vadd.f32 %v12885_v7, %v13493_v50  ;;  %v11704_v3 = vld [vmem:[%s14326_s5 + $0xa0] sm:$0xff] }
 0x7ad   : > { %v6568_v30 = vmax.f32 %v6566_v52, %v6567_v17  ;;  %v6302_v13 = vld [vmem:[#allocation4 + $0x1] sm:$0x1]  ;;  %7532 = vmatpush.bf16.msrb.mxu2 %v11794_v11  ;;  %v11790_v7 = vld [vmem:[%s14326_s5 + $0x350] sm:$0xff]  ;;  %v6477_v23 = vld [vmem:[#allocation4 + $0x4] sm:$0x1] }
 0x7ae   : > { %v6303_v43 = vmax.f32 %v6301_v62, %v6302_v13 }
 0x7af   : > { %7447 = vmatpush.bf16.msrb.mxu1 %v11782_v38 }
 0x7b1   : > { %v6211_v48 = vpop.f32.mrf.mxu2  ;;  %7533 = vmatpush.bf16.msrb.mxu2 %v11793_v24 }
 0x7b2   : > { %v6269_v47 = vadd.f32 %v6211_v48, %v6074_v6  ;;  %v11780_v6 = vld [vmem:[%s14326_s5 + $0x300] sm:$0xff]  ;;  %v11706_v48 = vld [vmem:[%s14326_s5 + $0xb0] sm:$0xff] }
 0x7b3   : > { %v13669_v37 = vpop.f32.mrf.mxu1  ;;  %v6304_v59 = vld [vmem:[#allocation4 + $0xe] sm:$0x1]  ;;  %v6305_v36 = vld [vmem:[#allocation4 + $0xf] sm:$0x1]  ;;  %7448 = vmatpush.bf16.msrb.mxu1 %v11781_v29 }
 0x7b4   : > { %6286 = vst [vmem:[#allocation4 + $0x10] sm:$0xff] %v6269_v47  ;;  %v6306_v28 = vmax.f32 %v6304_v59, %v6305_v36  ;;  %v6077_v56 = vadd.f32 %v13669_v37, %v5882_v42  ;;  %v11705_v37 = vld [vmem:[%s14326_s5 + $0xa8] sm:$0xff] }
 0x7b5   : > { %7534 = vmatpush.bf16.msrb.mxu2 %v11792_v19 }
 0x7b6   : > { %v6307_v47 = vmax.f32 %v6303_v43, %v6306_v28  ;;  %v11701_v28 = vld [vmem:[%s14326_s5 + $0x88] sm:$0xff] }
 0x7b7   : > { %7449 = vmatpush.bf16.msrb.mxu1 %v11780_v6 }
 0x7b9   : > { %v6213_v60 = vpop.f32.mrf.mxu2 }
 0x7ba   : > { %v6270_v55 = vadd.f32 %v6213_v60, %v6075_v21  ;;  %v6309_v21 = vadd.f32 %v13703_v41, %v6307_v47  ;;  %v11791_v60 = vld [vmem:[%s14326_s5 + $0x358] sm:$0xff]  ;;  %v11741_v47 = vld [vmem:[%s14326_s5 + $0x1c8] sm:$0xff] }
 0x7bb   : > { %v13684_v63 = vpop.f32.mrf.mxu1  ;;  %v6331_v45 = vld [vmem:[#allocation4 + $0x10] sm:$0x1]  ;;  %v6332_v49 = vld [vmem:[#allocation4 + $0x11] sm:$0x1]  ;;  %v6569_v8 = vld [vmem:[#allocation4 + $0x14] sm:$0x1]  ;;  %7535 = vmatpush.bf16.msrb.mxu2 %v11791_v60 }
 0x7bc   : > { %6287 = vst [vmem:[#allocation4 + $0x18] sm:$0xff] %v6270_v55  ;;  %v6333_v20 = vmax.f32 %v6331_v45, %v6332_v49  ;;  %v6570_v5 = vld [vmem:[#allocation4 + $0x15] sm:$0x1]  ;;  %v11744_v55 = vld [vmem:[%s14326_s5 + $0x1e0] sm:$0xff]  ;;  %v6078_v52 = vadd.f32 %v13684_v63, %v5883_v9  ;;  %v6310_v17 = vmax.f32 %v6309_v21, 0.0  ;;  %v14371_v21 = vld [vmem:[#allocation9_spill] sm:$0xff] }
 0x7bd   : > { %v6571_v34 = vmax.f32 %v6569_v8, %v6570_v5  ;;  %v6480_v45 = vld [vmem:[#allocation4 + $0x12] sm:$0x1]  ;;  %v6481_v49 = vld [vmem:[#allocation4 + $0x13] sm:$0x1]  ;;  %v6478_v63 = vld [vmem:[#allocation4 + $0x5] sm:$0x1]  ;;  %v5885_v60 = vadd.f32 %v14371_v21, %v13499_v15 }
 0x7be   : > { %v6334_v27 = vmax.f32 %v6330_v0, %v6333_v20  ;;  %v5689_v20 = vadd.f32 %v13495_v51, %v13497_v26  ;;  %v6482_v33 = vmax.f32 %v6480_v45, %v6481_v49  ;;  %v11743_v51 = vld [vmem:[%s14326_s5 + $0x1d8] sm:$0xff]  ;;  %v11740_v45 = vld [vmem:[%s14326_s5 + $0x1c0] sm:$0xff] }
 0x7bf   : > { %v6572_v16 = vmax.f32 %v6568_v30, %v6571_v34  ;;  %v11703_v30 = vld [vmem:[%s14326_s5 + $0x98] sm:$0xff]  ;;  %7536 = vmatpush.bf16.msrb.mxu2 %v11790_v7 }
 0x7c0   : > { %v6335_v1 = vadd.f32 %v6334_v27, %v13703_v41  ;;  %v6311_v27 = vpack.c.bf16 %v6310_v17, %v6310_v17  ;;  %v11723_v15 = vld [vmem:[%s14326_s5 + $0x138] sm:$0xff] }
 0x7c1   : > { %v6216_v46 = vpop.f32.mrf.mxu2  ;;  %v6573_v22 = vadd.f32 %v6572_v16, %v13703_v41  ;;  %v11789_v16 = vld [vmem:[%s14326_s5 + $0x348] sm:$0xff] }
 0x7c2   : > { %v6271_v39 = vadd.f32 %v6216_v46, %v6076_v31  ;;  %v6336_v18 = vmax.f32 %v6335_v1, 0.0  ;;  %v6479_v31 = vmax.f32 %v6477_v23, %v6478_v63  ;;  %v5884_v1 = vadd.f32 %v12893_v44, %v5689_v20  ;;  %v11702_v46 = vld [vmem:[%s14326_s5 + $0x90] sm:$0xff] }
 0x7c3   : > { %v13712_v40 = vpop.f32.mrf.mxu1  ;;  %v6574_v10 = vmax.f32 %v6573_v22, 0.0  ;;  %v6744_v8 = vld [vmem:[#allocation4 + $0x1c] sm:$0x1]  ;;  %v6745_v0 = vld [vmem:[#allocation4 + $0x1d] sm:$0x1]  ;;  %v11742_v22 = vld [vmem:[%s14326_s5 + $0x1d0] sm:$0xff]  ;;  %7537 = vmatpush.bf16.msrb.mxu2 %v11789_v16 }
 0x7c4   : > { %6288 = vst [vmem:[#allocation4 + $0x20] sm:$0xff] %v6271_v39  ;;  %v6337_v57 = vpack.c.bf16 %v6336_v18, %v6336_v18  ;;  %v6746_v26 = vmax.f32 %v6744_v8, %v6745_v0  ;;  %v6483_v59 = vmax.f32 %v6479_v31, %v6482_v33  ;;  %v6079_v35 = vadd.f32 %v13712_v40, %v5884_v1  ;;  %v11779_v0 = vld [vmem:[%s14326_s5 + $0x2f8] sm:$0xff]  ;;  %v5869_v63 = vld [vmem:[#allocation4 + $0x48] sm:$0xff] }
 0x7c5   : > { %v6575_v4 = vpack.c.bf16 %v6574_v10, %v6574_v10  ;;  %v11778_v16 = vld [vmem:[%s14326_s5 + $0x2f0] sm:$0xff]  ;;  %v14372_v31 = vld [vmem:[#allocation14_spill] sm:$0xff] }
 0x7c6   : > { %6411 = vmatmul.bf16.vlgmr.msrb.gmra.mxu3 %v6337_v57  ;;  %v6484_v42 = vadd.f32 %v6483_v59, %v13703_v41  ;;  %v5886_v1 = vadd.f32 %v5869_v63, %v14372_v31 }
 0x7c7   : > { %6552 = vmatpush.bf16.msrb.mxu3 %v11707_v25  ;;  %6649 = vmatmul.bf16.vlgmr.msrb.gmra.mxu0 %v6575_v4  ;;  %v11788_v25 = vld [vmem:[%s14326_s5 + $0x340] sm:$0xff] }
 0x7c8   : > { %6997 = vmatpush.bf16.msrb.mxu0 %v11747_v32  ;;  %7538 = vmatpush.bf16.msrb.mxu2 %v11788_v25  ;;  %v6485_v49 = vmax.f32 %v6484_v42, 0.0  ;;  %v11817_v25 = vld [vmem:[%s14326_s5 + $0x428] sm:$0xff]  ;;  %v11719_v42 = vld [vmem:[%s14326_s5 + $0x118] sm:$0xff] }
 0x7c9   : > { %v6218_v61 = vpop.f32.mrf.mxu2 }
 0x7ca   : > { %v6272_v12 = vadd.f32 %v6218_v61, %v6077_v56 }
 0x7cb   : > { %v13740_v54 = vpop.f32.mrf.mxu1  ;;  %6553 = vmatpush.bf16.msrb.mxu3 %v11706_v48  ;;  %v7011_v36 = vld [vmem:[#allocation4 + $0x22] sm:$0x1]  ;;  %v7012_v18 = vld [vmem:[#allocation4 + $0x23] sm:$0x1]  ;;  %v7100_v44 = vld [vmem:[#allocation4 + $0x24] sm:$0x1] }
 0x7cc   : > { %6289 = vst [vmem:[#allocation4 + $0x28] sm:$0xff] %v6272_v12  ;;  %6998 = vmatpush.bf16.msrb.mxu0 %v11746_v2  ;;  %v7101_v62 = vld [vmem:[#allocation4 + $0x25] sm:$0x1]  ;;  %v6922_v4 = vld [vmem:[#allocation4 + $0x20] sm:$0x1]  ;;  %v7013_v43 = vmax.f32 %v7011_v36, %v7012_v18  ;;  %v6080_v17 = vadd.f32 %v13740_v54, %v5885_v60  ;;  %v11826_v36 = vld [vmem:[%s14326_s5 + $0x470] sm:$0xff] }
 0x7cd   : > { %v6923_v24 = vld [vmem:[#allocation4 + $0x21] sm:$0x1]  ;;  %v11718_v60 = vld [vmem:[%s14326_s5 + $0x110] sm:$0xff] }
 0x7cf   : > { %6554 = vmatpush.bf16.msrb.mxu3 %v11705_v37  ;;  %v7102_v37 = vmax.f32 %v7100_v44, %v7101_v62  ;;  %v11720_v62 = vld [vmem:[%s14326_s5 + $0x120] sm:$0xff] }
 0x7d0   : > { %6999 = vmatpush.bf16.msrb.mxu0 %v11745_v58 }
 0x7d1   : > { %v6221_v50 = vpop.f32.mrf.mxu2 }
 0x7d2   : > { %v6273_v5 = vadd.f32 %v6221_v50, %v6078_v52 }
 0x7d3   : > { %v13766_v14 = vpop.f32.mrf.mxu1  ;;  %6555 = vmatpush.bf16.msrb.mxu3 %v11704_v3  ;;  %v6747_v34 = vld [vmem:[#allocation4 + $0x2a] sm:$0x1]  ;;  %v6748_v53 = vld [vmem:[#allocation4 + $0x2b] sm:$0x1]  ;;  %v6925_v13 = vld [vmem:[#allocation4 + $0x2e] sm:$0x1]  ;;  %v6924_v3 = vmax.f32 %v6922_v4, %v6923_v24 }
 0x7d4   : > { %6290 = vst [vmem:[#allocation4 + $0x30] sm:$0xff] %v6273_v5  ;;  %7000 = vmatpush.bf16.msrb.mxu0 %v11744_v55  ;;  %v6749_v38 = vmax.f32 %v6747_v34, %v6748_v53  ;;  %v6926_v57 = vld [vmem:[#allocation4 + $0x2f] sm:$0x1]  ;;  %v11700_v55 = vld [vmem:[%s14326_s5 + $0x80] sm:$0xff]  ;;  %v11819_v34 = vld [vmem:[%s14326_s5 + $0x438] sm:$0xff]  ;;  %v6486_v53 = vpack.c.bf16 %v6485_v49, %v6485_v49 }
 0x7d5   : > { %v6927_v12 = vmax.f32 %v6925_v13, %v6926_v57  ;;  %v11825_v13 = vld [vmem:[%s14326_s5 + $0x468] sm:$0xff]  ;;  %v11776_v57 = vld [vmem:[%s14326_s5 + $0x2e0] sm:$0xff]  ;;  %v6659_v4 = vld [vmem:[#allocation4 + $0x17] sm:$0x1] }
 0x7d6   : > { %6472 = vmatmul.bf16.vlgmr.msra.gmra.mxu3 %v6311_v27  ;;  %v6750_v11 = vmax.f32 %v6746_v26, %v6749_v38  ;;  %v11722_v27 = vld [vmem:[%s14326_s5 + $0x130] sm:$0xff]  ;;  %v11827_v26 = vld [vmem:[%s14326_s5 + $0x478] sm:$0xff]  ;;  %v11816_v24 = vld [vmem:[%s14326_s5 + $0x420] sm:$0xff] }
 0x7d7   : > { %6556 = vmatpush.bf16.msrb.mxu3 %v11703_v30  ;;  %v6928_v50 = vmax.f32 %v6924_v3, %v6927_v12 }
 0x7d8   : > { %7001 = vmatpush.bf16.msrb.mxu0 %v11743_v51  ;;  %v6751_v39 = vadd.f32 %v6750_v11, %v13703_v41  ;;  %v11818_v11 = vld [vmem:[%s14326_s5 + $0x430] sm:$0xff] }
 0x7d9   : > { %v6223_v10 = vpop.f32.mrf.mxu2  ;;  %v6929_v51 = vadd.f32 %v6928_v50, %v13703_v41 }
 0x7da   : > { %v6274_v32 = vadd.f32 %v6223_v10, %v6079_v35  ;;  %v6752_v40 = vmax.f32 %v6751_v39, 0.0  ;;  %v11777_v39 = vld [vmem:[%s14326_s5 + $0x2e8] sm:$0xff] }
 0x7db   : > { %v13792_v29 = vpop.f32.mrf.mxu1  ;;  %6557 = vmatpush.bf16.msrb.mxu3 %v11702_v46  ;;  %v7014_v6 = vld [vmem:[#allocation4 + $0x30] sm:$0x1]  ;;  %v7015_v48 = vld [vmem:[#allocation4 + $0x31] sm:$0x1]  ;;  %v7103_v56 = vld [vmem:[#allocation4 + $0x32] sm:$0x1]  ;;  %v6081_v46 = vadd.f32 %v13766_v14, %v5886_v1 }
 0x7dc   : > { %6291 = vst [vmem:[#allocation4 + $0x38] sm:$0xff] %v6274_v32  ;;  %7002 = vmatpush.bf16.msrb.mxu0 %v11742_v22  ;;  %v6753_v2 = vpack.c.bf16 %v6752_v40, %v6752_v40  ;;  %v7016_v19 = vmax.f32 %v7014_v6, %v7015_v48  ;;  %v7104_v61 = vld [vmem:[#allocation4 + $0x33] sm:$0x1]  ;;  %v11721_v22 = vld [vmem:[%s14326_s5 + $0x128] sm:$0xff]  ;;  %v6930_v59 = vmax.f32 %v6929_v51, 0.0 }
 0x7dd   : > { %v7105_v58 = vmax.f32 %v7103_v56, %v7104_v61  ;;  %v5870_v14 = vld [vmem:[#allocation4 + $0x50] sm:$0xff]  ;;  %v6655_v48 = vld [vmem:[#allocation4 + $0x8] sm:$0x1]  ;;  %v6656_v56 = vld [vmem:[#allocation4 + $0x9] sm:$0x1] }
 0x7de   : > { %6827 = vmatmul.bf16.vlgmr.msra.gmra.mxu0 %v6753_v2  ;;  %v7017_v9 = vmax.f32 %v7013_v43, %v7016_v19  ;;  %v6931_v10 = vpack.c.bf16 %v6930_v59, %v6930_v59  ;;  %v14373_v32 = vld [vmem:[#allocation10_spill] sm:$0xff]  ;;  %v6657_v49 = vmax.f32 %v6655_v48, %v6656_v56  ;;  %v11717_v1 = vld [vmem:[%s14326_s5 + $0x108] sm:$0xff] }
 0x7df   : > { %6558 = vmatpush.bf16.msrb.mxu3 %v11701_v28  ;;  %v7106_v52 = vmax.f32 %v7102_v37, %v7105_v58  ;;  %v5887_v28 = vadd.f32 %v5870_v14, %v14373_v32  ;;  %v6658_v40 = vld [vmem:[#allocation4 + $0x16] sm:$0x1]  ;;  %v11824_v2 = vld [vmem:[%s14326_s5 + $0x460] sm:$0xff] }
 0x7e0   : > { %7003 = vmatpush.bf16.msrb.mxu0 %v11741_v47  ;;  %v7018_v7 = vadd.f32 %v7017_v9, %v13703_v41  ;;  %v11775_v43 = vld [vmem:[%s14326_s5 + $0x2d8] sm:$0xff]  ;;  %v5871_v47 = vld [vmem:[#allocation4 + $0x58] sm:$0xff]  ;;  %v6660_v21 = vmax.f32 %v6658_v40, %v6659_v4 }
 0x7e1   : > { %v6226_v8 = vpop.f32.mrf.mxu2  ;;  %v7107_v54 = vadd.f32 %v7106_v52, %v13703_v41  ;;  %v6082_v6 = vadd.f32 %v13792_v29, %v5887_v28  ;;  %v11815_v61 = vld [vmem:[%s14326_s5 + $0x418] sm:$0xff]  ;;  %v11716_v32 = vld [vmem:[%s14326_s5 + $0x100] sm:$0xff]  ;;  %v11821_v28 = vld [vmem:[%s14326_s5 + $0x448] sm:$0xff] }
 0x7e2   : > { %v6275_v20 = vadd.f32 %v6226_v8, %v6080_v17  ;;  %v7019_v5 = vmax.f32 %v7018_v7, 0.0  ;;  %v11772_v4 = vld [vmem:[%s14326_s5 + $0x2c0] sm:$0xff]  ;;  %v11811_v48 = vld [vmem:[%s14326_s5 + $0x3f8] sm:$0xff] }
 0x7e3   : > { %v13815_v23 = vpop.f32.mrf.mxu1  ;;  %6559 = vmatpush.bf16.msrb.mxu3 %v11700_v55  ;;  %v7108_v30 = vmax.f32 %v7107_v54, 0.0  ;;  %v7367_v12 = vld [vmem:[#allocation4 + $0x3c] sm:$0x1]  ;;  %v7368_v37 = vld [vmem:[#allocation4 + $0x3d] sm:$0x1]  ;;  %v11823_v54 = vld [vmem:[%s14326_s5 + $0x458] sm:$0xff] }
 0x7e4   : > { %6292 = vst [vmem:[#allocation4 + $0x40] sm:$0xff] %v6275_v20  ;;  %7004 = vmatpush.bf16.msrb.mxu0 %v11740_v45  ;;  %v7020_v33 = vpack.c.bf16 %v7019_v5, %v7019_v5  ;;  %v7456_v58 = vld [vmem:[#allocation4 + $0x3e] sm:$0x1]  ;;  %v7457_v3 = vld [vmem:[#allocation4 + $0x3f] sm:$0x1]  ;;  %v7369_v7 = vmax.f32 %v7367_v12, %v7368_v37  ;;  %v11774_v20 = vld [vmem:[%s14326_s5 + $0x2d0] sm:$0xff] }
 0x7e5   : > { %v7109_v38 = vpack.c.bf16 %v7108_v30, %v7108_v30  ;;  %v7278_v55 = vld [vmem:[#allocation4 + $0x3a] sm:$0x1]  ;;  %v7279_v52 = vld [vmem:[#allocation4 + $0x3b] sm:$0x1]  ;;  %v7458_v5 = vmax.f32 %v7456_v58, %v7457_v3  ;;  %v6661_v30 = vmax.f32 %v6657_v49, %v6660_v21  ;;  %v11738_v37 = vld [vmem:[%s14326_s5 + $0x1b0] sm:$0xff] }
 0x7e6   : > { %6560 = vmatmul.bf16.vlgmr.msrb.gmra.mxu3 %v6486_v53  ;;  %7094 = vmatmul.bf16.vlgmr.msra.gmra.mxu1 %v7020_v33  ;;  %v14374_v53 = vld [vmem:[#allocation15_spill] sm:$0xff]  ;;  %v7280_v51 = vmax.f32 %v7278_v55, %v7279_v52  ;;  %v11859_v3 = vld [vmem:[%s14326_s5 + $0x578] sm:$0xff]  ;;  %v5873_v55 = vld [vmem:[#allocation4 + $0x68] sm:$0xff] }
 0x7e7   : > { %6730 = vmatpush.bf16.msra.mxu3 %v11723_v15  ;;  %7183 = vmatmul.bf16.vlgmr.msra.gmra.mxu2 %v7109_v38  ;;  %v5888_v33 = vadd.f32 %v5871_v47, %v14374_v53  ;;  %v11814_v38 = vld [vmem:[%s14326_s5 + $0x410] sm:$0xff]  ;;  %v11820_v58 = vld [vmem:[%s14326_s5 + $0x440] sm:$0xff]  ;;  %v11809_v49 = vld [vmem:[%s14326_s5 + $0x3e8] sm:$0xff] }
 0x7e8   : > { %7353 = vmatpush.bf16.msra.mxu0 %v11779_v0  ;;  %7798 = vmatpush.bf16.msra.mxu1 %v11819_v34  ;;  %v11850_v52 = vld [vmem:[%s14326_s5 + $0x530] sm:$0xff] }
 0x7e9   : > { %7887 = vmatpush.bf16.msra.mxu2 %v11827_v26  ;;  %v6228_v35 = vpop.f32.mrf.mxu2  ;;  %v6083_v31 = vadd.f32 %v13815_v23, %v5888_v33 }
 0x7ea   : > { %v6276_v18 = vadd.f32 %v6228_v35, %v6081_v46  ;;  %v6662_v35 = vadd.f32 %v6661_v30, %v13703_v41 }
 0x7eb   : > { %6731 = vmatpush.bf16.msra.mxu3 %v11722_v27  ;;  %v13844_v44 = vpop.f32.mrf.mxu1 }
 0x7ec   : > { %7354 = vmatpush.bf16.msra.mxu0 %v11778_v16  ;;  %7799 = vmatpush.bf16.msra.mxu1 %v11818_v11  ;;  %6293 = vst [vmem:[#allocation4 + $0x48] sm:$0xff] %v6276_v18 }
 0x7ed   : > { %7888 = vmatpush.bf16.msra.mxu2 %v11826_v36  ;;  %v11773_v36 = vld [vmem:[%s14326_s5 + $0x2c8] sm:$0xff] }
 0x7ee   : > { %7005 = vmatmul.bf16.vlgmr.msrb.gmra.mxu0 %v6931_v10  ;;  %v5872_v10 = vld [vmem:[#allocation4 + $0x60] sm:$0xff] }
 0x7ef   : > { %6732 = vmatpush.bf16.msra.mxu3 %v11721_v22  ;;  %v11822_v22 = vld [vmem:[%s14326_s5 + $0x450] sm:$0xff] }
 0x7f0   : > { %7355 = vmatpush.bf16.msra.mxu0 %v11777_v39  ;;  %7800 = vmatpush.bf16.msra.mxu1 %v11817_v25 }
 0x7f1   : > { %7889 = vmatpush.bf16.msra.mxu2 %v11825_v13  ;;  %v6231_v19 = vpop.f32.mrf.mxu2  ;;  %v11813_v13 = vld [vmem:[%s14326_s5 + $0x408] sm:$0xff] }
 0x7f2   : > { %v6277_v29 = vadd.f32 %v6231_v19, %v6082_v6  ;;  %v11851_v19 = vld [vmem:[%s14326_s5 + $0x538] sm:$0xff] }
 0x7f3   : > { %6733 = vmatpush.bf16.msra.mxu3 %v11720_v62  ;;  %v13878_v9 = vpop.f32.mrf.mxu1  ;;  %v7370_v17 = vld [vmem:[#allocation4 + $0x4a] sm:$0x1]  ;;  %v7371_v45 = vld [vmem:[#allocation4 + $0x4b] sm:$0x1]  ;;  %v7459_v15 = vld [vmem:[#allocation4 + $0x4c] sm:$0x1] }
 0x7f4   : > { %7356 = vmatpush.bf16.msra.mxu0 %v11776_v57  ;;  %7801 = vmatpush.bf16.msra.mxu1 %v11816_v24  ;;  %6294 = vst [vmem:[#allocation4 + $0x50] sm:$0xff] %v6277_v29  ;;  %v7372_v50 = vmax.f32 %v7370_v17, %v7371_v45  ;;  %v7460_v8 = vld [vmem:[#allocation4 + $0x4d] sm:$0x1]  ;;  %v7281_v0 = vld [vmem:[#allocation4 + $0x48] sm:$0x1]  ;;  %v11739_v24 = vld [vmem:[%s14326_s5 + $0x1b8] sm:$0xff] }
 0x7f5   : > { %7890 = vmatpush.bf16.msra.mxu2 %v11824_v2  ;;  %v7461_v63 = vmax.f32 %v7459_v15, %v7460_v8  ;;  %v7282_v34 = vld [vmem:[#allocation4 + $0x49] sm:$0x1]  ;;  %v11812_v2 = vld [vmem:[%s14326_s5 + $0x400] sm:$0xff]  ;;  %v11737_v17 = vld [vmem:[%s14326_s5 + $0x1a8] sm:$0xff] }
 0x7f6   : > { %v7373_v27 = vmax.f32 %v7369_v7, %v7372_v50  ;;  %v7283_v26 = vmax.f32 %v7281_v0, %v7282_v34  ;;  %v11810_v29 = vld [vmem:[%s14326_s5 + $0x3f0] sm:$0xff]  ;;  %v11849_v8 = vld [vmem:[%s14326_s5 + $0x528] sm:$0xff]  ;;  %v11736_v0 = vld [vmem:[%s14326_s5 + $0x1a0] sm:$0xff] }
 0x7f7   : > { %6734 = vmatpush.bf16.msra.mxu3 %v11719_v42  ;;  %v7462_v16 = vmax.f32 %v7458_v5, %v7461_v63  ;;  %v6663_v42 = vmax.f32 %v6662_v35, 0.0  ;;  %v14376_v45 = vld [vmem:[#allocation16_spill] sm:$0xff]  ;;  %v6836_v34 = vld [vmem:[#allocation4 + $0x2c] sm:$0x1]  ;;  %v11735_v35 = vld [vmem:[%s14326_s5 + $0x198] sm:$0xff] }
 0x7f8   : > { %7357 = vmatpush.bf16.msra.mxu0 %v11775_v43  ;;  %7802 = vmatpush.bf16.msra.mxu1 %v11815_v61  ;;  %v7374_v11 = vadd.f32 %v7373_v27, %v13703_v41  ;;  %v7284_v46 = vmax.f32 %v7280_v51, %v7283_v26  ;;  %v14375_v43 = vld [vmem:[#allocation11_spill] sm:$0xff]  ;;  %v5890_v15 = vadd.f32 %v5873_v55, %v14376_v45  ;;  %v11858_v7 = vld [vmem:[%s14326_s5 + $0x570] sm:$0xff] }
 0x7f9   : > { %7891 = vmatpush.bf16.msra.mxu2 %v11823_v54  ;;  %v6233_v59 = vpop.f32.mrf.mxu2  ;;  %v7463_v23 = vadd.f32 %v7462_v16, %v13703_v41  ;;  %v5889_v6 = vadd.f32 %v5872_v10, %v14375_v43  ;;  %v6664_v12 = vpack.c.bf16 %v6663_v42, %v6663_v42  ;;  %v11808_v54 = vld [vmem:[%s14326_s5 + $0x3e0] sm:$0xff]  ;;  %v11857_v26 = vld [vmem:[%s14326_s5 + $0x568] sm:$0xff] }
 0x7fa   : > { %v6278_v39 = vadd.f32 %v6233_v59, %v6083_v31  ;;  %v7375_v18 = vmax.f32 %v7374_v11, 0.0  ;;  %v7285_v14 = vadd.f32 %v7284_v46, %v13703_v41  ;;  %v6085_v50 = vadd.f32 %v13878_v9, %v5890_v15  ;;  %v6837_v9 = vld [vmem:[#allocation4 + $0x2d] sm:$0x1]  ;;  %v6834_v11 = vld [vmem:[#allocation4 + $0x1f] sm:$0x1]  ;;  %v11733_v15 = vld [vmem:[%s14326_s5 + $0x188] sm:$0xff] }
 0x7fb   : > { %6735 = vmatpush.bf16.msra.mxu3 %v11718_v60  ;;  %v13904_v25 = vpop.f32.mrf.mxu1  ;;  %v7464_v62 = vmax.f32 %v7463_v23, 0.0  ;;  %v6084_v47 = vadd.f32 %v13844_v44, %v5889_v6  ;;  %v7723_v63 = vld [vmem:[#allocation4 + $0x56] sm:$0x1]  ;;  %v7724_v30 = vld [vmem:[#allocation4 + $0x57] sm:$0x1]  ;;  %v11848_v46 = vld [vmem:[%s14326_s5 + $0x520] sm:$0xff] }
 0x7fc   : > { %7358 = vmatpush.bf16.msra.mxu0 %v11774_v20  ;;  %7803 = vmatpush.bf16.msra.mxu1 %v11814_v38  ;;  %6295 = vst [vmem:[#allocation4 + $0x58] sm:$0xff] %v6278_v39  ;;  %v7376_v57 = vpack.c.bf16 %v7375_v18, %v7375_v18  ;;  %v7286_v56 = vmax.f32 %v7285_v14, 0.0  ;;  %v5874_v20 = vld [vmem:[#allocation4 + $0x70] sm:$0xff] }
 0x7fd   : > { %7892 = vmatpush.bf16.msra.mxu2 %v11822_v22  ;;  %v7465_v40 = vpack.c.bf16 %v7464_v62, %v7464_v62  ;;  %v7725_v22 = vmax.f32 %v7723_v63, %v7724_v30  ;;  %v11807_v39 = vld [vmem:[%s14326_s5 + $0x3d8] sm:$0xff]  ;;  %v14377_v62 = vld [vmem:[#allocation12_spill] sm:$0xff]  ;;  %v11732_v30 = vld [vmem:[%s14326_s5 + $0x180] sm:$0xff] }
 0x7fe   : > { %7450 = vmatmul.bf16.vlgmr.msrb.gmra.mxu1 %v7376_v57  ;;  %v7287_v21 = vpack.c.bf16 %v7286_v56, %v7286_v56  ;;  %v11847_v6 = vld [vmem:[%s14326_s5 + $0x518] sm:$0xff] }
 0x7ff   : > { %6736 = vmatpush.bf16.msra.mxu3 %v11717_v1  ;;  %7539 = vmatmul.bf16.vlgmr.msrb.gmra.mxu2 %v7465_v40  ;;  %v6833_v1 = vld [vmem:[#allocation4 + $0x1e] sm:$0x1]  ;;  %v7635_v40 = vld [vmem:[#allocation4 + $0x55] sm:$0x1] }
 0x800   : > { %7359 = vmatpush.bf16.msra.mxu0 %v11773_v36  ;;  %7804 = vmatpush.bf16.msra.mxu1 %v11813_v13  ;;  %v5891_v13 = vadd.f32 %v5874_v20, %v14377_v62  ;;  %v6835_v56 = vmax.f32 %v6833_v1, %v6834_v11  ;;  %v11845_v20 = vld [vmem:[%s14326_s5 + $0x508] sm:$0xff] }
 0x801   : > { %7893 = vmatpush.bf16.msra.mxu2 %v11821_v28  ;;  %v6236_v61 = vpop.f32.mrf.mxu2  ;;  %v7634_v28 = vld [vmem:[#allocation4 + $0x54] sm:$0x1]  ;;  %v11769_v62 = vld [vmem:[%s14326_s5 + $0x2a8] sm:$0xff] }
 0x802   : > { %v6279_v44 = vadd.f32 %v6236_v61, %v6084_v47  ;;  %v6086_v43 = vadd.f32 %v13904_v25, %v5891_v13  ;;  %v11734_v47 = vld [vmem:[%s14326_s5 + $0x190] sm:$0xff]  ;;  %v7636_v61 = vmax.f32 %v7634_v28, %v7635_v40  ;;  %v11841_v13 = vld [vmem:[%s14326_s5 + $0x4e8] sm:$0xff] }
 0x803   : > { %6737 = vmatpush.bf16.msra.mxu3 %v11716_v32  ;;  %v13941_v60 = vpop.f32.mrf.mxu1  ;;  %v7812_v27 = vld [vmem:[#allocation4 + $0x58] sm:$0x1]  ;;  %v7813_v51 = vld [vmem:[#allocation4 + $0x59] sm:$0x1]  ;;  %v6838_v32 = vmax.f32 %v6836_v34, %v6837_v9  ;;  %v11806_v25 = vld [vmem:[%s14326_s5 + $0x3d0] sm:$0xff] }
 0x804   : > { %7360 = vmatpush.bf16.msra.mxu0 %v11772_v4  ;;  %7805 = vmatpush.bf16.msra.mxu1 %v11812_v2  ;;  %6296 = vst [vmem:[#allocation4 + $0x60] sm:$0xff] %v6279_v44  ;;  %v7814_v18 = vmax.f32 %v7812_v27, %v7813_v51  ;;  %v11856_v4 = vld [vmem:[%s14326_s5 + $0x560] sm:$0xff]  ;;  %v11771_v9 = vld [vmem:[%s14326_s5 + $0x2b8] sm:$0xff]  ;;  %v5876_v27 = vld [vmem:[#allocation4 + $0x80] sm:$0xff] }
 0x805   : > { %7894 = vmatpush.bf16.msra.mxu2 %v11820_v58  ;;  %v6839_v44 = vmax.f32 %v6835_v56, %v6838_v32  ;;  %v11843_v51 = vld [vmem:[%s14326_s5 + $0x4f8] sm:$0xff] }
 0x806   : > { %6738 = vmatmul.bf16.vlgmr.msra.gmra.mxu3 %v6664_v12 }
 0x807   : > { %6908 = vmatpush.bf16.msrb.mxu3 %v11739_v24  ;;  %7361 = vmatmul.bf16.vlgmr.msra.gmra.mxu0 %v7287_v21  ;;  %v5875_v21 = vld [vmem:[#allocation4 + $0x78] sm:$0xff] }
 0x808   : > { %7709 = vmatpush.bf16.msrb.mxu0 %v11811_v48  ;;  %8154 = vmatpush.bf16.msrb.mxu1 %v11851_v19 }
 0x809   : > { %8243 = vmatpush.bf16.msrb.mxu2 %v11859_v3  ;;  %v6238_v5 = vpop.f32.mrf.mxu2 }
 0x80a   : > { %v6280_v53 = vadd.f32 %v6238_v5, %v6085_v50  ;;  %v11805_v50 = vld [vmem:[%s14326_s5 + $0x3c8] sm:$0xff]  ;;  %v11854_v5 = vld [vmem:[%s14326_s5 + $0x550] sm:$0xff] }
 0x80b   : > { %6909 = vmatpush.bf16.msrb.mxu3 %v11738_v37  ;;  %v13969_v33 = vpop.f32.mrf.mxu1  ;;  %v7726_v38 = vld [vmem:[#allocation4 + $0x64] sm:$0x1]  ;;  %v7727_v16 = vld [vmem:[#allocation4 + $0x65] sm:$0x1]  ;;  %v7815_v31 = vld [vmem:[#allocation4 + $0x66] sm:$0x1] }
 0x80c   : > { %7710 = vmatpush.bf16.msrb.mxu0 %v11810_v29  ;;  %8155 = vmatpush.bf16.msrb.mxu1 %v11850_v52  ;;  %6297 = vst [vmem:[#allocation4 + $0x68] sm:$0xff] %v6280_v53  ;;  %v7728_v59 = vmax.f32 %v7726_v38, %v7727_v16  ;;  %v7816_v36 = vld [vmem:[#allocation4 + $0x67] sm:$0x1]  ;;  %v7637_v23 = vld [vmem:[#allocation4 + $0x62] sm:$0x1]  ;;  %v11846_v52 = vld [vmem:[%s14326_s5 + $0x510] sm:$0xff] }
 0x80d   : > { %8244 = vmatpush.bf16.msrb.mxu2 %v11858_v7  ;;  %v7817_v14 = vmax.f32 %v7815_v31, %v7816_v36  ;;  %v7638_v10 = vld [vmem:[#allocation4 + $0x63] sm:$0x1]  ;;  %v11844_v38 = vld [vmem:[%s14326_s5 + $0x500] sm:$0xff]  ;;  %v11883_v16 = vld [vmem:[%s14326_s5 + $0x638] sm:$0xff] }
 0x80e   : > { %v7729_v57 = vmax.f32 %v7725_v22, %v7728_v59  ;;  %v7639_v42 = vmax.f32 %v7637_v23, %v7638_v10  ;;  %v14379_v31 = vld [vmem:[#allocation13_spill] sm:$0xff]  ;;  %v11853_v22 = vld [vmem:[%s14326_s5 + $0x548] sm:$0xff] }
 0x80f   : > { %6910 = vmatpush.bf16.msrb.mxu3 %v11737_v17  ;;  %v7818_v24 = vmax.f32 %v7814_v18, %v7817_v14  ;;  %v11855_v17 = vld [vmem:[%s14326_s5 + $0x558] sm:$0xff]  ;;  %v5893_v1 = vadd.f32 %v5876_v27, %v14379_v31  ;;  %v11842_v36 = vld [vmem:[%s14326_s5 + $0x4f0] sm:$0xff]  ;;  %v11765_v31 = vld [vmem:[%s14326_s5 + $0x288] sm:$0xff] }
 0x810   : > { %7711 = vmatpush.bf16.msrb.mxu0 %v11809_v49  ;;  %8156 = vmatpush.bf16.msrb.mxu1 %v11849_v8  ;;  %v7730_v48 = vadd.f32 %v7729_v57, %v13703_v41  ;;  %v7640_v3 = vmax.f32 %v7636_v61, %v7639_v42  ;;  %v14378_v49 = vld [vmem:[#allocation17_spill] sm:$0xff]  ;;  %v6840_v8 = vadd.f32 %v6839_v44, %v13703_v41  ;;  %v7192_v61 = vld [vmem:[#allocation4 + $0x46] sm:$0x1] }
 0x811   : > { %8245 = vmatpush.bf16.msrb.mxu2 %v11857_v26  ;;  %v6241_v2 = vpop.f32.mrf.mxu2  ;;  %v7819_v19 = vadd.f32 %v7818_v24, %v13703_v41  ;;  %v5892_v7 = vadd.f32 %v5875_v21, %v14378_v49  ;;  %v6088_v23 = vadd.f32 %v13969_v33, %v5893_v1  ;;  %v11852_v33 = vld [vmem:[%s14326_s5 + $0x540] sm:$0xff]  ;;  %v11839_v21 = vld [vmem:[%s14326_s5 + $0x4d8] sm:$0xff] }
 0x812   : > { %v6281_v12 = vadd.f32 %v6241_v2, %v6086_v43  ;;  %v7731_v37 = vmax.f32 %v7730_v48, 0.0  ;;  %v6841_v53 = vmax.f32 %v6840_v8, 0.0  ;;  %v11768_v24 = vld [vmem:[%s14326_s5 + $0x2a0] sm:$0xff]  ;;  %v11767_v48 = vld [vmem:[%s14326_s5 + $0x298] sm:$0xff] }
 0x813   : > { %6911 = vmatpush.bf16.msrb.mxu3 %v11736_v0  ;;  %v6053_v58 = vpop.f32.mrf.mxu1  ;;  %v7820_v29 = vmax.f32 %v7819_v19, 0.0  ;;  %v7641_v0 = vadd.f32 %v7640_v3, %v13703_v41  ;;  %v11840_v43 = vld [vmem:[%s14326_s5 + $0x4e0] sm:$0xff]  ;;  %v7994_v44 = vld [vmem:[#allocation4 + $0x6b] sm:$0x1] }
 0x814   : > { %7712 = vmatpush.bf16.msrb.mxu0 %v11808_v54  ;;  %8157 = vmatpush.bf16.msrb.mxu1 %v11848_v46  ;;  %6298 = vst [vmem:[#allocation4 + $0x70] sm:$0xff] %v6281_v12  ;;  %v7732_v55 = vpack.c.bf16 %v7731_v37, %v7731_v37  ;;  %v6087_v54 = vadd.f32 %v13941_v60, %v5892_v7  ;;  %v11804_v60 = vld [vmem:[%s14326_s5 + $0x3c0] sm:$0xff]  ;;  %v11770_v46 = vld [vmem:[%s14326_s5 + $0x2b0] sm:$0xff]  ;;  %v7193_v12 = vld [vmem:[#allocation4 + $0x47] sm:$0x1] }
 0x815   : > { %8246 = vmatpush.bf16.msrb.mxu2 %v11856_v4  ;;  %v7821_v45 = vpack.c.bf16 %v7820_v29, %v7820_v29  ;;  %v7642_v26 = vmax.f32 %v7641_v0, 0.0  ;;  %v6842_v11 = vpack.c.bf16 %v6841_v53, %v6841_v53  ;;  %v11881_v4 = vld [vmem:[%s14326_s5 + $0x628] sm:$0xff]  ;;  %v7190_v19 = vld [vmem:[#allocation4 + $0x39] sm:$0x1]  ;;  %v7993_v58 = vld [vmem:[#allocation4 + $0x6a] sm:$0x1] }
 0x816   : > { %7806 = vmatmul.bf16.vlgmr.msra.gmra.mxu1 %v7732_v55  ;;  %v7990_v3 = vld [vmem:[#allocation4 + $0x5c] sm:$0x1]  ;;  %v7991_v55 = vld [vmem:[#allocation4 + $0x5d] sm:$0x1]  ;;  %v7995_v8 = vmax.f32 %v7993_v58, %v7994_v44  ;;  %v11838_v53 = vld [vmem:[%s14326_s5 + $0x4d0] sm:$0xff] }
 0x817   : > { %6912 = vmatpush.bf16.msrb.mxu3 %v11735_v35  ;;  %7895 = vmatmul.bf16.vlgmr.msra.gmra.mxu2 %v7821_v45  ;;  %v7643_v59 = vpack.c.bf16 %v7642_v26, %v7642_v26  ;;  %v7194_v45 = vmax.f32 %v7192_v61, %v7193_v12  ;;  %v11799_v12 = vld [vmem:[%s14326_s5 + $0x398] sm:$0xff] }
 0x818   : > { %7713 = vmatpush.bf16.msrb.mxu0 %v11807_v39  ;;  %8158 = vmatpush.bf16.msrb.mxu1 %v11847_v6  ;;  %v11882_v39 = vld [vmem:[%s14326_s5 + $0x630] sm:$0xff]  ;;  %v11880_v6 = vld [vmem:[%s14326_s5 + $0x620] sm:$0xff]  ;;  %v11871_v58 = vld [vmem:[%s14326_s5 + $0x5d8] sm:$0xff] }
 0x819   : > { %8247 = vmatpush.bf16.msrb.mxu2 %v11855_v17  ;;  %v6243_v63 = vpop.f32.mrf.mxu2 }
 0x81a   : > { %v6282_v34 = vadd.f32 %v6243_v63, %v6087_v54  ;;  %v11879_v54 = vld [vmem:[%s14326_s5 + $0x618] sm:$0xff] }
 0x81b   : > { %6913 = vmatpush.bf16.msrb.mxu3 %v11734_v47  ;;  %v8079_v18 = vld [vmem:[#allocation4 + $0x70] sm:$0x1]  ;;  %v8080_v14 = vld [vmem:[#allocation4 + $0x71] sm:$0x1]  ;;  %v8168_v2 = vld [vmem:[#allocation4 + $0x72] sm:$0x1] }
 0x81c   : > { %7714 = vmatpush.bf16.msrb.mxu0 %v11806_v25  ;;  %8159 = vmatpush.bf16.msrb.mxu1 %v11846_v52  ;;  %6299 = vst [vmem:[#allocation4 + $0x78] sm:$0xff] %v6282_v34  ;;  %v8081_v28 = vmax.f32 %v8079_v18, %v8080_v14  ;;  %v7189_v47 = vld [vmem:[#allocation4 + $0x38] sm:$0x1]  ;;  %v8169_v37 = vld [vmem:[#allocation4 + $0x73] sm:$0x1] }
 0x81d   : > { %8248 = vmatpush.bf16.msrb.mxu2 %v11854_v5  ;;  %v8170_v7 = vmax.f32 %v8168_v2, %v8169_v37  ;;  %v11803_v14 = vld [vmem:[%s14326_s5 + $0x3b8] sm:$0xff]  ;;  %v7548_v2 = vld [vmem:[#allocation4 + $0x4e] sm:$0x1]  ;;  %v7546_v37 = vld [vmem:[#allocation4 + $0x41] sm:$0x1] }
 0x81f   : > { %6914 = vmatpush.bf16.msrb.mxu3 %v11733_v15 }
 0x820   : > { %7715 = vmatpush.bf16.msrb.mxu0 %v11805_v50  ;;  %8160 = vmatpush.bf16.msrb.mxu1 %v11845_v20  ;;  %v7191_v20 = vmax.f32 %v7189_v47, %v7190_v19  ;;  %v7549_v47 = vld [vmem:[#allocation4 + $0x4f] sm:$0x1] }
 0x821   : > { %v6246_v35 = vpop.f32.mrf.mxu2  ;;  %8249 = vmatpush.bf16.msrb.mxu2 %v11853_v22  ;;  %v7550_v44 = vmax.f32 %v7548_v2, %v7549_v47 }
 0x822   : > { %v6283_v10 = vadd.f32 %v6246_v35, %v6088_v23  ;;  %v7195_v27 = vmax.f32 %v7191_v20, %v7194_v45  ;;  %v11877_v23 = vld [vmem:[%s14326_s5 + $0x608] sm:$0xff]  ;;  %v11764_v35 = vld [vmem:[%s14326_s5 + $0x280] sm:$0xff] }
 0x823   : > { %6915 = vmatpush.bf16.msrb.mxu3 %v11732_v30  ;;  %v8082_v57 = vld [vmem:[#allocation4 + $0x7e] sm:$0x1]  ;;  %v8083_v32 = vld [vmem:[#allocation4 + $0x7f] sm:$0x1]  ;;  %v8435_v5 = vld [vmem:[#allocation4 + $0x78] sm:$0x1] }
 0x824   : > { %7716 = vmatpush.bf16.msrb.mxu0 %v11804_v60  ;;  %8161 = vmatpush.bf16.msrb.mxu1 %v11844_v38  ;;  %6300 = vst [vmem:[#allocation4 + $0x80] sm:$0xff] %v6283_v10  ;;  %v8084_v40 = vmax.f32 %v8082_v57, %v8083_v32  ;;  %v8436_v63 = vld [vmem:[#allocation4 + $0x79] sm:$0x1]  ;;  %v11766_v30 = vld [vmem:[%s14326_s5 + $0x290] sm:$0xff]  ;;  %v7992_v60 = vmax.f32 %v7990_v3, %v7991_v55 }
 0x825   : > { %8250 = vmatpush.bf16.msrb.mxu2 %v11852_v33  ;;  %v8437_v38 = vmax.f32 %v8435_v5, %v8436_v63  ;;  %v7196_v22 = vadd.f32 %v7195_v27, %v13703_v41  ;;  %v11796_v63 = vld [vmem:[%s14326_s5 + $0x380] sm:$0xff]  ;;  %v11834_v27 = vld [vmem:[%s14326_s5 + $0x4b0] sm:$0xff] }
 0x826   : > { %6916 = vmatmul.bf16.vlgmr.msrb.gmra.mxu3 %v6842_v11  ;;  %v8085_v42 = vmax.f32 %v8081_v28, %v8084_v40  ;;  %v7996_v26 = vmax.f32 %v7992_v60, %v7995_v8  ;;  %v11802_v28 = vld [vmem:[%s14326_s5 + $0x3b0] sm:$0xff]  ;;  %v11797_v8 = vld [vmem:[%s14326_s5 + $0x388] sm:$0xff] }
 0x827   : > { %7264 = vmatpush.bf16.msra.mxu3 %v11771_v9  ;;  %7717 = vmatmul.bf16.vlgmr.msrb.gmra.mxu0 %v7643_v59  ;;  %v7197_v10 = vmax.f32 %v7196_v22, 0.0  ;;  %v7905_v22 = vld [vmem:[#allocation4 + $0x69] sm:$0x1] }
 0x828   : > { %8065 = vmatpush.bf16.msra.mxu0 %v11843_v51  ;;  %8510 = vmatpush.bf16.msra.mxu1 %v11883_v16  ;;  %v8086_v56 = vadd.f32 %v8085_v42, %v13703_v41  ;;  %v11878_v16 = vld [vmem:[%s14326_s5 + $0x610] sm:$0xff]  ;;  %v11801_v42 = vld [vmem:[%s14326_s5 + $0x3a8] sm:$0xff] }
 0x829   : > { %v6248_v25 = vpop.f32.mrf.mxu2  ;;  %v7198_v32 = vpack.c.bf16 %v7197_v10, %v7197_v10  ;;  %v11830_v10 = vld [vmem:[%s14326_s5 + $0x490] sm:$0xff] }
 0x82a   : > { %v8087_v29 = vmax.f32 %v8086_v56, 0.0  ;;  %v11872_v56 = vld [vmem:[%s14326_s5 + $0x5e0] sm:$0xff]  ;;  %v7545_v25 = vld [vmem:[#allocation4 + $0x40] sm:$0x1] }
 0x82b   : > { %7265 = vmatpush.bf16.msra.mxu3 %v11770_v46  ;;  %v8171_v52 = vld [vmem:[#allocation4 + $0x80] sm:$0x1]  ;;  %v8172_v17 = vld [vmem:[#allocation4 + $0x81] sm:$0x1]  ;;  %v8438_v15 = vld [vmem:[#allocation4 + $0x86] sm:$0x1] }
 0x82c   : > { %8066 = vmatpush.bf16.msra.mxu0 %v11842_v36  ;;  %8511 = vmatpush.bf16.msra.mxu1 %v11882_v39  ;;  %v8088_v49 = vpack.c.bf16 %v8087_v29, %v8087_v29  ;;  %v8173_v50 = vmax.f32 %v8171_v52, %v8172_v17  ;;  %v8439_v0 = vld [vmem:[#allocation4 + $0x87] sm:$0x1]  ;;  %v7997_v36 = vadd.f32 %v7996_v26, %v13703_v41  ;;  %v14111_v39 = vld [vmem:[%s14325_s4] sm:$0x1]  ;;  %v8349_v19 = vld [vmem:[#allocation4 + $0x84] sm:$0x1] }
 0x82d   : > { %v8440_v9 = vmax.f32 %v8438_v15, %v8439_v0  ;;  %v11837_v46 = vld [vmem:[%s14326_s5 + $0x4c8] sm:$0xff]  ;;  %v8347_v29 = vld [vmem:[#allocation4 + $0x77] sm:$0x1]  ;;  %v7547_v52 = vmax.f32 %v7545_v25, %v7546_v37  ;;  %v11798_v17 = vld [vmem:[%s14326_s5 + $0x390] sm:$0xff] }
 0x82e   : > { %8162 = vmatmul.bf16.vlgmr.msrb.gmra.mxu1 %v8088_v49  ;;  %v8174_v34 = vmax.f32 %v8170_v7, %v8173_v50  ;;  %v7998_v33 = vmax.f32 %v7997_v36, 0.0  ;;  %v8350_v61 = vld [vmem:[#allocation4 + $0x85] sm:$0x1]  ;;  %v11870_v49 = vld [vmem:[%s14326_s5 + $0x5d0] sm:$0xff]  ;;  %v11864_v25 = vld [vmem:[%s14326_s5 + $0x5a0] sm:$0xff] }
 0x82f   : > { %7266 = vmatpush.bf16.msra.mxu3 %v11769_v62  ;;  %v8441_v11 = vmax.f32 %v8437_v38, %v8440_v9  ;;  %v11875_v62 = vld [vmem:[%s14326_s5 + $0x5f8] sm:$0xff]  ;;  %v8351_v55 = vmax.f32 %v8349_v19, %v8350_v61  ;;  %v7551_v7 = vmax.f32 %v7547_v52, %v7550_v44  ;;  %v11869_v0 = vld [vmem:[%s14326_s5 + $0x5c8] sm:$0xff] }
 0x830   : > { %8067 = vmatpush.bf16.msra.mxu0 %v11841_v13  ;;  %8512 = vmatpush.bf16.msra.mxu1 %v11881_v4  ;;  %v8175_v51 = vadd.f32 %v8174_v34, %v13703_v41  ;;  %v11836_v41 = vld [vmem:[%s14326_s5 + $0x4c0] sm:$0xff]  ;;  %v7999_v40 = vpack.c.bf16 %v7998_v33, %v7998_v33  ;;  %v11874_v4 = vld [vmem:[%s14326_s5 + $0x5f0] sm:$0xff]  ;;  %v11835_v34 = vld [vmem:[%s14326_s5 + $0x4b8] sm:$0xff] }
 0x831   : > { %v8442_v18 = vadd.f32 %v14111_v39, %v8441_v11  ;;  %v11876_v13 = vld [vmem:[%s14326_s5 + $0x600] sm:$0xff]  ;;  %v11865_v61 = vld [vmem:[%s14326_s5 + $0x5a8] sm:$0xff] }
 0x832   : > { %v8176_v1 = vmax.f32 %v8175_v51, 0.0  ;;  %v8260_v37 = vld [vmem:[#allocation4 + $0x82] sm:$0x1] }
 0x833   : > { %7267 = vmatpush.bf16.msra.mxu3 %v11768_v24  ;;  %v8443_v57 = vmax.f32 %v8442_v18, 0.0  ;;  %v7902_v18 = vld [vmem:[#allocation4 + $0x5b] sm:$0x1] }
 0x834   : > { %8068 = vmatpush.bf16.msra.mxu0 %v11840_v43  ;;  %8513 = vmatpush.bf16.msra.mxu1 %v11880_v6  ;;  %v8177_v59 = vpack.c.bf16 %v8176_v1, %v8176_v1  ;;  %v11873_v43 = vld [vmem:[%s14326_s5 + $0x5e8] sm:$0xff]  ;;  %v11800_v6 = vld [vmem:[%s14326_s5 + $0x3a0] sm:$0xff] }
 0x835   : > { %v8444_v24 = vpack.c.bf16 %v8443_v57, %v8443_v57  ;;  %v11832_v1 = vld [vmem:[%s14326_s5 + $0x4a0] sm:$0xff] }
 0x836   : > { %8251 = vmatmul.bf16.vlgmr.msrb.gmra.mxu2 %v8177_v59 }
 0x837   : > { %7268 = vmatpush.bf16.msra.mxu3 %v11767_v48 }
 0x838   : > { %8069 = vmatpush.bf16.msra.mxu0 %v11839_v21  ;;  %8514 = vmatpush.bf16.msra.mxu1 %v11879_v54  ;;  %v8346_v21 = vld [vmem:[#allocation4 + $0x76] sm:$0x1]  ;;  %v7552_v54 = vadd.f32 %v14111_v39, %v7551_v7 }
 0x839   : > { %v8348_v45 = vmax.f32 %v8346_v21, %v8347_v29  ;;  %v11863_v21 = vld [vmem:[%s14326_s5 + $0x598] sm:$0xff] }
 0x83a   : > { %v7553_v60 = vmax.f32 %v7552_v54, 0.0  ;;  %v8257_v29 = vld [vmem:[#allocation4 + $0x74] sm:$0x1] }
 0x83b   : > { %7269 = vmatpush.bf16.msra.mxu3 %v11766_v30  ;;  %v8352_v50 = vmax.f32 %v8348_v45, %v8351_v55  ;;  %v11868_v30 = vld [vmem:[%s14326_s5 + $0x5c0] sm:$0xff] }
 0x83c   : > { %8070 = vmatpush.bf16.msra.mxu0 %v11838_v53  ;;  %8515 = vmatpush.bf16.msra.mxu1 %v11878_v16  ;;  %v7554_v53 = vpack.c.bf16 %v7553_v60, %v7553_v60 }
 0x83d   : > { %v8353_v5 = vadd.f32 %v14111_v39, %v8352_v50 }
 0x83f   : > { %7270 = vmatpush.bf16.msra.mxu3 %v11765_v31  ;;  %v8354_v9 = vmax.f32 %v8353_v5, 0.0  ;;  %v11833_v31 = vld [vmem:[%s14326_s5 + $0x4a8] sm:$0xff] }
 0x840   : > { %8071 = vmatpush.bf16.msra.mxu0 %v11837_v46  ;;  %8516 = vmatpush.bf16.msra.mxu1 %v11877_v23  ;;  %v7904_v46 = vld [vmem:[#allocation4 + $0x68] sm:$0x1]  ;;  %v11831_v23 = vld [vmem:[%s14326_s5 + $0x498] sm:$0xff] }
 0x841   : > { %v8355_v26 = vpack.c.bf16 %v8354_v9, %v8354_v9 }
 0x843   : > { %7271 = vmatpush.bf16.msra.mxu3 %v11764_v35  ;;  %v7901_v35 = vld [vmem:[#allocation4 + $0x5a] sm:$0x1] }
 0x844   : > { %8072 = vmatpush.bf16.msra.mxu0 %v11836_v41  ;;  %8517 = vmatpush.bf16.msra.mxu1 %v11876_v13  ;;  %v14141_v48 = vpop.f32.mrf.mxu0  ;;  %v7906_v41 = vmax.f32 %v7904_v46, %v7905_v22 }
 0x846   : > { %7272 = vmatmul.bf16.vlgmr.msra.gmra.mxu3 %v7198_v32 }
 0x847   : > { %7620 = vmatpush.bf16.msrb.mxu3 %v11803_v14  ;;  %8073 = vmatmul.bf16.vlgmr.msra.gmra.mxu0 %v7999_v40  ;;  %v7903_v14 = vmax.f32 %v7901_v35, %v7902_v18  ;;  %v11829_v40 = vld [vmem:[%s14326_s5 + $0x488] sm:$0xff] }
 0x848   : > { %8421 = vmatpush.bf16.msrb.mxu0 %v11875_v62  ;;  %8518 = vmatmul.bf16.vlgmr.msra.gmra.mxu1 %v8444_v24 }
 0x849   : > { %v6412_v3 = vpop.f32.mrf.mxu3  ;;  %v7907_v33 = vmax.f32 %v7903_v14, %v7906_v41 }
 0x84b   : > { %7621 = vmatpush.bf16.msrb.mxu3 %v11802_v28  ;;  %v7908_v24 = vadd.f32 %v14111_v39, %v7907_v33 }
 0x84c   : > { %8422 = vmatpush.bf16.msrb.mxu0 %v11874_v4  ;;  %v6652_v15 = vpop.f32.mrf.mxu0 }
 0x84d   : > { %v11862_v15 = vld [vmem:[%s14326_s5 + $0x590] sm:$0xff] }
 0x84f   : > { %7622 = vmatpush.bf16.msrb.mxu3 %v11801_v42  ;;  %v11828_v42 = vld [vmem:[%s14326_s5 + $0x480] sm:$0xff] }
 0x850   : > { %8423 = vmatpush.bf16.msrb.mxu0 %v11873_v43 }
 0x851   : > { %v6414_v20 = vpop.f32.mrf.mxu3 }
 0x853   : > { %7623 = vmatpush.bf16.msrb.mxu3 %v11800_v6  ;;  %v11867_v6 = vld [vmem:[%s14326_s5 + $0x5b8] sm:$0xff] }
 0x854   : > { %8424 = vmatpush.bf16.msrb.mxu0 %v11872_v56  ;;  %v7909_v56 = vmax.f32 %v7908_v24, 0.0 }
 0x856   : > { %v7910_v19 = vpack.c.bf16 %v7909_v56, %v7909_v56 }
 0x857   : > { %7624 = vmatpush.bf16.msrb.mxu3 %v11799_v12 }
 0x858   : > { %8425 = vmatpush.bf16.msrb.mxu0 %v11871_v58  ;;  %v8261_v58 = vld [vmem:[#allocation4 + $0x83] sm:$0x1] }
 0x859   : > { %v6473_v51 = vpop.f32.mrf.mxu3  ;;  %v8262_v52 = vmax.f32 %v8260_v37, %v8261_v58 }
 0x85a   : > { %v6474_v38 = vadd.f32 %v6473_v51, %v6412_v3  ;;  %v8258_v3 = vld [vmem:[#allocation4 + $0x75] sm:$0x1] }
 0x85b   : > { %7625 = vmatpush.bf16.msrb.mxu3 %v11798_v17  ;;  %v14178_v16 = vpop.f32.mrf.mxu0  ;;  %v8259_v45 = vmax.f32 %v8257_v29, %v8258_v3  ;;  %v11886_v29 = vld [vmem:[%s14328_s7 + $0x10] sm:$0xff]  ;;  %v11885_v3 = vld [vmem:[%s14328_s7 + $0x8] sm:$0xff] }
 0x85c   : > { %8426 = vmatpush.bf16.msrb.mxu0 %v11870_v49 }
 0x85d   : > { %v8263_v7 = vmax.f32 %v8259_v45, %v8262_v52  ;;  %v11898_v52 = vld [vmem:[%s14330_s9 + $0x30] sm:$0xff]  ;;  %v11897_v45 = vld [vmem:[%s14330_s9 + $0x28] sm:$0xff] }
 0x85f   : > { %7626 = vmatpush.bf16.msrb.mxu3 %v11797_v8  ;;  %v8264_v5 = vadd.f32 %v14111_v39, %v8263_v7  ;;  %v11894_v7 = vld [vmem:[%s14330_s9 + $0x10] sm:$0xff] }
 0x860   : > { %8427 = vmatpush.bf16.msrb.mxu0 %v11869_v0  ;;  %v11861_v0 = vld [vmem:[%s14326_s5 + $0x588] sm:$0xff] }
 0x861   : > { %v6475_v11 = vpop.f32.mrf.mxu3 }
 0x863   : > { %7627 = vmatpush.bf16.msrb.mxu3 %v11796_v63  ;;  %v6830_v59 = vpop.f32.mrf.mxu0  ;;  %v14186_v36 = vpop.f32.mrf.mxu1  ;;  %v11860_v63 = vld [vmem:[%s14326_s5 + $0x580] sm:$0xff] }
 0x864   : > { %8428 = vmatpush.bf16.msrb.mxu0 %v11868_v30 }
 0x866   : > { %7628 = vmatmul.bf16.vlgmr.msrb.gmra.mxu3 %v7554_v53 }
 0x867   : > { %7976 = vmatpush.bf16.msra.mxu3 %v11835_v34  ;;  %8429 = vmatmul.bf16.vlgmr.msrb.gmra.mxu0 %v8355_v26  ;;  %v8265_v34 = vmax.f32 %v8264_v5, 0.0 }
 0x869   : > { %v6561_v62 = vpop.f32.mrf.mxu3  ;;  %v8266_v60 = vpack.c.bf16 %v8265_v34, %v8265_v34 }
 0x86a   : > { %v6565_v13 = vadd.f32 %v6561_v62, %v6474_v38  ;;  %v14194_v57 = vpop.f32.mrf.mxu2 }
 0x86b   : > { %7977 = vmatpush.bf16.msra.mxu3 %v11834_v27  ;;  %v7006_v32 = vpop.f32.mrf.mxu0  ;;  %v7097_v28 = vpop.f32.mrf.mxu1 }
 0x86c   : > { %v6654_v4 = vadd.f32 %v14141_v48, %v6565_v13  ;;  %v11866_v48 = vld [vmem:[%s14326_s5 + $0x5b0] sm:$0xff] }
 0x86f   : > { %7978 = vmatpush.bf16.msra.mxu3 %v11833_v31 }
 0x871   : > { %v6563_v43 = vpop.f32.mrf.mxu3 }
 0x872   : > { %v7186_v2 = vpop.f32.mrf.mxu2  ;;  %v11891_v43 = vld [vmem:[%s14328_s7 + $0x38] sm:$0xff] }
 0x873   : > { %7979 = vmatpush.bf16.msra.mxu3 %v11832_v1  ;;  %v7008_v47 = vpop.f32.mrf.mxu0  ;;  %8593 = vmatpush.bf16.msra.mxu2 %v11891_v43  ;;  %v11889_v2 = vld [vmem:[%s14328_s7 + $0x28] sm:$0xff] }
 0x874   : > { %v11888_v47 = vld [vmem:[%s14328_s7 + $0x20] sm:$0xff] }
 0x877   : > { %7980 = vmatpush.bf16.msra.mxu3 %v11831_v23 }
 0x87b   : > { %7981 = vmatpush.bf16.msra.mxu3 %v11830_v10  ;;  %v7451_v12 = vpop.f32.mrf.mxu1 }
 0x87f   : > { %7982 = vmatpush.bf16.msra.mxu3 %v11829_v40 }
 0x882   : > { %v7540_v55 = vpop.f32.mrf.mxu2 }
 0x883   : > { %7983 = vmatpush.bf16.msra.mxu3 %v11828_v42  ;;  %v7453_v17 = vpop.f32.mrf.mxu1 }
 0x884   : > { %v7362_v44 = vpop.f32.mrf.mxu0  ;;  %v11884_v17 = vld [vmem:[%s14328_s7] sm:$0xff] }
 0x886   : > { %7984 = vmatmul.bf16.vlgmr.msra.gmra.mxu3 %v7910_v19  ;;  %v11887_v19 = vld [vmem:[%s14328_s7 + $0x18] sm:$0xff] }
 0x887   : > { %8332 = vmatpush.bf16.msrb.mxu3 %v11867_v6  ;;  %v11890_v6 = vld [vmem:[%s14328_s7 + $0x30] sm:$0xff] }
 0x888   : > { %8594 = vmatpush.bf16.msra.mxu2 %v11890_v6 }
 0x889   : > { %v6739_v49 = vpop.f32.mrf.mxu3 }
 0x88a   : > { %v6743_v50 = vadd.f32 %v6739_v49, %v6654_v4  ;;  %v7542_v20 = vpop.f32.mrf.mxu2  ;;  %v11895_v49 = vld [vmem:[%s14330_s9 + $0x18] sm:$0xff] }
 0x88b   : > { %8333 = vmatpush.bf16.msrb.mxu3 %v11866_v48 }
 0x88c   : > { %v7364_v8 = vpop.f32.mrf.mxu0  ;;  %v6832_v54 = vadd.f32 %v14178_v16, %v6743_v50  ;;  %8595 = vmatpush.bf16.msra.mxu2 %v11889_v2 }
 0x88f   : > { %8334 = vmatpush.bf16.msrb.mxu3 %v11865_v61 }
 0x890   : > { %8596 = vmatpush.bf16.msra.mxu2 %v11888_v47 }
 0x891   : > { %v6741_v30 = vpop.f32.mrf.mxu3 }
 0x893   : > { %8335 = vmatpush.bf16.msrb.mxu3 %v11864_v25  ;;  %v7807_v9 = vpop.f32.mrf.mxu1 }
 0x894   : > { %8597 = vmatpush.bf16.msra.mxu2 %v11887_v19 }
 0x897   : > { %8336 = vmatpush.bf16.msrb.mxu3 %v11863_v21 }
 0x898   : > { %8598 = vmatpush.bf16.msra.mxu2 %v11886_v29 }
 0x89a   : > { %v7896_v53 = vpop.f32.mrf.mxu2 }
 0x89b   : > { %8337 = vmatpush.bf16.msrb.mxu3 %v11862_v15  ;;  %v7809_v27 = vpop.f32.mrf.mxu1  ;;  %v11896_v15 = vld [vmem:[%s14330_s9 + $0x20] sm:$0xff] }
 0x89c   : > { %8599 = vmatpush.bf16.msra.mxu2 %v11885_v3 }
 0x89f   : > { %8338 = vmatpush.bf16.msrb.mxu3 %v11861_v0 }
 0x8a0   : > { %8600 = vmatpush.bf16.msra.mxu2 %v11884_v17 }
 0x8a2   : > { %v7898_v26 = vpop.f32.mrf.mxu2 }
 0x8a3   : > { %8339 = vmatpush.bf16.msrb.mxu3 %v11860_v63 }
 0x8a4   : > { %v7718_v51 = vpop.f32.mrf.mxu0 }
 0x8a6   : > { %8340 = vmatmul.bf16.vlgmr.msrb.gmra.mxu3 %v8266_v60  ;;  %v11893_v60 = vld [vmem:[%s14330_s9 + $0x8] sm:$0xff] }
 0x8a9   : > { %v6917_v38 = vpop.f32.mrf.mxu3 }
 0x8aa   : > { %v6921_v16 = vadd.f32 %v6917_v38, %v6832_v54  ;;  %v8524_v54 = vld [vmem:[%s14327_s6] sm:$0x1] }
 0x8ab   : > { %v8163_v22 = vpop.f32.mrf.mxu1 }
 0x8ac   : > { %v7010_v31 = vadd.f32 %v7006_v32, %v6921_v16  ;;  %v7720_v1 = vpop.f32.mrf.mxu0 }
 0x8ae   : > { %v7099_v39 = vadd.f32 %v14186_v36, %v7010_v31  ;;  %v8624_v31 = vld [vmem:[%s14331_s10] sm:$0x1] }
 0x8b0   : > { %v7188_v11 = vadd.f32 %v14194_v57, %v7099_v39 }
 0x8b1   : > { %v6919_v46 = vpop.f32.mrf.mxu3 }
 0x8b3   : > { %v8165_v59 = vpop.f32.mrf.mxu1 }
 0x8b9   : > { %v8252_v23 = vpop.f32.mrf.mxu2 }
 0x8c1   : > { %v8254_v10 = vpop.f32.mrf.mxu2 }
 0x8c4   : > { %v8074_v35 = vpop.f32.mrf.mxu0 }
 0x8c5   : > { %v8519_v18 = vpop.f32.mrf.mxu1 }
 0x8c9   : > { %v7273_v41 = vpop.f32.mrf.mxu3 }
 0x8ca   : > { %v7277_v14 = vadd.f32 %v7273_v41, %v7188_v11 }
 0x8cc   : > { %v7366_v62 = vadd.f32 %v7362_v44, %v7277_v14  ;;  %v8076_v33 = vpop.f32.mrf.mxu0 }
 0x8cd   : > { %v8521_v13 = vpop.f32.mrf.mxu1 }
 0x8ce   : > { %v7455_v28 = vadd.f32 %v7451_v12, %v7366_v62 }
 0x8d0   : > { %v7544_v40 = vadd.f32 %v7540_v55, %v7455_v28  ;;  %v11899_v55 = vld [vmem:[%s14330_s9 + $0x38] sm:$0xff] }
 0x8d1   : > { %v7275_v32 = vpop.f32.mrf.mxu3  ;;  %8673 = vmatpush.bf16.msra.mxu3 %v11899_v55 }
 0x8d5   : > { %8674 = vmatpush.bf16.msra.mxu3 %v11898_v52 }
 0x8d9   : > { %8675 = vmatpush.bf16.msra.mxu3 %v11897_v45 }
 0x8dd   : > { %8676 = vmatpush.bf16.msra.mxu3 %v11896_v15 }
 0x8e1   : > { %8677 = vmatpush.bf16.msra.mxu3 %v11895_v49 }
 0x8e4   : > { %v8430_v4 = vpop.f32.mrf.mxu0 }
 0x8e5   : > { %8678 = vmatpush.bf16.msra.mxu3 %v11894_v7 }
 0x8e9   : > { %v7629_v24 = vpop.f32.mrf.mxu3  ;;  %8679 = vmatpush.bf16.msra.mxu3 %v11893_v60 }
 0x8ea   : > { %v7633_v36 = vadd.f32 %v7629_v24, %v7544_v40 }
 0x8ec   : > { %v7722_v42 = vadd.f32 %v7718_v51, %v7633_v36  ;;  %v8432_v57 = vpop.f32.mrf.mxu0 }
 0x8ee   : > { %v7811_v48 = vadd.f32 %v7807_v9, %v7722_v42  ;;  %v11892_v9 = vld [vmem:[%s14330_s9] sm:$0xff] }
 0x8ef   : > { %8680 = vmatpush.bf16.msra.mxu3 %v11892_v9 }
 0x8f0   : > { %v7900_v61 = vadd.f32 %v7896_v53, %v7811_v48  ;;  %v8544_v53 = vld [vmem:[%s14329_s8] sm:$0x1] }
 0x8f1   : > { %v7631_v56 = vpop.f32.mrf.mxu3 }
 0x909   : > { %v7985_v12 = vpop.f32.mrf.mxu3 }
 0x90a   : > { %v7989_v25 = vadd.f32 %v7985_v12, %v7900_v61 }
 0x90c   : > { %v8078_v37 = vadd.f32 %v8074_v35, %v7989_v25 }
 0x90e   : > { %v8167_v58 = vadd.f32 %v8163_v22, %v8078_v37 }
 0x910   : > { %v8256_v44 = vadd.f32 %v8252_v23, %v8167_v58 }
 0x911   : > { %v7987_v21 = vpop.f32.mrf.mxu3 }
 0x929   : > { %v8341_v50 = vpop.f32.mrf.mxu3 }
 0x92a   : > { %v8345_v8 = vadd.f32 %v8341_v50, %v8256_v44 }
 0x92c   : > { %v8434_v0 = vadd.f32 %v8430_v4, %v8345_v8 }
 0x92e   : > { %v8523_v20 = vadd.f32 %v8519_v18, %v8434_v0 }
 0x930   : > { %v8525_v5 = vadd.f32 %v8524_v54, %v8523_v20 }
 0x931   : > { %v8343_v63 = vpop.f32.mrf.mxu3 }
 0x932   : > { %v8526_v30 = vmax.f32 %v8525_v5, 0.0 }
 0x934   : > { %v8527_v34 = vpack.c.bf16 %v8526_v30, %v8526_v30 }
 0x936   : > { %8601 = vmatmul.bf16.vlgmr.msra.gmra.mxu2 %v8527_v34 }
 0x9b9   : > { %v8602_v27 = vpop.f32.mrf.mxu2 }
 0x9ba   : > { %v8603_v51 = vadd.f32 %v8602_v27, %v8544_v53 }
 0x9bc   : > { %v8606_v26 = vmax.f32 %v8603_v51, 0.0 }
 0x9be   : > { %v8607_v38 = vpack.c.bf16 %v8606_v26, %v8606_v26 }
 0x9c0   : > { %8681 = vmatmul.bf16.vlgmr.msra.gmra.mxu3 %v8607_v38 }
 0x9c1   : > { %v8604_v16 = vpop.f32.mrf.mxu2 }
 0xa43   : > { %v8682_v1 = vpop.f32.mrf.mxu3 }
 0xa44   : > { %v8683_v39 = vadd.f32 %v8682_v1, %v8624_v31 }
 0xa46   : > { %8686 = vst [vmem:[%s378_s16] sm:$0x1] %v8683_v39 }
 0xa47   : > { %11977 = shalt.err (!%p11974_p3)
}
 0xa48   : > { %11901 = dma.vmem_to_hbm [thread:$0]  (%p12112_p5), %s8699_s22, 16, %s8701_s24, %s8688_s25  }
 0xa4b   : > { %v8684_v11 = vpop.f32.mrf.mxu3 }
 0xa4c PF: > { %p11907_p4 = scmp.ge.s32.totalorder %s12012_s20, 2  ;;  %s8712_s30 = sand.u32 1, %s12000_s17  }
 0xa4d   : > { %s8713_s14 = scalar_lea.sflag [#allocation6], %s8712_s30 }
 0xa4e   : > { %p11904_p7 = pnand %p11907_p4, %p12116_p6 }
 0xa50   : > { %p11905_p8 = pneg %p11904_p7 }
 0xa52   : > { %11995 = dma.done.wait (%p11905_p8), %s8713_s14, 16  }
 0xa53   : > { %11997 = vsyncadd (%p11905_p8), %s8713_s14, 4294967280  ;;  %s14380_s0 = sld [smem:[#allocation8_spill]]  ;;  %p21_p9 = scmp.ge.s32.totalorder %s12099_s23, 4  }
 0xa54   : > { %s14381_s17 = smov %s12004_s18  ;;  %s14382_s18 = smov %s12008_s19 }
 0xa55   : > { %s14384_s20 = smov %s12099_s23  ;;  %23 = sbr.rel (!%p21_p9) target bundleno = 5 (0x5), region = 147 }
 0xa59   : > { %s14383_s19 = smov %s14380_s0 }
 0xa5a   :  { %8718 = vsyncpa [#allocation6], 1 }
 0xa5b   :  { %8720 = vsyncpa [#allocation6 + $0x1], 1 }

</bundles_post_ra>
